<compile_context>
chip_gen: v7x
topology: tpu7x:2x2x1
jax: 0.10.0
libtpu: 0.0.40
codegen_flags: <defaults>
</compile_context>

<pallas_src>
import jax
import jax.numpy as jnp
from jax.experimental import pallas as pl
from jax.experimental.pallas import tpu as pltpu

BN_EPS = 1e-5

# Rows (N*H*W) per grid step for the row-tiled passes (memory-bound; large
# tiles amortize the ~0.35us/step overhead).  TODO(synk): derive from VMEM
# budget per generation for very wide channel counts.
ROW_TILE = 1024

# Explicit scoped-VMEM budget: above v5e/v6e's default scoped limit, below
# v7x's 64 MiB physical per-TensorCore.
VMEM_LIMIT_BYTES = 48 * 1024 * 1024


def _cparams(semantics):
    return pltpu.CompilerParams(dimension_semantics=semantics,
                                vmem_limit_bytes=VMEM_LIMIT_BYTES)


def _row_tile(r, target):
    """Row tile: full extent if it fits, else a 16-aligned tile (bf16 blocks).

    The tile does NOT need to divide r: grids use pl.cdiv and the kernels mask
    the padded tail rows when accumulating statistics (OOB stores are dropped).
    """
    if r <= target:
        return r
    return max(16, (target // 16) * 16)


# ----------------------------------------------------------------------------
# Pass 1 (runs once per block, on x0 only): per-channel sum / sum-of-squares.
# Per-tile partials -> fully "parallel" grid; reduced in XLA glue.
# ----------------------------------------------------------------------------
def _make_stats_kernel(tr, r, c):
    def kernel(x_ref, sum_ref, sq_ref):
        row0 = pl.program_id(0) * tr
        ridx = jax.lax.broadcasted_iota(jnp.int32, (tr, 1), 0)
        x = x_ref[...].astype(jnp.float32)
        x = jnp.where(row0 + ridx < r, x, 0.0)          # mask padded tail rows
        sum_ref[...] = jnp.sum(x, axis=0).reshape(1, 1, c)
        sq_ref[...] = jnp.sum(x * x, axis=0).reshape(1, 1, c)
    return kernel


def _channel_stats(x, row_tile):
    r, c = x.shape
    tr = _row_tile(r, row_tile)
    t = pl.cdiv(r, tr)
    psum, psq = pl.pallas_call(
        _make_stats_kernel(tr, r, c),
        grid=(t,),
        in_specs=[pl.BlockSpec((tr, c), lambda i: (i, 0))],
        out_specs=[pl.BlockSpec((1, 1, c), lambda i: (i, 0, 0)),
                   pl.BlockSpec((1, 1, c), lambda i: (i, 0, 0))],
        out_shape=[jax.ShapeDtypeStruct((t, 1, c), jnp.float32)] * 2,
        compiler_params=_cparams(("parallel",)),
    )(x)
    return jnp.sum(psum, axis=0), jnp.sum(psq, axis=0)   # (1, c) each


# ----------------------------------------------------------------------------
# Pass A: folded BN1 + ReLU + 1x1 conv over all feature groups (per-group
# K-accumulated MXU matmuls, bf16 operands / f32 accumulation), y stored bf16,
# per-tile BN2 partial statistics (fully "parallel" grid).
# ----------------------------------------------------------------------------
def _make_bottleneck_kernel(ng, tr, r, cmid):
    def kernel(*refs):
        xs = refs[0:ng]
        ss = refs[ng:2 * ng]
        ts = refs[2 * ng:3 * ng]
        ws = refs[3 * ng:4 * ng]
        y_ref, ysum_ref, ysq_ref = refs[4 * ng:4 * ng + 3]

        acc = jnp.zeros((tr, cmid), jnp.float32)
        for g in range(ng):                               # static unroll
            hg = jnp.maximum(
                xs[g][...].astype(jnp.float32) * ss[g][...] + ts[g][...], 0.0)
            acc += jnp.dot(hg.astype(jnp.bfloat16), ws[g][...],
                           preferred_element_type=jnp.float32)

        yb = acc.astype(jnp.bfloat16)
        y_ref[...] = yb                                   # OOB tail rows dropped

        # BN2 partial statistics of the bf16-rounded y (masked tail rows).
        row0 = pl.program_id(0) * tr
        ridx = jax.lax.broadcasted_iota(jnp.int32, (tr, 1), 0)
        yf = jnp.where(row0 + ridx < r, yb.astype(jnp.float32), 0.0)
        ysum_ref[...] = jnp.sum(yf, axis=0).reshape(1, 1, cmid)
        ysq_ref[...] = jnp.sum(yf * yf, axis=0).reshape(1, 1, cmid)
    return kernel


# ----------------------------------------------------------------------------
# Pass B: fused BN2 + ReLU + kw-fold (built once per image in VMEM with zero
# halo) + 3x3 conv as three K=3*Cmid matmuls.  Writes only the G new channels
# plus their per-image BN statistics (used as BN1 stats by the next layer).
# ----------------------------------------------------------------------------
def _make_conv3x3_kernel(hh, ww, cmid, growth):
    def kernel(y_ref, s2_ref, t2_ref, w2_ref, new_ref, nsum_ref, nsq_ref,
               shift_ref):
        # BN2 + ReLU in f32 for one image.
        h2 = jnp.maximum(
            y_ref[0].astype(jnp.float32) * s2_ref[...] + t2_ref[...], 0.0)

        # kw-fold built ONCE: shift[a, w, kw*Cmid:(kw+1)*Cmid] = h2pad[a, w+kw]
        # (h2pad = h2 with a 1-pixel zero halo).  Only the two halo rows are
        # written each step; the interior is one aligned full-width store.
        zrow = jnp.zeros((1, ww, 3 * cmid), jnp.bfloat16)
        shift_ref[0:1] = zrow
        shift_ref[hh + 1:hh + 2] = zrow
        zcol = jnp.zeros((hh, 1, cmid), jnp.float32)
        interior = jnp.concatenate(
            [jnp.concatenate([zcol, h2[:, :ww - 1, :]], axis=1),   # kw = 0
             h2,                                                   # kw = 1
             jnp.concatenate([h2[:, 1:, :], zcol], axis=1)],       # kw = 2
            axis=-1)
        shift_ref[1:hh + 1] = interior.astype(jnp.bfloat16)

        acc = jnp.zeros((hh * ww, growth), jnp.float32)
        for kh in range(3):                                # static unroll
            win = shift_ref[kh:kh + hh].reshape(hh * ww, 3 * cmid)
            acc = acc + jnp.dot(win, w2_ref[kh],
                                preferred_element_type=jnp.float32)

        nb = acc.astype(jnp.bfloat16)
        new_ref[0] = nb
        # Per-image stats of the new features (BN1 of the next layer); summed
        # across images in the XLA glue -> no extra HBM stats pass.
        nf = nb.astype(jnp.float32)
        nsum_ref[...] = jnp.sum(nf, axis=0).reshape(1, 1, growth)
        nsq_ref[...] = jnp.sum(nf * nf, axis=0).reshape(1, 1, growth)
    return kernel


# ----------------------------------------------------------------------------
# One DenseLayer over the current list of feature groups (oldest first).
# Returns (new_features (r, G) bf16, (sum, sumsq) of the new features).
# ----------------------------------------------------------------------------
def _dense_layer(groups, stats, n, h, w, p, row_tile):
    r = n * h * w
    widths = [g.shape[1] for g in groups]
    c_in = sum(widths)
    # Channel offset of each group inside the layer input, whose channel order
    # (per the PyTorch module) is cat([new_{L-1}, ..., new_1, x0]).
    offsets = [sum(widths[j + 1:]) for j in range(len(groups))]
    cmid = p["w1"].shape[1]
    growth = p["w2"].shape[-1]
    ng = len(groups)
    assert p["w1"].shape[0] == c_in

    # Tiny per-channel XLA glue: fold BN1 into per-group scale/shift + slices.
    s1s, t1s, w1s = [], [], []
    for (gsum, gsq), off, cw in zip(stats, offsets, widths):
        mean = gsum / r
        var = jnp.maximum(gsq / r - mean * mean, 0.0)   # biased (train) var
        g1 = p["g1"][:, off:off + cw]
        b1 = p["b1"][:, off:off + cw]
        s1 = g1 * jax.lax.rsqrt(var + BN_EPS)
        s1s.append(s1)
        t1s.append(b1 - mean * s1)
        w1s.append(p["w1"][off:off + cw, :].astype(jnp.bfloat16))

    tr = _row_tile(r, row_tile)
    t = pl.cdiv(r, tr)

    # ---- Pass A: BN1 + ReLU + 1x1 conv, per-tile BN2 partial stats. ----
    x_specs = [pl.BlockSpec((tr, cw), lambda i: (i, 0)) for cw in widths]
    vec_specs = [pl.BlockSpec((1, cw), lambda i: (0, 0)) for cw in widths]
    w_specs = [pl.BlockSpec((cw, cmid), lambda i: (0, 0)) for cw in widths]
    y, ypsum, ypsq = pl.pallas_call(
        _make_bottleneck_kernel(ng, tr, r, cmid),
        grid=(t,),
        in_specs=x_specs + vec_specs + vec_specs + w_specs,
        out_specs=[pl.BlockSpec((tr, cmid), lambda i: (i, 0)),
                   pl.BlockSpec((1, 1, cmid), lambda i: (i, 0, 0)),
                   pl.BlockSpec((1, 1, cmid), lambda i: (i, 0, 0))],
        out_shape=[jax.ShapeDtypeStruct((r, cmid), jnp.bfloat16),
                   jax.ShapeDtypeStruct((t, 1, cmid), jnp.float32),
                   jax.ShapeDtypeStruct((t, 1, cmid), jnp.float32)],
        compiler_params=_cparams(("parallel",)),
    )(*groups, *s1s, *t1s, *w1s)

    mean2 = jnp.sum(ypsum, axis=0) / r
    var2 = jnp.maximum(jnp.sum(ypsq, axis=0) / r - mean2 * mean2, 0.0)
    s2 = p["g2"] * jax.lax.rsqrt(var2 + BN_EPS)
    t2 = p["b2"] - mean2 * s2

    # 3x3 weights with kw folded into K: layout [kh, (kw, cin), cout].
    w2b = p["w2"].reshape(3, 3 * cmid, growth).astype(jnp.bfloat16)

    # ---- Pass B: BN2 + ReLU + halo/kw-fold + 3x3 conv + new-feature stats. ----
    new, npsum, npsq = pl.pallas_call(
        _make_conv3x3_kernel(h, w, cmid, growth),
        grid=(n,),
        in_specs=[pl.BlockSpec((1, h, w, cmid), lambda i: (i, 0, 0, 0)),
                  pl.BlockSpec((1, cmid), lambda i: (0, 0)),
                  pl.BlockSpec((1, cmid), lambda i: (0, 0)),
                  pl.BlockSpec((3, 3 * cmid, growth), lambda i: (0, 0, 0))],
        out_specs=[pl.BlockSpec((1, h * w, growth), lambda i: (i, 0, 0)),
                   pl.BlockSpec((1, 1, growth), lambda i: (i, 0, 0)),
                   pl.BlockSpec((1, 1, growth), lambda i: (i, 0, 0))],
        out_shape=[jax.ShapeDtypeStruct((n, h * w, growth), jnp.bfloat16),
                   jax.ShapeDtypeStruct((n, 1, growth), jnp.float32),
                   jax.ShapeDtypeStruct((n, 1, growth), jnp.float32)],
        scratch_shapes=[pltpu.VMEM((h + 2, w, 3 * cmid), jnp.bfloat16)],
        compiler_params=_cparams(("parallel",)),   # independent images -> 2 TCs on v7x
    )(y.reshape(n, h, w, cmid), s2, t2, w2b)

    new_stats = (jnp.sum(npsum, axis=0), jnp.sum(npsq, axis=0))
    return new.reshape(r, growth), new_stats


def dense_block_forward(x_nchw, params, *, row_tile=ROW_TILE):
    """DenseBlock forward. Input/output in NCHW (PyTorch convention)."""
    n, c, h, w = x_nchw.shape
    r = n * h * w
    # Channels-last rows; features stored bf16 internally (halved HBM traffic),
    # BN statistics and matmul accumulation stay f32.
    x0 = jnp.transpose(x_nchw, (0, 2, 3, 1)).reshape(r, c).astype(jnp.bfloat16)
    groups = [x0]
    stats = [_channel_stats(x0, row_tile)]
    for p in params:
        new, new_stats = _dense_layer(groups, stats, n, h, w, p, row_tile)
        groups.append(new)
        stats.append(new_stats)
    # Single concat at block exit, in the PyTorch order [new_L, ..., new_1, x0].
    feat = jnp.concatenate(list(reversed(groups)), axis=-1).astype(jnp.float32)
    c_out = feat.shape[-1]
    return jnp.transpose(feat.reshape(n, h, w, c_out), (0, 3, 1, 2))


# ----------------------------------------------------------------------------
# Deterministic parameter init (shapes follow the PyTorch module __init__).
# ----------------------------------------------------------------------------
def init_params(key, c_in, num_layers, bn_size, growth_rate):
    params = []
    c = c_in
    cmid = bn_size * growth_rate
    for _ in range(num_layers):
        key, k1, k2, k3, k4, k5, k6 = jax.random.split(key, 7)
        params.append({
            "g1": 1.0 + 0.1 * jax.random.normal(k1, (1, c), jnp.float32),
            "b1": 0.1 * jax.random.normal(k2, (1, c), jnp.float32),
            # torch Conv2d weight (cmid, c, 1, 1) stored transposed as (c, cmid)
            "w1": jax.random.normal(k3, (c, cmid), jnp.float32) / jnp.sqrt(c),
            "g2": 1.0 + 0.1 * jax.random.normal(k4, (1, cmid), jnp.float32),
            "b2": 0.1 * jax.random.normal(k5, (1, cmid), jnp.float32),
            # torch Conv2d weight (growth, cmid, 3, 3) stored HWIO (3,3,cmid,growth)
            "w2": jax.random.normal(k6, (3, 3, cmid, growth_rate), jnp.float32)
                  / jnp.sqrt(9 * cmid),
        })
        c += growth_rate
    return params


# ----------------------------------------------------------------------------
# Pure-JAX reference.  match_kernel=True mirrors the kernel's bf16 storage /
# bf16 MXU operands / f32 accumulation so the check can be tight.
# ----------------------------------------------------------------------------
def _ref_dense_block(x_nchw, params, *, match_kernel):
    cast = (lambda a: a.astype(jnp.bfloat16)) if match_kernel else (lambda a: a)
    rnd = ((lambda a: a.astype(jnp.bfloat16).astype(jnp.float32))
           if match_kernel else (lambda a: a))
    x = rnd(jnp.transpose(x_nchw, (0, 2, 3, 1)))
    for p in params:
        mu = jnp.mean(x, axis=(0, 1, 2))
        var = jnp.mean((x - mu) ** 2, axis=(0, 1, 2))
        h1 = jnp.maximum((x - mu) * jax.lax.rsqrt(var + BN_EPS) * p["g1"][0]
                         + p["b1"][0], 0.0)
        y = jnp.einsum("nhwc,cm->nhwm", cast(h1), cast(p["w1"]),
                       preferred_element_type=jnp.float32)
        y = rnd(y)
        mu2 = jnp.mean(y, axis=(0, 1, 2))
        var2 = jnp.mean((y - mu2) ** 2, axis=(0, 1, 2))
        h2 = jnp.maximum((y - mu2) * jax.lax.rsqrt(var2 + BN_EPS) * p["g2"][0]
                         + p["b2"][0], 0.0)
        new = jax.lax.conv_general_dilated(
            cast(h2), cast(p["w2"]), window_strides=(1, 1), padding="SAME",
            dimension_numbers=("NHWC", "HWIO", "NHWC"),
            preferred_element_type=jnp.float32)
        new = rnd(new)
        x = jnp.concatenate([new, x], axis=-1)
    return jnp.transpose(x, (0, 3, 1, 2))


if __name__ == "__main__":
    # Small shapes: batch=2, c_in=4, spatial=16, num_layers=2, bn_size=2, growth=4
    batch, c_in, spatial = 2, 4, 16
    num_layers, bn_size, growth_rate = 2, 2, 4

    key = jax.random.PRNGKey(0)
    kx, kp = jax.random.split(key)
    x = jax.random.normal(kx, (batch, c_in, spatial, spatial), jnp.float32)  # NCHW
    params = init_params(kp, c_in, num_layers, bn_size, growth_rate)

    fwd = jax.jit(dense_block_forward, static_argnames=("row_tile",))
    out = jax.block_until_ready(fwd(x, params))

    expected_c = c_in + num_layers * growth_rate
    assert out.shape == (batch, expected_c, spatial, spatial), out.shape

    # Tight check vs a reference that mirrors the kernel's bf16 rounding points.
    ref_match = jax.block_until_ready(
        _ref_dense_block(x, params, match_kernel=True))
    err = float(jnp.max(jnp.abs(out - ref_match)))
    assert err < 2e-2, f"mismatch vs bf16-matched reference: {err}"

    # Loose sanity check vs the pure-f32 reference (bf16 storage adds noise).
    ref_f32 = jax.block_until_ready(
        _ref_dense_block(x, params, match_kernel=False))
    err32 = float(jnp.max(jnp.abs(out - ref_f32)))
    assert err32 < 1.5e-1, f"mismatch vs f32 reference: {err32}"

    # Exercise the cdiv row grid + masked-tail path (tile does not divide N*H*W).
    out_tail = jax.block_until_ready(fwd(x, params, row_tile=208))
    err_tail = float(jnp.max(jnp.abs(out_tail - ref_match)))
    assert err_tail < 2e-2, f"masked-tail path mismatch: {err_tail}"

    print("KERNEL_OK")
</pallas_src>

<mosaic_0001>
module attributes {stable_mosaic.version = 11 : i64} {
  func.func @kernel(%arg0: i32, %arg1: memref<512x4xbf16, #tpu.memory_space<vmem>>, %arg2: memref<1x1x4xf32, #tpu.memory_space<vmem>>, %arg3: memref<1x1x4xf32, #tpu.memory_space<vmem>>) attributes {dimension_semantics = [#tpu.dimension_semantics<parallel>], iteration_bounds = array<i64: 1>, scalar_prefetch = 0 : i64, scratch_operands = 0 : i64, tpu.core_type = #tpu.core_type<tc>, window_params = [{transform_indices = @transform_0, window_bounds = array<i64: 512, 4>}, {transform_indices = @transform_1, window_bounds = array<i64: 1, 1, 4>}, {transform_indices = @transform_2, window_bounds = array<i64: 1, 1, 4>}]} {
    %c512_i32 = arith.constant 512 : i32
    %0 = arith.muli %arg0, %c512_i32 : i32
    %1 = tpu.iota {dimensions = array<i32: 0>} : vector<512x1xi32>
    %c0 = arith.constant 0 : index
    %c0_0 = arith.constant 0 : index
    %2 = vector.load %arg1[%c0, %c0_0] : memref<512x4xbf16, #tpu.memory_space<vmem>>, vector<512x4xbf16>
    %3 = arith.extf %2 : vector<512x4xbf16> to vector<512x4xf32>
    %4 = vector.broadcast %0 : i32 to vector<512x1xi32>
    %5 = arith.addi %4, %1 : vector<512x1xi32>
    %c512_i32_1 = arith.constant 512 : i32
    %6 = vector.broadcast %c512_i32_1 : i32 to vector<512x1xi32>
    %7 = arith.cmpi slt, %5, %6 : vector<512x1xi32>
    %cst = arith.constant 0.000000e+00 : f32
    %8 = vector.shape_cast %7 : vector<512x1xi1> to vector<512x1xi1>
    %9 = vector.broadcast %8 : vector<512x1xi1> to vector<512x4xi1>
    %10 = vector.broadcast %cst : f32 to vector<512x4xf32>
    %11 = arith.select %9, %3, %10 : vector<512x4xi1>, vector<512x4xf32>
    %cst_2 = arith.constant dense<0.000000e+00> : vector<4xf32>
    %12 = vector.multi_reduction <add>, %11, %cst_2 [0] : vector<512x4xf32> to vector<4xf32>
    %13 = vector.shape_cast %12 : vector<4xf32> to vector<1x1x4xf32>
    %c0_3 = arith.constant 0 : index
    %c0_4 = arith.constant 0 : index
    %c0_5 = arith.constant 0 : index
    %14 = vector.load %arg2[%c0_3, %c0_4, %c0_5] : memref<1x1x4xf32, #tpu.memory_space<vmem>>, vector<1x1x4xf32>
    tpu.vector_store %arg2[%c0_3, %c0_4, %c0_5], %13 {strides = array<i32>} : memref<1x1x4xf32, #tpu.memory_space<vmem>>, vector<1x1x4xf32>,
    %15 = arith.mulf %11, %11 : vector<512x4xf32>
    %cst_6 = arith.constant dense<0.000000e+00> : vector<4xf32>
    %16 = vector.multi_reduction <add>, %15, %cst_6 [0] : vector<512x4xf32> to vector<4xf32>
    %17 = vector.shape_cast %16 : vector<4xf32> to vector<1x1x4xf32>
    %c0_7 = arith.constant 0 : index
    %c0_8 = arith.constant 0 : index
    %c0_9 = arith.constant 0 : index
    %18 = vector.load %arg3[%c0_7, %c0_8, %c0_9] : memref<1x1x4xf32, #tpu.memory_space<vmem>>, vector<1x1x4xf32>
    tpu.vector_store %arg3[%c0_7, %c0_8, %c0_9], %17 {strides = array<i32>} : memref<1x1x4xf32, #tpu.memory_space<vmem>>, vector<1x1x4xf32>,
    return
  }
  func.func @transform_0(%arg0: i32) -> (i32, i32) {
    %c0_i32 = arith.constant 0 : i32
    %c0_i32_0 = arith.constant 0 : i32
    return %arg0, %c0_i32 : i32, i32
  }
  func.func @transform_1(%arg0: i32) -> (i32, i32, i32) {
    %c0_i32 = arith.constant 0 : i32
    %c0_i32_0 = arith.constant 0 : i32
    %c0_i32_1 = arith.constant 0 : i32
    return %arg0, %c0_i32, %c0_i32_0 : i32, i32, i32
  }
  func.func @transform_2(%arg0: i32) -> (i32, i32, i32) {
    %c0_i32 = arith.constant 0 : i32
    %c0_i32_0 = arith.constant 0 : i32
    %c0_i32_1 = arith.constant 0 : i32
    return %arg0, %c0_i32, %c0_i32_0 : i32, i32, i32
  }
}

module attributes {stable_mosaic.version = 11 : i64} {
  func.func @kernel(%arg0: i32, %arg1: memref<512x4xbf16, #tpu.memory_space<vmem>>, %arg2: memref<1x4xf32, #tpu.memory_space<vmem>>, %arg3: memref<1x4xf32, #tpu.memory_space<vmem>>, %arg4: memref<4x8xbf16, #tpu.memory_space<vmem>>, %arg5: memref<512x8xbf16, #tpu.memory_space<vmem>>, %arg6: memref<1x1x8xf32, #tpu.memory_space<vmem>>, %arg7: memref<1x1x8xf32, #tpu.memory_space<vmem>>) attributes {dimension_semantics = [#tpu.dimension_semantics<parallel>], iteration_bounds = array<i64: 1>, scalar_prefetch = 0 : i64, scratch_operands = 0 : i64, tpu.core_type = #tpu.core_type<tc>, window_params = [{transform_indices = @transform_0, window_bounds = array<i64: 512, 4>}, {pipeline_mode = #tpu.pipeline_mode<synchronous>, transform_indices = @transform_1, window_bounds = array<i64: 1, 4>}, {pipeline_mode = #tpu.pipeline_mode<synchronous>, transform_indices = @transform_2, window_bounds = array<i64: 1, 4>}, {pipeline_mode = #tpu.pipeline_mode<synchronous>, transform_indices = @transform_3, window_bounds = array<i64: 4, 8>}, {transform_indices = @transform_4, window_bounds = array<i64: 512, 8>}, {transform_indices = @transform_5, window_bounds = array<i64: 1, 1, 8>}, {transform_indices = @transform_6, window_bounds = array<i64: 1, 1, 8>}]} {
    %cst = arith.constant 0.000000e+00 : f32
    %0 = vector.broadcast %cst : f32 to vector<512x8xf32>
    %c0 = arith.constant 0 : index
    %c0_0 = arith.constant 0 : index
    %1 = vector.load %arg1[%c0, %c0_0] : memref<512x4xbf16, #tpu.memory_space<vmem>>, vector<512x4xbf16>
    %2 = arith.extf %1 : vector<512x4xbf16> to vector<512x4xf32>
    %c0_1 = arith.constant 0 : index
    %c0_2 = arith.constant 0 : index
    %3 = vector.load %arg2[%c0_1, %c0_2] : memref<1x4xf32, #tpu.memory_space<vmem>>, vector<1x4xf32>
    %4 = vector.broadcast %3 : vector<1x4xf32> to vector<512x4xf32>
    %5 = arith.mulf %2, %4 : vector<512x4xf32>
    %c0_3 = arith.constant 0 : index
    %c0_4 = arith.constant 0 : index
    %6 = vector.load %arg3[%c0_3, %c0_4] : memref<1x4xf32, #tpu.memory_space<vmem>>, vector<1x4xf32>
    %7 = vector.broadcast %6 : vector<1x4xf32> to vector<512x4xf32>
    %8 = arith.addf %5, %7 : vector<512x4xf32>
    %cst_5 = arith.constant 0.000000e+00 : f32
    %9 = vector.broadcast %cst_5 : f32 to vector<512x4xf32>
    %10 = arith.maximumf %8, %9 : vector<512x4xf32>
    %11 = arith.truncf %10 : vector<512x4xf32> to vector<512x4xbf16>
    %c0_6 = arith.constant 0 : index
    %c0_7 = arith.constant 0 : index
    %12 = vector.load %arg4[%c0_6, %c0_7] : memref<4x8xbf16, #tpu.memory_space<vmem>>, vector<4x8xbf16>
    %cst_8 = arith.constant dense<0.000000e+00> : vector<512x8xf32>
    %13 = tpu.matmul %11, %12, %cst_8 {dimension_numbers = #tpu.dot_dimension_numbers<[1], [0], [0], [1], [0, 0, 1, 1], [], []>} : vector<512x4xbf16>, vector<4x8xbf16>, vector<512x8xf32> -> vector<512x8xf32>
    %14 = arith.addf %0, %13 : vector<512x8xf32>
    %15 = arith.truncf %14 : vector<512x8xf32> to vector<512x8xbf16>
    %c0_9 = arith.constant 0 : index
    %c0_10 = arith.constant 0 : index
    %16 = vector.load %arg5[%c0_9, %c0_10] : memref<512x8xbf16, #tpu.memory_space<vmem>>, vector<512x8xbf16>
    tpu.vector_store %arg5[%c0_9, %c0_10], %15 {strides = array<i32>} : memref<512x8xbf16, #tpu.memory_space<vmem>>, vector<512x8xbf16>,
    %c512_i32 = arith.constant 512 : i32
    %17 = arith.muli %arg0, %c512_i32 : i32
    %18 = tpu.iota {dimensions = array<i32: 0>} : vector<512x1xi32>
    %19 = vector.broadcast %17 : i32 to vector<512x1xi32>
    %20 = arith.addi %19, %18 : vector<512x1xi32>
    %c512_i32_11 = arith.constant 512 : i32
    %21 = vector.broadcast %c512_i32_11 : i32 to vector<512x1xi32>
    %22 = arith.cmpi slt, %20, %21 : vector<512x1xi32>
    %23 = arith.extf %15 : vector<512x8xbf16> to vector<512x8xf32>
    %cst_12 = arith.constant 0.000000e+00 : f32
    %24 = vector.shape_cast %22 : vector<512x1xi1> to vector<512x1xi1>
    %25 = vector.broadcast %24 : vector<512x1xi1> to vector<512x8xi1>
    %26 = vector.broadcast %cst_12 : f32 to vector<512x8xf32>
    %27 = arith.select %25, %23, %26 : vector<512x8xi1>, vector<512x8xf32>
    %cst_13 = arith.constant dense<0.000000e+00> : vector<8xf32>
    %28 = vector.multi_reduction <add>, %27, %cst_13 [0] : vector<512x8xf32> to vector<8xf32>
    %29 = vector.shape_cast %28 : vector<8xf32> to vector<1x1x8xf32>
    %c0_14 = arith.constant 0 : index
    %c0_15 = arith.constant 0 : index
    %c0_16 = arith.constant 0 : index
    %30 = vector.load %arg6[%c0_14, %c0_15, %c0_16] : memref<1x1x8xf32, #tpu.memory_space<vmem>>, vector<1x1x8xf32>
    tpu.vector_store %arg6[%c0_14, %c0_15, %c0_16], %29 {strides = array<i32>} : memref<1x1x8xf32, #tpu.memory_space<vmem>>, vector<1x1x8xf32>,
    %31 = arith.mulf %27, %27 : vector<512x8xf32>
    %cst_17 = arith.constant dense<0.000000e+00> : vector<8xf32>
    %32 = vector.multi_reduction <add>, %31, %cst_17 [0] : vector<512x8xf32> to vector<8xf32>
    %33 = vector.shape_cast %32 : vector<8xf32> to vector<1x1x8xf32>
    %c0_18 = arith.constant 0 : index
    %c0_19 = arith.constant 0 : index
    %c0_20 = arith.constant 0 : index
    %34 = vector.load %arg7[%c0_18, %c0_19, %c0_20] : memref<1x1x8xf32, #tpu.memory_space<vmem>>, vector<1x1x8xf32>
    tpu.vector_store %arg7[%c0_18, %c0_19, %c0_20], %33 {strides = array<i32>} : memref<1x1x8xf32, #tpu.memory_space<vmem>>, vector<1x1x8xf32>,
    return
  }
  func.func @transform_0(%arg0: i32) -> (i32, i32) {
    %c0_i32 = arith.constant 0 : i32
    %c0_i32_0 = arith.constant 0 : i32
    return %arg0, %c0_i32 : i32, i32
  }
  func.func @transform_1(%arg0: i32) -> (i32, i32) {
    %c0_i32 = arith.constant 0 : i32
    %c0_i32_0 = arith.constant 0 : i32
    %c0_i32_1 = arith.constant 0 : i32
    return %c0_i32, %c0_i32_0 : i32, i32
  }
  func.func @transform_2(%arg0: i32) -> (i32, i32) {
    %c0_i32 = arith.constant 0 : i32
    %c0_i32_0 = arith.constant 0 : i32
    %c0_i32_1 = arith.constant 0 : i32
    return %c0_i32, %c0_i32_0 : i32, i32
  }
  func.func @transform_3(%arg0: i32) -> (i32, i32) {
    %c0_i32 = arith.constant 0 : i32
    %c0_i32_0 = arith.constant 0 : i32
    %c0_i32_1 = arith.constant 0 : i32
    return %c0_i32, %c0_i32_0 : i32, i32
  }
  func.func @transform_4(%arg0: i32) -> (i32, i32) {
    %c0_i32 = arith.constant 0 : i32
    %c0_i32_0 = arith.constant 0 : i32
    return %arg0, %c0_i32 : i32, i32
  }
  func.func @transform_5(%arg0: i32) -> (i32, i32, i32) {
    %c0_i32 = arith.constant 0 : i32
    %c0_i32_0 = arith.constant 0 : i32
    %c0_i32_1 = arith.constant 0 : i32
    return %arg0, %c0_i32, %c0_i32_0 : i32, i32, i32
  }
  func.func @transform_6(%arg0: i32) -> (i32, i32, i32) {
    %c0_i32 = arith.constant 0 : i32
    %c0_i32_0 = arith.constant 0 : i32
    %c0_i32_1 = arith.constant 0 : i32
    return %arg0, %c0_i32, %c0_i32_0 : i32, i32, i32
  }
}

module attributes {stable_mosaic.version = 11 : i64} {
  func.func @kernel(%arg0: i32, %arg1: memref<1x16x16x8xbf16, #tpu.memory_space<vmem>>, %arg2: memref<1x8xf32, #tpu.memory_space<vmem>>, %arg3: memref<1x8xf32, #tpu.memory_space<vmem>>, %arg4: memref<3x24x4xbf16, #tpu.memory_space<vmem>>, %arg5: memref<1x256x4xbf16, #tpu.memory_space<vmem>>, %arg6: memref<1x1x4xf32, #tpu.memory_space<vmem>>, %arg7: memref<1x1x4xf32, #tpu.memory_space<vmem>>, %arg8: memref<18x16x24xbf16, #tpu.memory_space<vmem>>) attributes {dimension_semantics = [#tpu.dimension_semantics<parallel>], iteration_bounds = array<i64: 2>, scalar_prefetch = 0 : i64, scratch_operands = 1 : i64, tpu.core_type = #tpu.core_type<tc>, window_params = [{transform_indices = @transform_0, window_bounds = array<i64: 1, 16, 16, 8>}, {pipeline_mode = #tpu.pipeline_mode<synchronous>, transform_indices = @transform_1, window_bounds = array<i64: 1, 8>}, {pipeline_mode = #tpu.pipeline_mode<synchronous>, transform_indices = @transform_2, window_bounds = array<i64: 1, 8>}, {pipeline_mode = #tpu.pipeline_mode<synchronous>, transform_indices = @transform_3, window_bounds = array<i64: 3, 24, 4>}, {transform_indices = @transform_4, window_bounds = array<i64: 1, 256, 4>}, {transform_indices = @transform_5, window_bounds = array<i64: 1, 1, 4>}, {transform_indices = @transform_6, window_bounds = array<i64: 1, 1, 4>}]} {
    %c0 = arith.constant 0 : index
    %c0_0 = arith.constant 0 : index
    %c0_1 = arith.constant 0 : index
    %c0_2 = arith.constant 0 : index
    %0 = vector.load %arg1[%c0, %c0_0, %c0_1, %c0_2] : memref<1x16x16x8xbf16, #tpu.memory_space<vmem>>, vector<1x16x16x8xbf16>
    %1 = vector.shape_cast %0 : vector<1x16x16x8xbf16> to vector<16x16x8xbf16>
    %2 = arith.extf %1 : vector<16x16x8xbf16> to vector<16x16x8xf32>
    %c0_3 = arith.constant 0 : index
    %c0_4 = arith.constant 0 : index
    %3 = vector.load %arg2[%c0_3, %c0_4] : memref<1x8xf32, #tpu.memory_space<vmem>>, vector<1x8xf32>
    %4 = vector.shape_cast %3 : vector<1x8xf32> to vector<1x1x8xf32>
    %5 = vector.broadcast %4 : vector<1x1x8xf32> to vector<16x16x8xf32>
    %6 = arith.mulf %2, %5 : vector<16x16x8xf32>
    %c0_5 = arith.constant 0 : index
    %c0_6 = arith.constant 0 : index
    %7 = vector.load %arg3[%c0_5, %c0_6] : memref<1x8xf32, #tpu.memory_space<vmem>>, vector<1x8xf32>
    %8 = vector.shape_cast %7 : vector<1x8xf32> to vector<1x1x8xf32>
    %9 = vector.broadcast %8 : vector<1x1x8xf32> to vector<16x16x8xf32>
    %10 = arith.addf %6, %9 : vector<16x16x8xf32>
    %cst = arith.constant 0.000000e+00 : f32
    %11 = vector.broadcast %cst : f32 to vector<16x16x8xf32>
    %12 = arith.maximumf %10, %11 : vector<16x16x8xf32>
    %cst_7 = arith.constant 0.000000e+00 : bf16
    %13 = vector.broadcast %cst_7 : bf16 to vector<1x16x24xbf16>
    %c0_8 = arith.constant 0 : index
    %c0_9 = arith.constant 0 : index
    %c0_10 = arith.constant 0 : index
    %14 = vector.load %arg8[%c0_8, %c0_9, %c0_10] : memref<18x16x24xbf16, #tpu.memory_space<vmem>>, vector<1x16x24xbf16>
    tpu.vector_store %arg8[%c0_8, %c0_9, %c0_10], %13 {strides = array<i32>} : memref<18x16x24xbf16, #tpu.memory_space<vmem>>, vector<1x16x24xbf16>,
    %c17 = arith.constant 17 : index
    %c0_11 = arith.constant 0 : index
    %c0_12 = arith.constant 0 : index
    %15 = vector.load %arg8[%c17, %c0_11, %c0_12] : memref<18x16x24xbf16, #tpu.memory_space<vmem>>, vector<1x16x24xbf16>
    tpu.vector_store %arg8[%c17, %c0_11, %c0_12], %13 {strides = array<i32>} : memref<18x16x24xbf16, #tpu.memory_space<vmem>>, vector<1x16x24xbf16>,
    %cst_13 = arith.constant 0.000000e+00 : f32
    %16 = vector.broadcast %cst_13 : f32 to vector<16x1x8xf32>
    %17 = vector.extract_strided_slice %12 {offsets = [0, 0, 0], sizes = [16, 15, 8], strides = [1, 1, 1]} : vector<16x16x8xf32> to vector<16x15x8xf32>
    %18 = tpu.concatenate %16, %17 in 1 : vector<16x1x8xf32>, vector<16x15x8xf32> -> vector<16x16x8xf32>
    %19 = vector.extract_strided_slice %12 {offsets = [0, 1, 0], sizes = [16, 15, 8], strides = [1, 1, 1]} : vector<16x16x8xf32> to vector<16x15x8xf32>
    %20 = tpu.concatenate %19, %16 in 1 : vector<16x15x8xf32>, vector<16x1x8xf32> -> vector<16x16x8xf32>
    %21 = tpu.concatenate %18, %12, %20 in 2 : vector<16x16x8xf32>, vector<16x16x8xf32>, vector<16x16x8xf32> -> vector<16x16x24xf32>
    %22 = arith.truncf %21 : vector<16x16x24xf32> to vector<16x16x24xbf16>
    %c1 = arith.constant 1 : index
    %c0_14 = arith.constant 0 : index
    %c0_15 = arith.constant 0 : index
    %23 = vector.load %arg8[%c1, %c0_14, %c0_15] : memref<18x16x24xbf16, #tpu.memory_space<vmem>>, vector<16x16x24xbf16>
    tpu.vector_store %arg8[%c1, %c0_14, %c0_15], %22 {strides = array<i32>} : memref<18x16x24xbf16, #tpu.memory_space<vmem>>, vector<16x16x24xbf16>,
    %cst_16 = arith.constant 0.000000e+00 : f32
    %24 = vector.broadcast %cst_16 : f32 to vector<256x4xf32>
    %c0_17 = arith.constant 0 : index
    %c0_18 = arith.constant 0 : index
    %c0_19 = arith.constant 0 : index
    %25 = vector.load %arg8[%c0_17, %c0_18, %c0_19] : memref<18x16x24xbf16, #tpu.memory_space<vmem>>, vector<16x16x24xbf16>
    %26 = vector.shape_cast %25 : vector<16x16x24xbf16> to vector<256x24xbf16>
    %c0_20 = arith.constant 0 : index
    %c0_21 = arith.constant 0 : index
    %c0_22 = arith.constant 0 : index
    %27 = vector.load %arg4[%c0_20, %c0_21, %c0_22] : memref<3x24x4xbf16, #tpu.memory_space<vmem>>, vector<1x24x4xbf16>
    %28 = vector.shape_cast %27 : vector<1x24x4xbf16> to vector<24x4xbf16>
    %cst_23 = arith.constant dense<0.000000e+00> : vector<256x4xf32>
    %29 = tpu.matmul %26, %28, %cst_23 {dimension_numbers = #tpu.dot_dimension_numbers<[1], [0], [0], [1], [0, 0, 1, 1], [], []>} : vector<256x24xbf16>, vector<24x4xbf16>, vector<256x4xf32> -> vector<256x4xf32>
    %30 = arith.addf %24, %29 : vector<256x4xf32>
    %c1_24 = arith.constant 1 : index
    %c0_25 = arith.constant 0 : index
    %c0_26 = arith.constant 0 : index
    %31 = vector.load %arg8[%c1_24, %c0_25, %c0_26] : memref<18x16x24xbf16, #tpu.memory_space<vmem>>, vector<16x16x24xbf16>
    %32 = vector.shape_cast %31 : vector<16x16x24xbf16> to vector<256x24xbf16>
    %c1_27 = arith.constant 1 : index
    %c0_28 = arith.constant 0 : index
    %c0_29 = arith.constant 0 : index
    %33 = vector.load %arg4[%c1_27, %c0_28, %c0_29] : memref<3x24x4xbf16, #tpu.memory_space<vmem>>, vector<1x24x4xbf16>
    %34 = vector.shape_cast %33 : vector<1x24x4xbf16> to vector<24x4xbf16>
    %cst_30 = arith.constant dense<0.000000e+00> : vector<256x4xf32>
    %35 = tpu.matmul %32, %34, %cst_30 {dimension_numbers = #tpu.dot_dimension_numbers<[1], [0], [0], [1], [0, 0, 1, 1], [], []>} : vector<256x24xbf16>, vector<24x4xbf16>, vector<256x4xf32> -> vector<256x4xf32>
    %36 = arith.addf %30, %35 : vector<256x4xf32>
    %c2 = arith.constant 2 : index
    %c0_31 = arith.constant 0 : index
    %c0_32 = arith.constant 0 : index
    %37 = vector.load %arg8[%c2, %c0_31, %c0_32] : memref<18x16x24xbf16, #tpu.memory_space<vmem>>, vector<16x16x24xbf16>
    %38 = vector.shape_cast %37 : vector<16x16x24xbf16> to vector<256x24xbf16>
    %c2_33 = arith.constant 2 : index
    %c0_34 = arith.constant 0 : index
    %c0_35 = arith.constant 0 : index
    %39 = vector.load %arg4[%c2_33, %c0_34, %c0_35] : memref<3x24x4xbf16, #tpu.memory_space<vmem>>, vector<1x24x4xbf16>
    %40 = vector.shape_cast %39 : vector<1x24x4xbf16> to vector<24x4xbf16>
    %cst_36 = arith.constant dense<0.000000e+00> : vector<256x4xf32>
    %41 = tpu.matmul %38, %40, %cst_36 {dimension_numbers = #tpu.dot_dimension_numbers<[1], [0], [0], [1], [0, 0, 1, 1], [], []>} : vector<256x24xbf16>, vector<24x4xbf16>, vector<256x4xf32> -> vector<256x4xf32>
    %42 = arith.addf %36, %41 : vector<256x4xf32>
    %43 = arith.truncf %42 : vector<256x4xf32> to vector<256x4xbf16>
    %c0_37 = arith.constant 0 : index
    %c0_38 = arith.constant 0 : index
    %c0_39 = arith.constant 0 : index
    %44 = vector.load %arg5[%c0_37, %c0_38, %c0_39] : memref<1x256x4xbf16, #tpu.memory_space<vmem>>, vector<1x256x4xbf16>
    %45 = vector.shape_cast %44 : vector<1x256x4xbf16> to vector<256x4xbf16>
    %46 = vector.shape_cast %43 : vector<256x4xbf16> to vector<1x256x4xbf16>
    tpu.vector_store %arg5[%c0_37, %c0_38, %c0_39], %46 {strides = array<i32>} : memref<1x256x4xbf16, #tpu.memory_space<vmem>>, vector<1x256x4xbf16>,
    %47 = arith.extf %43 : vector<256x4xbf16> to vector<256x4xf32>
    %cst_40 = arith.constant dense<0.000000e+00> : vector<4xf32>
    %48 = vector.multi_reduction <add>, %47, %cst_40 [0] : vector<256x4xf32> to vector<4xf32>
    %49 = vector.shape_cast %48 : vector<4xf32> to vector<1x1x4xf32>
    %c0_41 = arith.constant 0 : index
    %c0_42 = arith.constant 0 : index
    %c0_43 = arith.constant 0 : index
    %50 = vector.load %arg6[%c0_41, %c0_42, %c0_43] : memref<1x1x4xf32, #tpu.memory_space<vmem>>, vector<1x1x4xf32>
    tpu.vector_store %arg6[%c0_41, %c0_42, %c0_43], %49 {strides = array<i32>} : memref<1x1x4xf32, #tpu.memory_space<vmem>>, vector<1x1x4xf32>,
    %51 = arith.mulf %47, %47 : vector<256x4xf32>
    %cst_44 = arith.constant dense<0.000000e+00> : vector<4xf32>
    %52 = vector.multi_reduction <add>, %51, %cst_44 [0] : vector<256x4xf32> to vector<4xf32>
    %53 = vector.shape_cast %52 : vector<4xf32> to vector<1x1x4xf32>
    %c0_45 = arith.constant 0 : index
    %c0_46 = arith.constant 0 : index
    %c0_47 = arith.constant 0 : index
    %54 = vector.load %arg7[%c0_45, %c0_46, %c0_47] : memref<1x1x4xf32, #tpu.memory_space<vmem>>, vector<1x1x4xf32>
    tpu.vector_store %arg7[%c0_45, %c0_46, %c0_47], %53 {strides = array<i32>} : memref<1x1x4xf32, #tpu.memory_space<vmem>>, vector<1x1x4xf32>,
    return
  }
  func.func @transform_0(%arg0: i32) -> (i32, i32, i32, i32) {
    %c0_i32 = arith.constant 0 : i32
    %c0_i32_0 = arith.constant 0 : i32
    %c0_i32_1 = arith.constant 0 : i32
    %c0_i32_2 = arith.constant 0 : i32
    return %arg0, %c0_i32, %c0_i32_0, %c0_i32_1 : i32, i32, i32, i32
  }
  func.func @transform_1(%arg0: i32) -> (i32, i32) {
    %c0_i32 = arith.constant 0 : i32
    %c0_i32_0 = arith.constant 0 : i32
    %c0_i32_1 = arith.constant 0 : i32
    return %c0_i32, %c0_i32_0 : i32, i32
  }
  func.func @transform_2(%arg0: i32) -> (i32, i32) {
    %c0_i32 = arith.constant 0 : i32
    %c0_i32_0 = arith.constant 0 : i32
    %c0_i32_1 = arith.constant 0 : i32
    return %c0_i32, %c0_i32_0 : i32, i32
  }
  func.func @transform_3(%arg0: i32) -> (i32, i32, i32) {
    %c0_i32 = arith.constant 0 : i32
    %c0_i32_0 = arith.constant 0 : i32
    %c0_i32_1 = arith.constant 0 : i32
    %c0_i32_2 = arith.constant 0 : i32
    return %c0_i32, %c0_i32_0, %c0_i32_1 : i32, i32, i32
  }
  func.func @transform_4(%arg0: i32) -> (i32, i32, i32) {
    %c0_i32 = arith.constant 0 : i32
    %c0_i32_0 = arith.constant 0 : i32
    %c0_i32_1 = arith.constant 0 : i32
    return %arg0, %c0_i32, %c0_i32_0 : i32, i32, i32
  }
  func.func @transform_5(%arg0: i32) -> (i32, i32, i32) {
    %c0_i32 = arith.constant 0 : i32
    %c0_i32_0 = arith.constant 0 : i32
    %c0_i32_1 = arith.constant 0 : i32
    return %arg0, %c0_i32, %c0_i32_0 : i32, i32, i32
  }
  func.func @transform_6(%arg0: i32) -> (i32, i32, i32) {
    %c0_i32 = arith.constant 0 : i32
    %c0_i32_0 = arith.constant 0 : i32
    %c0_i32_1 = arith.constant 0 : i32
    return %arg0, %c0_i32, %c0_i32_0 : i32, i32, i32
  }
}

module attributes {stable_mosaic.version = 11 : i64} {
  func.func @kernel(%arg0: i32, %arg1: memref<512x4xbf16, #tpu.memory_space<vmem>>, %arg2: memref<512x4xbf16, #tpu.memory_space<vmem>>, %arg3: memref<1x4xf32, #tpu.memory_space<vmem>>, %arg4: memref<1x4xf32, #tpu.memory_space<vmem>>, %arg5: memref<1x4xf32, #tpu.memory_space<vmem>>, %arg6: memref<1x4xf32, #tpu.memory_space<vmem>>, %arg7: memref<4x8xbf16, #tpu.memory_space<vmem>>, %arg8: memref<4x8xbf16, #tpu.memory_space<vmem>>, %arg9: memref<512x8xbf16, #tpu.memory_space<vmem>>, %arg10: memref<1x1x8xf32, #tpu.memory_space<vmem>>, %arg11: memref<1x1x8xf32, #tpu.memory_space<vmem>>) attributes {dimension_semantics = [#tpu.dimension_semantics<parallel>], iteration_bounds = array<i64: 1>, scalar_prefetch = 0 : i64, scratch_operands = 0 : i64, tpu.core_type = #tpu.core_type<tc>, window_params = [{transform_indices = @transform_0, window_bounds = array<i64: 512, 4>}, {transform_indices = @transform_1, window_bounds = array<i64: 512, 4>}, {pipeline_mode = #tpu.pipeline_mode<synchronous>, transform_indices = @transform_2, window_bounds = array<i64: 1, 4>}, {pipeline_mode = #tpu.pipeline_mode<synchronous>, transform_indices = @transform_3, window_bounds = array<i64: 1, 4>}, {pipeline_mode = #tpu.pipeline_mode<synchronous>, transform_indices = @transform_4, window_bounds = array<i64: 1, 4>}, {pipeline_mode = #tpu.pipeline_mode<synchronous>, transform_indices = @transform_5, window_bounds = array<i64: 1, 4>}, {pipeline_mode = #tpu.pipeline_mode<synchronous>, transform_indices = @transform_6, window_bounds = array<i64: 4, 8>}, {pipeline_mode = #tpu.pipeline_mode<synchronous>, transform_indices = @transform_7, window_bounds = array<i64: 4, 8>}, {transform_indices = @transform_8, window_bounds = array<i64: 512, 8>}, {transform_indices = @transform_9, window_bounds = array<i64: 1, 1, 8>}, {transform_indices = @transform_10, window_bounds = array<i64: 1, 1, 8>}]} {
    %cst = arith.constant 0.000000e+00 : f32
    %0 = vector.broadcast %cst : f32 to vector<512x8xf32>
    %c0 = arith.constant 0 : index
    %c0_0 = arith.constant 0 : index
    %1 = vector.load %arg1[%c0, %c0_0] : memref<512x4xbf16, #tpu.memory_space<vmem>>, vector<512x4xbf16>
    %2 = arith.extf %1 : vector<512x4xbf16> to vector<512x4xf32>
    %c0_1 = arith.constant 0 : index
    %c0_2 = arith.constant 0 : index
    %3 = vector.load %arg3[%c0_1, %c0_2] : memref<1x4xf32, #tpu.memory_space<vmem>>, vector<1x4xf32>
    %4 = vector.broadcast %3 : vector<1x4xf32> to vector<512x4xf32>
    %5 = arith.mulf %2, %4 : vector<512x4xf32>
    %c0_3 = arith.constant 0 : index
    %c0_4 = arith.constant 0 : index
    %6 = vector.load %arg5[%c0_3, %c0_4] : memref<1x4xf32, #tpu.memory_space<vmem>>, vector<1x4xf32>
    %7 = vector.broadcast %6 : vector<1x4xf32> to vector<512x4xf32>
    %8 = arith.addf %5, %7 : vector<512x4xf32>
    %cst_5 = arith.constant 0.000000e+00 : f32
    %9 = vector.broadcast %cst_5 : f32 to vector<512x4xf32>
    %10 = arith.maximumf %8, %9 : vector<512x4xf32>
    %11 = arith.truncf %10 : vector<512x4xf32> to vector<512x4xbf16>
    %c0_6 = arith.constant 0 : index
    %c0_7 = arith.constant 0 : index
    %12 = vector.load %arg7[%c0_6, %c0_7] : memref<4x8xbf16, #tpu.memory_space<vmem>>, vector<4x8xbf16>
    %cst_8 = arith.constant dense<0.000000e+00> : vector<512x8xf32>
    %13 = tpu.matmul %11, %12, %cst_8 {dimension_numbers = #tpu.dot_dimension_numbers<[1], [0], [0], [1], [0, 0, 1, 1], [], []>} : vector<512x4xbf16>, vector<4x8xbf16>, vector<512x8xf32> -> vector<512x8xf32>
    %14 = arith.addf %0, %13 : vector<512x8xf32>
    %c0_9 = arith.constant 0 : index
    %c0_10 = arith.constant 0 : index
    %15 = vector.load %arg2[%c0_9, %c0_10] : memref<512x4xbf16, #tpu.memory_space<vmem>>, vector<512x4xbf16>
    %16 = arith.extf %15 : vector<512x4xbf16> to vector<512x4xf32>
    %c0_11 = arith.constant 0 : index
    %c0_12 = arith.constant 0 : index
    %17 = vector.load %arg4[%c0_11, %c0_12] : memref<1x4xf32, #tpu.memory_space<vmem>>, vector<1x4xf32>
    %18 = vector.broadcast %17 : vector<1x4xf32> to vector<512x4xf32>
    %19 = arith.mulf %16, %18 : vector<512x4xf32>
    %c0_13 = arith.constant 0 : index
    %c0_14 = arith.constant 0 : index
    %20 = vector.load %arg6[%c0_13, %c0_14] : memref<1x4xf32, #tpu.memory_space<vmem>>, vector<1x4xf32>
    %21 = vector.broadcast %20 : vector<1x4xf32> to vector<512x4xf32>
    %22 = arith.addf %19, %21 : vector<512x4xf32>
    %cst_15 = arith.constant 0.000000e+00 : f32
    %23 = vector.broadcast %cst_15 : f32 to vector<512x4xf32>
    %24 = arith.maximumf %22, %23 : vector<512x4xf32>
    %25 = arith.truncf %24 : vector<512x4xf32> to vector<512x4xbf16>
    %c0_16 = arith.constant 0 : index
    %c0_17 = arith.constant 0 : index
    %26 = vector.load %arg8[%c0_16, %c0_17] : memref<4x8xbf16, #tpu.memory_space<vmem>>, vector<4x8xbf16>
    %cst_18 = arith.constant dense<0.000000e+00> : vector<512x8xf32>
    %27 = tpu.matmul %25, %26, %cst_18 {dimension_numbers = #tpu.dot_dimension_numbers<[1], [0], [0], [1], [0, 0, 1, 1], [], []>} : vector<512x4xbf16>, vector<4x8xbf16>, vector<512x8xf32> -> vector<512x8xf32>
    %28 = arith.addf %14, %27 : vector<512x8xf32>
    %29 = arith.truncf %28 : vector<512x8xf32> to vector<512x8xbf16>
    %c0_19 = arith.constant 0 : index
    %c0_20 = arith.constant 0 : index
    %30 = vector.load %arg9[%c0_19, %c0_20] : memref<512x8xbf16, #tpu.memory_space<vmem>>, vector<512x8xbf16>
    tpu.vector_store %arg9[%c0_19, %c0_20], %29 {strides = array<i32>} : memref<512x8xbf16, #tpu.memory_space<vmem>>, vector<512x8xbf16>,
    %c512_i32 = arith.constant 512 : i32
    %31 = arith.muli %arg0, %c512_i32 : i32
    %32 = tpu.iota {dimensions = array<i32: 0>} : vector<512x1xi32>
    %33 = vector.broadcast %31 : i32 to vector<512x1xi32>
    %34 = arith.addi %33, %32 : vector<512x1xi32>
    %c512_i32_21 = arith.constant 512 : i32
    %35 = vector.broadcast %c512_i32_21 : i32 to vector<512x1xi32>
    %36 = arith.cmpi slt, %34, %35 : vector<512x1xi32>
    %37 = arith.extf %29 : vector<512x8xbf16> to vector<512x8xf32>
    %cst_22 = arith.constant 0.000000e+00 : f32
    %38 = vector.shape_cast %36 : vector<512x1xi1> to vector<512x1xi1>
    %39 = vector.broadcast %38 : vector<512x1xi1> to vector<512x8xi1>
    %40 = vector.broadcast %cst_22 : f32 to vector<512x8xf32>
    %41 = arith.select %39, %37, %40 : vector<512x8xi1>, vector<512x8xf32>
    %cst_23 = arith.constant dense<0.000000e+00> : vector<8xf32>
    %42 = vector.multi_reduction <add>, %41, %cst_23 [0] : vector<512x8xf32> to vector<8xf32>
    %43 = vector.shape_cast %42 : vector<8xf32> to vector<1x1x8xf32>
    %c0_24 = arith.constant 0 : index
    %c0_25 = arith.constant 0 : index
    %c0_26 = arith.constant 0 : index
    %44 = vector.load %arg10[%c0_24, %c0_25, %c0_26] : memref<1x1x8xf32, #tpu.memory_space<vmem>>, vector<1x1x8xf32>
    tpu.vector_store %arg10[%c0_24, %c0_25, %c0_26], %43 {strides = array<i32>} : memref<1x1x8xf32, #tpu.memory_space<vmem>>, vector<1x1x8xf32>,
    %45 = arith.mulf %41, %41 : vector<512x8xf32>
    %cst_27 = arith.constant dense<0.000000e+00> : vector<8xf32>
    %46 = vector.multi_reduction <add>, %45, %cst_27 [0] : vector<512x8xf32> to vector<8xf32>
    %47 = vector.shape_cast %46 : vector<8xf32> to vector<1x1x8xf32>
    %c0_28 = arith.constant 0 : index
    %c0_29 = arith.constant 0 : index
    %c0_30 = arith.constant 0 : index
    %48 = vector.load %arg11[%c0_28, %c0_29, %c0_30] : memref<1x1x8xf32, #tpu.memory_space<vmem>>, vector<1x1x8xf32>
    tpu.vector_store %arg11[%c0_28, %c0_29, %c0_30], %47 {strides = array<i32>} : memref<1x1x8xf32, #tpu.memory_space<vmem>>, vector<1x1x8xf32>,
    return
  }
  func.func @transform_0(%arg0: i32) -> (i32, i32) {
    %c0_i32 = arith.constant 0 : i32
    %c0_i32_0 = arith.constant 0 : i32
    return %arg0, %c0_i32 : i32, i32
  }
  func.func @transform_1(%arg0: i32) -> (i32, i32) {
    %c0_i32 = arith.constant 0 : i32
    %c0_i32_0 = arith.constant 0 : i32
    return %arg0, %c0_i32 : i32, i32
  }
  func.func @transform_2(%arg0: i32) -> (i32, i32) {
    %c0_i32 = arith.constant 0 : i32
    %c0_i32_0 = arith.constant 0 : i32
    %c0_i32_1 = arith.constant 0 : i32
    return %c0_i32, %c0_i32_0 : i32, i32
  }
  func.func @transform_3(%arg0: i32) -> (i32, i32) {
    %c0_i32 = arith.constant 0 : i32
    %c0_i32_0 = arith.constant 0 : i32
    %c0_i32_1 = arith.constant 0 : i32
    return %c0_i32, %c0_i32_0 : i32, i32
  }
  func.func @transform_4(%arg0: i32) -> (i32, i32) {
    %c0_i32 = arith.constant 0 : i32
    %c0_i32_0 = arith.constant 0 : i32
    %c0_i32_1 = arith.constant 0 : i32
    return %c0_i32, %c0_i32_0 : i32, i32
  }
  func.func @transform_5(%arg0: i32) -> (i32, i32) {
    %c0_i32 = arith.constant 0 : i32
    %c0_i32_0 = arith.constant 0 : i32
    %c0_i32_1 = arith.constant 0 : i32
    return %c0_i32, %c0_i32_0 : i32, i32
  }
  func.func @transform_6(%arg0: i32) -> (i32, i32) {
    %c0_i32 = arith.constant 0 : i32
    %c0_i32_0 = arith.constant 0 : i32
    %c0_i32_1 = arith.constant 0 : i32
    return %c0_i32, %c0_i32_0 : i32, i32
  }
  func.func @transform_7(%arg0: i32) -> (i32, i32) {
    %c0_i32 = arith.constant 0 : i32
    %c0_i32_0 = arith.constant 0 : i32
    %c0_i32_1 = arith.constant 0 : i32
    return %c0_i32, %c0_i32_0 : i32, i32
  }
  func.func @transform_8(%arg0: i32) -> (i32, i32) {
    %c0_i32 = arith.constant 0 : i32
    %c0_i32_0 = arith.constant 0 : i32
    return %arg0, %c0_i32 : i32, i32
  }
  func.func @transform_9(%arg0: i32) -> (i32, i32, i32) {
    %c0_i32 = arith.constant 0 : i32
    %c0_i32_0 = arith.constant 0 : i32
    %c0_i32_1 = arith.constant 0 : i32
    return %arg0, %c0_i32, %c0_i32_0 : i32, i32, i32
  }
  func.func @transform_10(%arg0: i32) -> (i32, i32, i32) {
    %c0_i32 = arith.constant 0 : i32
    %c0_i32_0 = arith.constant 0 : i32
    %c0_i32_1 = arith.constant 0 : i32
    return %arg0, %c0_i32, %c0_i32_0 : i32, i32, i32
  }
}

module attributes {stable_mosaic.version = 11 : i64} {
  func.func @kernel(%arg0: i32, %arg1: memref<1x16x16x8xbf16, #tpu.memory_space<vmem>>, %arg2: memref<1x8xf32, #tpu.memory_space<vmem>>, %arg3: memref<1x8xf32, #tpu.memory_space<vmem>>, %arg4: memref<3x24x4xbf16, #tpu.memory_space<vmem>>, %arg5: memref<1x256x4xbf16, #tpu.memory_space<vmem>>, %arg6: memref<1x1x4xf32, #tpu.memory_space<vmem>>, %arg7: memref<1x1x4xf32, #tpu.memory_space<vmem>>, %arg8: memref<18x16x24xbf16, #tpu.memory_space<vmem>>) attributes {dimension_semantics = [#tpu.dimension_semantics<parallel>], iteration_bounds = array<i64: 2>, scalar_prefetch = 0 : i64, scratch_operands = 1 : i64, tpu.core_type = #tpu.core_type<tc>, window_params = [{transform_indices = @transform_0, window_bounds = array<i64: 1, 16, 16, 8>}, {pipeline_mode = #tpu.pipeline_mode<synchronous>, transform_indices = @transform_1, window_bounds = array<i64: 1, 8>}, {pipeline_mode = #tpu.pipeline_mode<synchronous>, transform_indices = @transform_2, window_bounds = array<i64: 1, 8>}, {pipeline_mode = #tpu.pipeline_mode<synchronous>, transform_indices = @transform_3, window_bounds = array<i64: 3, 24, 4>}, {transform_indices = @transform_4, window_bounds = array<i64: 1, 256, 4>}, {transform_indices = @transform_5, window_bounds = array<i64: 1, 1, 4>}, {transform_indices = @transform_6, window_bounds = array<i64: 1, 1, 4>}]} {
    %c0 = arith.constant 0 : index
    %c0_0 = arith.constant 0 : index
    %c0_1 = arith.constant 0 : index
    %c0_2 = arith.constant 0 : index
    %0 = vector.load %arg1[%c0, %c0_0, %c0_1, %c0_2] : memref<1x16x16x8xbf16, #tpu.memory_space<vmem>>, vector<1x16x16x8xbf16>
    %1 = vector.shape_cast %0 : vector<1x16x16x8xbf16> to vector<16x16x8xbf16>
    %2 = arith.extf %1 : vector<16x16x8xbf16> to vector<16x16x8xf32>
    %c0_3 = arith.constant 0 : index
    %c0_4 = arith.constant 0 : index
    %3 = vector.load %arg2[%c0_3, %c0_4] : memref<1x8xf32, #tpu.memory_space<vmem>>, vector<1x8xf32>
    %4 = vector.shape_cast %3 : vector<1x8xf32> to vector<1x1x8xf32>
    %5 = vector.broadcast %4 : vector<1x1x8xf32> to vector<16x16x8xf32>
    %6 = arith.mulf %2, %5 : vector<16x16x8xf32>
    %c0_5 = arith.constant 0 : index
    %c0_6 = arith.constant 0 : index
    %7 = vector.load %arg3[%c0_5, %c0_6] : memref<1x8xf32, #tpu.memory_space<vmem>>, vector<1x8xf32>
    %8 = vector.shape_cast %7 : vector<1x8xf32> to vector<1x1x8xf32>
    %9 = vector.broadcast %8 : vector<1x1x8xf32> to vector<16x16x8xf32>
    %10 = arith.addf %6, %9 : vector<16x16x8xf32>
    %cst = arith.constant 0.000000e+00 : f32
    %11 = vector.broadcast %cst : f32 to vector<16x16x8xf32>
    %12 = arith.maximumf %10, %11 : vector<16x16x8xf32>
    %cst_7 = arith.constant 0.000000e+00 : bf16
    %13 = vector.broadcast %cst_7 : bf16 to vector<1x16x24xbf16>
    %c0_8 = arith.constant 0 : index
    %c0_9 = arith.constant 0 : index
    %c0_10 = arith.constant 0 : index
    %14 = vector.load %arg8[%c0_8, %c0_9, %c0_10] : memref<18x16x24xbf16, #tpu.memory_space<vmem>>, vector<1x16x24xbf16>
    tpu.vector_store %arg8[%c0_8, %c0_9, %c0_10], %13 {strides = array<i32>} : memref<18x16x24xbf16, #tpu.memory_space<vmem>>, vector<1x16x24xbf16>,
    %c17 = arith.constant 17 : index
    %c0_11 = arith.constant 0 : index
    %c0_12 = arith.constant 0 : index
    %15 = vector.load %arg8[%c17, %c0_11, %c0_12] : memref<18x16x24xbf16, #tpu.memory_space<vmem>>, vector<1x16x24xbf16>
    tpu.vector_store %arg8[%c17, %c0_11, %c0_12], %13 {strides = array<i32>} : memref<18x16x24xbf16, #tpu.memory_space<vmem>>, vector<1x16x24xbf16>,
    %cst_13 = arith.constant 0.000000e+00 : f32
    %16 = vector.broadcast %cst_13 : f32 to vector<16x1x8xf32>
    %17 = vector.extract_strided_slice %12 {offsets = [0, 0, 0], sizes = [16, 15, 8], strides = [1, 1, 1]} : vector<16x16x8xf32> to vector<16x15x8xf32>
    %18 = tpu.concatenate %16, %17 in 1 : vector<16x1x8xf32>, vector<16x15x8xf32> -> vector<16x16x8xf32>
    %19 = vector.extract_strided_slice %12 {offsets = [0, 1, 0], sizes = [16, 15, 8], strides = [1, 1, 1]} : vector<16x16x8xf32> to vector<16x15x8xf32>
    %20 = tpu.concatenate %19, %16 in 1 : vector<16x15x8xf32>, vector<16x1x8xf32> -> vector<16x16x8xf32>
    %21 = tpu.concatenate %18, %12, %20 in 2 : vector<16x16x8xf32>, vector<16x16x8xf32>, vector<16x16x8xf32> -> vector<16x16x24xf32>
    %22 = arith.truncf %21 : vector<16x16x24xf32> to vector<16x16x24xbf16>
    %c1 = arith.constant 1 : index
    %c0_14 = arith.constant 0 : index
    %c0_15 = arith.constant 0 : index
    %23 = vector.load %arg8[%c1, %c0_14, %c0_15] : memref<18x16x24xbf16, #tpu.memory_space<vmem>>, vector<16x16x24xbf16>
    tpu.vector_store %arg8[%c1, %c0_14, %c0_15], %22 {strides = array<i32>} : memref<18x16x24xbf16, #tpu.memory_space<vmem>>, vector<16x16x24xbf16>,
    %cst_16 = arith.constant 0.000000e+00 : f32
    %24 = vector.broadcast %cst_16 : f32 to vector<256x4xf32>
    %c0_17 = arith.constant 0 : index
    %c0_18 = arith.constant 0 : index
    %c0_19 = arith.constant 0 : index
    %25 = vector.load %arg8[%c0_17, %c0_18, %c0_19] : memref<18x16x24xbf16, #tpu.memory_space<vmem>>, vector<16x16x24xbf16>
    %26 = vector.shape_cast %25 : vector<16x16x24xbf16> to vector<256x24xbf16>
    %c0_20 = arith.constant 0 : index
    %c0_21 = arith.constant 0 : index
    %c0_22 = arith.constant 0 : index
    %27 = vector.load %arg4[%c0_20, %c0_21, %c0_22] : memref<3x24x4xbf16, #tpu.memory_space<vmem>>, vector<1x24x4xbf16>
    %28 = vector.shape_cast %27 : vector<1x24x4xbf16> to vector<24x4xbf16>
    %cst_23 = arith.constant dense<0.000000e+00> : vector<256x4xf32>
    %29 = tpu.matmul %26, %28, %cst_23 {dimension_numbers = #tpu.dot_dimension_numbers<[1], [0], [0], [1], [0, 0, 1, 1], [], []>} : vector<256x24xbf16>, vector<24x4xbf16>, vector<256x4xf32> -> vector<256x4xf32>
    %30 = arith.addf %24, %29 : vector<256x4xf32>
    %c1_24 = arith.constant 1 : index
    %c0_25 = arith.constant 0 : index
    %c0_26 = arith.constant 0 : index
    %31 = vector.load %arg8[%c1_24, %c0_25, %c0_26] : memref<18x16x24xbf16, #tpu.memory_space<vmem>>, vector<16x16x24xbf16>
    %32 = vector.shape_cast %31 : vector<16x16x24xbf16> to vector<256x24xbf16>
    %c1_27 = arith.constant 1 : index
    %c0_28 = arith.constant 0 : index
    %c0_29 = arith.constant 0 : index
    %33 = vector.load %arg4[%c1_27, %c0_28, %c0_29] : memref<3x24x4xbf16, #tpu.memory_space<vmem>>, vector<1x24x4xbf16>
    %34 = vector.shape_cast %33 : vector<1x24x4xbf16> to vector<24x4xbf16>
    %cst_30 = arith.constant dense<0.000000e+00> : vector<256x4xf32>
    %35 = tpu.matmul %32, %34, %cst_30 {dimension_numbers = #tpu.dot_dimension_numbers<[1], [0], [0], [1], [0, 0, 1, 1], [], []>} : vector<256x24xbf16>, vector<24x4xbf16>, vector<256x4xf32> -> vector<256x4xf32>
    %36 = arith.addf %30, %35 : vector<256x4xf32>
    %c2 = arith.constant 2 : index
    %c0_31 = arith.constant 0 : index
    %c0_32 = arith.constant 0 : index
    %37 = vector.load %arg8[%c2, %c0_31, %c0_32] : memref<18x16x24xbf16, #tpu.memory_space<vmem>>, vector<16x16x24xbf16>
    %38 = vector.shape_cast %37 : vector<16x16x24xbf16> to vector<256x24xbf16>
    %c2_33 = arith.constant 2 : index
    %c0_34 = arith.constant 0 : index
    %c0_35 = arith.constant 0 : index
    %39 = vector.load %arg4[%c2_33, %c0_34, %c0_35] : memref<3x24x4xbf16, #tpu.memory_space<vmem>>, vector<1x24x4xbf16>
    %40 = vector.shape_cast %39 : vector<1x24x4xbf16> to vector<24x4xbf16>
    %cst_36 = arith.constant dense<0.000000e+00> : vector<256x4xf32>
    %41 = tpu.matmul %38, %40, %cst_36 {dimension_numbers = #tpu.dot_dimension_numbers<[1], [0], [0], [1], [0, 0, 1, 1], [], []>} : vector<256x24xbf16>, vector<24x4xbf16>, vector<256x4xf32> -> vector<256x4xf32>
    %42 = arith.addf %36, %41 : vector<256x4xf32>
    %43 = arith.truncf %42 : vector<256x4xf32> to vector<256x4xbf16>
    %c0_37 = arith.constant 0 : index
    %c0_38 = arith.constant 0 : index
    %c0_39 = arith.constant 0 : index
    %44 = vector.load %arg5[%c0_37, %c0_38, %c0_39] : memref<1x256x4xbf16, #tpu.memory_space<vmem>>, vector<1x256x4xbf16>
    %45 = vector.shape_cast %44 : vector<1x256x4xbf16> to vector<256x4xbf16>
    %46 = vector.shape_cast %43 : vector<256x4xbf16> to vector<1x256x4xbf16>
    tpu.vector_store %arg5[%c0_37, %c0_38, %c0_39], %46 {strides = array<i32>} : memref<1x256x4xbf16, #tpu.memory_space<vmem>>, vector<1x256x4xbf16>,
    %47 = arith.extf %43 : vector<256x4xbf16> to vector<256x4xf32>
    %cst_40 = arith.constant dense<0.000000e+00> : vector<4xf32>
    %48 = vector.multi_reduction <add>, %47, %cst_40 [0] : vector<256x4xf32> to vector<4xf32>
    %49 = vector.shape_cast %48 : vector<4xf32> to vector<1x1x4xf32>
    %c0_41 = arith.constant 0 : index
    %c0_42 = arith.constant 0 : index
    %c0_43 = arith.constant 0 : index
    %50 = vector.load %arg6[%c0_41, %c0_42, %c0_43] : memref<1x1x4xf32, #tpu.memory_space<vmem>>, vector<1x1x4xf32>
    tpu.vector_store %arg6[%c0_41, %c0_42, %c0_43], %49 {strides = array<i32>} : memref<1x1x4xf32, #tpu.memory_space<vmem>>, vector<1x1x4xf32>,
    %51 = arith.mulf %47, %47 : vector<256x4xf32>
    %cst_44 = arith.constant dense<0.000000e+00> : vector<4xf32>
    %52 = vector.multi_reduction <add>, %51, %cst_44 [0] : vector<256x4xf32> to vector<4xf32>
    %53 = vector.shape_cast %52 : vector<4xf32> to vector<1x1x4xf32>
    %c0_45 = arith.constant 0 : index
    %c0_46 = arith.constant 0 : index
    %c0_47 = arith.constant 0 : index
    %54 = vector.load %arg7[%c0_45, %c0_46, %c0_47] : memref<1x1x4xf32, #tpu.memory_space<vmem>>, vector<1x1x4xf32>
    tpu.vector_store %arg7[%c0_45, %c0_46, %c0_47], %53 {strides = array<i32>} : memref<1x1x4xf32, #tpu.memory_space<vmem>>, vector<1x1x4xf32>,
    return
  }
  func.func @transform_0(%arg0: i32) -> (i32, i32, i32, i32) {
    %c0_i32 = arith.constant 0 : i32
    %c0_i32_0 = arith.constant 0 : i32
    %c0_i32_1 = arith.constant 0 : i32
    %c0_i32_2 = arith.constant 0 : i32
    return %arg0, %c0_i32, %c0_i32_0, %c0_i32_1 : i32, i32, i32, i32
  }
  func.func @transform_1(%arg0: i32) -> (i32, i32) {
    %c0_i32 = arith.constant 0 : i32
    %c0_i32_0 = arith.constant 0 : i32
    %c0_i32_1 = arith.constant 0 : i32
    return %c0_i32, %c0_i32_0 : i32, i32
  }
  func.func @transform_2(%arg0: i32) -> (i32, i32) {
    %c0_i32 = arith.constant 0 : i32
    %c0_i32_0 = arith.constant 0 : i32
    %c0_i32_1 = arith.constant 0 : i32
    return %c0_i32, %c0_i32_0 : i32, i32
  }
  func.func @transform_3(%arg0: i32) -> (i32, i32, i32) {
    %c0_i32 = arith.constant 0 : i32
    %c0_i32_0 = arith.constant 0 : i32
    %c0_i32_1 = arith.constant 0 : i32
    %c0_i32_2 = arith.constant 0 : i32
    return %c0_i32, %c0_i32_0, %c0_i32_1 : i32, i32, i32
  }
  func.func @transform_4(%arg0: i32) -> (i32, i32, i32) {
    %c0_i32 = arith.constant 0 : i32
    %c0_i32_0 = arith.constant 0 : i32
    %c0_i32_1 = arith.constant 0 : i32
    return %arg0, %c0_i32, %c0_i32_0 : i32, i32, i32
  }
  func.func @transform_5(%arg0: i32) -> (i32, i32, i32) {
    %c0_i32 = arith.constant 0 : i32
    %c0_i32_0 = arith.constant 0 : i32
    %c0_i32_1 = arith.constant 0 : i32
    return %arg0, %c0_i32, %c0_i32_0 : i32, i32, i32
  }
  func.func @transform_6(%arg0: i32) -> (i32, i32, i32) {
    %c0_i32 = arith.constant 0 : i32
    %c0_i32_0 = arith.constant 0 : i32
    %c0_i32_1 = arith.constant 0 : i32
    return %arg0, %c0_i32, %c0_i32_0 : i32, i32, i32
  }
}

</mosaic_0001>

<bundles_post_ra>
// kernel: dense_block_forward.5
= control target key start
LH: loop header
LB: loop body
LE: loop exit
PB: predicated region body
PF: predicated region fallthrough
CT: control target
= control target key end

     0   :  { %vm525_vm0 = vcmask 31744   ;;  %vm659_vm1 = vcmask 24576   ;;  %s1803_s0 = inlined_call_operand.vmem [shape: bf16[512,4], index: 0, kind: input, shape index: {}]   ;;  %s1804_s1 = inlined_call_operand.vmem [shape: f32[1,1,4], index: 1, kind: output, shape index: {0}]   ;;  %s1805_s2 = inlined_call_operand.vmem [shape: f32[1,1,4], index: 2, kind: output, shape index: {1}]  }
   0x1   :  { %v868_v0 = vld [vmem:[%s1803_s0] sm:$0xff]   ;;  %v995_v1 = vld [vmem:[%s1803_s0 + $0x8] sm:$0xff]   ;;  %v996_v2 = vld [vmem:[%s1803_s0 + $0x10] sm:$0xff]  }
   0x2   :  { %v997_v3 = vld [vmem:[%s1803_s0 + $0x18] sm:$0xff]   ;;  %v998_v4 = vld [vmem:[%s1803_s0 + $0x20] sm:$0xff]   ;;  %v999_v5 = vld [vmem:[%s1803_s0 + $0x28] sm:$0xff]   ;;  %v1059_v6 = vunpack.c.l.bf16 %v868_v0  ;;  %v1061_v7 = vunpack.c.h.bf16 %v868_v0  ;;  %v1063_v8 = vunpack.c.l.bf16 %v995_v1  ;;  %v1071_v11 = vunpack.c.h.bf16 %v995_v1 }
   0x3   :  { %v1011_v9 = vld [vmem:[%s1803_s0 + $0x88] sm:$0xff]   ;;  %v1012_v10 = vld [vmem:[%s1803_s0 + $0x90] sm:$0xff]   ;;  %v1073_v12 = vunpack.c.l.bf16 %v996_v2  ;;  %v1075_v13 = vunpack.c.h.bf16 %v996_v2  ;;  %v1077_v14 = vunpack.c.l.bf16 %v997_v3  ;;  %v1013_v15 = vld [vmem:[%s1803_s0 + $0x98] sm:$0xff]   ;;  %v1085_v17 = vunpack.c.h.bf16 %v997_v3 }
   0x4   :  { %v1014_v16 = vld [vmem:[%s1803_s0 + $0xa0] sm:$0xff]   ;;  %v1087_v18 = vunpack.c.l.bf16 %v998_v4  ;;  %v1089_v19 = vunpack.c.h.bf16 %v998_v4  ;;  %v1091_v20 = vunpack.c.l.bf16 %v999_v5  ;;  %v1093_v21 = vunpack.c.h.bf16 %v999_v5  ;;  %v1015_v25 = vld [vmem:[%s1803_s0 + $0xa8] sm:$0xff]   ;;  %v1016_v26 = vld [vmem:[%s1803_s0 + $0xb0] sm:$0xff]  }
   0x5   :  { %v1095_v22 = vunpack.c.l.bf16 %v1011_v9  ;;  %v1097_v23 = vunpack.c.h.bf16 %v1011_v9  ;;  %v1099_v24 = vunpack.c.l.bf16 %v1012_v10  ;;  %v1107_v27 = vunpack.c.h.bf16 %v1012_v10  ;;  %v1017_v31 = vld [vmem:[%s1803_s0 + $0xb8] sm:$0xff]   ;;  %v1018_v33 = vld [vmem:[%s1803_s0 + $0xc0] sm:$0xff]   ;;  %v1019_v34 = vld [vmem:[%s1803_s0 + $0xc8] sm:$0xff]  }
   0x6   :  { %v1109_v28 = vunpack.c.l.bf16 %v1013_v15  ;;  %v1111_v29 = vunpack.c.h.bf16 %v1013_v15  ;;  %v1113_v30 = vunpack.c.l.bf16 %v1014_v16  ;;  %v1118_v32 = vunpack.c.h.bf16 %v1014_v16  ;;  %v1020_v41 = vld [vmem:[%s1803_s0 + $0xd0] sm:$0xff]   ;;  %v1021_v46 = vld [vmem:[%s1803_s0 + $0xd8] sm:$0xff]   ;;  %v1022_v47 = vld [vmem:[%s1803_s0 + $0xe0] sm:$0xff]  }
   0x7   :  { %v526_v35 = vsel %vm525_vm0, %v1059_v6, 0.0  ;;  %v527_v36 = vsel %vm525_vm0, %v1061_v7, 0.0  ;;  %v529_v37 = vsel %vm525_vm0, %v1063_v8, 0.0  ;;  %v1132_v38 = vunpack.c.l.bf16 %v1015_v25  ;;  %v1023_v52 = vld [vmem:[%s1803_s0 + $0xe8] sm:$0xff]   ;;  %v1024_v57 = vld [vmem:[%s1803_s0 + $0xf0] sm:$0xff]   ;;  %v1025_v58 = vld [vmem:[%s1803_s0 + $0xf8] sm:$0xff]  }
   0x8   :  { %v1134_v39 = vunpack.c.h.bf16 %v1015_v25  ;;  %v1136_v40 = vunpack.c.l.bf16 %v1016_v26  ;;  %v528_v42 = vadd.f32 %v527_v36, %v526_v35  ;;  %v1141_v43 = vunpack.c.h.bf16 %v1016_v26 }
   0x9   :  { %v1143_v44 = vunpack.c.l.bf16 %v1017_v31  ;;  %v1145_v45 = vunpack.c.h.bf16 %v1017_v31  ;;  %v531_v48 = vsel %vm525_vm0, %v1071_v11, 0.0  ;;  %v1155_v49 = vunpack.c.l.bf16 %v1018_v33 }
   0xa   :  { %v1157_v50 = vunpack.c.h.bf16 %v1018_v33  ;;  %v1159_v51 = vunpack.c.l.bf16 %v1019_v34  ;;  %v530_v53 = vadd.f32 %v529_v37, %v528_v42  ;;  %v1164_v54 = vunpack.c.h.bf16 %v1019_v34 }
   0xb   :  { %v1166_v55 = vunpack.c.l.bf16 %v1020_v41  ;;  %v1168_v56 = vunpack.c.h.bf16 %v1020_v41  ;;  %v533_v59 = vsel %vm525_vm0, %v1073_v12, 0.0  ;;  %v1178_v60 = vunpack.c.l.bf16 %v1021_v46 }
   0xc   :  { %v1180_v61 = vunpack.c.h.bf16 %v1021_v46  ;;  %v1182_v62 = vunpack.c.l.bf16 %v1022_v47  ;;  %v532_v63 = vadd.f32 %v531_v48, %v530_v53  ;;  %v1184_v0 = vunpack.c.h.bf16 %v1022_v47 }
   0xd   :  { %v1186_v1 = vunpack.c.l.bf16 %v1023_v52  ;;  %v1188_v2 = vunpack.c.h.bf16 %v1023_v52  ;;  %v535_v3 = vsel %vm525_vm0, %v1075_v13, 0.0  ;;  %v1192_v4 = vunpack.c.l.bf16 %v1024_v57 }
   0xe   :  { %1828 = vst [vmem:[#allocation2_spill] sm:$0xff] %v1182_v62  ;;  %1829 = vst [vmem:[#allocation3_spill] sm:$0xff] %v1184_v0  ;;  %v1194_v5 = vunpack.c.h.bf16 %v1024_v57  ;;  %v1196_v9 = vunpack.c.l.bf16 %v1025_v58  ;;  %v534_v10 = vadd.f32 %v533_v59, %v532_v63  ;;  %v1198_v15 = vunpack.c.h.bf16 %v1025_v58 }
   0xf   :  { %1830 = vst [vmem:[#allocation4_spill] sm:$0xff] %v1186_v1  ;;  %1831 = vst [vmem:[#allocation5_spill] sm:$0xff] %v1188_v2  ;;  %v537_v16 = vsel %vm525_vm0, %v1077_v14, 0.0  ;;  %v539_v25 = vsel %vm525_vm0, %v1085_v17, 0.0  ;;  %v541_v26 = vsel %vm525_vm0, %v1087_v18, 0.0  ;;  %v543_v33 = vsel %vm525_vm0, %v1089_v19, 0.0 }
  0x10   :  { %1832 = vst [vmem:[#allocation6_spill] sm:$0xff] %v1192_v4  ;;  %1833 = vst [vmem:[#allocation7_spill] sm:$0xff] %v1194_v5  ;;  %v536_v31 = vadd.f32 %v535_v3, %v534_v10  ;;  %v545_v34 = vsel %vm525_vm0, %v1091_v20, 0.0  ;;  %v1212_v35 = vsel %vm525_vm0, %v1095_v22, 0.0  ;;  %v1216_v36 = vsel %vm525_vm0, %v1097_v23, 0.0 }
  0x11   :  { %1834 = vst [vmem:[#allocation8_spill] sm:$0xff] %v1196_v9  ;;  %1835 = vst [vmem:[#allocation9_spill] sm:$0xff] %v1198_v15  ;;  %v1220_v37 = vsel %vm525_vm0, %v1099_v24, 0.0  ;;  %v1224_v41 = vsel %vm525_vm0, %v1107_v27, 0.0  ;;  %v1228_v42 = vsel %vm525_vm0, %v1109_v28, 0.0  ;;  %v1232_v47 = vsel %vm525_vm0, %v1111_v29, 0.0 }
  0x12   :  { %1836 = vst [vmem:[#allocation10_spill] sm:$0xff] %v1212_v35  ;;  %1837 = vst [vmem:[#allocation11_spill] sm:$0xff] %v1216_v36  ;;  %v538_v46 = vadd.f32 %v537_v16, %v536_v31  ;;  %v1236_v48 = vsel %vm525_vm0, %v1113_v30, 0.0  ;;  %v1240_v52 = vsel %vm525_vm0, %v1118_v32, 0.0  ;;  %v1244_v53 = vsel %vm525_vm0, %v1132_v38, 0.0 }
  0x13   :  { %1838 = vst [vmem:[#allocation12_spill] sm:$0xff] %v1220_v37  ;;  %1839 = vst [vmem:[#allocation13_spill] sm:$0xff] %v1224_v41  ;;  %v1248_v57 = vsel %vm525_vm0, %v1134_v39, 0.0  ;;  %v1252_v58 = vsel %vm525_vm0, %v1136_v40, 0.0  ;;  %v1256_v59 = vsel %vm525_vm0, %v1141_v43, 0.0  ;;  %v1260_v3 = vsel %vm525_vm0, %v1143_v44, 0.0 }
  0x14   :  { %1840 = vst [vmem:[#allocation14_spill] sm:$0xff] %v1228_v42  ;;  %1841 = vst [vmem:[#allocation15_spill] sm:$0xff] %v1232_v47  ;;  %v540_v63 = vadd.f32 %v539_v25, %v538_v46  ;;  %v1264_v10 = vsel %vm525_vm0, %v1145_v45, 0.0  ;;  %v1268_v16 = vsel %vm525_vm0, %v1155_v49, 0.0  ;;  %v1272_v31 = vsel %vm525_vm0, %v1157_v50, 0.0 }
  0x15   :  { %1842 = vst [vmem:[#allocation16_spill] sm:$0xff] %v1236_v48  ;;  %1843 = vst [vmem:[#allocation17_spill] sm:$0xff] %v1240_v52  ;;  %v1280_v25 = vsel %vm525_vm0, %v1164_v54, 0.0  ;;  %v1284_v46 = vsel %vm525_vm0, %v1166_v55, 0.0  ;;  %v1006_v52 = vld [vmem:[%s1803_s0 + $0x60] sm:$0xff]  }
  0x16   :  { %1844 = vst [vmem:[#allocation18_spill] sm:$0xff] %v1244_v53  ;;  %1845 = vst [vmem:[#allocation19_spill] sm:$0xff] %v1248_v57  ;;  %v1004_v57 = vld [vmem:[%s1803_s0 + $0x50] sm:$0xff]  }
  0x17   :  { %1846 = vst [vmem:[#allocation20_spill] sm:$0xff] %v1252_v58  ;;  %1847 = vst [vmem:[#allocation21_spill] sm:$0xff] %v1256_v59  ;;  %v1276_v59 = vsel %vm525_vm0, %v1159_v51, 0.0  ;;  %v1374_v37 = vunpack.c.l.bf16 %v1004_v57  ;;  %v1376_v36 = vunpack.c.h.bf16 %v1004_v57  ;;  %v1392_v57 = vunpack.c.h.bf16 %v1006_v52 }
  0x18   :  { %1848 = vst [vmem:[#allocation22_spill] sm:$0xff] %v1260_v3  ;;  %1849 = vst [vmem:[#allocation23_spill] sm:$0xff] %v1264_v10  ;;  %v542_v10 = vadd.f32 %v541_v26, %v540_v63  ;;  %v1306_v3 = vsel %vm525_vm0, %v1182_v62, 0.0  ;;  %v1310_v26 = vsel %vm525_vm0, %v1184_v0, 0.0  ;;  %v1314_v63 = vsel %vm525_vm0, %v1186_v1, 0.0 }
  0x19   :  { %1850 = vst [vmem:[#allocation24_spill] sm:$0xff] %v1268_v16  ;;  %1851 = vst [vmem:[#allocation25_spill] sm:$0xff] %v1272_v31  ;;  %v1000_v16 = vld [vmem:[%s1803_s0 + $0x30] sm:$0xff]   ;;  %v1291_v31 = vsel %vm525_vm0, %v1168_v56, 0.0 }
  0x1a   :  { %1852 = vst [vmem:[#allocation26_spill] sm:$0xff] %v1276_v59  ;;  %1853 = vst [vmem:[#allocation27_spill] sm:$0xff] %v1280_v25  ;;  %v1295_v59 = vsel %vm525_vm0, %v1178_v60, 0.0  ;;  %v1299_v25 = vsel %vm525_vm0, %v1180_v61, 0.0  ;;  %v1338_v58 = vunpack.c.l.bf16 %v1000_v16 }
  0x1b   :  { %1854 = vst [vmem:[#allocation28_spill] sm:$0xff] %v1284_v46  ;;  %1855 = vst [vmem:[#allocation29_spill] sm:$0xff] %v1291_v31  ;;  %v1001_v46 = vld [vmem:[%s1803_s0 + $0x38] sm:$0xff]   ;;  %v544_v31 = vadd.f32 %v543_v33, %v542_v10  ;;  %v547_v33 = vsel %vm525_vm0, %v1093_v21, 0.0  ;;  %v1347_v10 = vsel %vm525_vm0, %v1198_v15, 0.0 }
  0x1c   :  { %1856 = vst [vmem:[#allocation30_spill] sm:$0xff] %v1295_v59  ;;  %1857 = vst [vmem:[#allocation31_spill] sm:$0xff] %v1299_v25  ;;  %v1318_v59 = vsel %vm525_vm0, %v1188_v2, 0.0  ;;  %v1002_v25 = vld [vmem:[%s1803_s0 + $0x40] sm:$0xff]   ;;  %v1353_v53 = vunpack.c.h.bf16 %v1001_v46 }
  0x1d   :  { %1858 = vst [vmem:[#allocation32_spill] sm:$0xff] %v1306_v3  ;;  %1859 = vst [vmem:[#allocation33_spill] sm:$0xff] %v1310_v26  ;;  %v1003_v3 = vld [vmem:[%s1803_s0 + $0x48] sm:$0xff]   ;;  %v1328_v26 = vsel %vm525_vm0, %v1192_v4, 0.0  ;;  %v546_v48 = vadd.f32 %v545_v34, %v544_v31  ;;  %v1361_v47 = vunpack.c.l.bf16 %v1002_v25  ;;  %v1363_v42 = vunpack.c.h.bf16 %v1002_v25  ;;  %v1008_v34 = vld [vmem:[%s1803_s0 + $0x70] sm:$0xff]  }
  0x1e   :  { %1860 = vst [vmem:[#allocation34_spill] sm:$0xff] %v1314_v63  ;;  %1861 = vst [vmem:[#allocation35_spill] sm:$0xff] %v1318_v59  ;;  %v1332_v63 = vsel %vm525_vm0, %v1194_v5, 0.0  ;;  %v1336_v59 = vsel %vm525_vm0, %v1196_v9, 0.0  ;;  %v1372_v41 = vunpack.c.h.bf16 %v1003_v3  ;;  %v1009_v31 = vld [vmem:[%s1803_s0 + $0x78] sm:$0xff]   ;;  %v1388_v9 = vunpack.c.l.bf16 %v1006_v52 }
  0x1f   :  { %1862 = vst [vmem:[#allocation36_spill] sm:$0xff] %v1328_v26  ;;  %1863 = vst [vmem:[#allocation37_spill] sm:$0xff] %v1332_v63  ;;  %v1349_v26 = vunpack.c.h.bf16 %v1000_v16  ;;  %v1351_v63 = vunpack.c.l.bf16 %v1001_v46  ;;  %v1007_v16 = vld [vmem:[%s1803_s0 + $0x68] sm:$0xff]   ;;  %v549_v46 = vsel %vm525_vm0, %v1338_v58, 0.0  ;;  %v548_v25 = vadd.f32 %v547_v33, %v546_v48 }
  0x20   :  { %1864 = vst [vmem:[#allocation38_spill] sm:$0xff] %v1336_v59  ;;  %1865 = vst [vmem:[#allocation39_spill] sm:$0xff] %v1347_v10  ;;  %v1005_v59 = vld [vmem:[%s1803_s0 + $0x58] sm:$0xff]   ;;  %v1365_v10 = vunpack.c.l.bf16 %v1003_v3  ;;  %v1394_v5 = vunpack.c.l.bf16 %v1007_v16  ;;  %v1396_v4 = vunpack.c.h.bf16 %v1007_v16  ;;  %v1398_v1 = vunpack.c.l.bf16 %v1008_v34 }
  0x21   :  { %1866 = vst [vmem:[#allocation40_spill] sm:$0xff] %v1361_v47  ;;  %1868 = vst [vmem:[#allocation42_spill] sm:$0xff] %v1372_v41  ;;  %v1384_v35 = vunpack.c.l.bf16 %v1005_v59  ;;  %v1386_v15 = vunpack.c.h.bf16 %v1005_v59  ;;  %v551_v3 = vsel %vm525_vm0, %v1349_v26, 0.0  ;;  %v550_v2 = vadd.f32 %v549_v46, %v548_v25 }
  0x22   :  { %1867 = vst [vmem:[#allocation41_spill] sm:$0xff] %v1365_v10  ;;  %1869 = vst [vmem:[#allocation43_spill] sm:$0xff] %v1376_v36  ;;  %v1400_v0 = vunpack.c.h.bf16 %v1008_v34  ;;  %v1402_v48 = vunpack.c.l.bf16 %v1009_v31  ;;  %v553_v59 = vsel %vm525_vm0, %v1351_v63, 0.0  ;;  %v1406_v33 = vunpack.c.h.bf16 %v1009_v31 }
  0x23   :  { %1870 = vst [vmem:[#allocation44_spill] sm:$0xff] %v1384_v35  ;;  %1871 = vst [vmem:[#allocation45_spill] sm:$0xff] %v1386_v15  ;;  %v552_v62 = vadd.f32 %v551_v3, %v550_v2  ;;  %v555_v52 = vsel %vm525_vm0, %v1353_v53, 0.0  ;;  %v557_v16 = vsel %vm525_vm0, %v1361_v47, 0.0  ;;  %v559_v46 = vsel %vm525_vm0, %v1363_v42, 0.0 }
  0x24   :  { %1872 = vst [vmem:[#allocation46_spill] sm:$0xff] %v1388_v9  ;;  %1873 = vst [vmem:[#allocation47_spill] sm:$0xff] %v1392_v57  ;;  %v561_v34 = vsel %vm525_vm0, %v1365_v10, 0.0  ;;  %v563_v25 = vsel %vm525_vm0, %v1372_v41, 0.0  ;;  %v565_v31 = vsel %vm525_vm0, %v1374_v37, 0.0  ;;  %v567_v2 = vsel %vm525_vm0, %v1376_v36, 0.0 }
  0x25   :  { %1874 = vst [vmem:[#allocation48_spill] sm:$0xff] %v1394_v5  ;;  %1875 = vst [vmem:[#allocation49_spill] sm:$0xff] %v1396_v4  ;;  %v569_v3 = vsel %vm525_vm0, %v1384_v35, 0.0  ;;  %v1426_v47 = vsel %vm525_vm0, %v1386_v15, 0.0  ;;  %v1430_v10 = vsel %vm525_vm0, %v1388_v9, 0.0  ;;  %v1434_v41 = vsel %vm525_vm0, %v1392_v57, 0.0 }
  0x26   :  { %1876 = vst [vmem:[#allocation50_spill] sm:$0xff] %v1398_v1  ;;  %1877 = vst [vmem:[#allocation51_spill] sm:$0xff] %v1400_v0  ;;  %v1446_v15 = vsel %vm525_vm0, %v1398_v1, 0.0  ;;  %v1450_v9 = vsel %vm525_vm0, %v1400_v0, 0.0  ;;  %v1454_v57 = vsel %vm525_vm0, %v1402_v48, 0.0  ;;  %v665_v0 = vmul.f32 %v1073_v12, %v1073_v12 }
  0x27   :  { %1878 = vst [vmem:[#allocation52_spill] sm:$0xff] %v1402_v48  ;;  %1879 = vst [vmem:[#allocation53_spill] sm:$0xff] %v1406_v33  ;;  %v554_v33 = vadd.f32 %v553_v59, %v552_v62  ;;  %v1438_v62 = vsel %vm525_vm0, %v1394_v5, 0.0  ;;  %v1442_v59 = vsel %vm525_vm0, %v1396_v4, 0.0  ;;  %v661_v5 = vmul.f32 %v1059_v6, %v1059_v6 }
  0x28   :  { %v662_v4 = vmul.f32 %v1061_v7, %v1061_v7  ;;  %v666_v48 = vmul.f32 %v1075_v13, %v1075_v13  ;;  %v667_v36 = vmul.f32 %v1077_v14, %v1077_v14  ;;  %v668_v6 = vmul.f32 %v1085_v17, %v1085_v17 }
  0x29   :  { %v556_v35 = vadd.f32 %v555_v52, %v554_v33  ;;  %v663_v33 = vmul.f32 %v1063_v8, %v1063_v8  ;;  %v664_v52 = vmul.f32 %v1071_v11, %v1071_v11  ;;  %v669_v7 = vmul.f32 %v1087_v18, %v1087_v18 }
  0x2a   :  { %v670_v8 = vmul.f32 %v1089_v19, %v1089_v19  ;;  %v671_v11 = vmul.f32 %v1091_v20, %v1091_v20  ;;  %v672_v12 = vmul.f32 %v1093_v21, %v1093_v21  ;;  %v673_v13 = vmul.f32 %v1338_v58, %v1338_v58 }
  0x2b   :  { %v558_v1 = vadd.f32 %v557_v16, %v556_v35  ;;  %v1484_v14 = vmul.f32 %v1349_v26, %v1349_v26  ;;  %v1488_v17 = vmul.f32 %v1351_v63, %v1351_v63  ;;  %v695_v18 = vmul.f32 %v1095_v22, %v1095_v22 }
  0x2c   :  { %v696_v19 = vmul.f32 %v1097_v23, %v1097_v23  ;;  %v697_v20 = vmul.f32 %v1099_v24, %v1099_v24  ;;  %v699_v58 = vmul.f32 %v1109_v28, %v1109_v28  ;;  %v700_v26 = vmul.f32 %v1111_v29, %v1111_v29 }
  0x2d   :  { %v560_v35 = vadd.f32 %v559_v46, %v558_v1  ;;  %v698_v1 = vmul.f32 %v1107_v27, %v1107_v27  ;;  %v701_v63 = vmul.f32 %v1113_v30, %v1113_v30  ;;  %v702_v22 = vmul.f32 %v1118_v32, %v1118_v32 }
  0x2e   :  { %v703_v23 = vmul.f32 %v1132_v38, %v1132_v38  ;;  %v725_v24 = vsel %vm525_vm0, %v661_v5, 0.0  ;;  %v704_v27 = vmul.f32 %v1134_v39, %v1134_v39  ;;  %v726_v28 = vsel %vm525_vm0, %v662_v4, 0.0 }
  0x2f   :  { %v562_v21 = vadd.f32 %v561_v34, %v560_v35  ;;  %v728_v46 = vsel %vm525_vm0, %v663_v33, 0.0  ;;  %v705_v29 = vmul.f32 %v1136_v40, %v1136_v40  ;;  %v706_v30 = vmul.f32 %v1141_v43, %v1141_v43 }
  0x30   :  { %v707_v32 = vmul.f32 %v1143_v44, %v1143_v44  ;;  %v727_v38 = vadd.f32 %v726_v28, %v725_v24  ;;  %v708_v5 = vmul.f32 %v1145_v45, %v1145_v45  ;;  %v709_v39 = vmul.f32 %v1155_v49, %v1155_v49 }
  0x31   :  { %v564_v16 = vadd.f32 %v563_v25, %v562_v21  ;;  %v730_v4 = vsel %vm525_vm0, %v664_v52, 0.0  ;;  %v710_v25 = vmul.f32 %v1157_v50, %v1157_v50  ;;  %v711_v40 = vmul.f32 %v1159_v51, %v1159_v51  ;;  %v1880_v51 = vld [vmem:[#allocation2_spill] sm:$0xff] }
  0x32   :  { %v712_v43 = vmul.f32 %v1164_v54, %v1164_v54  ;;  %v729_v44 = vadd.f32 %v728_v46, %v727_v38  ;;  %v714_v45 = vmul.f32 %v1168_v56, %v1168_v56  ;;  %v732_v49 = vsel %vm525_vm0, %v665_v0, 0.0  ;;  %v1883_v0 = vld [vmem:[#allocation5_spill] sm:$0xff] }
  0x33   :  { %v566_v34 = vadd.f32 %v565_v31, %v564_v16  ;;  %v713_v31 = vmul.f32 %v1166_v55, %v1166_v55  ;;  %v715_v52 = vmul.f32 %v1178_v60, %v1178_v60  ;;  %v716_v50 = vmul.f32 %v1180_v61, %v1180_v61  ;;  %v1882_v55 = vld [vmem:[#allocation4_spill] sm:$0xff]  ;;  %v1884_v60 = vld [vmem:[#allocation6_spill] sm:$0xff]  ;;  %v1885_v61 = vld [vmem:[#allocation7_spill] sm:$0xff] }
  0x34   :  { %v717_v35 = vmul.f32 %v1880_v51, %v1880_v51  ;;  %v731_v54 = vadd.f32 %v730_v4, %v729_v44  ;;  %v719_v16 = vmul.f32 %v1882_v55, %v1882_v55  ;;  %v734_v56 = vsel %vm525_vm0, %v666_v48, 0.0  ;;  %v1886_v4 = vld [vmem:[#allocation8_spill] sm:$0xff] }
  0x35   :  { %v568_v33 = vadd.f32 %v567_v2, %v566_v34  ;;  %v1881_v2 = vld [vmem:[#allocation3_spill] sm:$0xff]  ;;  %v720_v28 = vmul.f32 %v1883_v0, %v1883_v0  ;;  %v721_v46 = vmul.f32 %v1884_v60, %v1884_v60  ;;  %v722_v38 = vmul.f32 %v1885_v61, %v1885_v61 }
  0x36   :  { %v718_v24 = vmul.f32 %v1881_v2, %v1881_v2  ;;  %v733_v34 = vadd.f32 %v732_v49, %v731_v54  ;;  %v723_v44 = vmul.f32 %v1886_v4, %v1886_v4  ;;  %v736_v48 = vsel %vm525_vm0, %v667_v36, 0.0 }
  0x37   :  { %v570_v21 = vadd.f32 %v569_v3, %v568_v33  ;;  %v1887_v33 = vld [vmem:[#allocation9_spill] sm:$0xff]  ;;  %v738_v55 = vsel %vm525_vm0, %v668_v6, 0.0  ;;  %v740_v0 = vsel %vm525_vm0, %v669_v7, 0.0  ;;  %v742_v60 = vsel %vm525_vm0, %v670_v8, 0.0 }
  0x38   :  { %v724_v51 = vmul.f32 %v1887_v33, %v1887_v33  ;;  %v735_v2 = vadd.f32 %v734_v56, %v733_v34  ;;  %v744_v49 = vsel %vm525_vm0, %v671_v11, 0.0  ;;  %v748_v54 = vsel %vm525_vm0, %v673_v13, 0.0 }
  0x39   :  { %v572_v3 = vadd.f32 %v1426_v47, %v570_v21  ;;  %v746_v47 = vsel %vm525_vm0, %v672_v12, 0.0  ;;  %v1566_v4 = vsel %vm525_vm0, %v695_v18, 0.0  ;;  %v1569_v36 = vsel %vm525_vm0, %v696_v19, 0.0 }
  0x3a   :  { %v737_v21 = vadd.f32 %v736_v48, %v735_v2  ;;  %v1572_v6 = vsel %vm525_vm0, %v697_v20, 0.0  ;;  %v1579_v8 = vsel %vm525_vm0, %v699_v58, 0.0  ;;  %v1582_v11 = vsel %vm525_vm0, %v700_v26, 0.0 }
  0x3b   :  { %v574_v61 = vadd.f32 %v1430_v10, %v572_v3  ;;  %v1576_v10 = vsel %vm525_vm0, %v698_v1, 0.0  ;;  %v1585_v13 = vsel %vm525_vm0, %v701_v63, 0.0  ;;  %v1588_v18 = vsel %vm525_vm0, %v702_v22, 0.0 }
  0x3c   :  { %v739_v12 = vadd.f32 %v738_v55, %v737_v21  ;;  %v1591_v19 = vsel %vm525_vm0, %v703_v23, 0.0  ;;  %v1595_v20 = vsel %vm525_vm0, %v704_v27, 0.0  ;;  %v1598_v1 = vsel %vm525_vm0, %v705_v29, 0.0 }
  0x3d   :  { %v576_v7 = vadd.f32 %v1434_v41, %v574_v61  ;;  %v1601_v58 = vsel %vm525_vm0, %v706_v30, 0.0  ;;  %v1604_v63 = vsel %vm525_vm0, %v707_v32, 0.0  ;;  %v1607_v22 = vsel %vm525_vm0, %v708_v5, 0.0 }
  0x3e   :  { %v741_v26 = vadd.f32 %v740_v0, %v739_v12  ;;  %v1610_v23 = vsel %vm525_vm0, %v709_v39, 0.0  ;;  %v1614_v27 = vsel %vm525_vm0, %v710_v25, 0.0  ;;  %v1617_v29 = vsel %vm525_vm0, %v711_v40, 0.0  ;;  %v1889_v0 = vld [vmem:[#allocation40_spill] sm:$0xff] }
  0x3f   :  { %v578_v41 = vadd.f32 %v1438_v62, %v576_v7  ;;  %v1620_v30 = vsel %vm525_vm0, %v712_v43, 0.0  ;;  %v1623_v32 = vsel %vm525_vm0, %v713_v31, 0.0  ;;  %v1626_v5 = vsel %vm525_vm0, %v714_v45, 0.0 }
  0x40   :  { %v743_v56 = vadd.f32 %v742_v60, %v741_v26  ;;  %v1629_v39 = vsel %vm525_vm0, %v715_v52, 0.0  ;;  %v1636_v40 = vsel %vm525_vm0, %v716_v50, 0.0  ;;  %v1639_v43 = vsel %vm525_vm0, %v717_v35, 0.0 }
  0x41   :  { %v580_v62 = vadd.f32 %v1442_v59, %v578_v41  ;;  %v1010_v59 = vld [vmem:[%s1803_s0 + $0x80] sm:$0xff]   ;;  %v1642_v31 = vsel %vm525_vm0, %v718_v24, 0.0  ;;  %v1645_v34 = vsel %vm525_vm0, %v719_v16, 0.0  ;;  %v1648_v52 = vsel %vm525_vm0, %v720_v28, 0.0  ;;  %v1888_v16 = vld [vmem:[#allocation53_spill] sm:$0xff] }
  0x42   :  { %v745_v45 = vadd.f32 %v744_v49, %v743_v56  ;;  %v1651_v3 = vsel %vm525_vm0, %v721_v46, 0.0  ;;  %v1655_v50 = vsel %vm525_vm0, %v722_v38, 0.0  ;;  %v1658_v35 = vsel %vm525_vm0, %v723_v44, 0.0  ;;  %v1892_v56 = vld [vmem:[#allocation42_spill] sm:$0xff] }
  0x43   :  { %v582_v25 = vadd.f32 %v1446_v15, %v580_v62  ;;  %v1661_v24 = vsel %vm525_vm0, %v724_v51, 0.0  ;;  %v1663_v33 = vunpack.c.l.bf16 %v1010_v59  ;;  %v587_v28 = vsel %vm525_vm0, %v1888_v16, 0.0  ;;  %v1891_v62 = vld [vmem:[#allocation10_spill] sm:$0xff] }
  0x44   :  { %v747_v48 = vadd.f32 %v746_v47, %v745_v45  ;;  %v750_v38 = vsel %vm525_vm0, %v1484_v14, 0.0  ;;  %v1672_v2 = vunpack.c.h.bf16 %v1010_v59  ;;  %v677_v60 = vmul.f32 %v1889_v0, %v1889_v0 }
  0x45   :  { %v584_v15 = vadd.f32 %v1450_v9, %v582_v25  ;;  %v676_v9 = vmul.f32 %v1353_v53, %v1353_v53  ;;  %v589_v44 = vsel %vm525_vm0, %v1663_v33, 0.0  ;;  %v752_v61 = vsel %vm525_vm0, %v1488_v17, 0.0 }
  0x46   :  { %v749_v51 = vadd.f32 %v748_v54, %v747_v48  ;;  %v678_v14 = vmul.f32 %v1363_v42, %v1363_v42  ;;  %v1890_v54 = vld [vmem:[#allocation41_spill] sm:$0xff]  ;;  %v756_v41 = vsel %vm525_vm0, %v677_v60, 0.0  ;;  %v680_v59 = vmul.f32 %v1892_v56, %v1892_v56 }
  0x47   :  { %v586_v46 = vadd.f32 %v1454_v57, %v584_v15  ;;  %v591_v57 = vsel %vm525_vm0, %v1672_v2, 0.0  ;;  %v754_v47 = vsel %vm525_vm0, %v676_v9, 0.0  ;;  %v679_v12 = vmul.f32 %v1890_v54, %v1890_v54  ;;  %v1893_v15 = vld [vmem:[#allocation11_spill] sm:$0xff]  ;;  %v1894_v9 = vld [vmem:[#allocation12_spill] sm:$0xff]  ;;  %v1896_v60 = vld [vmem:[#allocation13_spill] sm:$0xff] }
  0x48   :  { %v751_v53 = vadd.f32 %v750_v38, %v749_v51  ;;  %v758_v25 = vsel %vm525_vm0, %v678_v14, 0.0 }
  0x49   :  { %v588_v55 = vadd.f32 %v587_v28, %v586_v46  ;;  %v681_v28 = vmul.f32 %v1374_v37, %v1374_v37  ;;  %v760_v48 = vsel %vm525_vm0, %v679_v12, 0.0  ;;  %v1898_v37 = vld [vmem:[#allocation14_spill] sm:$0xff] }
  0x4a   :  { %v753_v21 = vadd.f32 %v752_v61, %v751_v53 }
  0x4b   :  { %v590_v49 = vadd.f32 %v589_v44, %v588_v55  ;;  %v1895_v44 = vld [vmem:[#allocation43_spill] sm:$0xff]  ;;  %v762_v55 = vsel %vm525_vm0, %v680_v59, 0.0 }
  0x4c   :  { %v755_v26 = vadd.f32 %v754_v47, %v753_v21  ;;  %v682_v51 = vmul.f32 %v1895_v44, %v1895_v44  ;;  %v1899_v21 = vld [vmem:[#allocation45_spill] sm:$0xff] }
  0x4d   :  { %v592_v7 = vadd.f32 %v591_v57, %v590_v49  ;;  %v1897_v57 = vld [vmem:[#allocation44_spill] sm:$0xff]  ;;  %v764_v49 = vsel %vm525_vm0, %v681_v28, 0.0 }
  0x4e   :  { %v757_v45 = vadd.f32 %v756_v41, %v755_v26  ;;  %v683_v53 = vmul.f32 %v1897_v57, %v1897_v57  ;;  %v766_v54 = vsel %vm525_vm0, %v682_v51, 0.0  ;;  %v1900_v41 = vld [vmem:[#allocation15_spill] sm:$0xff] }
  0x4f   :  { %v594_v17 = vadd.f32 %v1891_v62, %v592_v7  ;;  %v684_v7 = vmul.f32 %v1899_v21, %v1899_v21  ;;  %v1901_v62 = vld [vmem:[#allocation46_spill] sm:$0xff] }
  0x50   :  { %v759_v46 = vadd.f32 %v758_v25, %v757_v45  ;;  %v768_v56 = vsel %vm525_vm0, %v683_v53, 0.0  ;;  %v1902_v25 = vld [vmem:[#allocation16_spill] sm:$0xff] }
  0x51   :  { %v596_v42 = vadd.f32 %v1893_v15, %v594_v17  ;;  %v685_v17 = vmul.f32 %v1901_v62, %v1901_v62  ;;  %v1903_v15 = vld [vmem:[#allocation47_spill] sm:$0xff]  ;;  %v770_v28 = vsel %vm525_vm0, %v684_v7, 0.0 }
  0x52   :  { %v761_v0 = vadd.f32 %v760_v48, %v759_v46  ;;  %v1904_v46 = vld [vmem:[#allocation17_spill] sm:$0xff] }
  0x53   :  { %v598_v38 = vadd.f32 %v1894_v9, %v596_v42  ;;  %v686_v42 = vmul.f32 %v1903_v15, %v1903_v15  ;;  %v772_v51 = vsel %vm525_vm0, %v685_v17, 0.0 }
  0x54   :  { %v763_v14 = vadd.f32 %v762_v55, %v761_v0  ;;  %v1906_v0 = vld [vmem:[#allocation18_spill] sm:$0xff] }
  0x55   :  { %v600_v61 = vadd.f32 %v1896_v60, %v598_v38  ;;  %v1905_v38 = vld [vmem:[#allocation48_spill] sm:$0xff]  ;;  %v774_v53 = vsel %vm525_vm0, %v686_v42, 0.0 }
  0x56   :  { %v765_v12 = vadd.f32 %v764_v49, %v763_v14  ;;  %v687_v44 = vmul.f32 %v1905_v38, %v1905_v38  ;;  %v1908_v14 = vld [vmem:[#allocation19_spill] sm:$0xff] }
  0x57   :  { %v602_v47 = vadd.f32 %v1898_v37, %v600_v61  ;;  %v1907_v61 = vld [vmem:[#allocation49_spill] sm:$0xff] }
  0x58   :  { %v767_v59 = vadd.f32 %v766_v54, %v765_v12  ;;  %v688_v57 = vmul.f32 %v1907_v61, %v1907_v61  ;;  %v776_v7 = vsel %vm525_vm0, %v687_v44, 0.0  ;;  %v1910_v12 = vld [vmem:[#allocation20_spill] sm:$0xff] }
  0x59   :  { %v604_v26 = vadd.f32 %v1900_v41, %v602_v47  ;;  %v1909_v47 = vld [vmem:[#allocation50_spill] sm:$0xff] }
  0x5a   :  { %v769_v48 = vadd.f32 %v768_v56, %v767_v59  ;;  %v689_v21 = vmul.f32 %v1909_v47, %v1909_v47  ;;  %v778_v17 = vsel %vm525_vm0, %v688_v57, 0.0  ;;  %v1912_v59 = vld [vmem:[#allocation21_spill] sm:$0xff]  ;;  %v1916_v57 = vld [vmem:[#allocation24_spill] sm:$0xff] }
  0x5b   :  { %v606_v45 = vadd.f32 %v1902_v25, %v604_v26  ;;  %v1911_v26 = vld [vmem:[#allocation51_spill] sm:$0xff] }
  0x5c   :  { %v771_v55 = vadd.f32 %v770_v28, %v769_v48  ;;  %v690_v62 = vmul.f32 %v1911_v26, %v1911_v26  ;;  %v780_v42 = vsel %vm525_vm0, %v689_v21, 0.0  ;;  %v1914_v48 = vld [vmem:[#allocation22_spill] sm:$0xff]  ;;  %v1919_v26 = vld [vmem:[#allocation27_spill] sm:$0xff] }
  0x5d   :  { %v608_v9 = vadd.f32 %v1904_v46, %v606_v45  ;;  %v1913_v45 = vld [vmem:[#allocation52_spill] sm:$0xff] }
  0x5e   :  { %v773_v49 = vadd.f32 %v772_v51, %v771_v55  ;;  %v691_v15 = vmul.f32 %v1913_v45, %v1913_v45  ;;  %v782_v38 = vsel %vm525_vm0, %v690_v62, 0.0  ;;  %v1915_v51 = vld [vmem:[#allocation23_spill] sm:$0xff] }
  0x5f   :  { %v610_v60 = vadd.f32 %v1906_v0, %v608_v9  ;;  %v692_v9 = vmul.f32 %v1888_v16, %v1888_v16  ;;  %v693_v0 = vmul.f32 %v1663_v33, %v1663_v33  ;;  %v1917_v16 = vld [vmem:[#allocation25_spill] sm:$0xff] }
  0x60   :  { %v775_v54 = vadd.f32 %v774_v53, %v773_v49  ;;  %v694_v49 = vmul.f32 %v1672_v2, %v1672_v2 }
  0x61   :  { %v612_v37 = vadd.f32 %v1908_v14, %v610_v60  ;;  %v784_v60 = vsel %vm525_vm0, %v691_v15, 0.0  ;;  %v786_v14 = vsel %vm525_vm0, %v692_v9, 0.0  ;;  %v788_v21 = vsel %vm525_vm0, %v693_v0, 0.0  ;;  %v1925_v0 = vld [vmem:[#allocation33_spill] sm:$0xff] }
  0x62   :  { %v777_v56 = vadd.f32 %v776_v7, %v775_v54  ;;  %v1918_v54 = vld [vmem:[#allocation26_spill] sm:$0xff]  ;;  %v790_v33 = vsel %vm525_vm0, %v694_v49, 0.0 }
  0x63   :  { %v614_v41 = vadd.f32 %v1910_v12, %v612_v37 }
  0x64   :  { %v779_v28 = vadd.f32 %v778_v17, %v777_v56  ;;  %v1920_v56 = vld [vmem:[#allocation28_spill] sm:$0xff] }
  0x65   :  { %v616_v25 = vadd.f32 %v1912_v59, %v614_v41 }
  0x66   :  { %v781_v44 = vadd.f32 %v780_v42, %v779_v28  ;;  %v1922_v42 = vld [vmem:[#allocation30_spill] sm:$0xff] }
  0x67   :  { %v618_v46 = vadd.f32 %v1914_v48, %v616_v25  ;;  %v1921_v25 = vld [vmem:[#allocation29_spill] sm:$0xff] }
  0x68   :  { %v783_v61 = vadd.f32 %v782_v38, %v781_v44  ;;  %v1924_v44 = vld [vmem:[#allocation32_spill] sm:$0xff] }
  0x69   :  { %v620_v55 = vadd.f32 %v1915_v51, %v618_v46  ;;  %v1923_v46 = vld [vmem:[#allocation31_spill] sm:$0xff] }
  0x6a   :  { %v785_v37 = vadd.f32 %v784_v60, %v783_v61  ;;  %v1926_v61 = vld [vmem:[#allocation34_spill] sm:$0xff] }
  0x6b   :  { %v622_v53 = vadd.f32 %v1916_v57, %v620_v55 }
  0x6c   :  { %v787_v7 = vadd.f32 %v786_v14, %v785_v37  ;;  %v1928_v14 = vld [vmem:[#allocation36_spill] sm:$0xff] }
  0x6d   :  { %v624_v47 = vadd.f32 %v1917_v16, %v622_v53  ;;  %v1927_v53 = vld [vmem:[#allocation35_spill] sm:$0xff]  ;;  %v1929_v16 = vld [vmem:[#allocation37_spill] sm:$0xff] }
  0x6e   :  { %v789_v41 = vadd.f32 %v788_v21, %v787_v7  ;;  %v1930_v21 = vld [vmem:[#allocation38_spill] sm:$0xff] }
  0x6f   :  { %v626_v12 = vadd.f32 %v1918_v54, %v624_v47  ;;  %v1931_v54 = vld [vmem:[#allocation39_spill] sm:$0xff] }
  0x70   :  { %v791_v17 = vadd.f32 %v790_v33, %v789_v41 }
  0x71   :  { %v628_v62 = vadd.f32 %v1919_v26, %v626_v12 }
  0x72   :  { %v793_v2 = vadd.f32 %v1566_v4, %v791_v17 }
  0x73   :  { %v630_v59 = vadd.f32 %v1920_v56, %v628_v62 }
  0x74   :  { %v795_v15 = vadd.f32 %v1569_v36, %v793_v2 }
  0x75   :  { %v632_v45 = vadd.f32 %v1921_v25, %v630_v59 }
  0x76   :  { %v797_v48 = vadd.f32 %v1572_v6, %v795_v15 }
  0x77   :  { %v634_v28 = vadd.f32 %v1922_v42, %v632_v45 }
  0x78   :  { %v799_v38 = vadd.f32 %v1576_v10, %v797_v48 }
  0x79   :  { %v636_v9 = vadd.f32 %v1923_v46, %v634_v28 }
  0x7a   :  { %v801_v55 = vadd.f32 %v1579_v8, %v799_v38 }
  0x7b   :  { %v638_v51 = vadd.f32 %v1924_v44, %v636_v9 }
  0x7c   :  { %v803_v4 = vadd.f32 %v1582_v11, %v801_v55 }
  0x7d   :  { %v640_v60 = vadd.f32 %v1925_v0, %v638_v51 }
  0x7e   :  { %v805_v36 = vadd.f32 %v1585_v13, %v803_v4 }
  0x7f   :  { %v642_v57 = vadd.f32 %v1926_v61, %v640_v60 }
  0x80   :  { %v807_v6 = vadd.f32 %v1588_v18, %v805_v36 }
  0x81   :  { %v644_v49 = vadd.f32 %v1927_v53, %v642_v57 }
  0x82   :  { %v809_v10 = vadd.f32 %v1591_v19, %v807_v6 }
  0x83   :  { %v646_v37 = vadd.f32 %v1928_v14, %v644_v49 }
  0x84   :  { %v811_v8 = vadd.f32 %v1595_v20, %v809_v10 }
  0x85   :  { %v648_v47 = vadd.f32 %v1929_v16, %v646_v37 }
  0x86   :  { %v813_v11 = vadd.f32 %v1598_v1, %v811_v8 }
  0x87   :  { %v650_v7 = vadd.f32 %v1930_v21, %v648_v47 }
  0x88   :  { %v815_v13 = vadd.f32 %v1601_v58, %v813_v11 }
  0x89   :  { %v652_v12 = vadd.f32 %v1931_v54, %v650_v7 }
  0x8a   :  { %v817_v41 = vadd.f32 %v1604_v63, %v815_v13 }
  0x8b   :  { %v653_v33 = vrot.slane %v652_v12, 4 }
  0x8c   :  { %v819_v26 = vadd.f32 %v1607_v22, %v817_v41 }
  0x8d   :  { %v654_v18 = vadd.f32 %v653_v33, %v652_v12 }
  0x8e   :  { %v821_v19 = vadd.f32 %v1610_v23, %v819_v26 }
  0x8f   :  { %v655_v62 = vrot.slane %v654_v18, 2 }
  0x90   :  { %v823_v20 = vadd.f32 %v1614_v27, %v821_v19 }
  0x91   :  { %v656_v17 = vadd.f32 %v655_v62, %v654_v18 }
  0x92   :  { %v825_v1 = vadd.f32 %v1617_v29, %v823_v20 }
  0x93   :  { %v657_v56 = vrot.slane %v656_v17, 1 }
  0x94   :  { %v827_v2 = vadd.f32 %v1620_v30, %v825_v1 }
  0x95   :  { %v658_v59 = vadd.f32 %v657_v56, %v656_v17 }
  0x96   :  { %v829_v58 = vadd.f32 %v1623_v32, %v827_v2 }
  0x97   :  { %660 = vst.msk [vmem:[%s1804_s1] sm:$0x1] %vm659_vm1, %v658_v59 }
  0x98   :  { %v831_v63 = vadd.f32 %v1626_v5, %v829_v58 }
  0x9a   :  { %v833_v22 = vadd.f32 %v1629_v39, %v831_v63 }
  0x9c   :  { %v835_v23 = vadd.f32 %v1636_v40, %v833_v22 }
  0x9e   :  { %v837_v27 = vadd.f32 %v1639_v43, %v835_v23 }
  0xa0   :  { %v839_v29 = vadd.f32 %v1642_v31, %v837_v27 }
  0xa2   :  { %v841_v25 = vadd.f32 %v1645_v34, %v839_v29 }
  0xa4   :  { %v843_v30 = vadd.f32 %v1648_v52, %v841_v25 }
  0xa6   :  { %v845_v45 = vadd.f32 %v1651_v3, %v843_v30 }
  0xa8   :  { %v847_v15 = vadd.f32 %v1655_v50, %v845_v45 }
  0xaa   :  { %v849_v32 = vadd.f32 %v1658_v35, %v847_v15 }
  0xac   :  { %v851_v5 = vadd.f32 %v1661_v24, %v849_v32 }
  0xae   :  { %v852_v42 = vrot.slane %v851_v5, 4 }
  0xb0   :  { %v853_v39 = vadd.f32 %v852_v42, %v851_v5 }
  0xb2   :  { %v854_v28 = vrot.slane %v853_v39, 2 }
  0xb4   :  { %v855_v40 = vadd.f32 %v854_v28, %v853_v39 }
  0xb6   :  { %v856_v48 = vrot.slane %v855_v40, 1 }
  0xb8   :  { %v857_v43 = vadd.f32 %v856_v48, %v855_v40 }
  0xba   :  { %858 = vst.msk [vmem:[%s1805_s2] sm:$0x1] %vm659_vm1, %v857_v43 }

// kernel: dense_block_forward.6
= control target key start
LH: loop header
LB: loop body
LE: loop exit
PB: predicated region body
PF: predicated region fallthrough
CT: control target
= control target key end

     0   :  { %vm485_vm0 = vcmask 1041408   ;;  %vm388_vm1 = vcmask 31744   ;;  %vm1034_vm2 = vcmask 60416   ;;  %vm1550_vm3 = vcmask 64512   ;;  %s3207_s3 = inlined_call_operand.vmem [shape: bf16[4,8], index: 3, kind: input, shape index: {}]   ;;  %s3208_s0 = inlined_call_operand.vmem [shape: bf16[512,4], index: 0, kind: input, shape index: {}]   ;;  %s3209_s1 = inlined_call_operand.vmem [shape: f32[1,4], index: 1, kind: input, shape index: {}]   ;;  %s3210_s2 = inlined_call_operand.vmem [shape: f32[1,4], index: 2, kind: input, shape index: {}]   ;;  %s3211_s4 = inlined_call_operand.vmem [shape: bf16[512,8], index: 4, kind: output, shape index: {0}]   ;;  %s3212_s5 = inlined_call_operand.vmem [shape: f32[1,1,8], index: 5, kind: output, shape index: {1}]   ;;  %s3213_s6 = inlined_call_operand.vmem [shape: f32[1,1,8], index: 6, kind: output, shape index: {2}]  }
   0x1   :  { %v387_v0 = vld [vmem:[%s3207_s3] sm:$0x3]  ;;  %v2186_v6 = vld [vmem:[%s3208_s0 + $0x8] sm:$0xff]   ;;  %v2187_v7 = vld [vmem:[%s3208_s0 + $0x10] sm:$0xff]   ;;  %vm1684_vm4 = vcmask 57344  }
   0x2   :  { %v2059_v1 = vld [vmem:[%s3208_s0] sm:$0xff]   ;;  %2318 = vmatprep.subr.msk.bf16.mxu0 %vm485_vm0, %v387_v0  ;;  %v487_v3 = vsel %vm485_vm0, %v387_v0, 0  ;;  %2319 = vmatprep.subr.msk.bf16.mxu1 %vm485_vm0, %v387_v0  ;;  %v2064_v9 = vunpack.c.l.bf16 %v2186_v6  ;;  %v2065_v10 = vunpack.c.h.bf16 %v2186_v6  ;;  %v2068_v11 = vunpack.c.l.bf16 %v2187_v7  ;;  %v2188_v13 = vld [vmem:[%s3208_s0 + $0x18] sm:$0xff]   ;;  %v2190_v35 = vld [vmem:[%s3208_s0 + $0x28] sm:$0xff]  }
   0x3   :  { %v2364_v2 = vld [vmem:[%s3209_s1] ss:$0 sm:$0xff]  ;;  %v2060_v4 = vunpack.c.l.bf16 %v2059_v1  ;;  %v2061_v5 = vunpack.c.h.bf16 %v2059_v1  ;;  %2251 = vmatpush3.bf16.msra.mxu0 %v487_v3  ;;  %v2069_v12 = vunpack.c.h.bf16 %v2187_v7  ;;  %2317 = vmatpush3.bf16.msra.mxu1 %v487_v3  ;;  %v2072_v16 = vunpack.c.l.bf16 %v2188_v13  ;;  %v2191_v40 = vld [vmem:[%s3208_s0 + $0x30] sm:$0xff]   ;;  %v2192_v51 = vld [vmem:[%s3208_s0 + $0x38] sm:$0xff]  }
   0x4   :  { %v2375_v8 = vld [vmem:[%s3210_s2] ss:$0 sm:$0xff]  ;;  %v2073_v17 = vunpack.c.h.bf16 %v2188_v13  ;;  %v158_v18 = vmul.f32 %v2064_v9, %v2364_v2  ;;  %v159_v19 = vmul.f32 %v2065_v10, %v2364_v2  ;;  %v160_v20 = vmul.f32 %v2068_v11, %v2364_v2  ;;  %v2194_v9 = vld [vmem:[%s3208_s0 + $0x48] sm:$0xff]   ;;  %v2195_v11 = vld [vmem:[%s3208_s0 + $0x50] sm:$0xff]  }
   0x5   :  { %v156_v14 = vmul.f32 %v2060_v4, %v2364_v2  ;;  %v157_v15 = vmul.f32 %v2061_v5, %v2364_v2  ;;  %v161_v21 = vmul.f32 %v2069_v12, %v2364_v2  ;;  %v162_v24 = vmul.f32 %v2072_v16, %v2364_v2  ;;  %v2189_v30 = vld [vmem:[%s3208_s0 + $0x20] sm:$0xff]  }
   0x6   :  { %v163_v25 = vmul.f32 %v2073_v17, %v2364_v2  ;;  %v229_v26 = vadd.f32 %v2375_v8, %v158_v18  ;;  %v230_v27 = vadd.f32 %v2375_v8, %v159_v19  ;;  %v231_v28 = vadd.f32 %v2375_v8, %v160_v20  ;;  %v2193_v63 = vld [vmem:[%s3208_s0 + $0x40] sm:$0xff]   ;;  %v2196_v20 = vld [vmem:[%s3208_s0 + $0x58] sm:$0xff]  }
   0x7   :  { %v227_v22 = vadd.f32 %v2375_v8, %v156_v14  ;;  %v228_v23 = vadd.f32 %v2375_v8, %v157_v15  ;;  %v232_v29 = vadd.f32 %v2375_v8, %v161_v21  ;;  %v233_v33 = vadd.f32 %v2375_v8, %v162_v24 }
   0x8   :  { %v234_v34 = vadd.f32 %v2375_v8, %v163_v25  ;;  %v293_v36 = vmax.f32 %v229_v26, 0.0  ;;  %v294_v37 = vmax.f32 %v230_v27, 0.0  ;;  %v295_v38 = vmax.f32 %v231_v28, 0.0 }
   0x9   :  { %v291_v31 = vmax.f32 %v227_v22, 0.0  ;;  %v292_v32 = vmax.f32 %v228_v23, 0.0  ;;  %v296_v39 = vmax.f32 %v232_v29, 0.0  ;;  %v2076_v42 = vunpack.c.l.bf16 %v2189_v30 }
   0xa   :  { %v356_v43 = vpack.c.bf16 %v294_v37, %v293_v36  ;;  %v2077_v45 = vunpack.c.h.bf16 %v2189_v30  ;;  %v2080_v46 = vunpack.c.l.bf16 %v2190_v35  ;;  %v297_v47 = vmax.f32 %v233_v33, 0.0 }
   0xb   :  { %v355_v41 = vpack.c.bf16 %v292_v32, %v291_v31  ;;  %v357_v44 = vpack.c.bf16 %v296_v39, %v295_v38  ;;  %v164_v48 = vmul.f32 %v2076_v42, %v2364_v2  ;;  %v2081_v49 = vunpack.c.h.bf16 %v2190_v35  ;;  %v2197_v31 = vld [vmem:[%s3208_s0 + $0x60] sm:$0xff]  }
   0xc   :  { %v2084_v50 = vunpack.c.l.bf16 %v2191_v40  ;;  %v298_v52 = vmax.f32 %v234_v34, 0.0  ;;  %v165_v53 = vmul.f32 %v2077_v45, %v2364_v2  ;;  %v166_v54 = vmul.f32 %v2080_v46, %v2364_v2 }
   0xd   :  { %2252 = vmatprep.mubr.msk.bf16.mxu0 %vm388_vm1, %v355_v41  ;;  %v2085_v55 = vunpack.c.h.bf16 %v2191_v40  ;;  %v235_v56 = vadd.f32 %v2375_v8, %v164_v48  ;;  %v167_v57 = vmul.f32 %v2081_v49, %v2364_v2  ;;  %v2088_v61 = vunpack.c.l.bf16 %v2192_v51 }
   0xe   :  { %2253 = vmatmul.mubr.msk.bf16.vlgmr.msra.gmra.mrb[0].mxu0 %vm388_vm1, %v356_v43  ;;  %v168_v58 = vmul.f32 %v2084_v50, %v2364_v2  ;;  %v236_v59 = vadd.f32 %v2375_v8, %v165_v53  ;;  %v2089_v62 = vunpack.c.h.bf16 %v2192_v51  ;;  %v237_v1 = vadd.f32 %v2375_v8, %v166_v54 }
   0xf   :  { %2256 = vmatprep.mubr.msk.bf16.mxu0 %vm388_vm1, %v357_v44  ;;  %v169_v60 = vmul.f32 %v2085_v55, %v2364_v2  ;;  %v299_v0 = vmax.f32 %v235_v56, 0.0  ;;  %v238_v3 = vadd.f32 %v2375_v8, %v167_v57  ;;  %v358_v5 = vpack.c.bf16 %v298_v52, %v297_v47  ;;  %v2198_v44 = vld [vmem:[%s3208_s0 + $0x68] sm:$0xff]   ;;  %v2199_v56 = vld [vmem:[%s3208_s0 + $0x70] sm:$0xff]  }
  0x10   :  { %v239_v4 = vadd.f32 %v2375_v8, %v168_v58  ;;  %v300_v6 = vmax.f32 %v236_v59, 0.0  ;;  %v2092_v10 = vunpack.c.l.bf16 %v2193_v63  ;;  %v170_v13 = vmul.f32 %v2088_v61, %v2364_v2 }
  0x11   :  { %v240_v7 = vadd.f32 %v2375_v8, %v169_v60  ;;  %v171_v14 = vmul.f32 %v2089_v62, %v2364_v2  ;;  %v2093_v15 = vunpack.c.h.bf16 %v2193_v63  ;;  %v301_v16 = vmax.f32 %v237_v1, 0.0  ;;  %v2474_v1 = vld [vmem:[%s3208_s0 + $0x78] sm:$0xff]  }
  0x12   :  { %v359_v12 = vpack.c.bf16 %v300_v6, %v299_v0  ;;  %v302_v17 = vmax.f32 %v238_v3, 0.0  ;;  %v303_v18 = vmax.f32 %v239_v4, 0.0  ;;  %v2096_v19 = vunpack.c.l.bf16 %v2194_v9  ;;  %v2201_v3 = vld [vmem:[%s3208_s0 + $0x80] sm:$0xff]  }
  0x13   :  { %v304_v21 = vmax.f32 %v240_v7, 0.0  ;;  %v172_v22 = vmul.f32 %v2092_v10, %v2364_v2  ;;  %v2097_v23 = vunpack.c.h.bf16 %v2194_v9  ;;  %v2100_v24 = vunpack.c.l.bf16 %v2195_v11 }
  0x14   :  { %v173_v25 = vmul.f32 %v2093_v15, %v2364_v2  ;;  %v174_v26 = vmul.f32 %v2096_v19, %v2364_v2  ;;  %v2101_v27 = vunpack.c.h.bf16 %v2195_v11  ;;  %v2104_v30 = vunpack.c.l.bf16 %v2196_v20  ;;  %v2202_v19 = vld [vmem:[%s3208_s0 + $0x88] sm:$0xff]  }
  0x15   :  { %v175_v28 = vmul.f32 %v2097_v23, %v2364_v2  ;;  %v176_v29 = vmul.f32 %v2100_v24, %v2364_v2  ;;  %v241_v32 = vadd.f32 %v2375_v8, %v170_v13  ;;  %v242_v33 = vadd.f32 %v2375_v8, %v171_v14  ;;  %v2203_v24 = vld [vmem:[%s3208_s0 + $0x90] sm:$0xff]  }
  0x16   :  { %2257 = vmatmul.mubr.msk.bf16.gmra.mrb[4].mxu0 %vm388_vm1, %v358_v5  ;;  %v177_v34 = vmul.f32 %v2101_v27, %v2364_v2  ;;  %v2105_v35 = vunpack.c.h.bf16 %v2196_v20  ;;  %v360_v36 = vpack.c.bf16 %v302_v17, %v301_v16  ;;  %v361_v37 = vpack.c.bf16 %v304_v21, %v303_v18 }
  0x17   :  { %2260 = vmatprep.mubr.msk.bf16.mxu0 %vm388_vm1, %v359_v12  ;;  %v243_v38 = vadd.f32 %v2375_v8, %v172_v22  ;;  %v178_v39 = vmul.f32 %v2104_v30, %v2364_v2  ;;  %v244_v40 = vadd.f32 %v2375_v8, %v173_v25  ;;  %v245_v41 = vadd.f32 %v2375_v8, %v174_v26 }
  0x18   :  { %v179_v42 = vmul.f32 %v2105_v35, %v2364_v2  ;;  %v2108_v43 = vunpack.c.l.bf16 %v2197_v31  ;;  %v246_v45 = vadd.f32 %v2375_v8, %v175_v28  ;;  %v247_v46 = vadd.f32 %v2375_v8, %v176_v29 }
  0x19   :  { %v248_v47 = vadd.f32 %v2375_v8, %v177_v34  ;;  %v249_v48 = vadd.f32 %v2375_v8, %v178_v39  ;;  %v2109_v50 = vunpack.c.h.bf16 %v2197_v31  ;;  %v305_v52 = vmax.f32 %v241_v32, 0.0 }
  0x1a   :  { %v250_v49 = vadd.f32 %v2375_v8, %v179_v42  ;;  %v180_v51 = vmul.f32 %v2108_v43, %v2364_v2  ;;  %v306_v53 = vmax.f32 %v242_v33, 0.0  ;;  %v2112_v54 = vunpack.c.l.bf16 %v2198_v44  ;;  %v2204_v33 = vld [vmem:[%s3208_s0 + $0x98] sm:$0xff]  }
  0x1b   :  { %v2113_v55 = vunpack.c.h.bf16 %v2198_v44  ;;  %v307_v57 = vmax.f32 %v243_v38, 0.0  ;;  %v308_v58 = vmax.f32 %v244_v40, 0.0  ;;  %v309_v59 = vmax.f32 %v245_v41, 0.0 }
  0x1c   :  { %v181_v60 = vmul.f32 %v2109_v50, %v2364_v2  ;;  %v310_v61 = vmax.f32 %v246_v45, 0.0  ;;  %v311_v62 = vmax.f32 %v247_v46, 0.0  ;;  %v312_v63 = vmax.f32 %v248_v47, 0.0  ;;  %v2205_v46 = vld [vmem:[%s3208_s0 + $0xa0] sm:$0xff]  }
  0x1d   :  { %v182_v0 = vmul.f32 %v2112_v54, %v2364_v2  ;;  %v313_v4 = vmax.f32 %v249_v48, 0.0  ;;  %v314_v5 = vmax.f32 %v250_v49, 0.0  ;;  %v2480_v6 = vadd.f32 %v2375_v8, %v180_v51 }
  0x1e   :  { %2261 = vmatmul.mubr.msk.bf16.gmra.mrb[8].mxu0 %vm388_vm1, %v360_v36  ;;  %v2116_v7 = vunpack.c.l.bf16 %v2199_v56  ;;  %v362_v9 = vpack.c.bf16 %v306_v53, %v305_v52  ;;  %v2483_v10 = vadd.f32 %v2375_v8, %v181_v60  ;;  %v183_v11 = vmul.f32 %v2113_v55, %v2364_v2  ;;  %v2206_v55 = vld [vmem:[%s3208_s0 + $0xa8] sm:$0xff]  }
  0x1f   :  { %2264 = vmatprep.mubr.msk.bf16.mxu0 %vm388_vm1, %v361_v37  ;;  %v2117_v12 = vunpack.c.h.bf16 %v2199_v56  ;;  %v363_v13 = vpack.c.bf16 %v308_v58, %v307_v57  ;;  %v2120_v14 = vunpack.c.l.bf16 %v2474_v1  ;;  %v2124_v15 = vunpack.c.l.bf16 %v2201_v3 }
  0x20   :  { %v364_v16 = vpack.c.bf16 %v310_v61, %v309_v59  ;;  %v365_v17 = vpack.c.bf16 %v312_v63, %v311_v62  ;;  %v2488_v18 = vadd.f32 %v2375_v8, %v182_v0  ;;  %v2493_v20 = vpack.c.bf16 %v314_v5, %v313_v4 }
  0x21   :  { %v315_v21 = vmax.f32 %v2480_v6, 0.0  ;;  %v184_v22 = vmul.f32 %v2116_v7, %v2364_v2  ;;  %v2125_v23 = vunpack.c.h.bf16 %v2201_v3  ;;  %v316_v25 = vmax.f32 %v2483_v10, 0.0  ;;  %v2207_v7 = vld [vmem:[%s3208_s0 + $0xb0] sm:$0xff]   ;;  %v2209_v6 = vld [vmem:[%s3208_s0 + $0xc0] sm:$0xff]  }
  0x22   :  { %v2503_v26 = vadd.f32 %v2375_v8, %v183_v11  ;;  %v185_v27 = vmul.f32 %v2117_v12, %v2364_v2  ;;  %v188_v28 = vmul.f32 %v2124_v15, %v2364_v2  ;;  %v2121_v29 = vunpack.c.h.bf16 %v2474_v1 }
  0x23   :  { %v2510_v30 = vmul.f32 %v2120_v14, %v2364_v2  ;;  %v189_v31 = vmul.f32 %v2125_v23, %v2364_v2  ;;  %v2128_v32 = vunpack.c.l.bf16 %v2202_v19  ;;  %v317_v34 = vmax.f32 %v2488_v18, 0.0  ;;  %v2211_v18 = vld [vmem:[%s3208_s0 + $0xd0] sm:$0xff]  }
  0x24   :  { %v259_v35 = vadd.f32 %v2375_v8, %v188_v28  ;;  %v2129_v36 = vunpack.c.h.bf16 %v2202_v19  ;;  %v2132_v37 = vunpack.c.l.bf16 %v2203_v24  ;;  %v2519_v38 = vadd.f32 %v2375_v8, %v184_v22 }
  0x25   :  { %v260_v39 = vadd.f32 %v2375_v8, %v189_v31  ;;  %v190_v40 = vmul.f32 %v2128_v32, %v2364_v2  ;;  %v2133_v41 = vunpack.c.h.bf16 %v2203_v24  ;;  %v2136_v45 = vunpack.c.l.bf16 %v2204_v33  ;;  %v2208_v24 = vld [vmem:[%s3208_s0 + $0xb8] sm:$0xff]  }
  0x26   :  { %2265 = vmatmul.mubr.msk.bf16.gmra.mrb[12].mxu0 %vm388_vm1, %v362_v9  ;;  %v323_v42 = vmax.f32 %v259_v35, 0.0  ;;  %v191_v43 = vmul.f32 %v2129_v36, %v2364_v2  ;;  %v192_v44 = vmul.f32 %v2132_v37, %v2364_v2  ;;  %v2529_v47 = vadd.f32 %v2375_v8, %v185_v27 }
  0x27   :  { %2268 = vmatprep.mubr.msk.bf16.mxu0 %vm388_vm1, %v363_v13  ;;  %v324_v48 = vmax.f32 %v260_v39, 0.0  ;;  %v261_v49 = vadd.f32 %v2375_v8, %v190_v40  ;;  %v193_v50 = vmul.f32 %v2133_v41, %v2364_v2  ;;  %v2137_v53 = vunpack.c.h.bf16 %v2204_v33 }
  0x28   :  { %v262_v51 = vadd.f32 %v2375_v8, %v191_v43  ;;  %v263_v52 = vadd.f32 %v2375_v8, %v192_v44  ;;  %v194_v54 = vmul.f32 %v2136_v45, %v2364_v2  ;;  %v2140_v59 = vunpack.c.l.bf16 %v2205_v46 }
  0x29   :  { %v371_v56 = vpack.c.bf16 %v324_v48, %v323_v42  ;;  %v325_v57 = vmax.f32 %v261_v49, 0.0  ;;  %v264_v58 = vadd.f32 %v2375_v8, %v193_v50  ;;  %v195_v62 = vmul.f32 %v2137_v53, %v2364_v2 }
  0x2a   :  { %v326_v60 = vmax.f32 %v262_v51, 0.0  ;;  %v327_v61 = vmax.f32 %v263_v52, 0.0  ;;  %v265_v63 = vadd.f32 %v2375_v8, %v194_v54  ;;  %v2141_v3 = vunpack.c.h.bf16 %v2205_v46  ;;  %v2210_v52 = vld [vmem:[%s3208_s0 + $0xc8] sm:$0xff]  }
  0x2b   :  { %2284 = vmatprep.mubr.msk.bf16.mxu1 %vm388_vm1, %v371_v56  ;;  %v328_v0 = vmax.f32 %v264_v58, 0.0  ;;  %v196_v4 = vmul.f32 %v2140_v59, %v2364_v2  ;;  %v2144_v5 = vunpack.c.l.bf16 %v2206_v55  ;;  %v266_v10 = vadd.f32 %v2375_v8, %v195_v62 }
  0x2c   :  { %v372_v9 = vpack.c.bf16 %v326_v60, %v325_v57  ;;  %v329_v11 = vmax.f32 %v265_v63, 0.0  ;;  %v2145_v12 = vunpack.c.h.bf16 %v2206_v55  ;;  %v197_v14 = vmul.f32 %v2141_v3, %v2364_v2 }
  0x2d   :  { %v373_v13 = vpack.c.bf16 %v328_v0, %v327_v61  ;;  %v267_v15 = vadd.f32 %v2375_v8, %v196_v4  ;;  %v2148_v22 = vunpack.c.l.bf16 %v2207_v7  ;;  %v2149_v23 = vunpack.c.h.bf16 %v2207_v7 }
  0x2e   :  { %2269 = vmatmul.mubr.msk.bf16.gmra.mrb[16].mxu0 %vm388_vm1, %v364_v16  ;;  %v198_v16 = vmul.f32 %v2144_v5, %v2364_v2  ;;  %2285 = vmatmul.mubr.msk.bf16.vlgmr.msra.gmra.mrb[0].mxu1 %vm388_vm1, %v372_v9  ;;  %v199_v19 = vmul.f32 %v2145_v12, %v2364_v2  ;;  %v367_v27 = vpack.c.bf16 %v316_v25, %v315_v21  ;;  %v318_v28 = vmax.f32 %v2503_v26, 0.0 }
  0x2f   :  { %2272 = vmatprep.mubr.msk.bf16.mxu0 %vm388_vm1, %v365_v17  ;;  %v330_v17 = vmax.f32 %v266_v10, 0.0  ;;  %2288 = vmatprep.mubr.msk.bf16.mxu1 %vm388_vm1, %v373_v13  ;;  %v268_v31 = vadd.f32 %v2375_v8, %v197_v14  ;;  %v331_v32 = vmax.f32 %v267_v15, 0.0  ;;  %v319_v33 = vmax.f32 %v2519_v38, 0.0  ;;  %v2212_v14 = vld [vmem:[%s3208_s0 + $0xd8] sm:$0xff]  }
  0x30   :  { %v187_v35 = vmul.f32 %v2121_v29, %v2364_v2  ;;  %v200_v36 = vmul.f32 %v2148_v22, %v2364_v2  ;;  %v201_v37 = vmul.f32 %v2149_v23, %v2364_v2  ;;  %v320_v21 = vmax.f32 %v2529_v47, 0.0 }
  0x31   :  { %v332_v25 = vmax.f32 %v268_v31, 0.0  ;;  %v2152_v26 = vunpack.c.l.bf16 %v2208_v24  ;;  %v2153_v39 = vunpack.c.h.bf16 %v2208_v24  ;;  %v374_v38 = vpack.c.bf16 %v330_v17, %v329_v11  ;;  %v2213_v17 = vld [vmem:[%s3208_s0 + $0xe0] sm:$0xff]  }
  0x32   :  { %v269_v1 = vadd.f32 %v2375_v8, %v198_v16  ;;  %v270_v29 = vadd.f32 %v2375_v8, %v199_v19  ;;  %v271_v40 = vadd.f32 %v2375_v8, %v200_v36  ;;  %v272_v42 = vadd.f32 %v2375_v8, %v201_v37 }
  0x33   :  { %v375_v41 = vpack.c.bf16 %v332_v25, %v331_v32  ;;  %v2156_v43 = vunpack.c.l.bf16 %v2209_v6  ;;  %v2157_v44 = vunpack.c.h.bf16 %v2209_v6  ;;  %v257_v45 = vadd.f32 %v2375_v8, %v2510_v30 }
  0x34   :  { %v258_v46 = vadd.f32 %v2375_v8, %v187_v35  ;;  %v203_v47 = vmul.f32 %v2153_v39, %v2364_v2  ;;  %v368_v48 = vpack.c.bf16 %v318_v28, %v317_v34  ;;  %v369_v49 = vpack.c.bf16 %v320_v21, %v319_v33  ;;  %v2214_v39 = vld [vmem:[%s3208_s0 + $0xe8] sm:$0xff]  }
  0x35   :  { %v333_v50 = vmax.f32 %v269_v1, 0.0  ;;  %v334_v51 = vmax.f32 %v270_v29, 0.0  ;;  %v335_v30 = vmax.f32 %v271_v40, 0.0  ;;  %v336_v53 = vmax.f32 %v272_v42, 0.0  ;;  %v2215_v29 = vld [vmem:[%s3208_s0 + $0xf0] sm:$0xff]  }
  0x36   :  { %2273 = vmatmul.mubr.msk.bf16.gmra.mrb[20].mxu0 %vm388_vm1, %v2493_v20  ;;  %v202_v20 = vmul.f32 %v2152_v26, %v2364_v2  ;;  %2289 = vmatmul.mubr.msk.bf16.gmra.mrb[4].mxu1 %vm388_vm1, %v374_v38  ;;  %v204_v54 = vmul.f32 %v2156_v43, %v2364_v2  ;;  %v205_v55 = vmul.f32 %v2157_v44, %v2364_v2  ;;  %v321_v34 = vmax.f32 %v257_v45, 0.0 }
  0x37   :  { %2276 = vmatprep.mubr.msk.bf16.mxu0 %vm388_vm1, %v367_v27  ;;  %2292 = vmatprep.mubr.msk.bf16.mxu1 %vm388_vm1, %v375_v41  ;;  %v322_v56 = vmax.f32 %v258_v46, 0.0  ;;  %v274_v58 = vadd.f32 %v2375_v8, %v203_v47  ;;  %v2160_v59 = vunpack.c.l.bf16 %v2210_v52  ;;  %v376_v60 = vpack.c.bf16 %v334_v51, %v333_v50 }
  0x38   :  { %v273_v57 = vadd.f32 %v2375_v8, %v202_v20  ;;  %v2161_v61 = vunpack.c.h.bf16 %v2210_v52  ;;  %v2164_v62 = vunpack.c.l.bf16 %v2211_v18  ;;  %v2165_v63 = vunpack.c.h.bf16 %v2211_v18  ;;  %v2216_v18 = vld [vmem:[%s3208_s0 + $0xf8] sm:$0xff]  }
  0x39   :  { %v377_v0 = vpack.c.bf16 %v336_v53, %v335_v30  ;;  %v275_v3 = vadd.f32 %v2375_v8, %v204_v54  ;;  %v276_v4 = vadd.f32 %v2375_v8, %v205_v55  ;;  %v338_v7 = vmax.f32 %v274_v58, 0.0 }
  0x3a   :  { %v337_v5 = vmax.f32 %v273_v57, 0.0  ;;  %v206_v9 = vmul.f32 %v2160_v59, %v2364_v2  ;;  %v370_v10 = vpack.c.bf16 %v322_v56, %v321_v34  ;;  %v207_v11 = vmul.f32 %v2161_v61, %v2364_v2 }
  0x3b   :  { %v208_v12 = vmul.f32 %v2164_v62, %v2364_v2  ;;  %v209_v13 = vmul.f32 %v2165_v63, %v2364_v2  ;;  %v339_v15 = vmax.f32 %v275_v3, 0.0  ;;  %v340_v16 = vmax.f32 %v276_v4, 0.0 }
  0x3c   :  { %v378_v19 = vpack.c.bf16 %v338_v7, %v337_v5  ;;  %v277_v22 = vadd.f32 %v2375_v8, %v206_v9  ;;  %v2168_v23 = vunpack.c.l.bf16 %v2212_v14  ;;  %v278_v24 = vadd.f32 %v2375_v8, %v207_v11 }
  0x3d   :  { %v279_v27 = vadd.f32 %v2375_v8, %v208_v12  ;;  %v280_v28 = vadd.f32 %v2375_v8, %v209_v13  ;;  %v2169_v31 = vunpack.c.h.bf16 %v2212_v14  ;;  %v379_v32 = vpack.c.bf16 %v340_v16, %v339_v15 }
  0x3e   :  { %2277 = vmatmul.mubr.msk.bf16.gmra.mrb[24].mxu0 %vm388_vm1, %v368_v48  ;;  %2293 = vmatmul.mubr.msk.bf16.gmra.mrb[8].mxu1 %vm388_vm1, %v376_v60  ;;  %v2172_v33 = vunpack.c.l.bf16 %v2213_v17  ;;  %v2173_v35 = vunpack.c.h.bf16 %v2213_v17  ;;  %v341_v36 = vmax.f32 %v277_v22, 0.0  ;;  %v210_v37 = vmul.f32 %v2168_v23, %v2364_v2 }
  0x3f   :  { %2280 = vmatprep.mubr.msk.bf16.mxu0 %vm388_vm1, %v369_v49  ;;  %2296 = vmatprep.mubr.msk.bf16.mxu1 %vm388_vm1, %v377_v0  ;;  %v342_v6 = vmax.f32 %v278_v24, 0.0  ;;  %v343_v21 = vmax.f32 %v279_v27, 0.0  ;;  %v344_v25 = vmax.f32 %v280_v28, 0.0  ;;  %v211_v26 = vmul.f32 %v2169_v31, %v2364_v2 }
  0x40   :  { %v212_v38 = vmul.f32 %v2172_v33, %v2364_v2  ;;  %v213_v1 = vmul.f32 %v2173_v35, %v2364_v2  ;;  %v281_v40 = vadd.f32 %v2375_v8, %v210_v37  ;;  %v2176_v41 = vunpack.c.l.bf16 %v2214_v39 }
  0x41   :  { %v380_v42 = vpack.c.bf16 %v342_v6, %v341_v36  ;;  %v381_v43 = vpack.c.bf16 %v344_v25, %v343_v21  ;;  %v282_v44 = vadd.f32 %v2375_v8, %v211_v26  ;;  %v2177_v45 = vunpack.c.h.bf16 %v2214_v39 }
  0x42   :  { %v283_v46 = vadd.f32 %v2375_v8, %v212_v38  ;;  %v284_v20 = vadd.f32 %v2375_v8, %v213_v1  ;;  %v2180_v47 = vunpack.c.l.bf16 %v2215_v29  ;;  %v2181_v48 = vunpack.c.h.bf16 %v2215_v29 }
  0x43   :  { %v214_v49 = vmul.f32 %v2176_v41, %v2364_v2  ;;  %v345_v50 = vmax.f32 %v281_v40, 0.0  ;;  %v346_v51 = vmax.f32 %v282_v44, 0.0  ;;  %v215_v52 = vmul.f32 %v2177_v45, %v2364_v2 }
  0x44   :  { %v347_v30 = vmax.f32 %v283_v46, 0.0  ;;  %v348_v53 = vmax.f32 %v284_v20, 0.0  ;;  %v216_v54 = vmul.f32 %v2180_v47, %v2364_v2  ;;  %v217_v55 = vmul.f32 %v2181_v48, %v2364_v2 }
  0x45   :  { %v285_v34 = vadd.f32 %v2375_v8, %v214_v49  ;;  %v382_v56 = vpack.c.bf16 %v346_v51, %v345_v50  ;;  %v286_v57 = vadd.f32 %v2375_v8, %v215_v52  ;;  %v2184_v58 = vunpack.c.l.bf16 %v2216_v18 }
  0x46   :  { %2281 = vmatmul.mubr.msk.bf16.gmra.mrb[28].mxu0 %vm388_vm1, %v370_v10  ;;  %2297 = vmatmul.mubr.msk.bf16.gmra.mrb[12].mxu1 %vm388_vm1, %v378_v19  ;;  %v2185_v59 = vunpack.c.h.bf16 %v2216_v18  ;;  %v383_v60 = vpack.c.bf16 %v348_v53, %v347_v30  ;;  %v287_v61 = vadd.f32 %v2375_v8, %v216_v54  ;;  %v288_v62 = vadd.f32 %v2375_v8, %v217_v55 }
  0x47   :  { %2300 = vmatprep.mubr.msk.bf16.mxu1 %vm388_vm1, %v379_v32  ;;  %v349_v63 = vmax.f32 %v285_v34, 0.0  ;;  %v350_v0 = vmax.f32 %v286_v57, 0.0  ;;  %v218_v3 = vmul.f32 %v2184_v58, %v2364_v2 }
  0x48   :  { %v219_v4 = vmul.f32 %v2185_v59, %v2364_v2  ;;  %v351_v5 = vmax.f32 %v287_v61, 0.0  ;;  %v352_v7 = vmax.f32 %v288_v62, 0.0 }
  0x49   :  { %v384_v9 = vpack.c.bf16 %v350_v0, %v349_v63  ;;  %v289_v10 = vadd.f32 %v2375_v8, %v218_v3 }
  0x4a   :  { %v290_v11 = vadd.f32 %v2375_v8, %v219_v4  ;;  %v385_v12 = vpack.c.bf16 %v352_v7, %v351_v5 }
  0x4b   :  { %v353_v13 = vmax.f32 %v289_v10, 0.0 }
  0x4c   :  { %v354_v14 = vmax.f32 %v290_v11, 0.0 }
  0x4e   :  { %2301 = vmatmul.mubr.msk.bf16.gmra.mrb[16].mxu1 %vm388_vm1, %v380_v42  ;;  %v386_v15 = vpack.c.bf16 %v354_v14, %v353_v13 }
  0x4f   :  { %2304 = vmatprep.mubr.msk.bf16.mxu1 %vm388_vm1, %v381_v43 }
  0x56   :  { %2305 = vmatmul.mubr.msk.bf16.gmra.mrb[20].mxu1 %vm388_vm1, %v382_v56 }
  0x57   :  { %2308 = vmatprep.mubr.msk.bf16.mxu1 %vm388_vm1, %v383_v60 }
  0x5e   :  { %2309 = vmatmul.mubr.msk.bf16.gmra.mrb[24].mxu1 %vm388_vm1, %v384_v9 }
  0x5f   :  { %2312 = vmatprep.mubr.msk.bf16.mxu1 %vm388_vm1, %v385_v12 }
  0x66   :  { %2313 = vmatmul.mubr.msk.bf16.gmra.mrb[28].mxu1 %vm388_vm1, %v386_v15 }
  0xe1   :  { %v2254_v2 = vpop.f32.mrb[0].mxu0 }
  0xe2   :  { %v1996_v16 = vpack.c.bf16 %v2254_v2, %v2254_v2  ;;  %v523_v17 = vpop.f32.mrb[1].mxu0 }
  0xe3   :  { %v1994_v19 = vpack.c.bf16 %v523_v17, %v523_v17  ;;  %v2255_v22 = vpop.f32.mrb[2].mxu0 }
  0xe4   :  { %1037 = vst.msk [vmem:[%s3211_s4 + $0x8] sm:$0xf] %vm1034_vm2, %v1996_v16  ;;  %v779_v8 = vpack.c.bf16 %v2255_v22, %v2254_v2  ;;  %v1997_v23 = vpack.c.bf16 %v2255_v22, %v2255_v22  ;;  %v526_v24 = vpop.f32.mrb[3].mxu0 }
  0xe5   :  { %1035 = vst.msk [vmem:[%s3211_s4] sm:$0xf] %vm1034_vm2, %v1994_v19  ;;  %v778_v27 = vpack.c.bf16 %v526_v24, %v523_v17  ;;  %v1995_v28 = vpack.c.bf16 %v526_v24, %v526_v24 }
  0xe6   :  { %1038 = vst.msk [vmem:[%s3211_s4 + $0xc] sm:$0xf] %vm1034_vm2, %v1997_v23  ;;  %v1296_v31 = vunpack.c.l.bf16 %v779_v8  ;;  %v1297_v32 = vunpack.c.h.bf16 %v779_v8 }
  0xe7   :  { %1036 = vst.msk [vmem:[%s3211_s4 + $0x4] sm:$0xf] %vm1034_vm2, %v1995_v28  ;;  %v1294_v33 = vunpack.c.l.bf16 %v778_v27  ;;  %v1295_v35 = vunpack.c.h.bf16 %v778_v27 }
  0xe8   :  { %v1688_v36 = vmul.f32 %v1296_v31, %v1296_v31  ;;  %v1554_v39 = vsel %vm1550_vm3, %v1296_v31, 0.0  ;;  %v1689_v40 = vmul.f32 %v1297_v32, %v1297_v32  ;;  %v1556_v49 = vsel %vm1550_vm3, %v1297_v32, 0.0 }
  0xe9   :  { %v1551_v37 = vsel %vm1550_vm3, %v1294_v33, 0.0  ;;  %v1552_v6 = vsel %vm1550_vm3, %v1295_v35, 0.0  ;;  %v1686_v21 = vmul.f32 %v1294_v33, %v1294_v33  ;;  %v1687_v25 = vmul.f32 %v1295_v35, %v1295_v35  ;;  %v2258_v26 = vpop.f32.mrb[4].mxu0 }
  0xea   :  { %v1553_v38 = vadd.f32 %v1552_v6, %v1551_v37  ;;  %v2000_v1 = vpack.c.bf16 %v2258_v26, %v2258_v26  ;;  %v539_v29 = vpop.f32.mrb[5].mxu0  ;;  %v1753_v50 = vsel %vm1550_vm3, %v1688_v36, 0.0  ;;  %v1755_v34 = vsel %vm1550_vm3, %v1689_v40, 0.0 }
  0xeb   :  { %v1750_v41 = vsel %vm1550_vm3, %v1686_v21, 0.0  ;;  %v1751_v42 = vsel %vm1550_vm3, %v1687_v25, 0.0  ;;  %v1998_v43 = vpack.c.bf16 %v539_v29, %v539_v29  ;;  %v2259_v44 = vpop.f32.mrb[6].mxu0 }
  0xec   :  { %v1555_v45 = vadd.f32 %v1554_v39, %v1553_v38  ;;  %v1752_v46 = vadd.f32 %v1751_v42, %v1750_v41  ;;  %1041 = vst.msk [vmem:[%s3211_s4 + $0x18] sm:$0xf] %vm1034_vm2, %v2000_v1  ;;  %v781_v20 = vpack.c.bf16 %v2259_v44, %v2258_v26  ;;  %v2001_v47 = vpack.c.bf16 %v2259_v44, %v2259_v44  ;;  %v542_v48 = vpop.f32.mrb[7].mxu0 }
  0xed   :  { %1039 = vst.msk [vmem:[%s3211_s4 + $0x10] sm:$0xf] %vm1034_vm2, %v1998_v43  ;;  %v780_v51 = vpack.c.bf16 %v542_v48, %v539_v29  ;;  %v1999_v52 = vpack.c.bf16 %v542_v48, %v542_v48 }
  0xee   :  { %v1754_v30 = vadd.f32 %v1753_v50, %v1752_v46  ;;  %1042 = vst.msk [vmem:[%s3211_s4 + $0x1c] sm:$0xf] %vm1034_vm2, %v2001_v47  ;;  %v1300_v53 = vunpack.c.l.bf16 %v781_v20  ;;  %v1557_v54 = vadd.f32 %v1556_v49, %v1555_v45  ;;  %v1301_v56 = vunpack.c.h.bf16 %v781_v20 }
  0xef   :  { %1040 = vst.msk [vmem:[%s3211_s4 + $0x14] sm:$0xf] %vm1034_vm2, %v1999_v52  ;;  %v1298_v55 = vunpack.c.l.bf16 %v780_v51  ;;  %v1299_v18 = vunpack.c.h.bf16 %v780_v51 }
  0xf0   :  { %v1562_v61 = vsel %vm1550_vm3, %v1300_v53, 0.0  ;;  %v1692_v62 = vmul.f32 %v1300_v53, %v1300_v53  ;;  %v1756_v0 = vadd.f32 %v1755_v34, %v1754_v30  ;;  %v1693_v2 = vmul.f32 %v1301_v56, %v1301_v56 }
  0xf1   :  { %v1558_v57 = vsel %vm1550_vm3, %v1298_v55, 0.0  ;;  %v1690_v58 = vmul.f32 %v1298_v55, %v1298_v55  ;;  %v1691_v59 = vmul.f32 %v1299_v18, %v1299_v18  ;;  %v2262_v60 = vpop.f32.mrb[8].mxu0  ;;  %v1560_v4 = vsel %vm1550_vm3, %v1299_v18, 0.0 }
  0xf2   :  { %v1559_v63 = vadd.f32 %v1558_v57, %v1557_v54  ;;  %v555_v3 = vpop.f32.mrb[9].mxu0  ;;  %v2004_v7 = vpack.c.bf16 %v2262_v60, %v2262_v60  ;;  %v1761_v24 = vsel %vm1550_vm3, %v1692_v62, 0.0  ;;  %v1564_v32 = vsel %vm1550_vm3, %v1301_v56, 0.0 }
  0xf3   :  { %v1757_v5 = vsel %vm1550_vm3, %v1690_v58, 0.0  ;;  %v2002_v9 = vpack.c.bf16 %v555_v3, %v555_v3  ;;  %v2263_v10 = vpop.f32.mrb[10].mxu0  ;;  %v1759_v16 = vsel %vm1550_vm3, %v1691_v59, 0.0  ;;  %v1763_v35 = vsel %vm1550_vm3, %v1693_v2, 0.0 }
  0xf4   :  { %v1561_v11 = vadd.f32 %v1560_v4, %v1559_v63  ;;  %v1758_v12 = vadd.f32 %v1757_v5, %v1756_v0  ;;  %v783_v13 = vpack.c.bf16 %v2263_v10, %v2262_v60  ;;  %v2005_v14 = vpack.c.bf16 %v2263_v10, %v2263_v10  ;;  %v558_v15 = vpop.f32.mrb[11].mxu0  ;;  %1045 = vst.msk [vmem:[%s3211_s4 + $0x28] sm:$0xf] %vm1034_vm2, %v2004_v7 }
  0xf5   :  { %1043 = vst.msk [vmem:[%s3211_s4 + $0x20] sm:$0xf] %vm1034_vm2, %v2002_v9  ;;  %v782_v17 = vpack.c.bf16 %v558_v15, %v555_v3  ;;  %v2003_v19 = vpack.c.bf16 %v558_v15, %v558_v15 }
  0xf6   :  { %v1563_v22 = vadd.f32 %v1562_v61, %v1561_v11  ;;  %v1760_v8 = vadd.f32 %v1759_v16, %v1758_v12  ;;  %1046 = vst.msk [vmem:[%s3211_s4 + $0x2c] sm:$0xf] %vm1034_vm2, %v2005_v14  ;;  %v1304_v23 = vunpack.c.l.bf16 %v783_v13  ;;  %v1305_v27 = vunpack.c.h.bf16 %v783_v13 }
  0xf7   :  { %1044 = vst.msk [vmem:[%s3211_s4 + $0x24] sm:$0xf] %vm1034_vm2, %v2003_v19  ;;  %v1302_v28 = vunpack.c.l.bf16 %v782_v17  ;;  %v1303_v31 = vunpack.c.h.bf16 %v782_v17 }
  0xf8   :  { %v1762_v33 = vadd.f32 %v1761_v24, %v1760_v8  ;;  %v1565_v36 = vadd.f32 %v1564_v32, %v1563_v22  ;;  %v1696_v21 = vmul.f32 %v1304_v23, %v1304_v23  ;;  %v1697_v1 = vmul.f32 %v1305_v27, %v1305_v27 }
  0xf9   :  { %v1566_v37 = vsel %vm1550_vm3, %v1302_v28, 0.0  ;;  %v2266_v6 = vpop.f32.mrb[12].mxu0  ;;  %v1694_v25 = vmul.f32 %v1302_v28, %v1302_v28  ;;  %v1695_v26 = vmul.f32 %v1303_v31, %v1303_v31  ;;  %v1568_v43 = vsel %vm1550_vm3, %v1303_v31, 0.0 }
  0xfa   :  { %v1764_v39 = vadd.f32 %v1763_v35, %v1762_v33  ;;  %v571_v38 = vpop.f32.mrb[13].mxu0  ;;  %v1567_v29 = vadd.f32 %v1566_v37, %v1565_v36  ;;  %v2008_v40 = vpack.c.bf16 %v2266_v6, %v2266_v6  ;;  %v1570_v51 = vsel %vm1550_vm3, %v1304_v23, 0.0 }
  0xfb   :  { %v2006_v41 = vpack.c.bf16 %v571_v38, %v571_v38  ;;  %v2267_v42 = vpop.f32.mrb[14].mxu0  ;;  %v1765_v44 = vsel %vm1550_vm3, %v1694_v25, 0.0  ;;  %v1767_v52 = vsel %vm1550_vm3, %v1695_v26, 0.0  ;;  %v1572_v56 = vsel %vm1550_vm3, %v1305_v27, 0.0 }
  0xfc   :  { %v785_v45 = vpack.c.bf16 %v2267_v42, %v2266_v6  ;;  %v2009_v46 = vpack.c.bf16 %v2267_v42, %v2267_v42  ;;  %v574_v20 = vpop.f32.mrb[15].mxu0  ;;  %v1569_v47 = vadd.f32 %v1568_v43, %v1567_v29  ;;  %v1766_v48 = vadd.f32 %v1765_v44, %v1764_v39  ;;  %1049 = vst.msk [vmem:[%s3211_s4 + $0x38] sm:$0xf] %vm1034_vm2, %v2008_v40 }
  0xfd   :  { %1047 = vst.msk [vmem:[%s3211_s4 + $0x30] sm:$0xf] %vm1034_vm2, %v2006_v41  ;;  %v784_v49 = vpack.c.bf16 %v574_v20, %v571_v38  ;;  %v2007_v50 = vpack.c.bf16 %v574_v20, %v574_v20  ;;  %v1769_v57 = vsel %vm1550_vm3, %v1696_v21, 0.0  ;;  %v1771_v58 = vsel %vm1550_vm3, %v1697_v1, 0.0 }
  0xfe   :  { %1050 = vst.msk [vmem:[%s3211_s4 + $0x3c] sm:$0xf] %vm1034_vm2, %v2009_v46  ;;  %v1308_v30 = vunpack.c.l.bf16 %v785_v45  ;;  %v1309_v53 = vunpack.c.h.bf16 %v785_v45  ;;  %v1571_v54 = vadd.f32 %v1570_v51, %v1569_v47  ;;  %v1768_v55 = vadd.f32 %v1767_v52, %v1766_v48 }
  0xff   :  { %1048 = vst.msk [vmem:[%s3211_s4 + $0x34] sm:$0xf] %vm1034_vm2, %v2007_v50  ;;  %v1306_v18 = vunpack.c.l.bf16 %v784_v49  ;;  %v1307_v34 = vunpack.c.h.bf16 %v784_v49 }
 0x100   :  { %v1770_v59 = vadd.f32 %v1769_v57, %v1768_v55  ;;  %v1578_v60 = vsel %vm1550_vm3, %v1308_v30, 0.0  ;;  %v1573_v61 = vadd.f32 %v1572_v56, %v1571_v54  ;;  %v1700_v0 = vmul.f32 %v1308_v30, %v1308_v30 }
 0x101   :  { %v1574_v62 = vsel %vm1550_vm3, %v1306_v18, 0.0  ;;  %v2270_v63 = vpop.f32.mrb[16].mxu0  ;;  %v1701_v3 = vmul.f32 %v1309_v53, %v1309_v53  ;;  %v1698_v4 = vmul.f32 %v1306_v18, %v1306_v18  ;;  %v1699_v5 = vmul.f32 %v1307_v34, %v1307_v34  ;;  %v2286_v24 = vpop.f32.mrb[0].mxu1 }
 0x102   :  { %v587_v7 = vpop.f32.mrb[17].mxu0  ;;  %v1575_v9 = vadd.f32 %v1574_v62, %v1573_v61  ;;  %v1772_v10 = vadd.f32 %v1771_v58, %v1770_v59  ;;  %v2012_v11 = vpack.c.bf16 %v2270_v63, %v2270_v63  ;;  %v1576_v14 = vsel %vm1550_vm3, %v1307_v34, 0.0  ;;  %v2763_v33 = vpop.f32.mrb[1].mxu1 }
 0x103   :  { %v2010_v12 = vpack.c.bf16 %v587_v7, %v587_v7  ;;  %v2271_v13 = vpop.f32.mrb[18].mxu0  ;;  %v1773_v15 = vsel %vm1550_vm3, %v1698_v4, 0.0  ;;  %v1775_v27 = vsel %vm1550_vm3, %v1699_v5, 0.0  ;;  %v2028_v32 = vpack.c.bf16 %v2286_v24, %v2286_v24  ;;  %v2769_v21 = vpop.f32.mrb[2].mxu1 }
 0x104   :  { %v787_v2 = vpack.c.bf16 %v2271_v13, %v2270_v63  ;;  %v2013_v16 = vpack.c.bf16 %v2271_v13, %v2271_v13  ;;  %v590_v17 = vpop.f32.mrb[19].mxu0  ;;  %v1577_v19 = vadd.f32 %v1576_v14, %v1575_v9  ;;  %v1774_v22 = vadd.f32 %v1773_v15, %v1772_v10  ;;  %1053 = vst.msk [vmem:[%s3211_s4 + $0x48] sm:$0xf] %vm1034_vm2, %v2012_v11  ;;  %v2779_v1 = vpop.f32.mrb[3].mxu1 }
 0x105   :  { %1051 = vst.msk [vmem:[%s3211_s4 + $0x40] sm:$0xf] %vm1034_vm2, %v2010_v12  ;;  %v786_v8 = vpack.c.bf16 %v590_v17, %v587_v7  ;;  %v2011_v23 = vpack.c.bf16 %v590_v17, %v590_v17  ;;  %v1580_v25 = vsel %vm1550_vm3, %v1309_v53, 0.0  ;;  %v1777_v26 = vsel %vm1550_vm3, %v1700_v0, 0.0  ;;  %1069 = vst.msk [vmem:[%s3211_s4 + $0x88] sm:$0xf] %vm1034_vm2, %v2028_v32 }
 0x106   :  { %1054 = vst.msk [vmem:[%s3211_s4 + $0x4c] sm:$0xf] %vm1034_vm2, %v2013_v16  ;;  %v1312_v28 = vunpack.c.l.bf16 %v787_v2  ;;  %v1313_v31 = vunpack.c.h.bf16 %v787_v2  ;;  %v1579_v35 = vadd.f32 %v1578_v60, %v1577_v19  ;;  %v1776_v36 = vadd.f32 %v1775_v27, %v1774_v22 }
 0x107   :  { %1052 = vst.msk [vmem:[%s3211_s4 + $0x44] sm:$0xf] %vm1034_vm2, %v2011_v23  ;;  %v1310_v37 = vunpack.c.l.bf16 %v786_v8  ;;  %v1311_v6 = vunpack.c.h.bf16 %v786_v8  ;;  %v1779_v39 = vsel %vm1550_vm3, %v1701_v3, 0.0  ;;  %v2026_v62 = vpack.c.bf16 %v2763_v33, %v2763_v33 }
 0x108   :  { %v1586_v38 = vsel %vm1550_vm3, %v1312_v28, 0.0  ;;  %v1778_v29 = vadd.f32 %v1777_v26, %v1776_v36  ;;  %v1704_v40 = vmul.f32 %v1312_v28, %v1312_v28  ;;  %v1581_v41 = vadd.f32 %v1580_v25, %v1579_v35 }
 0x109   :  { %v1582_v42 = vsel %vm1550_vm3, %v1310_v37, 0.0  ;;  %v2274_v43 = vpop.f32.mrb[20].mxu0  ;;  %v1705_v44 = vmul.f32 %v1313_v31, %v1313_v31  ;;  %v1584_v45 = vsel %vm1550_vm3, %v1311_v6, 0.0  ;;  %v1702_v46 = vmul.f32 %v1310_v37, %v1310_v37  ;;  %v2793_v59 = vpop.f32.mrb[4].mxu1  ;;  %1067 = vst.msk [vmem:[%s3211_s4 + $0x80] sm:$0xf] %vm1034_vm2, %v2026_v62 }
 0x10a   :  { %v1703_v20 = vmul.f32 %v1311_v6, %v1311_v6  ;;  %v603_v47 = vpop.f32.mrb[21].mxu0  ;;  %v1583_v48 = vadd.f32 %v1582_v42, %v1581_v41  ;;  %v1780_v49 = vadd.f32 %v1779_v39, %v1778_v29  ;;  %v2016_v50 = vpack.c.bf16 %v2274_v43, %v2274_v43  ;;  %v2804_v0 = vpop.f32.mrb[5].mxu1 }
 0x10b   :  { %v2014_v51 = vpack.c.bf16 %v603_v47, %v603_v47  ;;  %v2275_v52 = vpop.f32.mrb[22].mxu0  ;;  %v1781_v30 = vsel %vm1550_vm3, %v1702_v46, 0.0  ;;  %v2802_v63 = vpack.c.bf16 %v2769_v21, %v2286_v24  ;;  %v2810_v9 = vpop.f32.mrb[6].mxu1  ;;  %v1588_v10 = vsel %vm1550_vm3, %v1313_v31, 0.0 }
 0x10c   :  { %v1783_v53 = vsel %vm1550_vm3, %v1703_v20, 0.0  ;;  %v789_v54 = vpack.c.bf16 %v2275_v52, %v2274_v43  ;;  %v2017_v55 = vpack.c.bf16 %v2275_v52, %v2275_v52  ;;  %v606_v18 = vpop.f32.mrb[23].mxu0  ;;  %v1585_v34 = vadd.f32 %v1584_v45, %v1583_v48  ;;  %1057 = vst.msk [vmem:[%s3211_s4 + $0x58] sm:$0xf] %vm1034_vm2, %v2016_v50  ;;  %v2818_v12 = vpop.f32.mrb[7].mxu1 }
 0x10d   :  { %v1782_v56 = vadd.f32 %v1781_v30, %v1780_v49  ;;  %1055 = vst.msk [vmem:[%s3211_s4 + $0x50] sm:$0xf] %vm1034_vm2, %v2014_v51  ;;  %v788_v57 = vpack.c.bf16 %v606_v18, %v603_v47  ;;  %v2015_v58 = vpack.c.bf16 %v606_v18, %v606_v18  ;;  %v1785_v11 = vsel %vm1550_vm3, %v1704_v40, 0.0 }
 0x10e   :  { %1058 = vst.msk [vmem:[%s3211_s4 + $0x5c] sm:$0xf] %vm1034_vm2, %v2017_v55  ;;  %v1316_v60 = vunpack.c.l.bf16 %v789_v54  ;;  %v1317_v61 = vunpack.c.h.bf16 %v789_v54  ;;  %v1587_v3 = vadd.f32 %v1586_v38, %v1585_v34  ;;  %v1787_v13 = vsel %vm1550_vm3, %v1705_v44, 0.0 }
 0x10f   :  { %v1784_v4 = vadd.f32 %v1783_v53, %v1782_v56  ;;  %1056 = vst.msk [vmem:[%s3211_s4 + $0x54] sm:$0xf] %vm1034_vm2, %v2015_v58  ;;  %v1314_v5 = vunpack.c.l.bf16 %v788_v57  ;;  %v1315_v7 = vunpack.c.h.bf16 %v788_v57  ;;  %v2029_v44 = vpack.c.bf16 %v2769_v21, %v2769_v21 }
 0x110   :  { %v1589_v15 = vadd.f32 %v1588_v10, %v1587_v3  ;;  %v1708_v17 = vmul.f32 %v1316_v60, %v1316_v60  ;;  %v1709_v19 = vmul.f32 %v1317_v61, %v1317_v61  ;;  %v1594_v41 = vsel %vm1550_vm3, %v1316_v60, 0.0 }
 0x111   :  { %v1786_v14 = vadd.f32 %v1785_v11, %v1784_v4  ;;  %v1590_v2 = vsel %vm1550_vm3, %v1314_v5, 0.0  ;;  %v2278_v16 = vpop.f32.mrb[24].mxu0  ;;  %v1706_v22 = vmul.f32 %v1314_v5, %v1314_v5  ;;  %v1707_v8 = vmul.f32 %v1315_v7, %v1315_v7  ;;  %v2832_v40 = vpop.f32.mrb[8].mxu1  ;;  %1070 = vst.msk [vmem:[%s3211_s4 + $0x8c] sm:$0xf] %vm1034_vm2, %v2029_v44 }
 0x112   :  { %v619_v23 = vpop.f32.mrb[25].mxu0  ;;  %v1591_v24 = vadd.f32 %v1590_v2, %v1589_v15  ;;  %v2020_v28 = vpack.c.bf16 %v2278_v16, %v2278_v16  ;;  %v1592_v35 = vsel %vm1550_vm3, %v1315_v7, 0.0  ;;  %v2842_v45 = vpop.f32.mrb[9].mxu1  ;;  %v1596_v50 = vsel %vm1550_vm3, %v1317_v61, 0.0 }
 0x113   :  { %v1788_v27 = vadd.f32 %v1787_v13, %v1786_v14  ;;  %v2018_v31 = vpack.c.bf16 %v619_v23, %v619_v23  ;;  %v2279_v32 = vpop.f32.mrb[26].mxu0  ;;  %v1789_v36 = vsel %vm1550_vm3, %v1706_v22, 0.0  ;;  %v1791_v42 = vsel %vm1550_vm3, %v1707_v8, 0.0  ;;  %v2848_v49 = vpop.f32.mrb[10].mxu1 }
 0x114   :  { %v791_v37 = vpack.c.bf16 %v2279_v32, %v2278_v16  ;;  %v2021_v6 = vpack.c.bf16 %v2279_v32, %v2279_v32  ;;  %v622_v25 = vpop.f32.mrb[27].mxu0  ;;  %v1593_v26 = vadd.f32 %v1592_v35, %v1591_v24  ;;  %1061 = vst.msk [vmem:[%s3211_s4 + $0x68] sm:$0xf] %vm1034_vm2, %v2020_v28  ;;  %v1793_v51 = vsel %vm1550_vm3, %v1708_v17, 0.0  ;;  %v2856_v21 = vpop.f32.mrb[11].mxu1 }
 0x115   :  { %v1790_v39 = vadd.f32 %v1789_v36, %v1788_v27  ;;  %1059 = vst.msk [vmem:[%s3211_s4 + $0x60] sm:$0xf] %vm1034_vm2, %v2018_v31  ;;  %v790_v38 = vpack.c.bf16 %v622_v25, %v619_v23  ;;  %v2019_v29 = vpack.c.bf16 %v622_v25, %v622_v25  ;;  %v1795_v52 = vsel %vm1550_vm3, %v1709_v19, 0.0 }
 0x116   :  { %1062 = vst.msk [vmem:[%s3211_s4 + $0x6c] sm:$0xf] %vm1034_vm2, %v2021_v6  ;;  %v1320_v43 = vunpack.c.l.bf16 %v791_v37  ;;  %v1595_v46 = vadd.f32 %v1594_v41, %v1593_v26  ;;  %v1321_v18 = vunpack.c.h.bf16 %v791_v37 }
 0x117   :  { %v1792_v20 = vadd.f32 %v1791_v42, %v1790_v39  ;;  %1060 = vst.msk [vmem:[%s3211_s4 + $0x64] sm:$0xf] %vm1034_vm2, %v2019_v29  ;;  %v1318_v47 = vunpack.c.l.bf16 %v790_v38  ;;  %v1319_v48 = vunpack.c.h.bf16 %v790_v38 }
 0x118   :  { %v1597_v53 = vadd.f32 %v1596_v50, %v1595_v46  ;;  %v1712_v34 = vmul.f32 %v1320_v43, %v1320_v43  ;;  %v1602_v19 = vsel %vm1550_vm3, %v1320_v43, 0.0  ;;  %v1713_v22 = vmul.f32 %v1321_v18, %v1321_v18 }
 0x119   :  { %v1794_v30 = vadd.f32 %v1793_v51, %v1792_v20  ;;  %v1598_v54 = vsel %vm1550_vm3, %v1318_v47, 0.0  ;;  %v2282_v55 = vpop.f32.mrb[28].mxu0  ;;  %v1710_v56 = vmul.f32 %v1318_v47, %v1318_v47  ;;  %v1711_v57 = vmul.f32 %v1319_v48, %v1319_v48  ;;  %v2870_v17 = vpop.f32.mrb[12].mxu1 }
 0x11a   :  { %v635_v58 = vpop.f32.mrb[29].mxu0  ;;  %v1599_v60 = vadd.f32 %v1598_v54, %v1597_v53  ;;  %v2024_v62 = vpack.c.bf16 %v2282_v55, %v2282_v55  ;;  %v1600_v5 = vsel %vm1550_vm3, %v1319_v48, 0.0  ;;  %v2878_v24 = vpop.f32.mrb[13].mxu1  ;;  %v1604_v36 = vsel %vm1550_vm3, %v1321_v18, 0.0 }
 0x11b   :  { %v1796_v61 = vadd.f32 %v1795_v52, %v1794_v30  ;;  %v2022_v3 = vpack.c.bf16 %v635_v58, %v635_v58  ;;  %v2283_v4 = vpop.f32.mrb[30].mxu0  ;;  %v1797_v7 = vsel %vm1550_vm3, %v1710_v56, 0.0  ;;  %v1799_v8 = vsel %vm1550_vm3, %v1711_v57, 0.0  ;;  %v2884_v35 = vpop.f32.mrb[14].mxu1 }
 0x11c   :  { %v793_v10 = vpack.c.bf16 %v2283_v4, %v2282_v55  ;;  %v2025_v11 = vpack.c.bf16 %v2283_v4, %v2283_v4  ;;  %v638_v13 = vpop.f32.mrb[31].mxu0  ;;  %v1601_v14 = vadd.f32 %v1600_v5, %v1599_v60  ;;  %1065 = vst.msk [vmem:[%s3211_s4 + $0x78] sm:$0xf] %vm1034_vm2, %v2024_v62  ;;  %v1801_v37 = vsel %vm1550_vm3, %v1712_v34, 0.0  ;;  %v2888_v6 = vpop.f32.mrb[15].mxu1 }
 0x11d   :  { %v1798_v15 = vadd.f32 %v1797_v7, %v1796_v61  ;;  %1063 = vst.msk [vmem:[%s3211_s4 + $0x70] sm:$0xf] %vm1034_vm2, %v2022_v3  ;;  %v792_v2 = vpack.c.bf16 %v638_v13, %v635_v58  ;;  %v2023_v16 = vpack.c.bf16 %v638_v13, %v638_v13  ;;  %v1803_v29 = vsel %vm1550_vm3, %v1713_v22, 0.0 }
 0x11e   :  { %1066 = vst.msk [vmem:[%s3211_s4 + $0x7c] sm:$0xf] %vm1034_vm2, %v2025_v11  ;;  %v1324_v23 = vunpack.c.l.bf16 %v793_v10  ;;  %v1603_v27 = vadd.f32 %v1602_v19, %v1601_v14  ;;  %v1325_v26 = vunpack.c.h.bf16 %v793_v10  ;;  %v1328_v43 = vunpack.c.l.bf16 %v2802_v63 }
 0x11f   :  { %v1800_v28 = vadd.f32 %v1799_v8, %v1798_v15  ;;  %1064 = vst.msk [vmem:[%s3211_s4 + $0x74] sm:$0xf] %vm1034_vm2, %v2023_v16  ;;  %v1322_v31 = vunpack.c.l.bf16 %v792_v2  ;;  %v1323_v32 = vunpack.c.h.bf16 %v792_v2  ;;  %v1329_v47 = vunpack.c.h.bf16 %v2802_v63 }
 0x120   :  { %v1605_v39 = vadd.f32 %v1604_v36, %v1603_v27  ;;  %v1610_v44 = vsel %vm1550_vm3, %v1324_v23, 0.0  ;;  %v1716_v48 = vmul.f32 %v1324_v23, %v1324_v23  ;;  %v794_v52 = vpack.c.bf16 %v2779_v1, %v2763_v33 }
 0x121   :  { %v1802_v25 = vadd.f32 %v1801_v37, %v1800_v28  ;;  %v1606_v38 = vsel %vm1550_vm3, %v1322_v31, 0.0  ;;  %v1714_v41 = vmul.f32 %v1322_v31, %v1322_v31  ;;  %v1715_v42 = vmul.f32 %v1323_v32, %v1323_v32  ;;  %v2901_v18 = vpop.f32.mrb[16].mxu1 }
 0x122   :  { %v1607_v46 = vadd.f32 %v1606_v38, %v1605_v39  ;;  %v1608_v50 = vsel %vm1550_vm3, %v1323_v32, 0.0  ;;  %v1717_v30 = vmul.f32 %v1325_v26, %v1325_v26  ;;  %v2027_v55 = vpack.c.bf16 %v2779_v1, %v2779_v1  ;;  %v2906_v58 = vpop.f32.mrb[17].mxu1 }
 0x123   :  { %v1804_v20 = vadd.f32 %v1803_v29, %v1802_v25  ;;  %v1805_v51 = vsel %vm1550_vm3, %v1714_v41, 0.0  ;;  %v1807_v34 = vsel %vm1550_vm3, %v1715_v42, 0.0  ;;  %v1326_v56 = vunpack.c.l.bf16 %v794_v52  ;;  %v2916_v62 = vpop.f32.mrb[18].mxu1 }
 0x124   :  { %v1609_v53 = vadd.f32 %v1608_v50, %v1607_v46  ;;  %v1327_v63 = vunpack.c.h.bf16 %v794_v52  ;;  %v2032_v57 = vpack.c.bf16 %v2793_v59, %v2793_v59  ;;  %1068 = vst.msk [vmem:[%s3211_s4 + $0x84] sm:$0xf] %vm1034_vm2, %v2027_v55  ;;  %v2030_v33 = vpack.c.bf16 %v2804_v0, %v2804_v0  ;;  %v2924_v7 = vpop.f32.mrb[19].mxu1 }
 0x125   :  { %v1806_v54 = vadd.f32 %v1805_v51, %v1804_v20  ;;  %v797_v1 = vpack.c.bf16 %v2810_v9, %v2793_v59  ;;  %v1612_v3 = vsel %vm1550_vm3, %v1325_v26, 0.0  ;;  %v1809_v4 = vsel %vm1550_vm3, %v1716_v48, 0.0 }
 0x126   :  { %v1611_v60 = vadd.f32 %v1610_v44, %v1609_v53  ;;  %v1718_v5 = vmul.f32 %v1326_v56, %v1326_v56  ;;  %1073 = vst.msk [vmem:[%s3211_s4 + $0x98] sm:$0xf] %vm1034_vm2, %v2032_v57  ;;  %v1811_v10 = vsel %vm1550_vm3, %v1717_v30, 0.0  ;;  %1071 = vst.msk [vmem:[%s3211_s4 + $0x90] sm:$0xf] %vm1034_vm2, %v2030_v33  ;;  %v2033_v59 = vpack.c.bf16 %v2810_v9, %v2810_v9 }
 0x127   :  { %v1808_v61 = vadd.f32 %v1807_v34, %v1806_v54  ;;  %v1720_v14 = vmul.f32 %v1328_v43, %v1328_v43  ;;  %v1614_v15 = vsel %vm1550_vm3, %v1326_v56, 0.0  ;;  %v1719_v2 = vmul.f32 %v1327_v63, %v1327_v63 }
 0x128   :  { %v1613_v13 = vadd.f32 %v1612_v3, %v1611_v60  ;;  %v796_v16 = vpack.c.bf16 %v2818_v12, %v2804_v0  ;;  %v1721_v19 = vmul.f32 %v1329_v47, %v1329_v47  ;;  %1074 = vst.msk [vmem:[%s3211_s4 + $0x9c] sm:$0xf] %vm1034_vm2, %v2033_v59  ;;  %v1616_v23 = vsel %vm1550_vm3, %v1327_v63, 0.0 }
 0x129   :  { %v1810_v11 = vadd.f32 %v1809_v4, %v1808_v61  ;;  %v1813_v27 = vsel %vm1550_vm3, %v1718_v5, 0.0  ;;  %v2031_v9 = vpack.c.bf16 %v2818_v12, %v2818_v12  ;;  %v1618_v31 = vsel %vm1550_vm3, %v1328_v43, 0.0  ;;  %v2946_v37 = vpop.f32.mrb[20].mxu1 }
 0x12a   :  { %v1615_v22 = vadd.f32 %v1614_v15, %v1613_v13  ;;  %v1330_v28 = vunpack.c.l.bf16 %v796_v16  ;;  %v1620_v0 = vsel %vm1550_vm3, %v1329_v47, 0.0  ;;  %v1817_v25 = vsel %vm1550_vm3, %v1720_v14, 0.0  ;;  %v2956_v38 = vpop.f32.mrb[21].mxu1 }
 0x12b   :  { %v1812_v8 = vadd.f32 %v1811_v10, %v1810_v11  ;;  %v1815_v26 = vsel %vm1550_vm3, %v1719_v2, 0.0  ;;  %1072 = vst.msk [vmem:[%s3211_s4 + $0x94] sm:$0xf] %vm1034_vm2, %v2031_v9  ;;  %v1331_v39 = vunpack.c.h.bf16 %v796_v16  ;;  %v2036_v12 = vpack.c.bf16 %v2832_v40, %v2832_v40  ;;  %v2959_v44 = vpop.f32.mrb[22].mxu1 }
 0x12c   :  { %v1617_v32 = vadd.f32 %v1616_v23, %v1615_v22  ;;  %v1819_v29 = vsel %vm1550_vm3, %v1721_v19, 0.0  ;;  %v1332_v43 = vunpack.c.l.bf16 %v797_v1  ;;  %v1722_v46 = vmul.f32 %v1330_v28, %v1330_v28  ;;  %v2971_v50 = vpop.f32.mrb[23].mxu1 }
 0x12d   :  { %v1814_v36 = vadd.f32 %v1813_v27, %v1812_v8  ;;  %1077 = vst.msk [vmem:[%s3211_s4 + $0xa8] sm:$0xf] %vm1034_vm2, %v2036_v12  ;;  %v2034_v20 = vpack.c.bf16 %v2842_v45, %v2842_v45  ;;  %v799_v47 = vpack.c.bf16 %v2848_v49, %v2832_v40  ;;  %v2037_v48 = vpack.c.bf16 %v2848_v49, %v2848_v49 }
 0x12e   :  { %v1619_v41 = vadd.f32 %v1618_v31, %v1617_v32  ;;  %v1333_v52 = vunpack.c.h.bf16 %v797_v1  ;;  %v798_v53 = vpack.c.bf16 %v2856_v21, %v2842_v45  ;;  %v1622_v54 = vsel %vm1550_vm3, %v1330_v28, 0.0 }
 0x12f   :  { %v1816_v42 = vadd.f32 %v1815_v26, %v1814_v36  ;;  %v1723_v55 = vmul.f32 %v1331_v39, %v1331_v39  ;;  %1075 = vst.msk [vmem:[%s3211_s4 + $0xa0] sm:$0xf] %vm1034_vm2, %v2034_v20  ;;  %1078 = vst.msk [vmem:[%s3211_s4 + $0xac] sm:$0xf] %vm1034_vm2, %v2037_v48  ;;  %v2035_v40 = vpack.c.bf16 %v2856_v21, %v2856_v21  ;;  %v1624_v63 = vsel %vm1550_vm3, %v1331_v39, 0.0 }
 0x130   :  { %v1621_v30 = vadd.f32 %v1620_v0, %v1619_v41  ;;  %v2040_v49 = vpack.c.bf16 %v2870_v17, %v2870_v17  ;;  %v1724_v56 = vmul.f32 %v1332_v43, %v1332_v43  ;;  %v1821_v57 = vsel %vm1550_vm3, %v1722_v46, 0.0 }
 0x131   :  { %v1818_v51 = vadd.f32 %v1817_v25, %v1816_v42  ;;  %1076 = vst.msk [vmem:[%s3211_s4 + $0xa4] sm:$0xf] %vm1034_vm2, %v2035_v40  ;;  %v1334_v60 = vunpack.c.l.bf16 %v798_v53  ;;  %v1626_v21 = vsel %vm1550_vm3, %v1332_v43, 0.0  ;;  %v1725_v61 = vmul.f32 %v1333_v52, %v1333_v52  ;;  %v2999_v3 = vpop.f32.mrb[24].mxu1 }
 0x132   :  { %v1623_v45 = vadd.f32 %v1622_v54, %v1621_v30  ;;  %1081 = vst.msk [vmem:[%s3211_s4 + $0xb8] sm:$0xf] %vm1034_vm2, %v2040_v49  ;;  %v1628_v4 = vsel %vm1550_vm3, %v1333_v52, 0.0  ;;  %v1823_v5 = vsel %vm1550_vm3, %v1723_v55, 0.0  ;;  %v1336_v10 = vunpack.c.l.bf16 %v799_v47  ;;  %v3003_v13 = vpop.f32.mrb[25].mxu1 }
 0x133   :  { %v1820_v34 = vadd.f32 %v1819_v29, %v1818_v51  ;;  %v1335_v11 = vunpack.c.h.bf16 %v798_v53  ;;  %v2038_v15 = vpack.c.bf16 %v2878_v24, %v2878_v24  ;;  %v801_v2 = vpack.c.bf16 %v2884_v35, %v2870_v17  ;;  %v3009_v16 = vpop.f32.mrb[26].mxu1 }
 0x134   :  { %v1625_v33 = vadd.f32 %v1624_v63, %v1623_v45  ;;  %v1825_v19 = vsel %vm1550_vm3, %v1724_v56, 0.0  ;;  %v1726_v22 = vmul.f32 %v1334_v60, %v1334_v60  ;;  %v2041_v8 = vpack.c.bf16 %v2884_v35, %v2884_v35  ;;  %v3016_v27 = vpop.f32.mrb[27].mxu1 }
 0x135   :  { %v1822_v1 = vadd.f32 %v1821_v57, %v1820_v34  ;;  %v800_v23 = vpack.c.bf16 %v2888_v6, %v2878_v24  ;;  %v1827_v9 = vsel %vm1550_vm3, %v1725_v61, 0.0  ;;  %v1337_v31 = vunpack.c.h.bf16 %v799_v47  ;;  %1079 = vst.msk [vmem:[%s3211_s4 + $0xb0] sm:$0xf] %vm1034_vm2, %v2038_v15 }
 0x136   :  { %v1627_v59 = vadd.f32 %v1626_v21, %v1625_v33  ;;  %v1630_v17 = vsel %vm1550_vm3, %v1334_v60, 0.0  ;;  %v1727_v32 = vmul.f32 %v1335_v11, %v1335_v11  ;;  %1082 = vst.msk [vmem:[%s3211_s4 + $0xbc] sm:$0xf] %vm1034_vm2, %v2041_v8  ;;  %v2039_v24 = vpack.c.bf16 %v2888_v6, %v2888_v6 }
 0x137   :  { %v1824_v14 = vadd.f32 %v1823_v5, %v1822_v1  ;;  %v2044_v35 = vpack.c.bf16 %v2901_v18, %v2901_v18  ;;  %v1728_v36 = vmul.f32 %v1336_v10, %v1336_v10  ;;  %v1634_v39 = vsel %vm1550_vm3, %v1336_v10, 0.0 }
 0x138   :  { %v1629_v0 = vadd.f32 %v1628_v4, %v1627_v59  ;;  %v1632_v12 = vsel %vm1550_vm3, %v1335_v11, 0.0  ;;  %v1829_v29 = vsel %vm1550_vm3, %v1726_v22, 0.0  ;;  %1080 = vst.msk [vmem:[%s3211_s4 + $0xb4] sm:$0xf] %vm1034_vm2, %v2039_v24  ;;  %v1338_v41 = vunpack.c.l.bf16 %v800_v23 }
 0x139   :  { %v1826_v28 = vadd.f32 %v1825_v19, %v1824_v14  ;;  %1085 = vst.msk [vmem:[%s3211_s4 + $0xc8] sm:$0xf] %vm1034_vm2, %v2044_v35  ;;  %v1636_v6 = vsel %vm1550_vm3, %v1337_v31, 0.0  ;;  %v1729_v42 = vmul.f32 %v1337_v31, %v1337_v31  ;;  %v3044_v20 = vpop.f32.mrb[28].mxu1  ;;  %v1831_v47 = vsel %vm1550_vm3, %v1727_v32, 0.0 }
 0x13a   :  { %v1631_v25 = vadd.f32 %v1630_v17, %v1629_v0  ;;  %v1339_v48 = vunpack.c.h.bf16 %v800_v23  ;;  %v2042_v51 = vpack.c.bf16 %v2906_v58, %v2906_v58  ;;  %v803_v52 = vpack.c.bf16 %v2916_v62, %v2901_v18  ;;  %v3051_v30 = vpop.f32.mrb[29].mxu1 }
 0x13b   :  { %v1828_v26 = vadd.f32 %v1827_v9, %v1826_v28  ;;  %v1833_v53 = vsel %vm1550_vm3, %v1728_v36, 0.0  ;;  %v1340_v40 = vunpack.c.l.bf16 %v801_v2  ;;  %v3054_v49 = vpop.f32.mrb[30].mxu1  ;;  %v1341_v45 = vunpack.c.h.bf16 %v801_v2 }
 0x13c   :  { %v1633_v43 = vadd.f32 %v1632_v12, %v1631_v25  ;;  %v1730_v34 = vmul.f32 %v1338_v41, %v1338_v41  ;;  %1083 = vst.msk [vmem:[%s3211_s4 + $0xc0] sm:$0xf] %vm1034_vm2, %v2042_v51  ;;  %v2045_v56 = vpack.c.bf16 %v2916_v62, %v2916_v62  ;;  %v802_v18 = vpack.c.bf16 %v2924_v7, %v2906_v58  ;;  %v3064_v63 = vpop.f32.mrb[31].mxu1 }
 0x13d   :  { %v1830_v46 = vadd.f32 %v1829_v29, %v1828_v26  ;;  %v2043_v21 = vpack.c.bf16 %v2924_v7, %v2924_v7  ;;  %v2048_v61 = vpack.c.bf16 %v2946_v37, %v2946_v37  ;;  %v1835_v33 = vsel %vm1550_vm3, %v1729_v42, 0.0 }
 0x13e   :  { %v1635_v54 = vadd.f32 %v1634_v39, %v1633_v43  ;;  %v1638_v1 = vsel %vm1550_vm3, %v1338_v41, 0.0  ;;  %v1731_v4 = vmul.f32 %v1339_v48, %v1339_v48  ;;  %1086 = vst.msk [vmem:[%s3211_s4 + $0xcc] sm:$0xf] %vm1034_vm2, %v2045_v56  ;;  %v1732_v58 = vmul.f32 %v1340_v40, %v1340_v40 }
 0x13f   :  { %v1832_v55 = vadd.f32 %v1831_v47, %v1830_v46  ;;  %v1640_v5 = vsel %vm1550_vm3, %v1339_v48, 0.0  ;;  %1084 = vst.msk [vmem:[%s3211_s4 + $0xc4] sm:$0xf] %vm1034_vm2, %v2043_v21  ;;  %1089 = vst.msk [vmem:[%s3211_s4 + $0xd8] sm:$0xf] %vm1034_vm2, %v2048_v61  ;;  %v1837_v7 = vsel %vm1550_vm3, %v1730_v34, 0.0  ;;  %v1342_v11 = vunpack.c.l.bf16 %v802_v18 }
 0x140   :  { %v1637_v60 = vadd.f32 %v1636_v6, %v1635_v54  ;;  %v2046_v59 = vpack.c.bf16 %v2956_v38, %v2956_v38  ;;  %v805_v14 = vpack.c.bf16 %v2959_v44, %v2946_v37  ;;  %v1642_v15 = vsel %vm1550_vm3, %v1340_v40, 0.0 }
 0x141   :  { %v1834_v57 = vadd.f32 %v1833_v53, %v1832_v55  ;;  %v1733_v2 = vmul.f32 %v1341_v45, %v1341_v45  ;;  %v1839_v8 = vsel %vm1550_vm3, %v1731_v4, 0.0  ;;  %v1344_v23 = vunpack.c.l.bf16 %v803_v52 }
 0x142   :  { %v1639_v62 = vadd.f32 %v1638_v1, %v1637_v60  ;;  %v1343_v9 = vunpack.c.h.bf16 %v802_v18  ;;  %1087 = vst.msk [vmem:[%s3211_s4 + $0xd0] sm:$0xf] %vm1034_vm2, %v2046_v59  ;;  %v2049_v28 = vpack.c.bf16 %v2959_v44, %v2959_v44  ;;  %v804_v37 = vpack.c.bf16 %v2971_v50, %v2956_v38 }
 0x143   :  { %v1836_v10 = vadd.f32 %v1835_v33, %v1834_v57  ;;  %v1644_v17 = vsel %vm1550_vm3, %v1341_v45, 0.0  ;;  %v1841_v32 = vsel %vm1550_vm3, %v1732_v58, 0.0  ;;  %v1345_v24 = vunpack.c.h.bf16 %v803_v52 }
 0x144   :  { %v1641_v19 = vadd.f32 %v1640_v5, %v1639_v62  ;;  %v1734_v35 = vmul.f32 %v1342_v11, %v1342_v11  ;;  %1090 = vst.msk [vmem:[%s3211_s4 + $0xdc] sm:$0xf] %vm1034_vm2, %v2049_v28  ;;  %v1843_v36 = vsel %vm1550_vm3, %v1733_v2, 0.0  ;;  %v1650_v26 = vsel %vm1550_vm3, %v1344_v23, 0.0 }
 0x145   :  { %v1838_v22 = vadd.f32 %v1837_v7, %v1836_v10  ;;  %v1646_v39 = vsel %vm1550_vm3, %v1342_v11, 0.0  ;;  %v1735_v38 = vmul.f32 %v1343_v9, %v1343_v9  ;;  %v2047_v12 = vpack.c.bf16 %v2971_v50, %v2971_v50 }
 0x146   :  { %v1643_v31 = vadd.f32 %v1642_v15, %v1641_v19  ;;  %v1736_v29 = vmul.f32 %v1344_v23, %v1344_v23  ;;  %v2052_v42 = vpack.c.bf16 %v2999_v3, %v2999_v3  ;;  %v1737_v43 = vmul.f32 %v1345_v24, %v1345_v24 }
 0x147   :  { %v1840_v0 = vadd.f32 %v1839_v8, %v1838_v22  ;;  %v1648_v46 = vsel %vm1550_vm3, %v1343_v9, 0.0  ;;  %v1845_v47 = vsel %vm1550_vm3, %v1734_v35, 0.0  ;;  %1088 = vst.msk [vmem:[%s3211_s4 + $0xd4] sm:$0xf] %vm1034_vm2, %v2047_v12  ;;  %v1346_v48 = vunpack.c.l.bf16 %v804_v37 }
 0x148   :  { %v1645_v44 = vadd.f32 %v1644_v17, %v1643_v31  ;;  %1093 = vst.msk [vmem:[%s3211_s4 + $0xe8] sm:$0xf] %vm1034_vm2, %v2052_v42  ;;  %v2050_v50 = vpack.c.bf16 %v3003_v13, %v3003_v13  ;;  %v807_v53 = vpack.c.bf16 %v3009_v16, %v2999_v3  ;;  %v1847_v54 = vsel %vm1550_vm3, %v1735_v38, 0.0 }
 0x149   :  { %v1842_v25 = vadd.f32 %v1841_v32, %v1840_v0  ;;  %v1347_v55 = vunpack.c.h.bf16 %v804_v37  ;;  %v2053_v40 = vpack.c.bf16 %v3009_v16, %v3009_v16  ;;  %v806_v45 = vpack.c.bf16 %v3016_v27, %v3003_v13 }
 0x14a   :  { %v1647_v41 = vadd.f32 %v1646_v39, %v1645_v44  ;;  %v1652_v34 = vsel %vm1550_vm3, %v1345_v24, 0.0  ;;  %v1348_v57 = vunpack.c.l.bf16 %v805_v14  ;;  %1091 = vst.msk [vmem:[%s3211_s4 + $0xe0] sm:$0xf] %vm1034_vm2, %v2050_v50  ;;  %v1849_v3 = vsel %vm1550_vm3, %v1736_v29, 0.0 }
 0x14b   :  { %v1844_v6 = vadd.f32 %v1843_v36, %v1842_v25  ;;  %v1738_v60 = vmul.f32 %v1346_v48, %v1346_v48  ;;  %1094 = vst.msk [vmem:[%s3211_s4 + $0xec] sm:$0xf] %vm1034_vm2, %v2053_v40  ;;  %v2051_v13 = vpack.c.bf16 %v3016_v27, %v3016_v27  ;;  %v2056_v16 = vpack.c.bf16 %v3044_v20, %v3044_v20 }
 0x14c   :  { %v1649_v51 = vadd.f32 %v1648_v46, %v1647_v41  ;;  %v1349_v61 = vunpack.c.h.bf16 %v805_v14  ;;  %v1851_v1 = vsel %vm1550_vm3, %v1737_v43, 0.0  ;;  %v1654_v4 = vsel %vm1550_vm3, %v1346_v48, 0.0 }
 0x14d   :  { %v1846_v52 = vadd.f32 %v1845_v47, %v1844_v6  ;;  %v1739_v58 = vmul.f32 %v1347_v55, %v1347_v55  ;;  %1092 = vst.msk [vmem:[%s3211_s4 + $0xe4] sm:$0xf] %vm1034_vm2, %v2051_v13  ;;  %1097 = vst.msk [vmem:[%s3211_s4 + $0xf8] sm:$0xf] %vm1034_vm2, %v2056_v16  ;;  %v1740_v27 = vmul.f32 %v1348_v57, %v1348_v57  ;;  %v1656_v5 = vsel %vm1550_vm3, %v1347_v55, 0.0 }
 0x14e   :  { %v1651_v56 = vadd.f32 %v1650_v26, %v1649_v51  ;;  %v1853_v7 = vsel %vm1550_vm3, %v1738_v60, 0.0  ;;  %v1350_v11 = vunpack.c.l.bf16 %v806_v45  ;;  %v2054_v59 = vpack.c.bf16 %v3051_v30, %v3051_v30 }
 0x14f   :  { %v1848_v18 = vadd.f32 %v1847_v54, %v1846_v52  ;;  %v809_v14 = vpack.c.bf16 %v3054_v49, %v3044_v20  ;;  %v1658_v15 = vsel %vm1550_vm3, %v1348_v57, 0.0  ;;  %v1741_v2 = vmul.f32 %v1349_v61, %v1349_v61 }
 0x150   :  { %v1653_v33 = vadd.f32 %v1652_v34, %v1651_v56  ;;  %v1855_v8 = vsel %vm1550_vm3, %v1739_v58, 0.0  ;;  %v1351_v23 = vunpack.c.h.bf16 %v806_v45  ;;  %1095 = vst.msk [vmem:[%s3211_s4 + $0xf0] sm:$0xf] %vm1034_vm2, %v2054_v59  ;;  %v2057_v9 = vpack.c.bf16 %v3054_v49, %v3054_v49 }
 0x151   :  { %v1850_v21 = vadd.f32 %v1849_v3, %v1848_v18  ;;  %v808_v28 = vpack.c.bf16 %v3064_v63, %v3051_v30  ;;  %v2055_v0 = vpack.c.bf16 %v3064_v63, %v3064_v63  ;;  %v1660_v37 = vsel %vm1550_vm3, %v1349_v61, 0.0 }
 0x152   :  { %v1655_v62 = vadd.f32 %v1654_v4, %v1653_v33  ;;  %v1857_v17 = vsel %vm1550_vm3, %v1740_v27, 0.0  ;;  %v1352_v32 = vunpack.c.l.bf16 %v807_v53  ;;  %v1742_v24 = vmul.f32 %v1350_v11, %v1350_v11  ;;  %1098 = vst.msk [vmem:[%s3211_s4 + $0xfc] sm:$0xf] %vm1034_vm2, %v2057_v9 }
 0x153   :  { %v1852_v10 = vadd.f32 %v1851_v1, %v1850_v21  ;;  %1096 = vst.msk [vmem:[%s3211_s4 + $0xf4] sm:$0xf] %vm1034_vm2, %v2055_v0  ;;  %v1859_v30 = vsel %vm1550_vm3, %v1741_v2, 0.0  ;;  %v1353_v63 = vunpack.c.h.bf16 %v807_v53  ;;  %v1662_v36 = vsel %vm1550_vm3, %v1350_v11, 0.0 }
 0x154   :  { %v1657_v19 = vadd.f32 %v1656_v5, %v1655_v62  ;;  %v1743_v25 = vmul.f32 %v1351_v23, %v1351_v23  ;;  %v1744_v39 = vmul.f32 %v1352_v32, %v1352_v32  ;;  %v1664_v38 = vsel %vm1550_vm3, %v1351_v23, 0.0 }
 0x155   :  { %v1854_v22 = vadd.f32 %v1853_v7, %v1852_v10  ;;  %v1861_v12 = vsel %vm1550_vm3, %v1742_v24, 0.0  ;;  %v1354_v29 = vunpack.c.l.bf16 %v808_v28  ;;  %v1666_v42 = vsel %vm1550_vm3, %v1352_v32, 0.0 }
 0x156   :  { %v1659_v20 = vadd.f32 %v1658_v15, %v1657_v19  ;;  %v1745_v43 = vmul.f32 %v1353_v63, %v1353_v63  ;;  %v1863_v46 = vsel %vm1550_vm3, %v1743_v25, 0.0  ;;  %v1355_v47 = vunpack.c.h.bf16 %v808_v28 }
 0x157   :  { %v1856_v31 = vadd.f32 %v1855_v8, %v1854_v22  ;;  %v1668_v52 = vsel %vm1550_vm3, %v1353_v63, 0.0  ;;  %v1865_v50 = vsel %vm1550_vm3, %v1744_v39, 0.0  ;;  %v1356_v53 = vunpack.c.l.bf16 %v809_v14 }
 0x158   :  { %v1661_v35 = vadd.f32 %v1660_v37, %v1659_v20  ;;  %v1746_v54 = vmul.f32 %v1354_v29, %v1354_v29  ;;  %v1867_v45 = vsel %vm1550_vm3, %v1745_v43, 0.0  ;;  %v1357_v34 = vunpack.c.h.bf16 %v809_v14 }
 0x159   :  { %v1858_v49 = vadd.f32 %v1857_v17, %v1856_v31  ;;  %v1670_v56 = vsel %vm1550_vm3, %v1354_v29, 0.0  ;;  %v1747_v18 = vmul.f32 %v1355_v47, %v1355_v47  ;;  %v1748_v60 = vmul.f32 %v1356_v53, %v1356_v53 }
 0x15a   :  { %v1663_v44 = vadd.f32 %v1662_v36, %v1661_v35  ;;  %v1672_v13 = vsel %vm1550_vm3, %v1355_v47, 0.0  ;;  %v1869_v16 = vsel %vm1550_vm3, %v1746_v54, 0.0  ;;  %v1674_v33 = vsel %vm1550_vm3, %v1356_v53, 0.0 }
 0x15b   :  { %v1860_v26 = vadd.f32 %v1859_v30, %v1858_v49  ;;  %v1749_v1 = vmul.f32 %v1357_v34, %v1357_v34  ;;  %v1871_v4 = vsel %vm1550_vm3, %v1747_v18, 0.0  ;;  %v1676_v62 = vsel %vm1550_vm3, %v1357_v34, 0.0 }
 0x15c   :  { %v1665_v41 = vadd.f32 %v1664_v38, %v1663_v44  ;;  %v1873_v5 = vsel %vm1550_vm3, %v1748_v60, 0.0 }
 0x15d   :  { %v1862_v6 = vadd.f32 %v1861_v12, %v1860_v26  ;;  %v1875_v11 = vsel %vm1550_vm3, %v1749_v1, 0.0 }
 0x15e   :  { %v1667_v48 = vadd.f32 %v1666_v42, %v1665_v41 }
 0x15f   :  { %v1864_v51 = vadd.f32 %v1863_v46, %v1862_v6 }
 0x160   :  { %v1669_v40 = vadd.f32 %v1668_v52, %v1667_v48 }
 0x161   :  { %v1866_v55 = vadd.f32 %v1865_v50, %v1864_v51 }
 0x162   :  { %v1671_v57 = vadd.f32 %v1670_v56, %v1669_v40 }
 0x163   :  { %v1868_v3 = vadd.f32 %v1867_v45, %v1866_v55 }
 0x164   :  { %v1673_v21 = vadd.f32 %v1672_v13, %v1671_v57 }
 0x165   :  { %v1870_v61 = vadd.f32 %v1869_v16, %v1868_v3 }
 0x166   :  { %v1675_v58 = vadd.f32 %v1674_v33, %v1673_v21 }
 0x167   :  { %v1872_v27 = vadd.f32 %v1871_v4, %v1870_v61 }
 0x168   :  { %v1677_v10 = vadd.f32 %v1676_v62, %v1675_v58 }
 0x169   :  { %v1874_v7 = vadd.f32 %v1873_v5, %v1872_v27 }
 0x16a   :  { %v1678_v59 = vrot.slane %v1677_v10, 4 }
 0x16b   :  { %v1876_v14 = vadd.f32 %v1875_v11, %v1874_v7 }
 0x16c   :  { %v1679_v15 = vadd.f32 %v1678_v59, %v1677_v10 }
 0x16d   :  { %v1877_v2 = vrot.slane %v1876_v14, 4 }
 0x16e   :  { %v1680_v19 = vrot.slane %v1679_v15, 2 }
 0x16f   :  { %v1878_v22 = vadd.f32 %v1877_v2, %v1876_v14 }
 0x170   :  { %v1681_v8 = vadd.f32 %v1680_v19, %v1679_v15 }
 0x171   :  { %v1879_v23 = vrot.slane %v1878_v22, 2 }
 0x172   :  { %v1682_v9 = vrot.slane %v1681_v8, 1 }
 0x173   :  { %v1880_v28 = vadd.f32 %v1879_v23, %v1878_v22 }
 0x174   :  { %v1683_v20 = vadd.f32 %v1682_v9, %v1681_v8 }
 0x175   :  { %v1881_v31 = vrot.slane %v1880_v28, 1 }
 0x176   :  { %1685 = vst.msk [vmem:[%s3212_s5] sm:$0x1] %vm1684_vm4, %v1683_v20 }
 0x177   :  { %v1882_v0 = vadd.f32 %v1881_v31, %v1880_v28 }
 0x179   :  { %1883 = vst.msk [vmem:[%s3213_s6] sm:$0x1] %vm1684_vm4, %v1882_v0 }

// kernel: dense_block_forward.7
= control target key start
LH: loop header
LB: loop body
LE: loop exit
PB: predicated region body
PF: predicated region fallthrough
CT: control target
= control target key end

     0   :  { %s2868_s21 = smov 0   ;;  %s3733_s0 = inlined_call_operand.vmem [shape: bf16[2,16,16,8], index: 0, kind: input, shape index: {}]   ;;  %s3734_s1 = inlined_call_operand.vmem [shape: f32[1,8], index: 1, kind: input, shape index: {}]   ;;  %s3735_s2 = inlined_call_operand.vmem [shape: f32[1,8], index: 2, kind: input, shape index: {}]   ;;  %s3736_s3 = inlined_call_operand.vmem [shape: bf16[3,24,4], index: 3, kind: input, shape index: {}]   ;;  %s3737_s4 = inlined_call_operand.vmem [shape: bf16[2,256,4], index: 4, kind: output, shape index: {0}]   ;;  %s3738_s5 = inlined_call_operand.vmem [shape: f32[2,1,4], index: 5, kind: output, shape index: {1}]   ;;  %s3739_s6 = inlined_call_operand.vmem [shape: f32[2,1,4], index: 6, kind: output, shape index: {2}]  }
   0x1 LB: > { %s2193_s22 = sadd.s32 4294967295, %s2828_s21   ;;  %p2197_p0 = scmp.ge.s32.totalorder %s2828_s21, 1  ;;  %s2828_s21 = sphi %s2868_s21, %s17_s21  }
   0x2   : > { %p217_p1 = scmp.lt.s32.totalorder %s2828_s21, 3 }
   0x4   : > { %p218_p2 = pnand %p2197_p0, %p217_p1 }
   0x5   : > { %p253_p3 = scmp.lt.s32.totalorder (!%p218_p2), %s2193_s22, 1  ;;  %v2889_v0 = vld [vmem:[%s3734_s1] ss:$0 sm:$0xff] (!%p218_p2)  ;;  %vm577_vm0 = vcmask (!%p218_p2), 1046528   ;;  %v2817_v39 = vld [vmem:[%s3736_s3 + $0xc] sm:$0xff] (!%p218_p2)   ;;  %s2830_s11 = smov (!%p218_p2), 8  }
   0x6   : > { %221 = sbr.rel (%p218_p2) target bundleno = 497 (0x1f1), region = 36  ;;  %v2898_v9 = vld [vmem:[%s3735_s2] ss:$0 sm:$0xff] (!%p218_p2)  ;;  %2465 = vmatprep.subr.bf16.mxu1 (!%p218_p2), %v2817_v39  ;;  %s2831_s12 = smov (!%p218_p2), 16   ;;  %vm480_vm1 = vcmask (!%p218_p2), 1040384   ;;  %vm444_vm2 = vcmask (!%p218_p2), 195584  }
   0x7   : > { %v2915_v26 = vld [vmem:[%s3736_s3] sm:$0xff] (!%p218_p2)   ;;  %2466 = vmatpush3.bf16.msra.mxu1 (!%p218_p2), %v2817_v39  ;;  %vm1061_vm3 = vcmask (!%p218_p2), 1043456   ;;  %vm866_vm4 = vcmask (!%p218_p2), 64512   ;;  %vm899_vm5 = vcmask (!%p218_p2), 130048   ;;  %vm1849_vm6 = vcmask (!%p218_p2), 27648  }
   0x8   : > { %2501 = vmatprep.subr.bf16.mxu0 (!%p218_p2), %v2915_v26  ;;  %vm1914_vm7 = vcmask (!%p218_p2), 31744   ;;  %vm1984_vm8 = vcmask (!%p218_p2), 24576  }
   0x9   : > { %2502 = vmatpush3.bf16.msra.mxu0 (!%p218_p2), %v2915_v26 }
   0xd   : > { %s3745_s22 = smov (!%p253_p3, %s2193_s22), 1 }
   0xe   : > { %s2298_s23 = sshll.u32 %s3745_s22, 7  ;;  %s265_s28 = scalar_lea.vmem %s3738_s5, %s3745_s22 }
   0xf   : > { %s2884_s26 = scalar_lea.vmem %s3733_s0, %s2298_s23  ;;  %s268_s7 = scalar_lea.vmem %s3739_s6, %s3745_s22 }
  0x10   : > { %v2333_v1 = vld [vmem:[%s2884_s26] sm:$0xff]   ;;  %v2396_v2 = vld [vmem:[%s2884_s26 + $0x8] sm:$0xff]   ;;  %v2397_v3 = vld [vmem:[%s2884_s26 + $0x10] sm:$0xff]  }
  0x11   : > { %v2334_v4 = vunpack.c.l.bf16 %v2333_v1  ;;  %v2335_v5 = vunpack.c.h.bf16 %v2333_v1  ;;  %v2338_v6 = vunpack.c.l.bf16 %v2396_v2  ;;  %v2339_v7 = vunpack.c.h.bf16 %v2396_v2  ;;  %v2398_v8 = vld [vmem:[%s2884_s26 + $0x18] sm:$0xff]   ;;  %v2399_v47 = vld [vmem:[%s2884_s26 + $0x20] sm:$0xff]   ;;  %v2400_v52 = vld [vmem:[%s2884_s26 + $0x28] sm:$0xff]  }
  0x12   : > { %v2342_v10 = vunpack.c.l.bf16 %v2397_v3  ;;  %v2343_v11 = vunpack.c.h.bf16 %v2397_v3  ;;  %v2346_v12 = vunpack.c.l.bf16 %v2398_v8  ;;  %v2347_v13 = vunpack.c.h.bf16 %v2398_v8  ;;  %v2401_v2 = vld [vmem:[%s2884_s26 + $0x30] sm:$0xff]   ;;  %v2402_v3 = vld [vmem:[%s2884_s26 + $0x38] sm:$0xff]  }
  0x13   : > { %v341_v14 = vmul.f32 %v2334_v4, %v2889_v0  ;;  %v342_v15 = vmul.f32 %v2335_v5, %v2889_v0  ;;  %v343_v16 = vmul.f32 %v2338_v6, %v2889_v0  ;;  %v344_v17 = vmul.f32 %v2339_v7, %v2889_v0 }
  0x14   : > { %v345_v18 = vmul.f32 %v2342_v10, %v2889_v0  ;;  %v346_v19 = vmul.f32 %v2343_v11, %v2889_v0  ;;  %v347_v20 = vmul.f32 %v2346_v12, %v2889_v0  ;;  %v348_v21 = vmul.f32 %v2347_v13, %v2889_v0 }
  0x15   : > { %v380_v22 = vadd.f32 %v2898_v9, %v341_v14  ;;  %v381_v23 = vadd.f32 %v2898_v9, %v342_v15  ;;  %v382_v24 = vadd.f32 %v2898_v9, %v343_v16  ;;  %v383_v25 = vadd.f32 %v2898_v9, %v344_v17 }
  0x16   : > { %v384_v27 = vadd.f32 %v2898_v9, %v345_v18  ;;  %v385_v28 = vadd.f32 %v2898_v9, %v346_v19  ;;  %v386_v29 = vadd.f32 %v2898_v9, %v347_v20  ;;  %v387_v30 = vadd.f32 %v2898_v9, %v348_v21 }
  0x17   : > { %v2921_v31 = vmax.f32 %v380_v22, 0.0  ;;  %v2923_v32 = vmax.f32 %v381_v23, 0.0  ;;  %v2925_v33 = vmax.f32 %v382_v24, 0.0  ;;  %v2927_v34 = vmax.f32 %v383_v25, 0.0 }
  0x18   : > { %v2930_v35 = vmax.f32 %v384_v27, 0.0  ;;  %v2932_v36 = vmax.f32 %v385_v28, 0.0  ;;  %v2934_v37 = vmax.f32 %v386_v29, 0.0  ;;  %v2936_v38 = vmax.f32 %v387_v30, 0.0 }
  0x19   : > { %v2656_v40 = vpack.i.bf16 %v2923_v32, %v2921_v31  ;;  %v578_v41 = vrot.slane %v2921_v31, 1  ;;  %v579_v42 = vrot.slane %v2923_v32, 1  ;;  %v2661_v43 = vpack.i.bf16 %v2927_v34, %v2925_v33 }
  0x1a   : > { %v581_v44 = vrot.slane %v2925_v33, 1  ;;  %v582_v45 = vrot.slane %v2927_v34, 1  ;;  %v2666_v46 = vpack.i.bf16 %v2932_v36, %v2930_v35  ;;  %v2681_v50 = vpack.i.bf16 %v2936_v38, %v2934_v37 }
  0x1b   : > { %2657 = vrot.lane.b32.xlu0 %v2656_v40, %s2830_s11  ;;  %v580_v48 = vsel %vm577_vm0, %v578_v41, %v579_v42  ;;  %v642_v49 = vsel %vm577_vm0, %v579_v42, 0.0  ;;  %v584_v51 = vrot.slane %v2930_v35, 1  ;;  %v585_v56 = vrot.slane %v2932_v36, 1 }
  0x1c   : > { %v2671_v53 = vpack.i.bf16 %v642_v49, %v580_v48  ;;  %v583_v54 = vsel %vm577_vm0, %v581_v44, %v582_v45  ;;  %v643_v55 = vsel %vm577_vm0, %v582_v45, 0.0  ;;  %v587_v58 = vrot.slane %v2934_v37, 1 }
  0x1d   : > { %v2676_v57 = vpack.i.bf16 %v643_v55, %v583_v54  ;;  %v588_v59 = vrot.slane %v2936_v38, 1  ;;  %v2350_v60 = vunpack.c.l.bf16 %v2399_v47  ;;  %v586_v61 = vsel %vm577_vm0, %v584_v51, %v585_v56 }
  0x1e   : > { %2672 = vrot.lane.b32.xlu1 %v2671_v53, %s2831_s12  ;;  %v644_v62 = vsel %vm577_vm0, %v585_v56, 0.0  ;;  %v2351_v63 = vunpack.c.h.bf16 %v2399_v47  ;;  %v2354_v1 = vunpack.c.l.bf16 %v2400_v52  ;;  %v2355_v11 = vunpack.c.h.bf16 %v2400_v52  ;;  %v2403_v53 = vld [vmem:[%s2884_s26 + $0x40] sm:$0xff]  }
  0x1f   : > { %2662 = vrot.lane.b32.xlu0 %v2661_v43, %s2830_s11  ;;  %v2686_v4 = vpack.i.bf16 %v644_v62, %v586_v61  ;;  %v589_v5 = vsel %vm577_vm0, %v587_v58, %v588_v59  ;;  %v645_v6 = vsel %vm577_vm0, %v588_v59, 0.0  ;;  %v349_v7 = vmul.f32 %v2350_v60, %v2889_v0  ;;  %v2404_v58 = vld [vmem:[%s2884_s26 + $0x48] sm:$0xff]  }
  0x20   : > { %v2696_v8 = vpack.i.bf16 %v645_v6, %v589_v5  ;;  %v350_v10 = vmul.f32 %v2351_v63, %v2889_v0  ;;  %v351_v12 = vmul.f32 %v2354_v1, %v2889_v0  ;;  %v2358_v14 = vunpack.c.l.bf16 %v2401_v2 }
  0x21   : > { %v388_v13 = vadd.f32 %v2898_v9, %v349_v7  ;;  %v2359_v15 = vunpack.c.h.bf16 %v2401_v2  ;;  %v2362_v16 = vunpack.c.l.bf16 %v2402_v3  ;;  %v352_v18 = vmul.f32 %v2355_v11, %v2889_v0 }
  0x22   : > { %2677 = vrot.lane.b32.xlu1 %v2676_v57, %s2831_s12  ;;  %v389_v17 = vadd.f32 %v2898_v9, %v350_v10  ;;  %v390_v19 = vadd.f32 %v2898_v9, %v351_v12  ;;  %v2363_v20 = vunpack.c.h.bf16 %v2402_v3  ;;  %v353_v22 = vmul.f32 %v2358_v14, %v2889_v0  ;;  %v2406_v10 = vld [vmem:[%s2884_s26 + $0x58] sm:$0xff]  }
  0x23   : > { %2667 = vrot.lane.b32.xlu0 %v2666_v46, %s2830_s11  ;;  %v2982_v21 = vmax.f32 %v388_v13, 0.0  ;;  %v354_v23 = vmul.f32 %v2359_v15, %v2889_v0  ;;  %v355_v24 = vmul.f32 %v2362_v16, %v2889_v0  ;;  %v391_v27 = vadd.f32 %v2898_v9, %v352_v18 }
  0x24   : > { %v2987_v25 = vmax.f32 %v389_v17, 0.0  ;;  %v2990_v28 = vmax.f32 %v390_v19, 0.0  ;;  %v356_v29 = vmul.f32 %v2363_v20, %v2889_v0  ;;  %v392_v39 = vadd.f32 %v2898_v9, %v353_v22 }
  0x25   : > { %v590_v30 = vrot.slane %v2982_v21, 1  ;;  %v393_v40 = vadd.f32 %v2898_v9, %v354_v23  ;;  %v394_v41 = vadd.f32 %v2898_v9, %v355_v24  ;;  %v3000_v43 = vmax.f32 %v391_v27, 0.0 }
  0x26   : > { %2682 = vrot.lane.b32.xlu1 %v2681_v50, %s2830_s11  ;;  %v2691_v42 = vpack.i.bf16 %v2987_v25, %v2982_v21  ;;  %v591_v44 = vrot.slane %v2987_v25, 1  ;;  %v593_v45 = vrot.slane %v2990_v28, 1  ;;  %v3005_v46 = vmax.f32 %v392_v39, 0.0 }
  0x27   : > { %2687 = vrot.lane.b32.xlu0 %v2686_v4, %s2831_s12  ;;  %v3007_v47 = vmax.f32 %v393_v40, 0.0  ;;  %v395_v48 = vadd.f32 %v2898_v9, %v356_v29  ;;  %v3010_v49 = vmax.f32 %v394_v41, 0.0  ;;  %v594_v52 = vrot.slane %v3000_v43, 1 }
  0x28   : > { %v592_v50 = vsel %vm577_vm0, %v590_v30, %v591_v44  ;;  %v646_v51 = vsel %vm577_vm0, %v591_v44, 0.0  ;;  %v2701_v54 = vpack.i.bf16 %v3000_v43, %v2990_v28  ;;  %v596_v57 = vrot.slane %v3005_v46, 1 }
  0x29   : > { %v2706_v55 = vpack.i.bf16 %v646_v51, %v592_v50  ;;  %v3018_v56 = vmax.f32 %v395_v48, 0.0  ;;  %v595_v59 = vsel %vm577_vm0, %v593_v45, %v594_v52  ;;  %v647_v60 = vsel %vm577_vm0, %v594_v52, 0.0 }
  0x2a   : > { %2697 = vrot.lane.b32.xlu1 %v2696_v8, %s2831_s12  ;;  %v597_v61 = vrot.slane %v3007_v47, 1  ;;  %v599_v62 = vrot.slane %v3010_v49, 1  ;;  %v2711_v63 = vpack.i.bf16 %v647_v60, %v595_v59  ;;  %v2716_v1 = vpack.i.bf16 %v3007_v47, %v3005_v46  ;;  %v2405_v8 = vld [vmem:[%s2884_s26 + $0x50] sm:$0xff]  }
  0x2b   : > { %2692 = vrot.lane.b32.xlu0 %v2691_v42, %s2830_s11  ;;  %v600_v2 = vrot.slane %v3018_v56, 1  ;;  %v2366_v3 = vunpack.c.l.bf16 %v2403_v53  ;;  %v2367_v6 = vunpack.c.h.bf16 %v2403_v53  ;;  %v2370_v7 = vunpack.c.l.bf16 %v2404_v58 }
  0x2c   : > { %v598_v4 = vsel %vm577_vm0, %v596_v57, %v597_v61  ;;  %v648_v5 = vsel %vm577_vm0, %v597_v61, 0.0  ;;  %v2721_v11 = vpack.i.bf16 %v3018_v56, %v3010_v49  ;;  %v2371_v17 = vunpack.c.h.bf16 %v2404_v58 }
  0x2d   : > { %v2726_v12 = vpack.i.bf16 %v648_v5, %v598_v4  ;;  %v601_v13 = vsel %vm577_vm0, %v599_v62, %v600_v2  ;;  %v357_v14 = vmul.f32 %v2366_v3, %v2889_v0  ;;  %v649_v15 = vsel %vm577_vm0, %v600_v2, 0.0  ;;  %v2407_v2 = vld [vmem:[%s2884_s26 + $0x60] sm:$0xff]  }
  0x2e   : > { %2702 = vrot.lane.b32.xlu1 %v2701_v54, %s2830_s11  ;;  %v358_v16 = vmul.f32 %v2367_v6, %v2889_v0  ;;  %v359_v18 = vmul.f32 %v2370_v7, %v2889_v0  ;;  %v2374_v20 = vunpack.c.l.bf16 %v2405_v8  ;;  %v2375_v22 = vunpack.c.h.bf16 %v2405_v8  ;;  %v2408_v7 = vld [vmem:[%s2884_s26 + $0x68] sm:$0xff]  }
  0x2f   : > { %2707 = vrot.lane.b32.xlu0 %v2706_v55, %s2831_s12  ;;  %v396_v19 = vadd.f32 %v2898_v9, %v357_v14  ;;  %v2378_v23 = vunpack.c.l.bf16 %v2406_v10  ;;  %v360_v27 = vmul.f32 %v2371_v17, %v2889_v0  ;;  %v2379_v30 = vunpack.c.h.bf16 %v2406_v10 }
  0x30   : > { %v397_v24 = vadd.f32 %v2898_v9, %v358_v16  ;;  %v398_v29 = vadd.f32 %v2898_v9, %v359_v18  ;;  %v361_v40 = vmul.f32 %v2374_v20, %v2889_v0  ;;  %v362_v41 = vmul.f32 %v2375_v22, %v2889_v0  ;;  %v2410_v20 = vld [vmem:[%s2884_s26 + $0x78] sm:$0xff]  }
  0x31   : > { %v3048_v39 = vmax.f32 %v396_v19, 0.0  ;;  %v363_v42 = vmul.f32 %v2378_v23, %v2889_v0  ;;  %v399_v45 = vadd.f32 %v2898_v9, %v360_v27  ;;  %v364_v50 = vmul.f32 %v2379_v30, %v2889_v0  ;;  %v2409_v19 = vld [vmem:[%s2884_s26 + $0x70] sm:$0xff]   ;;  %s3584_s26 = scalar_lea.vmem %s3737_s4, %s2298_s23 }
  0x32   : > { %2712 = vrot.lane.b32.xlu1 %v2711_v63, %s2831_s12  ;;  %v3054_v44 = vmax.f32 %v397_v24, 0.0  ;;  %v3057_v48 = vmax.f32 %v398_v29, 0.0  ;;  %v400_v52 = vadd.f32 %v2898_v9, %v361_v40  ;;  %v401_v53 = vadd.f32 %v2898_v9, %v362_v41 }
  0x33   : > { %2717 = vrot.lane.b32.xlu0 %v2716_v1, %s2830_s11  ;;  %v602_v51 = vrot.slane %v3048_v39, 1  ;;  %v402_v54 = vadd.f32 %v2898_v9, %v363_v42  ;;  %v3065_v55 = vmax.f32 %v399_v45, 0.0  ;;  %v403_v61 = vadd.f32 %v2898_v9, %v364_v50 }
  0x34   : > { %v603_v57 = vrot.slane %v3054_v44, 1  ;;  %v605_v58 = vrot.slane %v3057_v48, 1  ;;  %v3069_v59 = vmax.f32 %v400_v52, 0.0  ;;  %v3071_v60 = vmax.f32 %v401_v53, 0.0 }
  0x35   : > { %v2731_v62 = vpack.i.bf16 %v649_v15, %v601_v13  ;;  %v2736_v63 = vpack.i.bf16 %v3054_v44, %v3048_v39  ;;  %v606_v1 = vrot.slane %v3065_v55, 1  ;;  %v3082_v5 = vmax.f32 %v402_v54, 0.0 }
  0x36   : > { %2722 = vrot.lane.b32.xlu1 %v2721_v11, %s2830_s11  ;;  %v604_v3 = vsel %vm577_vm0, %v602_v51, %v603_v57  ;;  %v650_v4 = vsel %vm577_vm0, %v603_v57, 0.0  ;;  %v3084_v6 = vmax.f32 %v403_v61, 0.0  ;;  %v608_v11 = vrot.slane %v3069_v59, 1 }
  0x37   : > { %2727 = vrot.lane.b32.xlu0 %v2726_v12, %s2831_s12  ;;  %v607_v8 = vsel %vm577_vm0, %v605_v58, %v606_v1  ;;  %v651_v10 = vsel %vm577_vm0, %v606_v1, 0.0  ;;  %v609_v13 = vrot.slane %v3071_v60, 1  ;;  %v2741_v12 = vpack.i.bf16 %v3065_v55, %v3057_v48 }
  0x38   : > { %v2382_v14 = vunpack.c.l.bf16 %v2407_v2  ;;  %v2746_v15 = vpack.i.bf16 %v650_v4, %v604_v3  ;;  %v2756_v16 = vpack.i.bf16 %v3071_v60, %v3069_v59  ;;  %v2383_v17 = vunpack.c.h.bf16 %v2407_v2 }
  0x39   : > { %v2386_v18 = vunpack.c.l.bf16 %v2408_v7  ;;  %v2751_v22 = vpack.i.bf16 %v651_v10, %v607_v8  ;;  %v611_v23 = vrot.slane %v3082_v5, 1  ;;  %v612_v24 = vrot.slane %v3084_v6, 1 }
  0x3a   : > { %2732 = vrot.lane.b32.xlu1 %v2731_v62, %s2831_s12  ;;  %v365_v27 = vmul.f32 %v2382_v14, %v2889_v0  ;;  %v610_v29 = vsel %vm577_vm0, %v608_v11, %v609_v13  ;;  %v366_v30 = vmul.f32 %v2383_v17, %v2889_v0  ;;  %v2387_v40 = vunpack.c.h.bf16 %v2408_v7 }
  0x3b   : > { %2737 = vrot.lane.b32.xlu0 %v2736_v63, %s2830_s11  ;;  %v367_v41 = vmul.f32 %v2386_v18, %v2889_v0  ;;  %v2390_v45 = vunpack.c.l.bf16 %v2409_v19  ;;  %v2391_v50 = vunpack.c.h.bf16 %v2409_v19  ;;  %v2394_v51 = vunpack.c.l.bf16 %v2410_v20 }
  0x3c   : > { %v404_v42 = vadd.f32 %v2898_v9, %v365_v27  ;;  %v405_v52 = vadd.f32 %v2898_v9, %v366_v30  ;;  %v368_v53 = vmul.f32 %v2387_v40, %v2889_v0  ;;  %v2395_v57 = vunpack.c.h.bf16 %v2410_v20 }
  0x3d   : > { %v406_v54 = vadd.f32 %v2898_v9, %v367_v41  ;;  %v369_v61 = vmul.f32 %v2390_v45, %v2889_v0  ;;  %v370_v62 = vmul.f32 %v2391_v50, %v2889_v0  ;;  %v371_v63 = vmul.f32 %v2394_v51, %v2889_v0 }
  0x3e   : > { %2742 = vrot.lane.b32.xlu1 %v2741_v12, %s2830_s11  ;;  %v3111_v58 = vmax.f32 %v404_v42, 0.0  ;;  %v652_v1 = vsel %vm577_vm0, %v609_v13, 0.0  ;;  %v3117_v2 = vmax.f32 %v405_v52, 0.0  ;;  %v407_v3 = vadd.f32 %v2898_v9, %v368_v53  ;;  %v3162_v53 = vld [vmem:[%s3736_s3 + $0x8] ss:$0 sps:$4 sm:$0xff]  }
  0x3f   : > { %2747 = vrot.lane.b32.xlu0 %v2746_v15, %s2831_s12  ;;  %v3120_v4 = vmax.f32 %v406_v54, 0.0  ;;  %v408_v8 = vadd.f32 %v2898_v9, %v369_v61  ;;  %v409_v10 = vadd.f32 %v2898_v9, %v370_v62  ;;  %v372_v11 = vmul.f32 %v2395_v57, %v2889_v0  ;;  %2642 = vmatprep.subr.msk.bf16.mxu0 %vm1061_vm3, %v3162_v53 }
  0x40   : > { %v614_v7 = vrot.slane %v3111_v58, 1  ;;  %v2761_v12 = vpack.i.bf16 %v3084_v6, %v3082_v5  ;;  %v3129_v13 = vmax.f32 %v407_v3, 0.0  ;;  %v615_v14 = vrot.slane %v3117_v2, 1 }
  0x41   : > { %v410_v15 = vadd.f32 %v2898_v9, %v371_v63  ;;  %v2766_v17 = vpack.i.bf16 %v652_v1, %v610_v29  ;;  %v613_v18 = vsel %vm577_vm0, %v611_v23, %v612_v24  ;;  %v653_v19 = vsel %vm577_vm0, %v612_v24, 0.0 }
  0x42   : > { %2752 = vrot.lane.b32.xlu1 %v2751_v22, %s2831_s12  ;;  %v617_v0 = vrot.slane %v3120_v4, 1  ;;  %v482_v20 = vrot.slane %v2923_v32, 7  ;;  %v618_v22 = vrot.slane %v3129_v13, 1  ;;  %v3139_v27 = vmax.f32 %v408_v8, 0.0 }
  0x43   : > { %2757 = vrot.lane.b32.xlu0 %v2756_v16, %s2830_s11  ;;  %v616_v30 = vsel %vm577_vm0, %v614_v7, %v615_v14  ;;  %v654_v40 = vsel %vm577_vm0, %v615_v14, 0.0  ;;  %v3143_v41 = vmax.f32 %v409_v10, 0.0  ;;  %v411_v16 = vadd.f32 %v2898_v9, %v372_v11 }
  0x44   : > { %v2771_v23 = vpack.i.bf16 %v653_v19, %v613_v18  ;;  %v3147_v24 = vmax.f32 %v410_v15, 0.0  ;;  %v2776_v32 = vpack.i.bf16 %v3117_v2, %v3111_v58  ;;  %v619_v29 = vsel %vm577_vm0, %v617_v0, %v618_v22 }
  0x45   : > { %v655_v42 = vsel %vm577_vm0, %v618_v22, 0.0  ;;  %v481_v45 = vrot.slane %v2921_v31, 7  ;;  %v2781_v9 = vpack.i.bf16 %v3129_v13, %v3120_v4  ;;  %v2786_v50 = vpack.i.bf16 %v654_v40, %v616_v30 }
  0x46   : > { %2762 = vrot.lane.b32.xlu1 %v2761_v12, %s2830_s11  ;;  %v484_v51 = vrot.slane %v2925_v33, 7  ;;  %v485_v52 = vrot.slane %v2927_v34, 7  ;;  %v3164_v54 = vmax.f32 %v411_v16, 0.0  ;;  %v620_v57 = vrot.slane %v3139_v27, 1  ;;  %v2819_v34 = vld [vmem:[%s3736_s3 + $0x14] ss:$0 sps:$4 sm:$0xff]  }
  0x47   : > { %2767 = vrot.lane.b32.xlu0 %v2766_v17, %s2831_s12  ;;  %v621_v61 = vrot.slane %v3143_v41, 1  ;;  %v3171_v62 = vsel %vm480_vm1, %v481_v45, %v482_v20  ;;  %v2791_v63 = vpack.i.bf16 %v655_v42, %v619_v29  ;;  %v2796_v1 = vpack.i.bf16 %v3143_v41, %v3139_v27  ;;  %v3195_v17 = vld [vmem:[%s3736_s3 + $0x18] sm:$0xff]   ;;  %2641 = vmatprep.subr.msk.bf16.mxu1 %vm1061_vm3, %v2819_v34 }
  0x48   : > { %v623_v3 = vrot.slane %v3147_v24, 1  ;;  %v3183_v7 = vsel %vm480_vm1, %v484_v51, %v485_v52  ;;  %v487_v8 = vrot.slane %v2930_v35, 7  ;;  %v488_v10 = vrot.slane %v2932_v36, 7 }
  0x49   : > { %v490_v11 = vrot.slane %v2934_v37, 7  ;;  %v491_v12 = vrot.slane %v2936_v38, 7  ;;  %v493_v14 = vrot.slane %v2982_v21, 7  ;;  %v494_v15 = vrot.slane %v2987_v25, 7 }
  0x4a   : > { %2772 = vrot.lane.b32.xlu1 %v2771_v23, %s2831_s12  ;;  %v622_v18 = vsel %vm577_vm0, %v620_v57, %v621_v61  ;;  %v624_v19 = vrot.slane %v3164_v54, 1  ;;  %v3202_v36 = vsel %vm480_vm1, %v487_v8, %v488_v10  ;;  %v2832_v25 = vmov 0  }
  0x4b   : > { %2777 = vrot.lane.b32.xlu0 %v2776_v32, %s2830_s11  ;;  %v3207_v38 = vsel %vm480_vm1, %v490_v11, %v491_v12  ;;  %445 = vst.msk [vmem:[#allocation2] sm:$0xff] %vm444_vm2, %v2832_v25  ;;  %447 = vst.msk [vmem:[#allocation2 + $0x88] sm:$0xff] %vm444_vm2, %v2832_v25  ;;  %v656_v0 = vsel %vm577_vm0, %v621_v61, 0.0  ;;  %v3218_v20 = vsel %vm1061_vm3, %v3162_v53, 0  ;;  %v3223_v22 = vsel %vm480_vm1, %v493_v14, %v494_v15 }
  0x4c   : > { %v1063_v30 = vsel %vm1061_vm3, %v2819_v34, 0  ;;  %2504 = vmatpush3.bf16.msra.mxu0 %v3218_v20  ;;  %v496_v40 = vrot.slane %v2990_v28, 7  ;;  %v497_v16 = vrot.slane %v3000_v43, 7  ;;  %v499_v23 = vrot.slane %v3005_v46, 7 }
  0x4d   : > { %v500_v32 = vrot.slane %v3007_v47, 7  ;;  %2468 = vmatpush3.bf16.msra.mxu1 %v1063_v30  ;;  %2537 = vmatprep.subr.bf16.mxu0 %v3195_v17  ;;  %v502_v29 = vrot.slane %v3010_v49, 7  ;;  %v503_v42 = vrot.slane %v3018_v56, 7  ;;  %v2801_v52 = vpack.i.bf16 %v3164_v54, %v3147_v24 }
  0x4e   : > { %2782 = vrot.lane.b32.xlu1 %v2781_v9, %s2830_s11  ;;  %v505_v9 = vrot.slane %v3048_v39, 7  ;;  %v3242_v43 = vsel %vm480_vm1, %v496_v40, %v497_v16  ;;  %2573 = vmatprep.subr.bf16.mxu1 %v2915_v26  ;;  %v2806_v56 = vpack.i.bf16 %v656_v0, %v622_v18  ;;  %v657_v34 = vsel %vm577_vm0, %v624_v19, 0.0 }
  0x4f   : > { %2787 = vrot.lane.b32.xlu0 %v2786_v50, %s2831_s12  ;;  %v506_v50 = vrot.slane %v3054_v44, 7  ;;  %v3248_v47 = vsel %vm480_vm1, %v499_v23, %v500_v32  ;;  %v625_v44 = vsel %vm577_vm0, %v623_v3, %v624_v19  ;;  %v3255_v57 = vsel %vm480_vm1, %v502_v29, %v503_v42 }
  0x50   : > { %v508_v10 = vrot.slane %v3057_v48, 7  ;;  %v511_v3 = vrot.slane %v3069_v59, 7  ;;  %v512_v15 = vrot.slane %v3071_v60, 7  ;;  %v514_v18 = vrot.slane %v3082_v5, 7 }
  0x51   : > { %v3260_v61 = vsel %vm480_vm1, %v505_v9, %v506_v50  ;;  %v515_v25 = vrot.slane %v3084_v6, 7  ;;  %v517_v0 = vrot.slane %v3111_v58, 7  ;;  %v2811_v19 = vpack.i.bf16 %v657_v34, %v625_v44 }
  0x52   : > { %2792 = vrot.lane.b32.xlu1 %v2791_v63, %s2831_s12  ;;  %v509_v63 = vrot.slane %v3065_v55, 7  ;;  %v965_v12 = vld [vmem:[#allocation2] sm:$0xff]  ;;  %v518_v55 = vrot.slane %v3117_v2, 7  ;;  %v3282_v60 = vsel %vm480_vm1, %v511_v3, %v512_v15  ;;  %v520_v2 = vrot.slane %v3120_v4, 7 }
  0x53   : > { %2797 = vrot.lane.b32.xlu0 %v2796_v1, %s2830_s11  ;;  %2505 = vmatprep.mubr.msk.bf16.mxu0 %vm444_vm2, %v965_v12  ;;  %v3287_v6 = vsel %vm480_vm1, %v514_v18, %v515_v25  ;;  %v521_v16 = vrot.slane %v3129_v13, 7  ;;  %v3741_v32 = vrot.slane %v3139_v27, 7  ;;  %v524_v42 = vrot.slane %v3143_v41, 7 }
  0x54   : > { %v3275_v1 = vsel %vm480_vm1, %v508_v10, %v509_v63  ;;  %v3293_v30 = vsel %vm480_vm1, %v517_v0, %v518_v55  ;;  %v3740_v50 = vrot.slane %v3147_v24, 7  ;;  %v563_v33 = vsel %vm480_vm1, 0.0, %v487_v8 }
  0x55   : > { %v3310_v44 = vsel %vm480_vm1, %v3741_v32, %v524_v42  ;;  %v567_v28 = vsel %vm480_vm1, 0.0, %v499_v23 }
  0x56   : > { %2802 = vrot.lane.b32.xlu1 %v2801_v52, %s2830_s11  ;;  %v527_v52 = vrot.slane %v3164_v54, 7  ;;  %v561_v54 = vsel %vm480_vm1, 0.0, %v481_v45 }
  0x57   : > { %2807 = vrot.lane.b32.xlu0 %v2806_v56, %s2831_s12  ;;  %v3304_v56 = vsel %vm480_vm1, %v520_v2, %v521_v16  ;;  %v562_v16 = vsel %vm480_vm1, 0.0, %v484_v51 }
  0x58   : > { %v3315_v13 = vsel %vm480_vm1, %v3740_v50, %v527_v52 }
  0x5a   : > { %2812 = vrot.lane.b32.xlu1 %v2811_v19, %s2831_s12 }
  0x8d   : > { %v2658_v41 = vpop.permute.xlu0 %2657 }
  0x8e   : > { %v2660_v34 = vunpack.i.h.bf16 %v2658_v41  ;;  %v2659_v63 = vunpack.i.l.bf16 %v2658_v41 }
  0x90   : > { %v867_v12 = vsel %vm866_vm4, %v561_v54, %v2659_v63  ;;  %v868_v15 = vsel %vm866_vm4, %v3171_v62, %v2660_v34  ;;  %v2673_v25 = vpop.permute.xlu1 %2672 }
  0x91   : > { %v2675_v55 = vunpack.i.h.bf16 %v2673_v25  ;;  %v2674_v19 = vunpack.i.l.bf16 %v2673_v25  ;;  %v2663_v42 = vpop.permute.xlu0 %2662 }
  0x92   : > { %v2665_v52 = vunpack.i.h.bf16 %v2663_v42  ;;  %v2664_v31 = vunpack.i.l.bf16 %v2663_v42 }
  0x93   : > { %v900_v45 = vsel %vm899_vm5, %v867_v12, %v2674_v19  ;;  %v901_v41 = vsel %vm899_vm5, %v868_v15, %v2675_v55 }
  0x94   : > { %v932_v50 = vpack.c.bf16 %v901_v41, %v900_v45  ;;  %v870_v54 = vsel %vm866_vm4, %v3183_v7, %v2665_v52  ;;  %v869_v62 = vsel %vm866_vm4, %v562_v16, %v2664_v31  ;;  %v2678_v34 = vpop.permute.xlu1 %2677 }
  0x95   : > { %v2680_v63 = vunpack.i.h.bf16 %v2678_v34  ;;  %v2679_v25 = vunpack.i.l.bf16 %v2678_v34  ;;  %v2668_v32 = vpop.permute.xlu0 %2667 }
  0x96   : > { %949 = vst.msk [vmem:[#allocation2 + $0x8] sm:$0xff] %vm444_vm2, %v932_v50  ;;  %v2670_v51 = vunpack.i.h.bf16 %v2668_v32  ;;  %v2669_v12 = vunpack.i.l.bf16 %v2668_v32  ;;  %v564_v32 = vsel %vm480_vm1, 0.0, %v490_v11 }
  0x97   : > { %v903_v15 = vsel %vm899_vm5, %v870_v54, %v2680_v63  ;;  %v902_v55 = vsel %vm899_vm5, %v869_v62, %v2679_v25  ;;  %v565_v25 = vsel %vm480_vm1, 0.0, %v493_v14 }
  0x98   : > { %v933_v19 = vpack.c.bf16 %v903_v15, %v902_v55  ;;  %v2683_v7 = vpop.permute.xlu1 %2682  ;;  %v872_v16 = vsel %vm866_vm4, %v3202_v36, %v2670_v51  ;;  %v871_v42 = vsel %vm866_vm4, %v563_v33, %v2669_v12  ;;  %v2821_v36 = vld [vmem:[%s3736_s3 + $0x20] ss:$0 sps:$4 sm:$0xff]  }
  0x99   : > { %v2688_v52 = vpop.permute.xlu0 %2687  ;;  %v2685_v50 = vunpack.i.h.bf16 %v2683_v7  ;;  %v2684_v35 = vunpack.i.l.bf16 %v2683_v7 }
  0x9a   : > { %950 = vst.msk [vmem:[#allocation2 + $0x10] sm:$0xff] %vm444_vm2, %v933_v19  ;;  %v2690_v31 = vunpack.i.h.bf16 %v2688_v52  ;;  %v2689_v8 = vunpack.i.l.bf16 %v2688_v52 }
  0x9b   : > { %v874_v11 = vsel %vm866_vm4, %v3207_v38, %v2685_v50  ;;  %v873_v51 = vsel %vm866_vm4, %v564_v32, %v2684_v35  ;;  %v1526_v38 = vsel %vm1061_vm3, %v2821_v36, 0 }
  0x9c   : > { %v904_v45 = vsel %vm899_vm5, %v871_v42, %v2689_v8  ;;  %v905_v41 = vsel %vm899_vm5, %v872_v16, %v2690_v31  ;;  %v2698_v54 = vpop.permute.xlu1 %2697 }
  0x9d   : > { %v934_v62 = vpack.c.bf16 %v905_v41, %v904_v45  ;;  %v2700_v34 = vunpack.i.h.bf16 %v2698_v54  ;;  %v2699_v63 = vunpack.i.l.bf16 %v2698_v54  ;;  %v2693_v33 = vpop.permute.xlu0 %2692  ;;  %v984_v37 = vld [vmem:[#allocation2 + $0x8] sm:$0xff] }
  0x9e   : > { %v2695_v12 = vunpack.i.h.bf16 %v2693_v33  ;;  %v2694_v15 = vunpack.i.l.bf16 %v2693_v33  ;;  %2469 = vmatprep.mubr.msk.bf16.mxu1 %vm444_vm2, %v984_v37  ;;  %2506 = vmatmul.mubr.msk.bf16.vlgmr.msra.gmra.mrb[0].mxu0 %vm444_vm2, %v984_v37 }
  0x9f   : > { %951 = vst.msk [vmem:[#allocation2 + $0x18] sm:$0xff] %vm444_vm2, %v934_v62  ;;  %v906_v55 = vsel %vm899_vm5, %v873_v51, %v2699_v63  ;;  %v907_v21 = vsel %vm899_vm5, %v874_v11, %v2700_v34  ;;  %2538 = vmatpush3.bf16.msra.mxu0 %v3195_v17 }
  0xa0   : > { %v935_v14 = vpack.c.bf16 %v907_v21, %v906_v55  ;;  %v2703_v19 = vpop.permute.xlu1 %2702  ;;  %2644 = vmatprep.subr.msk.bf16.mxu0 %vm1061_vm3, %v2821_v36  ;;  %v876_v7 = vsel %vm866_vm4, %v3223_v22, %v2695_v12  ;;  %v875_v16 = vsel %vm866_vm4, %v565_v25, %v2694_v15  ;;  %v566_v22 = vsel %vm480_vm1, 0.0, %v496_v40 }
  0xa1   : > { %v2708_v42 = vpop.permute.xlu0 %2707  ;;  %v3366_v52 = vld [vmem:[#allocation2 + $0x10] sm:$0xff]  ;;  %v2705_v50 = vunpack.i.h.bf16 %v2703_v19  ;;  %v2704_v35 = vunpack.i.l.bf16 %v2703_v19 }
  0xa2   : > { %952 = vst.msk [vmem:[#allocation2 + $0x20] sm:$0xff] %vm444_vm2, %v935_v14  ;;  %v2710_v31 = vunpack.i.h.bf16 %v2708_v42  ;;  %v2709_v17 = vunpack.i.l.bf16 %v2708_v42  ;;  %2470 = vmatmul.mubr.msk.bf16.vlgmr.msra.gmra.mrb[0].mxu1 %vm444_vm2, %v3366_v52  ;;  %2509 = vmatprep.mubr.msk.bf16.mxu0 %vm444_vm2, %v3366_v52  ;;  %v569_v42 = vsel %vm480_vm1, 0.0, %v505_v9 }
  0xa3   : > { %2575 = vmatpush3.bf16.msra.mxu1 %v2915_v26  ;;  %2540 = vmatpush3.bf16.msra.mxu0 %v1526_v38  ;;  %v878_v26 = vsel %vm866_vm4, %v3242_v43, %v2705_v50  ;;  %v877_v40 = vsel %vm866_vm4, %v566_v22, %v2704_v35 }
  0xa4   : > { %v908_v8 = vsel %vm899_vm5, %v875_v16, %v2709_v17  ;;  %v909_v32 = vsel %vm899_vm5, %v876_v7, %v2710_v31  ;;  %v2713_v45 = vpop.permute.xlu1 %2712  ;;  %2643 = vmatprep.subr.msk.bf16.mxu1 %vm1061_vm3, %v3162_v53 }
  0xa5   : > { %v936_v41 = vpack.c.bf16 %v909_v32, %v908_v8  ;;  %v2715_v54 = vunpack.i.h.bf16 %v2713_v45  ;;  %v2714_v36 = vunpack.i.l.bf16 %v2713_v45  ;;  %v2718_v62 = vpop.permute.xlu0 %2717 }
  0xa6   : > { %v2720_v34 = vunpack.i.h.bf16 %v2718_v62  ;;  %v2719_v63 = vunpack.i.l.bf16 %v2718_v62  ;;  %v3387_v25 = vld [vmem:[#allocation2 + $0x18] sm:$0xff] }
  0xa7   : > { %953 = vst.msk [vmem:[#allocation2 + $0x28] sm:$0xff] %vm444_vm2, %v936_v41  ;;  %v910_v53 = vsel %vm899_vm5, %v877_v40, %v2714_v36  ;;  %v911_v33 = vsel %vm899_vm5, %v878_v26, %v2715_v54  ;;  %2473 = vmatprep.mubr.msk.bf16.mxu1 %vm444_vm2, %v3387_v25  ;;  %2510 = vmatmul.mubr.msk.bf16.gmra.mrb[4].mxu0 %vm444_vm2, %v3387_v25 }
  0xa8   : > { %v937_v46 = vpack.c.bf16 %v911_v33, %v910_v53  ;;  %v2723_v23 = vpop.permute.xlu1 %2722  ;;  %2576 = vmatpush3.bf16.msra.mxu1 %v3218_v20  ;;  %v880_v43 = vsel %vm866_vm4, %v3248_v47, %v2720_v34  ;;  %v879_v37 = vsel %vm866_vm4, %v567_v28, %v2719_v63  ;;  %v568_v20 = vsel %vm480_vm1, 0.0, %v502_v29 }
  0xa9   : > { %v2728_v11 = vpop.permute.xlu0 %2727  ;;  %v3400_v51 = vld [vmem:[#allocation2 + $0x20] sm:$0xff]  ;;  %v2725_v12 = vunpack.i.h.bf16 %v2723_v23  ;;  %v2724_v15 = vunpack.i.l.bf16 %v2723_v23 }
  0xaa   : > { %954 = vst.msk [vmem:[#allocation2 + $0x30] sm:$0xff] %vm444_vm2, %v937_v46  ;;  %v2730_v55 = vunpack.i.h.bf16 %v2728_v11  ;;  %v2729_v21 = vunpack.i.l.bf16 %v2728_v11  ;;  %2474 = vmatmul.mubr.msk.bf16.gmra.mrb[4].mxu1 %vm444_vm2, %v3400_v51  ;;  %2513 = vmatprep.mubr.msk.bf16.mxu0 %vm444_vm2, %v3400_v51  ;;  %v571_v46 = vsel %vm480_vm1, 0.0, %v511_v3 }
  0xab   : > { %v882_v35 = vsel %vm866_vm4, %v3255_v57, %v2725_v12  ;;  %v881_v49 = vsel %vm866_vm4, %v568_v20, %v2724_v15 }
  0xac   : > { %v912_v47 = vsel %vm899_vm5, %v879_v37, %v2729_v21  ;;  %v913_v14 = vsel %vm899_vm5, %v880_v43, %v2730_v55  ;;  %v2733_v19 = vpop.permute.xlu1 %2732 }
  0xad   : > { %v938_v38 = vpack.c.bf16 %v913_v14, %v912_v47  ;;  %v2735_v7 = vunpack.i.h.bf16 %v2733_v19  ;;  %v2734_v16 = vunpack.i.l.bf16 %v2733_v19  ;;  %v2738_v50 = vpop.permute.xlu0 %2737 }
  0xae   : > { %v2740_v31 = vunpack.i.h.bf16 %v2738_v50  ;;  %v2739_v29 = vunpack.i.l.bf16 %v2738_v50  ;;  %v3418_v17 = vld [vmem:[#allocation2 + $0x28] sm:$0xff] }
  0xaf   : > { %955 = vst.msk [vmem:[#allocation2 + $0x38] sm:$0xff] %vm444_vm2, %v938_v38  ;;  %v914_v22 = vsel %vm899_vm5, %v881_v49, %v2734_v16  ;;  %v915_v8 = vsel %vm899_vm5, %v882_v35, %v2735_v7  ;;  %2477 = vmatprep.mubr.msk.bf16.mxu1 %vm444_vm2, %v3418_v17  ;;  %2514 = vmatmul.mubr.msk.bf16.gmra.mrb[8].mxu0 %vm444_vm2, %v3418_v17  ;;  %v573_v49 = vsel %vm480_vm1, 0.0, %v517_v0 }
  0xb0   : > { %v939_v39 = vpack.c.bf16 %v915_v8, %v914_v22  ;;  %v2743_v9 = vpop.permute.xlu1 %2742  ;;  %v884_v57 = vsel %vm866_vm4, %v3260_v61, %v2740_v31  ;;  %v883_v32 = vsel %vm866_vm4, %v569_v42, %v2739_v29  ;;  %v570_v61 = vsel %vm480_vm1, 0.0, %v508_v10 }
  0xb1   : > { %v2748_v45 = vpop.permute.xlu0 %2747  ;;  %v3430_v41 = vld [vmem:[#allocation2 + $0x30] sm:$0xff]  ;;  %v2745_v54 = vunpack.i.h.bf16 %v2743_v9  ;;  %v2744_v36 = vunpack.i.l.bf16 %v2743_v9 }
  0xb2   : > { %956 = vst.msk [vmem:[#allocation2 + $0x40] sm:$0xff] %vm444_vm2, %v939_v39  ;;  %v2750_v28 = vunpack.i.h.bf16 %v2748_v45  ;;  %v2749_v62 = vunpack.i.l.bf16 %v2748_v45  ;;  %2478 = vmatmul.mubr.msk.bf16.gmra.mrb[8].mxu1 %vm444_vm2, %v3430_v41  ;;  %2517 = vmatprep.mubr.msk.bf16.mxu0 %vm444_vm2, %v3430_v41 }
  0xb3   : > { %v886_v43 = vsel %vm866_vm4, %v3275_v1, %v2745_v54  ;;  %v885_v48 = vsel %vm866_vm4, %v570_v61, %v2744_v36 }
  0xb4   : > { %v916_v26 = vsel %vm899_vm5, %v883_v32, %v2749_v62  ;;  %v917_v40 = vsel %vm899_vm5, %v884_v57, %v2750_v28  ;;  %v2753_v34 = vpop.permute.xlu1 %2752 }
  0xb5   : > { %v940_v63 = vpack.c.bf16 %v917_v40, %v916_v26  ;;  %v2755_v53 = vunpack.i.h.bf16 %v2753_v34  ;;  %v2754_v33 = vunpack.i.l.bf16 %v2753_v34  ;;  %v2758_v23 = vpop.permute.xlu0 %2757 }
  0xb6   : > { %v2760_v37 = vunpack.i.h.bf16 %v2758_v23  ;;  %v2759_v10 = vunpack.i.l.bf16 %v2758_v23  ;;  %v3448_v11 = vld [vmem:[#allocation2 + $0x38] sm:$0xff] }
  0xb7   : > { %957 = vst.msk [vmem:[#allocation2 + $0x48] sm:$0xff] %vm444_vm2, %v940_v63  ;;  %v918_v12 = vsel %vm899_vm5, %v885_v48, %v2754_v33  ;;  %v919_v15 = vsel %vm899_vm5, %v886_v43, %v2755_v53  ;;  %2481 = vmatprep.mubr.msk.bf16.mxu1 %vm444_vm2, %v3448_v11  ;;  %2518 = vmatmul.mubr.msk.bf16.gmra.mrb[12].mxu0 %vm444_vm2, %v3448_v11  ;;  %v3742_v63 = vrot.slane %v3139_v27, 7 }
  0xb8   : > { %v941_v59 = vpack.c.bf16 %v919_v15, %v918_v12  ;;  %v2763_v3 = vpop.permute.xlu1 %2762  ;;  %2541 = vmatprep.mubr.msk.bf16.mxu0 %vm444_vm2, %v3366_v52  ;;  %v888_v1 = vsel %vm866_vm4, %v3282_v60, %v2760_v37  ;;  %v887_v55 = vsel %vm866_vm4, %v571_v46, %v2759_v10  ;;  %v572_v52 = vsel %vm480_vm1, 0.0, %v514_v18 }
  0xb9   : > { %v2768_v21 = vpop.permute.xlu0 %2767  ;;  %v3462_v20 = vld [vmem:[#allocation2 + $0x40] sm:$0xff]  ;;  %v2765_v47 = vunpack.i.h.bf16 %v2763_v3  ;;  %v2764_v14 = vunpack.i.l.bf16 %v2763_v3  ;;  %v575_v53 = vsel %vm480_vm1, 0.0, %v3742_v63 }
  0xba   : > { %958 = vst.msk [vmem:[#allocation2 + $0x50] sm:$0xff] %vm444_vm2, %v941_v59  ;;  %v2770_v19 = vunpack.i.h.bf16 %v2768_v21  ;;  %v2769_v38 = vunpack.i.l.bf16 %v2768_v21  ;;  %2482 = vmatmul.mubr.msk.bf16.gmra.mrb[12].mxu1 %vm444_vm2, %v3462_v20 }
  0xbb   : > { %v890_v29 = vsel %vm866_vm4, %v3287_v6, %v2765_v47  ;;  %v889_v5 = vsel %vm866_vm4, %v572_v52, %v2764_v14 }
  0xbc   : > { %v920_v60 = vsel %vm899_vm5, %v887_v55, %v2769_v38  ;;  %v921_v7 = vsel %vm899_vm5, %v888_v1, %v2770_v19  ;;  %v2773_v16 = vpop.permute.xlu1 %2772 }
  0xbd   : > { %v942_v42 = vpack.c.bf16 %v921_v7, %v920_v60  ;;  %v2775_v50 = vunpack.i.h.bf16 %v2773_v16  ;;  %v2774_v35 = vunpack.i.l.bf16 %v2773_v16  ;;  %v2778_v31 = vpop.permute.xlu0 %2777 }
  0xbe   : > { %v2780_v22 = vunpack.i.h.bf16 %v2778_v31  ;;  %v2779_v18 = vunpack.i.l.bf16 %v2778_v31  ;;  %v3478_v8 = vld [vmem:[#allocation2 + $0x48] sm:$0xff] }
  0xbf   : > { %959 = vst.msk [vmem:[#allocation2 + $0x58] sm:$0xff] %vm444_vm2, %v942_v42  ;;  %v922_v39 = vsel %vm899_vm5, %v889_v5, %v2774_v35  ;;  %v923_v9 = vsel %vm899_vm5, %v890_v29, %v2775_v50  ;;  %2485 = vmatprep.mubr.msk.bf16.mxu1 %vm444_vm2, %v3478_v8  ;;  %2542 = vmatmul.mubr.msk.bf16.vlgmr.msra.gmra.mrb[0].mxu0 %vm444_vm2, %v3387_v25  ;;  %v574_v25 = vsel %vm480_vm1, 0.0, %v520_v2 }
  0xc0   : > { %v943_v58 = vpack.c.bf16 %v923_v9, %v922_v39  ;;  %v2783_v0 = vpop.permute.xlu1 %2782  ;;  %2545 = vmatprep.mubr.msk.bf16.mxu0 %vm444_vm2, %v3400_v51  ;;  %v892_v6 = vsel %vm866_vm4, %v3293_v30, %v2780_v22  ;;  %v891_v57 = vsel %vm866_vm4, %v573_v49, %v2779_v18 }
  0xc1   : > { %v2788_v32 = vpop.permute.xlu0 %2787  ;;  %v3492_v45 = vld [vmem:[#allocation2 + $0x50] sm:$0xff]  ;;  %v2785_v54 = vunpack.i.h.bf16 %v2783_v0  ;;  %v2784_v36 = vunpack.i.l.bf16 %v2783_v0 }
  0xc2   : > { %960 = vst.msk [vmem:[#allocation2 + $0x60] sm:$0xff] %vm444_vm2, %v943_v58  ;;  %v2790_v28 = vunpack.i.h.bf16 %v2788_v32  ;;  %v2789_v62 = vunpack.i.l.bf16 %v2788_v32  ;;  %2486 = vmatmul.mubr.msk.bf16.gmra.mrb[16].mxu1 %vm444_vm2, %v3492_v45 }
  0xc3   : > { %v894_v46 = vsel %vm866_vm4, %v3304_v56, %v2785_v54  ;;  %v893_v4 = vsel %vm866_vm4, %v574_v25, %v2784_v36 }
  0xc4   : > { %v924_v30 = vsel %vm899_vm5, %v891_v57, %v2789_v62  ;;  %v925_v51 = vsel %vm899_vm5, %v892_v6, %v2790_v28  ;;  %v2793_v61 = vpop.permute.xlu1 %2792 }
  0xc5   : > { %v944_v26 = vpack.c.bf16 %v925_v51, %v924_v30  ;;  %v2795_v40 = vunpack.i.h.bf16 %v2793_v61  ;;  %v2794_v34 = vunpack.i.l.bf16 %v2793_v61  ;;  %v2798_v33 = vpop.permute.xlu0 %2797 }
  0xc6   : > { %v2800_v23 = vunpack.i.h.bf16 %v2798_v33  ;;  %v2799_v2 = vunpack.i.l.bf16 %v2798_v33  ;;  %v994_v43 = vld [vmem:[#allocation2 + $0x58] sm:$0xff] }
  0xc7   : > { %961 = vst.msk [vmem:[#allocation2 + $0x68] sm:$0xff] %vm444_vm2, %v944_v26  ;;  %v926_v48 = vsel %vm899_vm5, %v893_v4, %v2794_v34  ;;  %v927_v37 = vsel %vm899_vm5, %v894_v46, %v2795_v40  ;;  %2489 = vmatprep.mubr.msk.bf16.mxu1 %vm444_vm2, %v994_v43  ;;  %2546 = vmatmul.mubr.msk.bf16.gmra.mrb[4].mxu0 %vm444_vm2, %v3418_v17  ;;  %v3743_v17 = vrot.slane %v3147_v24, 7 }
  0xc8   : > { %v945_v27 = vpack.c.bf16 %v927_v37, %v926_v48  ;;  %v2803_v10 = vpop.permute.xlu1 %2802  ;;  %2549 = vmatprep.mubr.msk.bf16.mxu0 %vm444_vm2, %v3430_v41  ;;  %v896_v56 = vsel %vm866_vm4, %v3310_v44, %v2800_v23  ;;  %v895_v12 = vsel %vm866_vm4, %v575_v53, %v2799_v2 }
  0xc9   : > { %v2808_v15 = vpop.permute.xlu0 %2807  ;;  %v995_v59 = vld [vmem:[#allocation2 + $0x60] sm:$0xff]  ;;  %v2805_v3 = vunpack.i.h.bf16 %v2803_v10  ;;  %v2804_v1 = vunpack.i.l.bf16 %v2803_v10  ;;  %v576_v47 = vsel %vm480_vm1, 0.0, %v3743_v17 }
  0xca   : > { %962 = vst.msk [vmem:[#allocation2 + $0x70] sm:$0xff] %vm444_vm2, %v945_v27  ;;  %v2810_v55 = vunpack.i.h.bf16 %v2808_v15  ;;  %v2809_v21 = vunpack.i.l.bf16 %v2808_v15  ;;  %2490 = vmatmul.mubr.msk.bf16.gmra.mrb[20].mxu1 %vm444_vm2, %v995_v59 }
  0xcb   : > { %v898_v60 = vsel %vm866_vm4, %v3315_v13, %v2805_v3  ;;  %v897_v7 = vsel %vm866_vm4, %v576_v47, %v2804_v1 }
  0xcc   : > { %v928_v41 = vsel %vm899_vm5, %v895_v12, %v2809_v21  ;;  %v929_v44 = vsel %vm899_vm5, %v896_v56, %v2810_v55  ;;  %v2813_v14 = vpop.permute.xlu1 %2812 }
  0xcd   : > { %v946_v19 = vpack.c.bf16 %v929_v44, %v928_v41  ;;  %v2815_v38 = vunpack.i.h.bf16 %v2813_v14  ;;  %v2814_v52 = vunpack.i.l.bf16 %v2813_v14 }
  0xce   : > { %v996_v16 = vld [vmem:[#allocation2 + $0x68] sm:$0xff] }
  0xcf   : > { %963 = vst.msk [vmem:[#allocation2 + $0x78] sm:$0xff] %vm444_vm2, %v946_v19  ;;  %v930_v24 = vsel %vm899_vm5, %v897_v7, %v2814_v52  ;;  %v931_v42 = vsel %vm899_vm5, %v898_v60, %v2815_v38  ;;  %2493 = vmatprep.mubr.msk.bf16.mxu1 %vm444_vm2, %v996_v16  ;;  %2550 = vmatmul.mubr.msk.bf16.gmra.mrb[8].mxu0 %vm444_vm2, %v3448_v11  ;;  %v1463_v11 = vld [vmem:[#allocation2 + $0x88] sm:$0xff] }
  0xd0   : > { %v947_v50 = vpack.c.bf16 %v931_v42, %v930_v24  ;;  %2553 = vmatprep.mubr.msk.bf16.mxu0 %vm444_vm2, %v3462_v20 }
  0xd1   : > { %v997_v35 = vld [vmem:[#allocation2 + $0x70] sm:$0xff] }
  0xd2   : > { %964 = vst.msk [vmem:[#allocation2 + $0x80] sm:$0xff] %vm444_vm2, %v947_v50  ;;  %2494 = vmatmul.mubr.msk.bf16.gmra.mrb[24].mxu1 %vm444_vm2, %v997_v35 }
  0xd6   : > { %v998_v13 = vld [vmem:[#allocation2 + $0x78] sm:$0xff] }
  0xd7   : > { %2497 = vmatprep.mubr.msk.bf16.mxu1 %vm444_vm2, %v998_v13  ;;  %2554 = vmatmul.mubr.msk.bf16.gmra.mrb[12].mxu0 %vm444_vm2, %v3478_v8 }
  0xd8   : > { %2557 = vmatprep.mubr.msk.bf16.mxu0 %vm444_vm2, %v3492_v45 }
  0xd9   : > { %v999_v49 = vld [vmem:[#allocation2 + $0x80] sm:$0xff] }
  0xda   : > { %2498 = vmatmul.mubr.msk.bf16.gmra.mrb[28].mxu1 %vm444_vm2, %v999_v49 }
  0xdb   : > { %2521 = vmatprep.mubr.msk.bf16.mxu1 %vm444_vm2, %v3462_v20 }
  0xdf   : > { %2558 = vmatmul.mubr.msk.bf16.gmra.mrb[16].mxu0 %vm444_vm2, %v994_v43 }
  0xe0   : > { %2561 = vmatprep.mubr.msk.bf16.mxu0 %vm444_vm2, %v995_v59 }
  0xe2   : > { %2522 = vmatmul.mubr.msk.bf16.vlgmr.msra.gmra.mrb[16].mxu1 %vm444_vm2, %v3478_v8 }
  0xe3   : > { %2525 = vmatprep.mubr.msk.bf16.mxu1 %vm444_vm2, %v3492_v45 }
  0xe7   : > { %2562 = vmatmul.mubr.msk.bf16.gmra.mrb[20].mxu0 %vm444_vm2, %v996_v16 }
  0xe8   : > { %2565 = vmatprep.mubr.msk.bf16.mxu0 %vm444_vm2, %v997_v35 }
  0xea   : > { %2526 = vmatmul.mubr.msk.bf16.gmra.mrb[20].mxu1 %vm444_vm2, %v994_v43 }
  0xeb   : > { %2529 = vmatprep.mubr.msk.bf16.mxu1 %vm444_vm2, %v995_v59 }
  0xef   : > { %2566 = vmatmul.mubr.msk.bf16.gmra.mrb[24].mxu0 %vm444_vm2, %v998_v13 }
  0xf0   : > { %2569 = vmatprep.mubr.msk.bf16.mxu0 %vm444_vm2, %v999_v49 }
  0xf2   : > { %2530 = vmatmul.mubr.msk.bf16.gmra.mrb[24].mxu1 %vm444_vm2, %v996_v16 }
  0xf3   : > { %2533 = vmatprep.mubr.msk.bf16.mxu1 %vm444_vm2, %v997_v35 }
  0xf7   : > { %2570 = vmatmul.mubr.msk.bf16.gmra.mrb[28].mxu0 %vm444_vm2, %v1463_v11 }
  0xfa   : > { %2534 = vmatmul.mubr.msk.bf16.gmra.mrb[28].mxu1 %vm444_vm2, %v998_v13 }
 0x175   : > { %v2471_v20 = vpop.f32.mrb[0].mxu1 }
 0x176   : > { %v1099_v31 = vpop.f32.mrb[1].mxu1 }
 0x177   : > { %v2472_v29 = vpop.f32.mrb[2].mxu1 }
 0x178   : > { %v1102_v5 = vpop.f32.mrb[3].mxu1 }
 0x17d   : > { %v2475_v22 = vpop.f32.mrb[4].mxu1 }
 0x17e   : > { %v1115_v18 = vpop.f32.mrb[5].mxu1 }
 0x17f   : > { %v2476_v8 = vpop.f32.mrb[6].mxu1 }
 0x180   : > { %v1118_v39 = vpop.f32.mrb[7].mxu1 }
 0x185   : > { %v3563_v9 = vpop.f32.mrb[8].mxu1 }
 0x186   : > { %v3565_v58 = vpop.f32.mrb[9].mxu1 }
 0x187   : > { %v3567_v0 = vpop.f32.mrb[10].mxu1 }
 0x188   : > { %v3569_v6 = vpop.f32.mrb[11].mxu1 }
 0x18d   : > { %v3571_v57 = vpop.f32.mrb[12].mxu1 }
 0x18e   : > { %v3573_v32 = vpop.f32.mrb[13].mxu1 }
 0x18f   : > { %v3575_v45 = vpop.f32.mrb[14].mxu1 }
 0x190   : > { %v3577_v54 = vpop.f32.mrb[15].mxu1 }
 0x192   : > { %v2543_v36 = vpop.f32.mrb[0].mxu0 }
 0x193   : > { %v2577_v28 = vadd.f32 %v2543_v36, %v2471_v20  ;;  %v1562_v62 = vpop.f32.mrb[1].mxu0 }
 0x194   : > { %v2578_v25 = vadd.f32 %v1562_v62, %v1099_v31  ;;  %v2544_v30 = vpop.f32.mrb[2].mxu0 }
 0x195   : > { %v2302_v51 = vpack.c.bf16 %v2577_v28, %v2577_v28  ;;  %v2579_v61 = vadd.f32 %v2544_v30, %v2472_v29  ;;  %v1565_v26 = vpop.f32.mrb[3].mxu0 }
 0x196   : > { %v2300_v40 = vpack.c.bf16 %v2578_v25, %v2578_v25  ;;  %v2580_v34 = vadd.f32 %v1565_v26, %v1102_v5 }
 0x197   : > { %1852 = vst.msk [vmem:[%s3584_s26 + $0x8] sm:$0xf] %vm1849_vm6, %v2302_v51  ;;  %v1722_v63 = vpack.c.bf16 %v2579_v61, %v2577_v28  ;;  %v2303_v53 = vpack.c.bf16 %v2579_v61, %v2579_v61 }
 0x198   : > { %1850 = vst.msk [vmem:[%s3584_s26] sm:$0xf] %vm1849_vm6, %v2300_v40  ;;  %v1721_v33 = vpack.c.bf16 %v2580_v34, %v2578_v25  ;;  %v2301_v46 = vpack.c.bf16 %v2580_v34, %v2580_v34 }
 0x199   : > { %1853 = vst.msk [vmem:[%s3584_s26 + $0xc] sm:$0xf] %vm1849_vm6, %v2303_v53  ;;  %v1884_v4 = vunpack.c.l.bf16 %v1722_v63  ;;  %v1885_v23 = vunpack.c.h.bf16 %v1722_v63 }
 0x19a   : > { %1851 = vst.msk [vmem:[%s3584_s26 + $0x4] sm:$0xf] %vm1849_vm6, %v2301_v46  ;;  %v1882_v2 = vunpack.c.l.bf16 %v1721_v33  ;;  %v1883_v43 = vunpack.c.h.bf16 %v1721_v33  ;;  %v2547_v48 = vpop.f32.mrb[4].mxu0 }
 0x19b   : > { %v1918_v37 = vsel %vm1914_vm7, %v1884_v4, 0.0  ;;  %v1988_v27 = vmul.f32 %v1884_v4, %v1884_v4  ;;  %v1578_v10 = vpop.f32.mrb[5].mxu0  ;;  %v1920_v1 = vsel %vm1914_vm7, %v1885_v23, 0.0  ;;  %v1989_v55 = vmul.f32 %v1885_v23, %v1885_v23 }
 0x19c   : > { %v1915_v56 = vsel %vm1914_vm7, %v1882_v2, 0.0  ;;  %v1916_v12 = vsel %vm1914_vm7, %v1883_v43, 0.0  ;;  %v1986_v15 = vmul.f32 %v1882_v2, %v1882_v2  ;;  %v1987_v59 = vmul.f32 %v1883_v43, %v1883_v43  ;;  %v2548_v3 = vpop.f32.mrb[6].mxu0 }
 0x19d   : > { %v1917_v21 = vadd.f32 %v1916_v12, %v1915_v56  ;;  %v2581_v17 = vadd.f32 %v2547_v48, %v2475_v22  ;;  %v1581_v47 = vpop.f32.mrb[7].mxu0  ;;  %v2582_v14 = vadd.f32 %v1578_v10, %v1115_v18  ;;  %v2583_v19 = vadd.f32 %v2548_v3, %v2476_v8 }
 0x19e   : > { %v2018_v41 = vsel %vm1914_vm7, %v1986_v15, 0.0  ;;  %v2019_v44 = vsel %vm1914_vm7, %v1987_v59, 0.0  ;;  %v2584_v7 = vadd.f32 %v1581_v47, %v1118_v39  ;;  %v2021_v16 = vsel %vm1914_vm7, %v1988_v27, 0.0 }
 0x19f   : > { %v1919_v38 = vadd.f32 %v1918_v37, %v1917_v21  ;;  %v2020_v52 = vadd.f32 %v2019_v44, %v2018_v41  ;;  %v2306_v60 = vpack.c.bf16 %v2581_v17, %v2581_v17  ;;  %v2304_v24 = vpack.c.bf16 %v2582_v14, %v2582_v14 }
 0x1a0   : > { %v1724_v42 = vpack.c.bf16 %v2583_v19, %v2581_v17  ;;  %v2307_v50 = vpack.c.bf16 %v2583_v19, %v2583_v19  ;;  %v1723_v13 = vpack.c.bf16 %v2584_v7, %v2582_v14  ;;  %v2305_v49 = vpack.c.bf16 %v2584_v7, %v2584_v7 }
 0x1a1   : > { %v2022_v35 = vadd.f32 %v2021_v16, %v2020_v52  ;;  %1856 = vst.msk [vmem:[%s3584_s26 + $0x18] sm:$0xf] %vm1849_vm6, %v2306_v60  ;;  %v1921_v11 = vadd.f32 %v1920_v1, %v1919_v38  ;;  %v2023_v20 = vsel %vm1914_vm7, %v1989_v55, 0.0  ;;  %1854 = vst.msk [vmem:[%s3584_s26 + $0x10] sm:$0xf] %vm1849_vm6, %v2304_v24 }
 0x1a2   : > { %1857 = vst.msk [vmem:[%s3584_s26 + $0x1c] sm:$0xf] %vm1849_vm6, %v2307_v50  ;;  %v1888_v31 = vunpack.c.l.bf16 %v1724_v42  ;;  %v2551_v29 = vpop.f32.mrb[8].mxu0  ;;  %1855 = vst.msk [vmem:[%s3584_s26 + $0x14] sm:$0xf] %vm1849_vm6, %v2305_v49  ;;  %v1886_v5 = vunpack.c.l.bf16 %v1723_v13  ;;  %v1887_v22 = vunpack.c.h.bf16 %v1723_v13  ;;  %v1889_v36 = vunpack.c.h.bf16 %v1724_v42 }
 0x1a3   : > { %v2024_v18 = vadd.f32 %v2023_v20, %v2022_v35  ;;  %v2585_v8 = vadd.f32 %v2551_v29, %v3563_v9  ;;  %v1594_v39 = vpop.f32.mrb[9].mxu0 }
 0x1a4   : > { %v2552_v28 = vpop.f32.mrb[10].mxu0  ;;  %v1922_v62 = vsel %vm1914_vm7, %v1886_v5, 0.0  ;;  %v1990_v25 = vmul.f32 %v1886_v5, %v1886_v5  ;;  %v1991_v30 = vmul.f32 %v1887_v22, %v1887_v22  ;;  %v1926_v61 = vsel %vm1914_vm7, %v1888_v31, 0.0 }
 0x1a5   : > { %v1597_v51 = vpop.f32.mrb[11].mxu0  ;;  %v1992_v26 = vmul.f32 %v1888_v31, %v1888_v31  ;;  %v1923_v40 = vadd.f32 %v1922_v62, %v1921_v11  ;;  %v2310_v34 = vpack.c.bf16 %v2585_v8, %v2585_v8  ;;  %v1924_v63 = vsel %vm1914_vm7, %v1887_v22, 0.0 }
 0x1a6   : > { %v2025_v53 = vsel %vm1914_vm7, %v1990_v25, 0.0  ;;  %v2586_v9 = vadd.f32 %v1594_v39, %v3565_v58  ;;  %v2587_v33 = vadd.f32 %v2552_v28, %v3567_v0  ;;  %v1993_v46 = vmul.f32 %v1889_v36, %v1889_v36 }
 0x1a7   : > { %v1925_v4 = vadd.f32 %v1924_v63, %v1923_v40  ;;  %v2026_v23 = vadd.f32 %v2025_v53, %v2024_v18  ;;  %1860 = vst.msk [vmem:[%s3584_s26 + $0x28] sm:$0xf] %vm1849_vm6, %v2310_v34  ;;  %v2588_v2 = vadd.f32 %v1597_v51, %v3569_v6  ;;  %v2027_v43 = vsel %vm1914_vm7, %v1991_v30, 0.0 }
 0x1a8   : > { %v2308_v48 = vpack.c.bf16 %v2586_v9, %v2586_v9  ;;  %v1726_v37 = vpack.c.bf16 %v2587_v33, %v2585_v8  ;;  %v2311_v27 = vpack.c.bf16 %v2587_v33, %v2587_v33  ;;  %v1928_v15 = vsel %vm1914_vm7, %v1889_v36, 0.0 }
 0x1a9   : > { %v1927_v10 = vadd.f32 %v1926_v61, %v1925_v4  ;;  %v2028_v56 = vadd.f32 %v2027_v43, %v2026_v23  ;;  %v1725_v58 = vpack.c.bf16 %v2588_v2, %v2586_v9  ;;  %v2309_v12 = vpack.c.bf16 %v2588_v2, %v2588_v2 }
 0x1aa   : > { %v2555_v0 = vpop.f32.mrb[12].mxu0  ;;  %v2029_v59 = vsel %vm1914_vm7, %v1992_v26, 0.0  ;;  %1858 = vst.msk [vmem:[%s3584_s26 + $0x20] sm:$0xf] %vm1849_vm6, %v2308_v48  ;;  %1861 = vst.msk [vmem:[%s3584_s26 + $0x2c] sm:$0xf] %vm1849_vm6, %v2311_v27  ;;  %v1892_v6 = vunpack.c.l.bf16 %v1726_v37  ;;  %v1893_v19 = vunpack.c.h.bf16 %v1726_v37 }
 0x1ab   : > { %v2589_v3 = vadd.f32 %v2555_v0, %v3571_v57  ;;  %v1610_v1 = vpop.f32.mrb[13].mxu0  ;;  %v2030_v55 = vadd.f32 %v2029_v59, %v2028_v56  ;;  %1859 = vst.msk [vmem:[%s3584_s26 + $0x24] sm:$0xf] %vm1849_vm6, %v2309_v12  ;;  %v1890_v21 = vunpack.c.l.bf16 %v1725_v58  ;;  %v1891_v17 = vunpack.c.h.bf16 %v1725_v58 }
 0x1ac   : > { %v1929_v47 = vadd.f32 %v1928_v15, %v1927_v10  ;;  %v2556_v41 = vpop.f32.mrb[14].mxu0  ;;  %v2031_v44 = vsel %vm1914_vm7, %v1993_v46, 0.0  ;;  %v1996_v7 = vmul.f32 %v1892_v6, %v1892_v6  ;;  %v2590_v35 = vadd.f32 %v1610_v1, %v3573_v32 }
 0x1ad   : > { %v1613_v14 = vpop.f32.mrb[15].mxu0  ;;  %v1930_v38 = vsel %vm1914_vm7, %v1890_v21, 0.0  ;;  %v1994_v52 = vmul.f32 %v1890_v21, %v1890_v21  ;;  %v1995_v60 = vmul.f32 %v1891_v17, %v1891_v17  ;;  %v2032_v57 = vadd.f32 %v2031_v44, %v2030_v55 }
 0x1ae   : > { %v1931_v16 = vadd.f32 %v1930_v38, %v1929_v47  ;;  %v1932_v24 = vsel %vm1914_vm7, %v1891_v17, 0.0  ;;  %v2314_v50 = vpack.c.bf16 %v2589_v3, %v2589_v3  ;;  %v2591_v11 = vadd.f32 %v2556_v41, %v3575_v45 }
 0x1af   : > { %v2033_v42 = vsel %vm1914_vm7, %v1994_v52, 0.0  ;;  %v2592_v20 = vadd.f32 %v1613_v14, %v3577_v54  ;;  %v1934_v31 = vsel %vm1914_vm7, %v1892_v6, 0.0  ;;  %v1997_v29 = vmul.f32 %v1893_v19, %v1893_v19 }
 0x1b0   : > { %v1933_v13 = vadd.f32 %v1932_v24, %v1931_v16  ;;  %v2034_v49 = vadd.f32 %v2033_v42, %v2032_v57  ;;  %v2035_v5 = vsel %vm1914_vm7, %v1995_v60, 0.0  ;;  %1864 = vst.msk [vmem:[%s3584_s26 + $0x38] sm:$0xf] %vm1849_vm6, %v2314_v50  ;;  %v2312_v22 = vpack.c.bf16 %v2590_v35, %v2590_v35 }
 0x1b1   : > { %v1728_v32 = vpack.c.bf16 %v2591_v11, %v2589_v3  ;;  %v2315_v36 = vpack.c.bf16 %v2591_v11, %v2591_v11  ;;  %v1936_v45 = vsel %vm1914_vm7, %v1893_v19, 0.0  ;;  %v2037_v54 = vsel %vm1914_vm7, %v1996_v7, 0.0 }
 0x1b2   : > { %v2559_v18 = vpop.f32.mrb[16].mxu0  ;;  %v1935_v8 = vadd.f32 %v1934_v31, %v1933_v13  ;;  %v2036_v39 = vadd.f32 %v2035_v5, %v2034_v49  ;;  %1862 = vst.msk [vmem:[%s3584_s26 + $0x30] sm:$0xf] %vm1849_vm6, %v2312_v22  ;;  %v1727_v62 = vpack.c.bf16 %v2592_v20, %v2590_v35  ;;  %v2313_v25 = vpack.c.bf16 %v2592_v20, %v2592_v20 }
 0x1b3   : > { %v1626_v28 = vpop.f32.mrb[17].mxu0  ;;  %1865 = vst.msk [vmem:[%s3584_s26 + $0x3c] sm:$0xf] %vm1849_vm6, %v2315_v36  ;;  %v1896_v61 = vunpack.c.l.bf16 %v1728_v32  ;;  %v2039_v46 = vsel %vm1914_vm7, %v1997_v29, 0.0  ;;  %v1897_v23 = vunpack.c.h.bf16 %v1728_v32 }
 0x1b4   : > { %v2560_v30 = vpop.f32.mrb[18].mxu0  ;;  %v2038_v51 = vadd.f32 %v2037_v54, %v2036_v39  ;;  %v1937_v26 = vadd.f32 %v1936_v45, %v1935_v8  ;;  %1863 = vst.msk [vmem:[%s3584_s26 + $0x34] sm:$0xf] %vm1849_vm6, %v2313_v25  ;;  %v1894_v63 = vunpack.c.l.bf16 %v1727_v62  ;;  %v1895_v53 = vunpack.c.h.bf16 %v1727_v62 }
 0x1b5   : > { %v2523_v40 = vpop.f32.mrb[16].mxu1  ;;  %v1629_v34 = vpop.f32.mrb[19].mxu0  ;;  %v1942_v27 = vsel %vm1914_vm7, %v1896_v61, 0.0  ;;  %v2000_v10 = vmul.f32 %v1896_v61, %v1896_v61  ;;  %v1944_v47 = vsel %vm1914_vm7, %v1897_v23, 0.0  ;;  %v2001_v41 = vmul.f32 %v1897_v23, %v1897_v23 }
 0x1b6   : > { %v2593_v9 = vadd.f32 %v2559_v18, %v2523_v40  ;;  %v1384_v33 = vpop.f32.mrb[17].mxu1  ;;  %v1938_v2 = vsel %vm1914_vm7, %v1894_v63, 0.0  ;;  %v1998_v43 = vmul.f32 %v1894_v63, %v1894_v63  ;;  %v1999_v48 = vmul.f32 %v1895_v53, %v1895_v53 }
 0x1b7   : > { %v2524_v4 = vpop.f32.mrb[18].mxu1  ;;  %v1939_v56 = vadd.f32 %v1938_v2, %v1937_v26  ;;  %v2040_v58 = vadd.f32 %v2039_v46, %v2038_v51  ;;  %v1940_v12 = vsel %vm1914_vm7, %v1895_v53, 0.0  ;;  %v2594_v59 = vadd.f32 %v1626_v28, %v1384_v33 }
 0x1b8   : > { %v1387_v37 = vpop.f32.mrb[19].mxu1  ;;  %v2041_v0 = vsel %vm1914_vm7, %v1998_v43, 0.0  ;;  %v2318_v15 = vpack.c.bf16 %v2593_v9, %v2593_v9  ;;  %v2595_v55 = vadd.f32 %v2560_v30, %v2524_v4  ;;  %v2043_v44 = vsel %vm1914_vm7, %v1999_v48, 0.0 }
 0x1b9   : > { %v1941_v3 = vadd.f32 %v1940_v12, %v1939_v56  ;;  %v2042_v1 = vadd.f32 %v2041_v0, %v2040_v58  ;;  %v2596_v21 = vadd.f32 %v1629_v34, %v1387_v37  ;;  %v2316_v14 = vpack.c.bf16 %v2594_v59, %v2594_v59 }
 0x1ba   : > { %v2563_v6 = vpop.f32.mrb[20].mxu0  ;;  %1868 = vst.msk [vmem:[%s3584_s26 + $0x48] sm:$0xf] %vm1849_vm6, %v2318_v15  ;;  %v1730_v60 = vpack.c.bf16 %v2595_v55, %v2593_v9  ;;  %v2319_v7 = vpack.c.bf16 %v2595_v55, %v2595_v55  ;;  %v2045_v24 = vsel %vm1914_vm7, %v2000_v10, 0.0  ;;  %v2047_v32 = vsel %vm1914_vm7, %v2001_v41, 0.0 }
 0x1bb   : > { %v1642_v17 = vpop.f32.mrb[21].mxu0  ;;  %v1943_v38 = vadd.f32 %v1942_v27, %v1941_v3  ;;  %v2044_v52 = vadd.f32 %v2043_v44, %v2042_v1  ;;  %1866 = vst.msk [vmem:[%s3584_s26 + $0x40] sm:$0xf] %vm1849_vm6, %v2316_v14  ;;  %v1729_v42 = vpack.c.bf16 %v2596_v21, %v2594_v59  ;;  %v2317_v50 = vpack.c.bf16 %v2596_v21, %v2596_v21 }
 0x1bc   : > { %v2564_v19 = vpop.f32.mrb[22].mxu0  ;;  %1869 = vst.msk [vmem:[%s3584_s26 + $0x4c] sm:$0xf] %vm1849_vm6, %v2319_v7  ;;  %v1900_v11 = vunpack.c.l.bf16 %v1730_v60  ;;  %v1901_v20 = vunpack.c.h.bf16 %v1730_v60 }
 0x1bd   : > { %v2527_v16 = vpop.f32.mrb[20].mxu1  ;;  %v1645_v57 = vpop.f32.mrb[23].mxu0  ;;  %v2046_v49 = vadd.f32 %v2045_v24, %v2044_v52  ;;  %v1945_v31 = vadd.f32 %v1944_v47, %v1943_v38  ;;  %1867 = vst.msk [vmem:[%s3584_s26 + $0x44] sm:$0xf] %vm1849_vm6, %v2317_v50  ;;  %v1898_v5 = vunpack.c.l.bf16 %v1729_v42  ;;  %v1899_v22 = vunpack.c.h.bf16 %v1729_v42 }
 0x1be   : > { %v2597_v35 = vadd.f32 %v2563_v6, %v2527_v16  ;;  %v1400_v13 = vpop.f32.mrb[21].mxu1  ;;  %v2004_v36 = vmul.f32 %v1900_v11, %v1900_v11  ;;  %v1950_v28 = vsel %vm1914_vm7, %v1900_v11, 0.0  ;;  %v1952_v30 = vsel %vm1914_vm7, %v1901_v20, 0.0 }
 0x1bf   : > { %v2528_v29 = vpop.f32.mrb[22].mxu1  ;;  %v2598_v8 = vadd.f32 %v1642_v17, %v1400_v13  ;;  %v1946_v45 = vsel %vm1914_vm7, %v1898_v5, 0.0  ;;  %v2002_v54 = vmul.f32 %v1898_v5, %v1898_v5  ;;  %v2003_v62 = vmul.f32 %v1899_v22, %v1899_v22 }
 0x1c0   : > { %v2322_v18 = vpack.c.bf16 %v2597_v35, %v2597_v35  ;;  %v1403_v39 = vpop.f32.mrb[23].mxu1  ;;  %v2005_v51 = vmul.f32 %v1901_v20, %v1901_v20  ;;  %v1947_v61 = vadd.f32 %v1946_v45, %v1945_v31  ;;  %v2048_v26 = vadd.f32 %v2047_v32, %v2046_v49 }
 0x1c1   : > { %v1948_v34 = vsel %vm1914_vm7, %v1899_v22, 0.0  ;;  %v2049_v63 = vsel %vm1914_vm7, %v2002_v54, 0.0  ;;  %v2320_v53 = vpack.c.bf16 %v2598_v8, %v2598_v8  ;;  %v2599_v9 = vadd.f32 %v2564_v19, %v2528_v29 }
 0x1c2   : > { %1872 = vst.msk [vmem:[%s3584_s26 + $0x58] sm:$0xf] %vm1849_vm6, %v2322_v18  ;;  %v2567_v25 = vpop.f32.mrb[24].mxu0  ;;  %v2053_v46 = vsel %vm1914_vm7, %v2004_v36, 0.0  ;;  %v1949_v4 = vadd.f32 %v1948_v34, %v1947_v61  ;;  %v2050_v23 = vadd.f32 %v2049_v63, %v2048_v26  ;;  %v2600_v2 = vadd.f32 %v1645_v57, %v1403_v39 }
 0x1c3   : > { %v1658_v40 = vpop.f32.mrb[25].mxu0  ;;  %v2051_v37 = vsel %vm1914_vm7, %v2003_v62, 0.0  ;;  %1870 = vst.msk [vmem:[%s3584_s26 + $0x50] sm:$0xf] %vm1849_vm6, %v2320_v53  ;;  %v1732_v27 = vpack.c.bf16 %v2599_v9, %v2597_v35  ;;  %v2323_v10 = vpack.c.bf16 %v2599_v9, %v2599_v9  ;;  %v2055_v19 = vsel %vm1914_vm7, %v2005_v51, 0.0 }
 0x1c4   : > { %v2568_v33 = vpop.f32.mrb[26].mxu0  ;;  %v1951_v12 = vadd.f32 %v1950_v28, %v1949_v4  ;;  %v2052_v0 = vadd.f32 %v2051_v37, %v2050_v23  ;;  %v1731_v15 = vpack.c.bf16 %v2600_v2, %v2598_v8  ;;  %v2321_v59 = vpack.c.bf16 %v2600_v2, %v2600_v2 }
 0x1c5   : > { %v2531_v43 = vpop.f32.mrb[24].mxu1  ;;  %v1661_v48 = vpop.f32.mrb[27].mxu0  ;;  %1873 = vst.msk [vmem:[%s3584_s26 + $0x5c] sm:$0xf] %vm1849_vm6, %v2323_v10  ;;  %v1904_v3 = vunpack.c.l.bf16 %v1732_v27  ;;  %v1905_v1 = vunpack.c.h.bf16 %v1732_v27 }
 0x1c6   : > { %v2601_v56 = vadd.f32 %v2567_v25, %v2531_v43  ;;  %v1416_v58 = vpop.f32.mrb[25].mxu1  ;;  %v2054_v47 = vadd.f32 %v2053_v46, %v2052_v0  ;;  %1871 = vst.msk [vmem:[%s3584_s26 + $0x54] sm:$0xf] %vm1849_vm6, %v2321_v59  ;;  %v1902_v41 = vunpack.c.l.bf16 %v1731_v15  ;;  %v1903_v44 = vunpack.c.h.bf16 %v1731_v15 }
 0x1c7   : > { %v2532_v6 = vpop.f32.mrb[26].mxu1  ;;  %v2602_v21 = vadd.f32 %v1658_v40, %v1416_v58  ;;  %v1953_v14 = vadd.f32 %v1952_v30, %v1951_v12  ;;  %v1958_v38 = vsel %vm1914_vm7, %v1904_v3, 0.0  ;;  %v1960_v60 = vsel %vm1914_vm7, %v1905_v1, 0.0 }
 0x1c8   : > { %v2326_v55 = vpack.c.bf16 %v2601_v56, %v2601_v56  ;;  %v1419_v17 = vpop.f32.mrb[27].mxu1  ;;  %v1954_v7 = vsel %vm1914_vm7, %v1902_v41, 0.0  ;;  %v2006_v16 = vmul.f32 %v1902_v41, %v1902_v41  ;;  %v2007_v57 = vmul.f32 %v1903_v44, %v1903_v44 }
 0x1c9   : > { %v2008_v42 = vmul.f32 %v1904_v3, %v1904_v3  ;;  %v2009_v50 = vmul.f32 %v1905_v1, %v1905_v1  ;;  %v1955_v35 = vadd.f32 %v1954_v7, %v1953_v14  ;;  %v2056_v13 = vadd.f32 %v2055_v19, %v2054_v47 }
 0x1ca   : > { %1876 = vst.msk [vmem:[%s3584_s26 + $0x68] sm:$0xf] %vm1849_vm6, %v2326_v55  ;;  %v2571_v52 = vpop.f32.mrb[28].mxu0  ;;  %v1956_v11 = vsel %vm1914_vm7, %v1903_v44, 0.0  ;;  %v2057_v20 = vsel %vm1914_vm7, %v2006_v16, 0.0  ;;  %v2324_v31 = vpack.c.bf16 %v2602_v21, %v2602_v21  ;;  %v2603_v29 = vadd.f32 %v2568_v33, %v2532_v6 }
 0x1cb   : > { %v1674_v24 = vpop.f32.mrb[29].mxu0  ;;  %v1957_v18 = vadd.f32 %v1956_v11, %v1955_v35  ;;  %v2058_v8 = vadd.f32 %v2057_v20, %v2056_v13  ;;  %v2604_v39 = vadd.f32 %v1661_v48, %v1419_v17  ;;  %v2059_v28 = vsel %vm1914_vm7, %v2007_v57, 0.0 }
 0x1cc   : > { %v2572_v49 = vpop.f32.mrb[30].mxu0  ;;  %1874 = vst.msk [vmem:[%s3584_s26 + $0x60] sm:$0xf] %vm1849_vm6, %v2324_v31  ;;  %v1734_v45 = vpack.c.bf16 %v2603_v29, %v2601_v56  ;;  %v2327_v54 = vpack.c.bf16 %v2603_v29, %v2603_v29  ;;  %v2061_v34 = vsel %vm1914_vm7, %v2008_v42, 0.0  ;;  %v2063_v43 = vsel %vm1914_vm7, %v2009_v50, 0.0 }
 0x1cd   : > { %v2535_v5 = vpop.f32.mrb[28].mxu1  ;;  %v1677_v22 = vpop.f32.mrb[31].mxu0  ;;  %v1959_v30 = vadd.f32 %v1958_v38, %v1957_v18  ;;  %v2060_v51 = vadd.f32 %v2059_v28, %v2058_v8  ;;  %v1733_v61 = vpack.c.bf16 %v2604_v39, %v2602_v21  ;;  %v2325_v26 = vpack.c.bf16 %v2604_v39, %v2604_v39 }
 0x1ce   : > { %v2605_v32 = vadd.f32 %v2571_v52, %v2535_v5  ;;  %v1432_v36 = vpop.f32.mrb[29].mxu1  ;;  %1877 = vst.msk [vmem:[%s3584_s26 + $0x6c] sm:$0xf] %vm1849_vm6, %v2327_v54  ;;  %v1908_v63 = vunpack.c.l.bf16 %v1734_v45  ;;  %v1909_v2 = vunpack.c.h.bf16 %v1734_v45 }
 0x1cf   : > { %v2606_v62 = vadd.f32 %v1674_v24, %v1432_v36  ;;  %v2536_v25 = vpop.f32.mrb[30].mxu1  ;;  %v2062_v33 = vadd.f32 %v2061_v34, %v2060_v51  ;;  %1875 = vst.msk [vmem:[%s3584_s26 + $0x64] sm:$0xf] %vm1849_vm6, %v2325_v26  ;;  %v1906_v46 = vunpack.c.l.bf16 %v1733_v61  ;;  %v1907_v4 = vunpack.c.h.bf16 %v1733_v61 }
 0x1d0   : > { %v1435_v40 = vpop.f32.mrb[31].mxu1  ;;  %v2330_v53 = vpack.c.bf16 %v2605_v32, %v2605_v32  ;;  %v1961_v23 = vadd.f32 %v1960_v60, %v1959_v30  ;;  %v1966_v10 = vsel %vm1914_vm7, %v1908_v63, 0.0  ;;  %v2012_v56 = vmul.f32 %v1908_v63, %v1908_v63 }
 0x1d1   : > { %v2328_v9 = vpack.c.bf16 %v2606_v62, %v2606_v62  ;;  %v1962_v48 = vsel %vm1914_vm7, %v1906_v46, 0.0  ;;  %v2010_v37 = vmul.f32 %v1906_v46, %v1906_v46  ;;  %v2011_v27 = vmul.f32 %v1907_v4, %v1907_v4 }
 0x1d2   : > { %1880 = vst.msk [vmem:[%s3584_s26 + $0x78] sm:$0xf] %vm1849_vm6, %v2330_v53  ;;  %v1963_v58 = vadd.f32 %v1962_v48, %v1961_v23  ;;  %v2064_v12 = vadd.f32 %v2063_v43, %v2062_v33  ;;  %v1964_v0 = vsel %vm1914_vm7, %v1907_v4, 0.0  ;;  %v2607_v59 = vadd.f32 %v2572_v49, %v2536_v25 }
 0x1d3   : > { %1878 = vst.msk [vmem:[%s3584_s26 + $0x70] sm:$0xf] %vm1849_vm6, %v2328_v9  ;;  %v2065_v15 = vsel %vm1914_vm7, %v2010_v37, 0.0  ;;  %v2608_v6 = vadd.f32 %v1677_v22, %v1435_v40  ;;  %v2013_v3 = vmul.f32 %v1909_v2, %v1909_v2  ;;  %v2067_v21 = vsel %vm1914_vm7, %v2011_v27, 0.0 }
 0x1d4   : > { %v1965_v1 = vadd.f32 %v1964_v0, %v1963_v58  ;;  %v2066_v55 = vadd.f32 %v2065_v15, %v2064_v12  ;;  %v1736_v17 = vpack.c.bf16 %v2607_v59, %v2605_v32  ;;  %v2331_v47 = vpack.c.bf16 %v2607_v59, %v2607_v59 }
 0x1d5   : > { %v1735_v41 = vpack.c.bf16 %v2608_v6, %v2606_v62  ;;  %v2329_v44 = vpack.c.bf16 %v2608_v6, %v2608_v6  ;;  %v1968_v38 = vsel %vm1914_vm7, %v1909_v2, 0.0  ;;  %v2069_v52 = vsel %vm1914_vm7, %v2012_v56, 0.0 }
 0x1d6   : > { %v1967_v14 = vadd.f32 %v1966_v10, %v1965_v1  ;;  %v2068_v19 = vadd.f32 %v2067_v21, %v2066_v55  ;;  %1881 = vst.msk [vmem:[%s3584_s26 + $0x7c] sm:$0xf] %vm1849_vm6, %v2331_v47  ;;  %v1912_v57 = vunpack.c.l.bf16 %v1736_v17  ;;  %v2071_v42 = vsel %vm1914_vm7, %v2013_v3, 0.0 }
 0x1d7   : > { %1879 = vst.msk [vmem:[%s3584_s26 + $0x74] sm:$0xf] %vm1849_vm6, %v2329_v44  ;;  %v1910_v60 = vunpack.c.l.bf16 %v1735_v41  ;;  %v1911_v7 = vunpack.c.h.bf16 %v1735_v41  ;;  %v1913_v50 = vunpack.c.h.bf16 %v1736_v17 }
 0x1d8   : > { %v2070_v16 = vadd.f32 %v2069_v52, %v2068_v19  ;;  %v1969_v24 = vadd.f32 %v1968_v38, %v1967_v14  ;;  %v2016_v31 = vmul.f32 %v1912_v57, %v1912_v57  ;;  %v1974_v8 = vsel %vm1914_vm7, %v1912_v57, 0.0 }
 0x1d9   : > { %v1970_v35 = vsel %vm1914_vm7, %v1910_v60, 0.0  ;;  %v2014_v13 = vmul.f32 %v1910_v60, %v1910_v60  ;;  %v2015_v49 = vmul.f32 %v1911_v7, %v1911_v7  ;;  %v1972_v29 = vsel %vm1914_vm7, %v1911_v7, 0.0 }
 0x1da   : > { %v1971_v11 = vadd.f32 %v1970_v35, %v1969_v24  ;;  %v2072_v20 = vadd.f32 %v2071_v42, %v2070_v16  ;;  %v2017_v39 = vmul.f32 %v1913_v50, %v1913_v50  ;;  %v1976_v45 = vsel %vm1914_vm7, %v1913_v50, 0.0 }
 0x1db   : > { %v2073_v5 = vsel %vm1914_vm7, %v2014_v13, 0.0  ;;  %v2075_v32 = vsel %vm1914_vm7, %v2015_v49, 0.0  ;;  %v2077_v54 = vsel %vm1914_vm7, %v2016_v31, 0.0 }
 0x1dc   : > { %v1973_v22 = vadd.f32 %v1972_v29, %v1971_v11  ;;  %v2074_v18 = vadd.f32 %v2073_v5, %v2072_v20  ;;  %v2079_v30 = vsel %vm1914_vm7, %v2017_v39, 0.0 }
 0x1de   : > { %v1975_v36 = vadd.f32 %v1974_v8, %v1973_v22  ;;  %v2076_v28 = vadd.f32 %v2075_v32, %v2074_v18 }
 0x1e0   : > { %v1977_v62 = vadd.f32 %v1976_v45, %v1975_v36  ;;  %v2078_v25 = vadd.f32 %v2077_v54, %v2076_v28 }
 0x1e2   : > { %v1978_v51 = vrot.slane %v1977_v62, 4  ;;  %v2080_v61 = vadd.f32 %v2079_v30, %v2078_v25 }
 0x1e4   : > { %v1979_v26 = vadd.f32 %v1978_v51, %v1977_v62  ;;  %v2081_v40 = vrot.slane %v2080_v61, 4 }
 0x1e6   : > { %v1980_v34 = vrot.slane %v1979_v26, 2  ;;  %v2082_v63 = vadd.f32 %v2081_v40, %v2080_v61 }
 0x1e8   : > { %v1981_v53 = vadd.f32 %v1980_v34, %v1979_v26  ;;  %v2083_v9 = vrot.slane %v2082_v63, 2 }
 0x1ea   : > { %v1982_v33 = vrot.slane %v1981_v53, 1  ;;  %v2084_v46 = vadd.f32 %v2083_v9, %v2082_v63 }
 0x1ec   : > { %v1983_v4 = vadd.f32 %v1982_v33, %v1981_v53  ;;  %v2085_v23 = vrot.slane %v2084_v46, 1 }
 0x1ee   : > { %1985 = vst.msk [vmem:[%s265_s28] sm:$0x1] %vm1984_vm8, %v1983_v4  ;;  %v2086_v2 = vadd.f32 %v2085_v23, %v2084_v46 }
 0x1f0   : > { %2087 = vst.msk [vmem:[%s268_s7] sm:$0x1] %vm1984_vm8, %v2086_v2 }
 0x1f1 PF: > { %s17_s21 = sadd.s32 1, %s2828_s21  }
 0x1f2   : > { %p14_p4 = scmp.ge.s32.totalorder %s17_s21, 4  }
 0x1f4   :  { %16 = sbr.rel (!%p14_p4) target bundleno = 1 (0x1), region = 95 }

// kernel: dense_block_forward.8
= control target key start
LH: loop header
LB: loop body
LE: loop exit
PB: predicated region body
PF: predicated region fallthrough
CT: control target
= control target key end

     0   :  { %vm864_vm0 = vcmask 1041408   ;;  %vm767_vm1 = vcmask 31744   ;;  %vm1801_vm2 = vcmask 60416   ;;  %vm2317_vm3 = vcmask 64512   ;;  %s4448_s7 = inlined_call_operand.vmem [shape: bf16[4,8], index: 7, kind: input, shape index: {}]   ;;  %s4449_s6 = inlined_call_operand.vmem [shape: bf16[4,8], index: 6, kind: input, shape index: {}]   ;;  %s4450_s1 = inlined_call_operand.vmem [shape: bf16[512,4], index: 1, kind: input, shape index: {}]   ;;  %s4451_s3 = inlined_call_operand.vmem [shape: f32[1,4], index: 3, kind: input, shape index: {}]   ;;  %s4452_s5 = inlined_call_operand.vmem [shape: f32[1,4], index: 5, kind: input, shape index: {}]   ;;  %s4453_s0 = inlined_call_operand.vmem [shape: bf16[512,4], index: 0, kind: input, shape index: {}]   ;;  %s4454_s2 = inlined_call_operand.vmem [shape: f32[1,4], index: 2, kind: input, shape index: {}]   ;;  %s4455_s4 = inlined_call_operand.vmem [shape: f32[1,4], index: 4, kind: input, shape index: {}]   ;;  %s4456_s8 = inlined_call_operand.vmem [shape: bf16[512,8], index: 8, kind: output, shape index: {0}]   ;;  %s4457_s9 = inlined_call_operand.vmem [shape: f32[1,1,8], index: 9, kind: output, shape index: {1}]   ;;  %s4458_s10 = inlined_call_operand.vmem [shape: f32[1,1,8], index: 10, kind: output, shape index: {2}]  }
   0x1   :  { %v766_v0 = vld [vmem:[%s4448_s7] sm:$0x3]  ;;  %v3146_v15 = vld [vmem:[%s4450_s1 + $0x8] sm:$0xff]   ;;  %v3147_v30 = vld [vmem:[%s4450_s1 + $0x10] sm:$0xff]   ;;  %vm2451_vm4 = vcmask 57344  }
   0x2   :  { %v399_v1 = vld [vmem:[%s4449_s6] sm:$0x3]  ;;  %3439 = vmatprep.subr.msk.bf16.mxu1 %vm864_vm0, %v766_v0  ;;  %v866_v3 = vsel %vm864_vm0, %v766_v0, 0  ;;  %v3115_v16 = vld [vmem:[%s4453_s0 + $0x8] sm:$0xff]   ;;  %v2993_v18 = vunpack.c.l.bf16 %v3146_v15  ;;  %v2994_v19 = vunpack.c.h.bf16 %v3146_v15  ;;  %v3116_v39 = vld [vmem:[%s4453_s0 + $0x10] sm:$0xff]   ;;  %v2997_v43 = vunpack.c.l.bf16 %v3147_v30 }
   0x3   :  { %v2988_v2 = vld [vmem:[%s4450_s1] sm:$0xff]   ;;  %3440 = vmatprep.subr.msk.bf16.mxu0 %vm864_vm0, %v399_v1  ;;  %v1254_v4 = vsel %vm864_vm0, %v399_v1, 0  ;;  %3244 = vmatpush3.bf16.msra.mxu1 %v866_v3  ;;  %v2865_v20 = vunpack.c.l.bf16 %v3115_v16  ;;  %v2866_v21 = vunpack.c.h.bf16 %v3115_v16  ;;  %v3148_v44 = vld [vmem:[%s4450_s1 + $0x18] sm:$0xff]   ;;  %v2998_v50 = vunpack.c.h.bf16 %v3147_v30 }
   0x4   :  { %v2989_v5 = vunpack.c.l.bf16 %v2988_v2  ;;  %v2990_v6 = vunpack.c.h.bf16 %v2988_v2  ;;  %v3512_v7 = vld [vmem:[%s4451_s3] ss:$0 sm:$0xff]  ;;  %3310 = vmatpush3.bf16.msra.mxu0 %v1254_v4  ;;  %v2869_v52 = vunpack.c.l.bf16 %v3116_v39  ;;  %v3117_v53 = vld [vmem:[%s4453_s0 + $0x18] sm:$0xff]   ;;  %v2870_v56 = vunpack.c.h.bf16 %v3116_v39 }
   0x5   :  { %v3517_v8 = vld [vmem:[%s4452_s5] ss:$0 sm:$0xff]  ;;  %v537_v26 = vmul.f32 %v2993_v18, %v3512_v7  ;;  %v538_v27 = vmul.f32 %v2994_v19, %v3512_v7  ;;  %v539_v51 = vmul.f32 %v2997_v43, %v3512_v7  ;;  %v3001_v57 = vunpack.c.l.bf16 %v3148_v44 }
   0x6   :  { %v2860_v9 = vld [vmem:[%s4453_s0] sm:$0xff]   ;;  %v535_v11 = vmul.f32 %v2989_v5, %v3512_v7  ;;  %v536_v12 = vmul.f32 %v2990_v6, %v3512_v7  ;;  %v540_v58 = vmul.f32 %v2998_v50, %v3512_v7  ;;  %v3002_v61 = vunpack.c.h.bf16 %v3148_v44 }
   0x7   :  { %v3525_v10 = vld [vmem:[%s4454_s2] ss:$0 sm:$0xff]  ;;  %v2861_v13 = vunpack.c.l.bf16 %v2860_v9  ;;  %v2862_v14 = vunpack.c.h.bf16 %v2860_v9  ;;  %v608_v35 = vadd.f32 %v3517_v8, %v537_v26  ;;  %v609_v36 = vadd.f32 %v3517_v8, %v538_v27 }
   0x8   :  { %v3538_v17 = vld [vmem:[%s4455_s4] ss:$0 sm:$0xff]  ;;  %v606_v22 = vadd.f32 %v3517_v8, %v535_v11  ;;  %v607_v23 = vadd.f32 %v3517_v8, %v536_v12  ;;  %v170_v28 = vmul.f32 %v2865_v20, %v3525_v10  ;;  %v171_v29 = vmul.f32 %v2866_v21, %v3525_v10 }
   0x9   :  { %v168_v24 = vmul.f32 %v2861_v13, %v3525_v10  ;;  %v169_v25 = vmul.f32 %v2862_v14, %v3525_v10  ;;  %v672_v45 = vmax.f32 %v608_v35, 0.0  ;;  %v673_v46 = vmax.f32 %v609_v36, 0.0  ;;  %v3149_v2 = vld [vmem:[%s4450_s1 + $0x20] sm:$0xff]  }
   0xa   :  { %v670_v31 = vmax.f32 %v606_v22, 0.0  ;;  %v671_v32 = vmax.f32 %v607_v23, 0.0  ;;  %v241_v37 = vadd.f32 %v3538_v17, %v170_v28  ;;  %v242_v38 = vadd.f32 %v3538_v17, %v171_v29  ;;  %v3118_v19 = vld [vmem:[%s4453_s0 + $0x20] sm:$0xff]   ;;  %v3150_v28 = vld [vmem:[%s4450_s1 + $0x28] sm:$0xff]  }
   0xb   :  { %v239_v33 = vadd.f32 %v3538_v17, %v168_v24  ;;  %v240_v34 = vadd.f32 %v3538_v17, %v169_v25  ;;  %v735_v54 = vpack.c.bf16 %v673_v46, %v672_v45  ;;  %v610_v59 = vadd.f32 %v3517_v8, %v539_v51 }
   0xc   :  { %v734_v40 = vpack.c.bf16 %v671_v32, %v670_v31  ;;  %v305_v47 = vmax.f32 %v241_v37, 0.0  ;;  %v306_v48 = vmax.f32 %v242_v38, 0.0  ;;  %v172_v60 = vmul.f32 %v2869_v52, %v3525_v10 }
   0xd   :  { %v303_v41 = vmax.f32 %v239_v33, 0.0  ;;  %v304_v42 = vmax.f32 %v240_v34, 0.0  ;;  %v173_v62 = vmul.f32 %v2870_v56, %v3525_v10  ;;  %v541_v63 = vmul.f32 %v3001_v57, %v3512_v7  ;;  %v3119_v33 = vld [vmem:[%s4453_s0 + $0x28] sm:$0xff]  }
   0xe   :  { %3245 = vmatprep.mubr.msk.bf16.mxu1 %vm767_vm1, %v734_v40  ;;  %v368_v55 = vpack.c.bf16 %v306_v48, %v305_v47  ;;  %v2873_v0 = vunpack.c.l.bf16 %v3117_v53  ;;  %v2874_v1 = vunpack.c.h.bf16 %v3117_v53  ;;  %v611_v3 = vadd.f32 %v3517_v8, %v540_v58 }
   0xf   :  { %v367_v49 = vpack.c.bf16 %v304_v42, %v303_v41  ;;  %3246 = vmatmul.mubr.msk.bf16.vlgmr.msra.gmra.mrb[0].mxu1 %vm767_vm1, %v735_v54  ;;  %v674_v4 = vmax.f32 %v610_v59, 0.0  ;;  %v243_v5 = vadd.f32 %v3538_v17, %v172_v60  ;;  %v542_v6 = vmul.f32 %v3002_v61, %v3512_v7  ;;  %v3151_v42 = vld [vmem:[%s4450_s1 + $0x30] sm:$0xff]  }
  0x10   :  { %v244_v9 = vadd.f32 %v3538_v17, %v173_v62  ;;  %v612_v11 = vadd.f32 %v3517_v8, %v541_v63  ;;  %v174_v12 = vmul.f32 %v2873_v0, %v3525_v10  ;;  %v175_v13 = vmul.f32 %v2874_v1, %v3525_v10  ;;  %v3120_v59 = vld [vmem:[%s4453_s0 + $0x30] sm:$0xff]  }
  0x11   :  { %3311 = vmatprep.mubr.msk.bf16.mxu0 %vm767_vm1, %v367_v49  ;;  %v675_v14 = vmax.f32 %v611_v3, 0.0  ;;  %v307_v15 = vmax.f32 %v243_v5, 0.0  ;;  %v613_v16 = vadd.f32 %v3517_v8, %v542_v6  ;;  %v3005_v18 = vunpack.c.l.bf16 %v3149_v2 }
  0x12   :  { %3312 = vmatmul.mubr.msk.bf16.vlgmr.msra.gmra.mrb[0].mxu0 %vm767_vm1, %v368_v55  ;;  %v308_v20 = vmax.f32 %v244_v9, 0.0  ;;  %v676_v21 = vmax.f32 %v612_v11, 0.0  ;;  %v245_v22 = vadd.f32 %v3538_v17, %v174_v12  ;;  %v246_v23 = vadd.f32 %v3538_v17, %v175_v13  ;;  %v3121_v12 = vld [vmem:[%s4453_s0 + $0x38] sm:$0xff]  }
  0x13   :  { %v736_v24 = vpack.c.bf16 %v675_v14, %v674_v4  ;;  %v677_v25 = vmax.f32 %v613_v16, 0.0  ;;  %v3006_v26 = vunpack.c.h.bf16 %v3149_v2  ;;  %v543_v27 = vmul.f32 %v3005_v18, %v3512_v7  ;;  %v3152_v4 = vld [vmem:[%s4450_s1 + $0x38] sm:$0xff]  }
  0x14   :  { %v369_v29 = vpack.c.bf16 %v308_v20, %v307_v15  ;;  %v309_v30 = vmax.f32 %v245_v22, 0.0  ;;  %v310_v31 = vmax.f32 %v246_v23, 0.0  ;;  %v2877_v32 = vunpack.c.l.bf16 %v3118_v19  ;;  %v3153_v22 = vld [vmem:[%s4450_s1 + $0x40] sm:$0xff]  }
  0x15   :  { %3249 = vmatprep.mubr.msk.bf16.mxu1 %vm767_vm1, %v736_v24  ;;  %v737_v34 = vpack.c.bf16 %v677_v25, %v676_v21  ;;  %v544_v35 = vmul.f32 %v3006_v26, %v3512_v7  ;;  %v614_v36 = vadd.f32 %v3517_v8, %v543_v27  ;;  %v2878_v37 = vunpack.c.h.bf16 %v3118_v19 }
  0x16   :  { %3315 = vmatprep.mubr.msk.bf16.mxu0 %vm767_vm1, %v369_v29  ;;  %v370_v38 = vpack.c.bf16 %v310_v31, %v309_v30  ;;  %v176_v39 = vmul.f32 %v2877_v32, %v3525_v10  ;;  %v3009_v40 = vunpack.c.l.bf16 %v3150_v28  ;;  %v3010_v41 = vunpack.c.h.bf16 %v3150_v28 }
  0x17   :  { %3250 = vmatmul.mubr.msk.bf16.gmra.mrb[4].mxu1 %vm767_vm1, %v737_v34  ;;  %v615_v43 = vadd.f32 %v3517_v8, %v544_v35  ;;  %v678_v44 = vmax.f32 %v614_v36, 0.0  ;;  %v177_v45 = vmul.f32 %v2878_v37, %v3525_v10  ;;  %v2881_v46 = vunpack.c.l.bf16 %v3119_v33  ;;  %v3122_v35 = vld [vmem:[%s4453_s0 + $0x40] sm:$0xff]  }
  0x18   :  { %v247_v47 = vadd.f32 %v3538_v17, %v176_v39  ;;  %v545_v48 = vmul.f32 %v3009_v40, %v3512_v7  ;;  %v546_v49 = vmul.f32 %v3010_v41, %v3512_v7  ;;  %v2882_v50 = vunpack.c.h.bf16 %v3119_v33 }
  0x19   :  { %v679_v51 = vmax.f32 %v615_v43, 0.0  ;;  %v248_v52 = vadd.f32 %v3538_v17, %v177_v45  ;;  %v178_v53 = vmul.f32 %v2881_v46, %v3525_v10  ;;  %v3013_v54 = vunpack.c.l.bf16 %v3151_v42 }
  0x1a   :  { %3316 = vmatmul.mubr.msk.bf16.gmra.mrb[4].mxu0 %vm767_vm1, %v370_v38  ;;  %v311_v55 = vmax.f32 %v247_v47, 0.0  ;;  %v616_v56 = vadd.f32 %v3517_v8, %v545_v48  ;;  %v617_v57 = vadd.f32 %v3517_v8, %v546_v49  ;;  %v179_v58 = vmul.f32 %v2882_v50, %v3525_v10  ;;  %v3154_v48 = vld [vmem:[%s4450_s1 + $0x48] sm:$0xff]  }
  0x1b   :  { %v738_v60 = vpack.c.bf16 %v679_v51, %v678_v44  ;;  %v312_v61 = vmax.f32 %v248_v52, 0.0  ;;  %v249_v62 = vadd.f32 %v3538_v17, %v178_v53  ;;  %v3014_v63 = vunpack.c.h.bf16 %v3151_v42  ;;  %v3123_v53 = vld [vmem:[%s4453_s0 + $0x48] sm:$0xff]  }
  0x1c   :  { %v680_v0 = vmax.f32 %v616_v56, 0.0  ;;  %v681_v1 = vmax.f32 %v617_v57, 0.0  ;;  %v250_v2 = vadd.f32 %v3538_v17, %v179_v58  ;;  %v547_v3 = vmul.f32 %v3013_v54, %v3512_v7 }
  0x1d   :  { %3253 = vmatprep.mubr.msk.bf16.mxu1 %vm767_vm1, %v738_v60  ;;  %v371_v5 = vpack.c.bf16 %v312_v61, %v311_v55  ;;  %v313_v6 = vmax.f32 %v249_v62, 0.0  ;;  %v548_v9 = vmul.f32 %v3014_v63, %v3512_v7  ;;  %v2885_v11 = vunpack.c.l.bf16 %v3120_v59 }
  0x1e   :  { %v739_v13 = vpack.c.bf16 %v681_v1, %v680_v0  ;;  %v314_v14 = vmax.f32 %v250_v2, 0.0  ;;  %v618_v15 = vadd.f32 %v3517_v8, %v547_v3  ;;  %v2886_v16 = vunpack.c.h.bf16 %v3120_v59  ;;  %v3155_v2 = vld [vmem:[%s4450_s1 + $0x50] sm:$0xff]  }
  0x1f   :  { %3319 = vmatprep.mubr.msk.bf16.mxu0 %vm767_vm1, %v371_v5  ;;  %v619_v18 = vadd.f32 %v3517_v8, %v548_v9  ;;  %v180_v19 = vmul.f32 %v2885_v11, %v3525_v10  ;;  %v3017_v20 = vunpack.c.l.bf16 %v3152_v4  ;;  %v3018_v21 = vunpack.c.h.bf16 %v3152_v4 }
  0x20   :  { %3254 = vmatmul.mubr.msk.bf16.gmra.mrb[8].mxu1 %vm767_vm1, %v739_v13  ;;  %v372_v23 = vpack.c.bf16 %v314_v14, %v313_v6  ;;  %v682_v24 = vmax.f32 %v618_v15, 0.0  ;;  %v181_v25 = vmul.f32 %v2886_v16, %v3525_v10  ;;  %v2889_v26 = vunpack.c.l.bf16 %v3121_v12  ;;  %v3124_v14 = vld [vmem:[%s4453_s0 + $0x50] sm:$0xff]  }
  0x21   :  { %v683_v27 = vmax.f32 %v619_v18, 0.0  ;;  %v251_v28 = vadd.f32 %v3538_v17, %v180_v19  ;;  %v549_v29 = vmul.f32 %v3017_v20, %v3512_v7  ;;  %v550_v30 = vmul.f32 %v3018_v21, %v3512_v7 }
  0x22   :  { %3320 = vmatmul.mubr.msk.bf16.gmra.mrb[8].mxu0 %vm767_vm1, %v372_v23  ;;  %v252_v31 = vadd.f32 %v3538_v17, %v181_v25  ;;  %v2890_v32 = vunpack.c.h.bf16 %v3121_v12  ;;  %v182_v33 = vmul.f32 %v2889_v26, %v3525_v10  ;;  %v3021_v34 = vunpack.c.l.bf16 %v3153_v22 }
  0x23   :  { %v740_v36 = vpack.c.bf16 %v683_v27, %v682_v24  ;;  %v315_v37 = vmax.f32 %v251_v28, 0.0  ;;  %v620_v38 = vadd.f32 %v3517_v8, %v549_v29  ;;  %v621_v39 = vadd.f32 %v3517_v8, %v550_v30  ;;  %v3156_v28 = vld [vmem:[%s4450_s1 + $0x58] sm:$0xff]  }
  0x24   :  { %v316_v40 = vmax.f32 %v252_v31, 0.0  ;;  %v183_v41 = vmul.f32 %v2890_v32, %v3525_v10  ;;  %v253_v42 = vadd.f32 %v3538_v17, %v182_v33  ;;  %v3022_v43 = vunpack.c.h.bf16 %v3153_v22  ;;  %v3125_v33 = vld [vmem:[%s4453_s0 + $0x58] sm:$0xff]  }
  0x25   :  { %3257 = vmatprep.mubr.msk.bf16.mxu1 %vm767_vm1, %v740_v36  ;;  %v684_v44 = vmax.f32 %v620_v38, 0.0  ;;  %v685_v45 = vmax.f32 %v621_v39, 0.0  ;;  %v551_v46 = vmul.f32 %v3021_v34, %v3512_v7  ;;  %v2893_v47 = vunpack.c.l.bf16 %v3122_v35 }
  0x26   :  { %v373_v49 = vpack.c.bf16 %v316_v40, %v315_v37  ;;  %v254_v50 = vadd.f32 %v3538_v17, %v183_v41  ;;  %v317_v51 = vmax.f32 %v253_v42, 0.0  ;;  %v552_v52 = vmul.f32 %v3022_v43, %v3512_v7 }
  0x27   :  { %v741_v54 = vpack.c.bf16 %v685_v45, %v684_v44  ;;  %v622_v55 = vadd.f32 %v3517_v8, %v551_v46  ;;  %v2894_v56 = vunpack.c.h.bf16 %v3122_v35  ;;  %v184_v57 = vmul.f32 %v2893_v47, %v3525_v10  ;;  %v3157_v46 = vld [vmem:[%s4450_s1 + $0x60] sm:$0xff]  }
  0x28   :  { %3323 = vmatprep.mubr.msk.bf16.mxu0 %vm767_vm1, %v373_v49  ;;  %v318_v58 = vmax.f32 %v254_v50, 0.0  ;;  %v623_v59 = vadd.f32 %v3517_v8, %v552_v52  ;;  %v3025_v60 = vunpack.c.l.bf16 %v3154_v48  ;;  %v3026_v61 = vunpack.c.h.bf16 %v3154_v48 }
  0x29   :  { %3258 = vmatmul.mubr.msk.bf16.gmra.mrb[12].mxu1 %vm767_vm1, %v741_v54  ;;  %v686_v62 = vmax.f32 %v622_v55, 0.0  ;;  %v185_v63 = vmul.f32 %v2894_v56, %v3525_v10  ;;  %v255_v0 = vadd.f32 %v3538_v17, %v184_v57  ;;  %v2897_v1 = vunpack.c.l.bf16 %v3123_v53  ;;  %v3126_v55 = vld [vmem:[%s4453_s0 + $0x60] sm:$0xff]  }
  0x2a   :  { %v374_v3 = vpack.c.bf16 %v318_v58, %v317_v51  ;;  %v687_v4 = vmax.f32 %v623_v59, 0.0  ;;  %v553_v5 = vmul.f32 %v3025_v60, %v3512_v7  ;;  %v554_v6 = vmul.f32 %v3026_v61, %v3512_v7 }
  0x2b   :  { %v256_v9 = vadd.f32 %v3538_v17, %v185_v63  ;;  %v319_v11 = vmax.f32 %v255_v0, 0.0  ;;  %v2898_v12 = vunpack.c.h.bf16 %v3123_v53  ;;  %v186_v13 = vmul.f32 %v2897_v1, %v3525_v10 }
  0x2c   :  { %3324 = vmatmul.mubr.msk.bf16.gmra.mrb[12].mxu0 %vm767_vm1, %v374_v3  ;;  %v742_v15 = vpack.c.bf16 %v687_v4, %v686_v62  ;;  %v624_v16 = vadd.f32 %v3517_v8, %v553_v5  ;;  %v625_v18 = vadd.f32 %v3517_v8, %v554_v6  ;;  %v3029_v19 = vunpack.c.l.bf16 %v3155_v2  ;;  %v3158_v4 = vld [vmem:[%s4450_s1 + $0x68] sm:$0xff]  }
  0x2d   :  { %v320_v20 = vmax.f32 %v256_v9, 0.0  ;;  %v187_v21 = vmul.f32 %v2898_v12, %v3525_v10  ;;  %v257_v22 = vadd.f32 %v3538_v17, %v186_v13  ;;  %v3030_v23 = vunpack.c.h.bf16 %v3155_v2  ;;  %v3127_v12 = vld [vmem:[%s4453_s0 + $0x68] sm:$0xff]  }
  0x2e   :  { %3261 = vmatprep.mubr.msk.bf16.mxu1 %vm767_vm1, %v742_v15  ;;  %v688_v24 = vmax.f32 %v624_v16, 0.0  ;;  %v689_v25 = vmax.f32 %v625_v18, 0.0  ;;  %v555_v26 = vmul.f32 %v3029_v19, %v3512_v7  ;;  %v2901_v27 = vunpack.c.l.bf16 %v3124_v14 }
  0x2f   :  { %v375_v29 = vpack.c.bf16 %v320_v20, %v319_v11  ;;  %v258_v30 = vadd.f32 %v3538_v17, %v187_v21  ;;  %v321_v31 = vmax.f32 %v257_v22, 0.0  ;;  %v556_v32 = vmul.f32 %v3030_v23, %v3512_v7 }
  0x30   :  { %v743_v34 = vpack.c.bf16 %v689_v25, %v688_v24  ;;  %v626_v35 = vadd.f32 %v3517_v8, %v555_v26  ;;  %v2902_v36 = vunpack.c.h.bf16 %v3124_v14  ;;  %v188_v37 = vmul.f32 %v2901_v27, %v3525_v10  ;;  %v3159_v26 = vld [vmem:[%s4450_s1 + $0x70] sm:$0xff]  }
  0x31   :  { %3327 = vmatprep.mubr.msk.bf16.mxu0 %vm767_vm1, %v375_v29  ;;  %v322_v38 = vmax.f32 %v258_v30, 0.0  ;;  %v627_v39 = vadd.f32 %v3517_v8, %v556_v32  ;;  %v3033_v40 = vunpack.c.l.bf16 %v3156_v28  ;;  %v3034_v41 = vunpack.c.h.bf16 %v3156_v28 }
  0x32   :  { %3262 = vmatmul.mubr.msk.bf16.gmra.mrb[16].mxu1 %vm767_vm1, %v743_v34  ;;  %v690_v42 = vmax.f32 %v626_v35, 0.0  ;;  %v189_v43 = vmul.f32 %v2902_v36, %v3525_v10  ;;  %v259_v44 = vadd.f32 %v3538_v17, %v188_v37  ;;  %v2905_v45 = vunpack.c.l.bf16 %v3125_v33  ;;  %v3128_v35 = vld [vmem:[%s4453_s0 + $0x70] sm:$0xff]  }
  0x33   :  { %v376_v47 = vpack.c.bf16 %v322_v38, %v321_v31  ;;  %v691_v48 = vmax.f32 %v627_v39, 0.0  ;;  %v557_v49 = vmul.f32 %v3033_v40, %v3512_v7  ;;  %v558_v50 = vmul.f32 %v3034_v41, %v3512_v7 }
  0x34   :  { %v260_v51 = vadd.f32 %v3538_v17, %v189_v43  ;;  %v323_v52 = vmax.f32 %v259_v44, 0.0  ;;  %v2906_v53 = vunpack.c.h.bf16 %v3125_v33  ;;  %v190_v54 = vmul.f32 %v2905_v45, %v3525_v10 }
  0x35   :  { %3328 = vmatmul.mubr.msk.bf16.gmra.mrb[16].mxu0 %vm767_vm1, %v376_v47  ;;  %v744_v56 = vpack.c.bf16 %v691_v48, %v690_v42  ;;  %v628_v57 = vadd.f32 %v3517_v8, %v557_v49  ;;  %v629_v58 = vadd.f32 %v3517_v8, %v558_v50  ;;  %v3037_v59 = vunpack.c.l.bf16 %v3157_v46  ;;  %v3160_v48 = vld [vmem:[%s4450_s1 + $0x78] sm:$0xff]  }
  0x36   :  { %v324_v60 = vmax.f32 %v260_v51, 0.0  ;;  %v191_v61 = vmul.f32 %v2906_v53, %v3525_v10  ;;  %v261_v62 = vadd.f32 %v3538_v17, %v190_v54  ;;  %v3038_v63 = vunpack.c.h.bf16 %v3157_v46  ;;  %v3129_v53 = vld [vmem:[%s4453_s0 + $0x78] sm:$0xff]  }
  0x37   :  { %3265 = vmatprep.mubr.msk.bf16.mxu1 %vm767_vm1, %v744_v56  ;;  %v692_v0 = vmax.f32 %v628_v57, 0.0  ;;  %v693_v1 = vmax.f32 %v629_v58, 0.0  ;;  %v559_v2 = vmul.f32 %v3037_v59, %v3512_v7  ;;  %v2909_v3 = vunpack.c.l.bf16 %v3126_v55 }
  0x38   :  { %v377_v5 = vpack.c.bf16 %v324_v60, %v323_v52  ;;  %v262_v6 = vadd.f32 %v3538_v17, %v191_v61  ;;  %v325_v9 = vmax.f32 %v261_v62, 0.0  ;;  %v560_v11 = vmul.f32 %v3038_v63, %v3512_v7 }
  0x39   :  { %v745_v13 = vpack.c.bf16 %v693_v1, %v692_v0  ;;  %v630_v14 = vadd.f32 %v3517_v8, %v559_v2  ;;  %v2910_v15 = vunpack.c.h.bf16 %v3126_v55  ;;  %v192_v16 = vmul.f32 %v2909_v3, %v3525_v10  ;;  %v3161_v2 = vld [vmem:[%s4450_s1 + $0x80] sm:$0xff]  }
  0x3a   :  { %3331 = vmatprep.mubr.msk.bf16.mxu0 %vm767_vm1, %v377_v5  ;;  %v326_v18 = vmax.f32 %v262_v6, 0.0  ;;  %v631_v19 = vadd.f32 %v3517_v8, %v560_v11  ;;  %v3041_v20 = vunpack.c.l.bf16 %v3158_v4  ;;  %v3042_v21 = vunpack.c.h.bf16 %v3158_v4 }
  0x3b   :  { %3266 = vmatmul.mubr.msk.bf16.gmra.mrb[20].mxu1 %vm767_vm1, %v745_v13  ;;  %v694_v22 = vmax.f32 %v630_v14, 0.0  ;;  %v193_v23 = vmul.f32 %v2910_v15, %v3525_v10  ;;  %v263_v24 = vadd.f32 %v3538_v17, %v192_v16  ;;  %v2913_v25 = vunpack.c.l.bf16 %v3127_v12  ;;  %v3130_v14 = vld [vmem:[%s4453_s0 + $0x80] sm:$0xff]  }
  0x3c   :  { %v378_v27 = vpack.c.bf16 %v326_v18, %v325_v9  ;;  %v695_v28 = vmax.f32 %v631_v19, 0.0  ;;  %v561_v29 = vmul.f32 %v3041_v20, %v3512_v7  ;;  %v562_v30 = vmul.f32 %v3042_v21, %v3512_v7 }
  0x3d   :  { %v264_v31 = vadd.f32 %v3538_v17, %v193_v23  ;;  %v327_v32 = vmax.f32 %v263_v24, 0.0  ;;  %v2914_v33 = vunpack.c.h.bf16 %v3127_v12  ;;  %v194_v34 = vmul.f32 %v2913_v25, %v3525_v10 }
  0x3e   :  { %3332 = vmatmul.mubr.msk.bf16.gmra.mrb[20].mxu0 %vm767_vm1, %v378_v27  ;;  %v746_v36 = vpack.c.bf16 %v695_v28, %v694_v22  ;;  %v632_v37 = vadd.f32 %v3517_v8, %v561_v29  ;;  %v633_v38 = vadd.f32 %v3517_v8, %v562_v30  ;;  %v3045_v39 = vunpack.c.l.bf16 %v3159_v26  ;;  %v3162_v28 = vld [vmem:[%s4450_s1 + $0x88] sm:$0xff]  }
  0x3f   :  { %v328_v40 = vmax.f32 %v264_v31, 0.0  ;;  %v195_v41 = vmul.f32 %v2914_v33, %v3525_v10  ;;  %v265_v42 = vadd.f32 %v3538_v17, %v194_v34  ;;  %v3046_v43 = vunpack.c.h.bf16 %v3159_v26  ;;  %v3131_v33 = vld [vmem:[%s4453_s0 + $0x88] sm:$0xff]  }
  0x40   :  { %3269 = vmatprep.mubr.msk.bf16.mxu1 %vm767_vm1, %v746_v36  ;;  %v696_v44 = vmax.f32 %v632_v37, 0.0  ;;  %v697_v45 = vmax.f32 %v633_v38, 0.0  ;;  %v563_v46 = vmul.f32 %v3045_v39, %v3512_v7  ;;  %v2917_v47 = vunpack.c.l.bf16 %v3128_v35 }
  0x41   :  { %v379_v49 = vpack.c.bf16 %v328_v40, %v327_v32  ;;  %v266_v50 = vadd.f32 %v3538_v17, %v195_v41  ;;  %v329_v51 = vmax.f32 %v265_v42, 0.0  ;;  %v564_v52 = vmul.f32 %v3046_v43, %v3512_v7 }
  0x42   :  { %v747_v54 = vpack.c.bf16 %v697_v45, %v696_v44  ;;  %v634_v55 = vadd.f32 %v3517_v8, %v563_v46  ;;  %v2918_v56 = vunpack.c.h.bf16 %v3128_v35  ;;  %v196_v57 = vmul.f32 %v2917_v47, %v3525_v10  ;;  %v3163_v46 = vld [vmem:[%s4450_s1 + $0x90] sm:$0xff]  }
  0x43   :  { %3335 = vmatprep.mubr.msk.bf16.mxu0 %vm767_vm1, %v379_v49  ;;  %v330_v58 = vmax.f32 %v266_v50, 0.0  ;;  %v635_v59 = vadd.f32 %v3517_v8, %v564_v52  ;;  %v3049_v60 = vunpack.c.l.bf16 %v3160_v48  ;;  %v3050_v61 = vunpack.c.h.bf16 %v3160_v48 }
  0x44   :  { %3270 = vmatmul.mubr.msk.bf16.gmra.mrb[24].mxu1 %vm767_vm1, %v747_v54  ;;  %v698_v62 = vmax.f32 %v634_v55, 0.0  ;;  %v197_v63 = vmul.f32 %v2918_v56, %v3525_v10  ;;  %v267_v0 = vadd.f32 %v3538_v17, %v196_v57  ;;  %v2921_v1 = vunpack.c.l.bf16 %v3129_v53  ;;  %v3132_v55 = vld [vmem:[%s4453_s0 + $0x90] sm:$0xff]  }
  0x45   :  { %v380_v3 = vpack.c.bf16 %v330_v58, %v329_v51  ;;  %v699_v4 = vmax.f32 %v635_v59, 0.0  ;;  %v565_v5 = vmul.f32 %v3049_v60, %v3512_v7  ;;  %v566_v6 = vmul.f32 %v3050_v61, %v3512_v7 }
  0x46   :  { %v268_v9 = vadd.f32 %v3538_v17, %v197_v63  ;;  %v331_v11 = vmax.f32 %v267_v0, 0.0  ;;  %v2922_v12 = vunpack.c.h.bf16 %v3129_v53  ;;  %v198_v13 = vmul.f32 %v2921_v1, %v3525_v10 }
  0x47   :  { %3336 = vmatmul.mubr.msk.bf16.gmra.mrb[24].mxu0 %vm767_vm1, %v380_v3  ;;  %v748_v15 = vpack.c.bf16 %v699_v4, %v698_v62  ;;  %v636_v16 = vadd.f32 %v3517_v8, %v565_v5  ;;  %v637_v18 = vadd.f32 %v3517_v8, %v566_v6  ;;  %v3053_v19 = vunpack.c.l.bf16 %v3161_v2  ;;  %v3164_v4 = vld [vmem:[%s4450_s1 + $0x98] sm:$0xff]  }
  0x48   :  { %v332_v20 = vmax.f32 %v268_v9, 0.0  ;;  %v199_v21 = vmul.f32 %v2922_v12, %v3525_v10  ;;  %v269_v22 = vadd.f32 %v3538_v17, %v198_v13  ;;  %v3054_v23 = vunpack.c.h.bf16 %v3161_v2  ;;  %v3133_v12 = vld [vmem:[%s4453_s0 + $0x98] sm:$0xff]  }
  0x49   :  { %3273 = vmatprep.mubr.msk.bf16.mxu1 %vm767_vm1, %v748_v15  ;;  %v700_v24 = vmax.f32 %v636_v16, 0.0  ;;  %v701_v25 = vmax.f32 %v637_v18, 0.0  ;;  %v567_v26 = vmul.f32 %v3053_v19, %v3512_v7  ;;  %v2925_v27 = vunpack.c.l.bf16 %v3130_v14 }
  0x4a   :  { %v381_v29 = vpack.c.bf16 %v332_v20, %v331_v11  ;;  %v270_v30 = vadd.f32 %v3538_v17, %v199_v21  ;;  %v333_v31 = vmax.f32 %v269_v22, 0.0  ;;  %v568_v32 = vmul.f32 %v3054_v23, %v3512_v7 }
  0x4b   :  { %v749_v34 = vpack.c.bf16 %v701_v25, %v700_v24  ;;  %v638_v35 = vadd.f32 %v3517_v8, %v567_v26  ;;  %v2926_v36 = vunpack.c.h.bf16 %v3130_v14  ;;  %v200_v37 = vmul.f32 %v2925_v27, %v3525_v10  ;;  %v3165_v26 = vld [vmem:[%s4450_s1 + $0xa0] sm:$0xff]  }
  0x4c   :  { %3339 = vmatprep.mubr.msk.bf16.mxu0 %vm767_vm1, %v381_v29  ;;  %v334_v38 = vmax.f32 %v270_v30, 0.0  ;;  %v639_v39 = vadd.f32 %v3517_v8, %v568_v32  ;;  %v3057_v40 = vunpack.c.l.bf16 %v3162_v28  ;;  %v3058_v41 = vunpack.c.h.bf16 %v3162_v28 }
  0x4d   :  { %3274 = vmatmul.mubr.msk.bf16.gmra.mrb[28].mxu1 %vm767_vm1, %v749_v34  ;;  %v702_v42 = vmax.f32 %v638_v35, 0.0  ;;  %v201_v43 = vmul.f32 %v2926_v36, %v3525_v10  ;;  %v271_v44 = vadd.f32 %v3538_v17, %v200_v37  ;;  %v2929_v45 = vunpack.c.l.bf16 %v3131_v33  ;;  %v3134_v35 = vld [vmem:[%s4453_s0 + $0xa0] sm:$0xff]  }
  0x4e   :  { %v382_v47 = vpack.c.bf16 %v334_v38, %v333_v31  ;;  %v703_v48 = vmax.f32 %v639_v39, 0.0  ;;  %v569_v49 = vmul.f32 %v3057_v40, %v3512_v7  ;;  %v570_v50 = vmul.f32 %v3058_v41, %v3512_v7 }
  0x4f   :  { %v272_v51 = vadd.f32 %v3538_v17, %v201_v43  ;;  %v335_v52 = vmax.f32 %v271_v44, 0.0  ;;  %v2930_v53 = vunpack.c.h.bf16 %v3131_v33  ;;  %v202_v54 = vmul.f32 %v2929_v45, %v3525_v10 }
  0x50   :  { %3340 = vmatmul.mubr.msk.bf16.gmra.mrb[28].mxu0 %vm767_vm1, %v382_v47  ;;  %v750_v56 = vpack.c.bf16 %v703_v48, %v702_v42  ;;  %v640_v57 = vadd.f32 %v3517_v8, %v569_v49  ;;  %v641_v58 = vadd.f32 %v3517_v8, %v570_v50  ;;  %v3061_v59 = vunpack.c.l.bf16 %v3163_v46  ;;  %v3166_v48 = vld [vmem:[%s4450_s1 + $0xa8] sm:$0xff]  }
  0x51   :  { %v336_v60 = vmax.f32 %v272_v51, 0.0  ;;  %v203_v61 = vmul.f32 %v2930_v53, %v3525_v10  ;;  %v273_v62 = vadd.f32 %v3538_v17, %v202_v54  ;;  %v3062_v63 = vunpack.c.h.bf16 %v3163_v46  ;;  %v3135_v53 = vld [vmem:[%s4453_s0 + $0xa8] sm:$0xff]  }
  0x52   :  { %3277 = vmatprep.mubr.msk.bf16.mxu1 %vm767_vm1, %v750_v56  ;;  %v704_v0 = vmax.f32 %v640_v57, 0.0  ;;  %v705_v1 = vmax.f32 %v641_v58, 0.0  ;;  %v571_v2 = vmul.f32 %v3061_v59, %v3512_v7  ;;  %v2933_v3 = vunpack.c.l.bf16 %v3132_v55 }
  0x53   :  { %v383_v5 = vpack.c.bf16 %v336_v60, %v335_v52  ;;  %v274_v6 = vadd.f32 %v3538_v17, %v203_v61  ;;  %v337_v9 = vmax.f32 %v273_v62, 0.0  ;;  %v572_v11 = vmul.f32 %v3062_v63, %v3512_v7 }
  0x54   :  { %v751_v13 = vpack.c.bf16 %v705_v1, %v704_v0  ;;  %v642_v14 = vadd.f32 %v3517_v8, %v571_v2  ;;  %v2934_v15 = vunpack.c.h.bf16 %v3132_v55  ;;  %v204_v16 = vmul.f32 %v2933_v3, %v3525_v10  ;;  %v3167_v2 = vld [vmem:[%s4450_s1 + $0xb0] sm:$0xff]  }
  0x55   :  { %3343 = vmatprep.mubr.msk.bf16.mxu0 %vm767_vm1, %v383_v5  ;;  %v338_v18 = vmax.f32 %v274_v6, 0.0  ;;  %v643_v19 = vadd.f32 %v3517_v8, %v572_v11  ;;  %v3065_v20 = vunpack.c.l.bf16 %v3164_v4  ;;  %v3066_v21 = vunpack.c.h.bf16 %v3164_v4 }
  0x56   :  { %3278 = vmatmul.mubr.msk.bf16.gmra.mrb[32].mxu1 %vm767_vm1, %v751_v13  ;;  %v706_v22 = vmax.f32 %v642_v14, 0.0  ;;  %v205_v23 = vmul.f32 %v2934_v15, %v3525_v10  ;;  %v275_v24 = vadd.f32 %v3538_v17, %v204_v16  ;;  %v2937_v25 = vunpack.c.l.bf16 %v3133_v12  ;;  %v3136_v14 = vld [vmem:[%s4453_s0 + $0xb0] sm:$0xff]  }
  0x57   :  { %v384_v27 = vpack.c.bf16 %v338_v18, %v337_v9  ;;  %v707_v28 = vmax.f32 %v643_v19, 0.0  ;;  %v573_v29 = vmul.f32 %v3065_v20, %v3512_v7  ;;  %v574_v30 = vmul.f32 %v3066_v21, %v3512_v7 }
  0x58   :  { %v276_v31 = vadd.f32 %v3538_v17, %v205_v23  ;;  %v339_v32 = vmax.f32 %v275_v24, 0.0  ;;  %v2938_v33 = vunpack.c.h.bf16 %v3133_v12  ;;  %v206_v34 = vmul.f32 %v2937_v25, %v3525_v10 }
  0x59   :  { %3344 = vmatmul.mubr.msk.bf16.gmra.mrb[32].mxu0 %vm767_vm1, %v384_v27  ;;  %v752_v36 = vpack.c.bf16 %v707_v28, %v706_v22  ;;  %v644_v37 = vadd.f32 %v3517_v8, %v573_v29  ;;  %v645_v38 = vadd.f32 %v3517_v8, %v574_v30  ;;  %v3069_v39 = vunpack.c.l.bf16 %v3165_v26  ;;  %v3168_v28 = vld [vmem:[%s4450_s1 + $0xb8] sm:$0xff]  }
  0x5a   :  { %v340_v40 = vmax.f32 %v276_v31, 0.0  ;;  %v207_v41 = vmul.f32 %v2938_v33, %v3525_v10  ;;  %v277_v42 = vadd.f32 %v3538_v17, %v206_v34  ;;  %v3070_v43 = vunpack.c.h.bf16 %v3165_v26  ;;  %v3137_v33 = vld [vmem:[%s4453_s0 + $0xb8] sm:$0xff]  }
  0x5b   :  { %3281 = vmatprep.mubr.msk.bf16.mxu1 %vm767_vm1, %v752_v36  ;;  %v708_v44 = vmax.f32 %v644_v37, 0.0  ;;  %v709_v45 = vmax.f32 %v645_v38, 0.0  ;;  %v575_v46 = vmul.f32 %v3069_v39, %v3512_v7  ;;  %v2941_v47 = vunpack.c.l.bf16 %v3134_v35 }
  0x5c   :  { %v385_v49 = vpack.c.bf16 %v340_v40, %v339_v32  ;;  %v278_v50 = vadd.f32 %v3538_v17, %v207_v41  ;;  %v341_v51 = vmax.f32 %v277_v42, 0.0  ;;  %v576_v52 = vmul.f32 %v3070_v43, %v3512_v7 }
  0x5d   :  { %v753_v54 = vpack.c.bf16 %v709_v45, %v708_v44  ;;  %v646_v55 = vadd.f32 %v3517_v8, %v575_v46  ;;  %v2942_v56 = vunpack.c.h.bf16 %v3134_v35  ;;  %v208_v57 = vmul.f32 %v2941_v47, %v3525_v10  ;;  %v3169_v46 = vld [vmem:[%s4450_s1 + $0xc0] sm:$0xff]  }
  0x5e   :  { %3347 = vmatprep.mubr.msk.bf16.mxu0 %vm767_vm1, %v385_v49  ;;  %v342_v58 = vmax.f32 %v278_v50, 0.0  ;;  %v647_v59 = vadd.f32 %v3517_v8, %v576_v52  ;;  %v3073_v60 = vunpack.c.l.bf16 %v3166_v48  ;;  %v3074_v61 = vunpack.c.h.bf16 %v3166_v48 }
  0x5f   :  { %3282 = vmatmul.mubr.msk.bf16.gmra.mrb[36].mxu1 %vm767_vm1, %v753_v54  ;;  %v710_v62 = vmax.f32 %v646_v55, 0.0  ;;  %v209_v63 = vmul.f32 %v2942_v56, %v3525_v10  ;;  %v279_v0 = vadd.f32 %v3538_v17, %v208_v57  ;;  %v2945_v1 = vunpack.c.l.bf16 %v3135_v53  ;;  %v3138_v54 = vld [vmem:[%s4453_s0 + $0xc0] sm:$0xff]  }
  0x60   :  { %v386_v3 = vpack.c.bf16 %v342_v58, %v341_v51  ;;  %v711_v4 = vmax.f32 %v647_v59, 0.0  ;;  %v577_v5 = vmul.f32 %v3073_v60, %v3512_v7  ;;  %v578_v6 = vmul.f32 %v3074_v61, %v3512_v7  ;;  %v3910_v56 = vld [vmem:[%s4452_s5] ss:$0 sm:$0xff] }
  0x61   :  { %v280_v9 = vadd.f32 %v3538_v17, %v209_v63  ;;  %v343_v11 = vmax.f32 %v279_v0, 0.0  ;;  %v2946_v12 = vunpack.c.h.bf16 %v3135_v53  ;;  %v210_v13 = vmul.f32 %v2945_v1, %v3525_v10  ;;  %v3925_v1 = vld [vmem:[%s4451_s3] ss:$0 sm:$0xff] }
  0x62   :  { %3348 = vmatmul.mubr.msk.bf16.gmra.mrb[36].mxu0 %vm767_vm1, %v386_v3  ;;  %v754_v15 = vpack.c.bf16 %v711_v4, %v710_v62  ;;  %v648_v16 = vadd.f32 %v3517_v8, %v577_v5  ;;  %v649_v18 = vadd.f32 %v3517_v8, %v578_v6  ;;  %v3077_v19 = vunpack.c.l.bf16 %v3167_v2  ;;  %v3170_v4 = vld [vmem:[%s4450_s1 + $0xc8] sm:$0xff]  }
  0x63   :  { %v344_v20 = vmax.f32 %v280_v9, 0.0  ;;  %v211_v21 = vmul.f32 %v2946_v12, %v3525_v10  ;;  %v281_v22 = vadd.f32 %v3538_v17, %v210_v13  ;;  %v3078_v23 = vunpack.c.h.bf16 %v3167_v2  ;;  %v3139_v12 = vld [vmem:[%s4453_s0 + $0xc8] sm:$0xff]  }
  0x64   :  { %3285 = vmatprep.mubr.msk.bf16.mxu1 %vm767_vm1, %v754_v15  ;;  %v712_v24 = vmax.f32 %v648_v16, 0.0  ;;  %v713_v25 = vmax.f32 %v649_v18, 0.0  ;;  %v579_v26 = vmul.f32 %v3077_v19, %v3512_v7  ;;  %v2949_v27 = vunpack.c.l.bf16 %v3136_v14 }
  0x65   :  { %v387_v29 = vpack.c.bf16 %v344_v20, %v343_v11  ;;  %v282_v30 = vadd.f32 %v3538_v17, %v211_v21  ;;  %v345_v31 = vmax.f32 %v281_v22, 0.0  ;;  %v580_v32 = vmul.f32 %v3078_v23, %v3512_v7 }
  0x66   :  { %v755_v34 = vpack.c.bf16 %v713_v25, %v712_v24  ;;  %v650_v35 = vadd.f32 %v3517_v8, %v579_v26  ;;  %v2950_v36 = vunpack.c.h.bf16 %v3136_v14  ;;  %v212_v37 = vmul.f32 %v2949_v27, %v3525_v10  ;;  %v3171_v26 = vld [vmem:[%s4450_s1 + $0xd0] sm:$0xff]  }
  0x67   :  { %3351 = vmatprep.mubr.msk.bf16.mxu0 %vm767_vm1, %v387_v29  ;;  %v346_v38 = vmax.f32 %v282_v30, 0.0  ;;  %v651_v39 = vadd.f32 %v3517_v8, %v580_v32  ;;  %v3081_v40 = vunpack.c.l.bf16 %v3168_v28  ;;  %v3082_v41 = vunpack.c.h.bf16 %v3168_v28 }
  0x68   :  { %3286 = vmatmul.mubr.msk.bf16.gmra.mrb[40].mxu1 %vm767_vm1, %v755_v34  ;;  %v714_v42 = vmax.f32 %v650_v35, 0.0  ;;  %v213_v43 = vmul.f32 %v2950_v36, %v3525_v10  ;;  %v283_v44 = vadd.f32 %v3538_v17, %v212_v37  ;;  %v2953_v45 = vunpack.c.l.bf16 %v3137_v33  ;;  %v3140_v35 = vld [vmem:[%s4453_s0 + $0xd0] sm:$0xff]  }
  0x69   :  { %v388_v47 = vpack.c.bf16 %v346_v38, %v345_v31  ;;  %v715_v48 = vmax.f32 %v651_v39, 0.0  ;;  %v581_v49 = vmul.f32 %v3081_v40, %v3512_v7  ;;  %v582_v8 = vmul.f32 %v3082_v41, %v3512_v7 }
  0x6a   :  { %v284_v50 = vadd.f32 %v3538_v17, %v213_v43  ;;  %v347_v51 = vmax.f32 %v283_v44, 0.0  ;;  %v2954_v52 = vunpack.c.h.bf16 %v3137_v33  ;;  %v214_v53 = vmul.f32 %v2953_v45, %v3525_v10  ;;  %v3917_v10 = vld [vmem:[%s4454_s2] ss:$0 sm:$0xff] }
  0x6b   :  { %3352 = vmatmul.mubr.msk.bf16.gmra.mrb[40].mxu0 %vm767_vm1, %v388_v47  ;;  %v756_v55 = vpack.c.bf16 %v715_v48, %v714_v42  ;;  %v652_v7 = vadd.f32 %v3910_v56, %v581_v49  ;;  %v653_v57 = vadd.f32 %v3910_v56, %v582_v8  ;;  %v3085_v58 = vunpack.c.l.bf16 %v3169_v46  ;;  %v3172_v48 = vld [vmem:[%s4450_s1 + $0xd8] sm:$0xff]  }
  0x6c   :  { %v348_v59 = vmax.f32 %v284_v50, 0.0  ;;  %v215_v60 = vmul.f32 %v3917_v10, %v2954_v52  ;;  %v285_v61 = vadd.f32 %v3538_v17, %v214_v53  ;;  %v3086_v62 = vunpack.c.h.bf16 %v3169_v46  ;;  %v3934_v17 = vld [vmem:[%s4455_s4] ss:$0 sm:$0xff]  ;;  %v3141_v52 = vld [vmem:[%s4453_s0 + $0xd8] sm:$0xff]  }
  0x6d   :  { %3289 = vmatprep.mubr.msk.bf16.mxu1 %vm767_vm1, %v756_v55  ;;  %v716_v63 = vmax.f32 %v652_v7, 0.0  ;;  %v717_v0 = vmax.f32 %v653_v57, 0.0  ;;  %v583_v2 = vmul.f32 %v3925_v1, %v3085_v58  ;;  %v2957_v3 = vunpack.c.l.bf16 %v3138_v54 }
  0x6e   :  { %v389_v5 = vpack.c.bf16 %v348_v59, %v347_v51  ;;  %v286_v6 = vadd.f32 %v3934_v17, %v215_v60  ;;  %v349_v9 = vmax.f32 %v285_v61, 0.0  ;;  %v584_v11 = vmul.f32 %v3925_v1, %v3086_v62 }
  0x6f   :  { %v757_v13 = vpack.c.bf16 %v717_v0, %v716_v63  ;;  %v654_v14 = vadd.f32 %v3910_v56, %v583_v2  ;;  %v2958_v15 = vunpack.c.h.bf16 %v3138_v54  ;;  %v216_v16 = vmul.f32 %v3917_v10, %v2957_v3  ;;  %v3173_v2 = vld [vmem:[%s4450_s1 + $0xe0] sm:$0xff]  }
  0x70   :  { %3355 = vmatprep.mubr.msk.bf16.mxu0 %vm767_vm1, %v389_v5  ;;  %v350_v18 = vmax.f32 %v286_v6, 0.0  ;;  %v655_v19 = vadd.f32 %v3910_v56, %v584_v11  ;;  %v3089_v20 = vunpack.c.l.bf16 %v3170_v4  ;;  %v3090_v21 = vunpack.c.h.bf16 %v3170_v4 }
  0x71   :  { %3290 = vmatmul.mubr.msk.bf16.gmra.mrb[44].mxu1 %vm767_vm1, %v757_v13  ;;  %v718_v22 = vmax.f32 %v654_v14, 0.0  ;;  %v217_v23 = vmul.f32 %v3917_v10, %v2958_v15  ;;  %v287_v24 = vadd.f32 %v3934_v17, %v216_v16  ;;  %v2961_v25 = vunpack.c.l.bf16 %v3139_v12  ;;  %v3142_v14 = vld [vmem:[%s4453_s0 + $0xe0] sm:$0xff]  }
  0x72   :  { %v390_v27 = vpack.c.bf16 %v350_v18, %v349_v9  ;;  %v719_v28 = vmax.f32 %v655_v19, 0.0  ;;  %v585_v29 = vmul.f32 %v3925_v1, %v3089_v20  ;;  %v586_v30 = vmul.f32 %v3925_v1, %v3090_v21 }
  0x73   :  { %v288_v31 = vadd.f32 %v3934_v17, %v217_v23  ;;  %v351_v32 = vmax.f32 %v287_v24, 0.0  ;;  %v2962_v33 = vunpack.c.h.bf16 %v3139_v12  ;;  %v218_v34 = vmul.f32 %v3917_v10, %v2961_v25 }
  0x74   :  { %3356 = vmatmul.mubr.msk.bf16.gmra.mrb[44].mxu0 %vm767_vm1, %v390_v27  ;;  %v758_v36 = vpack.c.bf16 %v719_v28, %v718_v22  ;;  %v656_v37 = vadd.f32 %v3910_v56, %v585_v29  ;;  %v657_v38 = vadd.f32 %v3910_v56, %v586_v30  ;;  %v3093_v39 = vunpack.c.l.bf16 %v3171_v26  ;;  %v3174_v28 = vld [vmem:[%s4450_s1 + $0xe8] sm:$0xff]  }
  0x75   :  { %v352_v40 = vmax.f32 %v288_v31, 0.0  ;;  %v219_v41 = vmul.f32 %v3917_v10, %v2962_v33  ;;  %v289_v42 = vadd.f32 %v3934_v17, %v218_v34  ;;  %v3094_v43 = vunpack.c.h.bf16 %v3171_v26  ;;  %v3143_v33 = vld [vmem:[%s4453_s0 + $0xe8] sm:$0xff]  }
  0x76   :  { %3293 = vmatprep.mubr.msk.bf16.mxu1 %vm767_vm1, %v758_v36  ;;  %v720_v44 = vmax.f32 %v656_v37, 0.0  ;;  %v721_v45 = vmax.f32 %v657_v38, 0.0  ;;  %v587_v46 = vmul.f32 %v3925_v1, %v3093_v39  ;;  %v2965_v47 = vunpack.c.l.bf16 %v3140_v35 }
  0x77   :  { %v391_v49 = vpack.c.bf16 %v352_v40, %v351_v32  ;;  %v290_v8 = vadd.f32 %v3934_v17, %v219_v41  ;;  %v353_v50 = vmax.f32 %v289_v42, 0.0  ;;  %v588_v51 = vmul.f32 %v3925_v1, %v3094_v43 }
  0x78   :  { %v759_v53 = vpack.c.bf16 %v721_v45, %v720_v44  ;;  %v658_v54 = vadd.f32 %v3910_v56, %v587_v46  ;;  %v2966_v55 = vunpack.c.h.bf16 %v3140_v35  ;;  %v220_v7 = vmul.f32 %v3917_v10, %v2965_v47  ;;  %v3175_v46 = vld [vmem:[%s4450_s1 + $0xf0] sm:$0xff]  }
  0x79   :  { %3359 = vmatprep.mubr.msk.bf16.mxu0 %vm767_vm1, %v391_v49  ;;  %v354_v57 = vmax.f32 %v290_v8, 0.0  ;;  %v659_v58 = vadd.f32 %v3910_v56, %v588_v51  ;;  %v3097_v59 = vunpack.c.l.bf16 %v3172_v48  ;;  %v3098_v60 = vunpack.c.h.bf16 %v3172_v48 }
  0x7a   :  { %3294 = vmatmul.mubr.msk.bf16.gmra.mrb[48].mxu1 %vm767_vm1, %v759_v53  ;;  %v722_v61 = vmax.f32 %v658_v54, 0.0  ;;  %v221_v62 = vmul.f32 %v3917_v10, %v2966_v55  ;;  %v291_v63 = vadd.f32 %v3934_v17, %v220_v7  ;;  %v2969_v0 = vunpack.c.l.bf16 %v3141_v52  ;;  %v3144_v54 = vld [vmem:[%s4453_s0 + $0xf0] sm:$0xff]  }
  0x7b   :  { %v392_v3 = vpack.c.bf16 %v354_v57, %v353_v50  ;;  %v723_v4 = vmax.f32 %v659_v58, 0.0  ;;  %v589_v5 = vmul.f32 %v3925_v1, %v3097_v59  ;;  %v590_v6 = vmul.f32 %v3925_v1, %v3098_v60 }
  0x7c   :  { %v292_v9 = vadd.f32 %v3934_v17, %v221_v62  ;;  %v355_v11 = vmax.f32 %v291_v63, 0.0  ;;  %v2970_v12 = vunpack.c.h.bf16 %v3141_v52  ;;  %v222_v13 = vmul.f32 %v3917_v10, %v2969_v0 }
  0x7d   :  { %3360 = vmatmul.mubr.msk.bf16.gmra.mrb[48].mxu0 %vm767_vm1, %v392_v3  ;;  %v760_v15 = vpack.c.bf16 %v723_v4, %v722_v61  ;;  %v660_v16 = vadd.f32 %v3910_v56, %v589_v5  ;;  %v661_v18 = vadd.f32 %v3910_v56, %v590_v6  ;;  %v3101_v19 = vunpack.c.l.bf16 %v3173_v2  ;;  %v3176_v4 = vld [vmem:[%s4450_s1 + $0xf8] sm:$0xff]  }
  0x7e   :  { %v356_v20 = vmax.f32 %v292_v9, 0.0  ;;  %v223_v21 = vmul.f32 %v3917_v10, %v2970_v12  ;;  %v293_v22 = vadd.f32 %v3934_v17, %v222_v13  ;;  %v3102_v23 = vunpack.c.h.bf16 %v3173_v2  ;;  %v3145_v12 = vld [vmem:[%s4453_s0 + $0xf8] sm:$0xff]  }
  0x7f   :  { %3297 = vmatprep.mubr.msk.bf16.mxu1 %vm767_vm1, %v760_v15  ;;  %v724_v24 = vmax.f32 %v660_v16, 0.0  ;;  %v725_v25 = vmax.f32 %v661_v18, 0.0  ;;  %v591_v26 = vmul.f32 %v3925_v1, %v3101_v19  ;;  %v2973_v27 = vunpack.c.l.bf16 %v3142_v14 }
  0x80   :  { %v393_v29 = vpack.c.bf16 %v356_v20, %v355_v11  ;;  %v294_v30 = vadd.f32 %v3934_v17, %v223_v21  ;;  %v357_v31 = vmax.f32 %v293_v22, 0.0  ;;  %v592_v32 = vmul.f32 %v3925_v1, %v3102_v23 }
  0x81   :  { %v761_v34 = vpack.c.bf16 %v725_v25, %v724_v24  ;;  %v662_v35 = vadd.f32 %v3910_v56, %v591_v26  ;;  %v2974_v36 = vunpack.c.h.bf16 %v3142_v14  ;;  %v224_v37 = vmul.f32 %v3917_v10, %v2973_v27 }
  0x82   :  { %3363 = vmatprep.mubr.msk.bf16.mxu0 %vm767_vm1, %v393_v29  ;;  %v358_v38 = vmax.f32 %v294_v30, 0.0  ;;  %v663_v39 = vadd.f32 %v3910_v56, %v592_v32  ;;  %v3105_v40 = vunpack.c.l.bf16 %v3174_v28  ;;  %v3106_v41 = vunpack.c.h.bf16 %v3174_v28 }
  0x83   :  { %3298 = vmatmul.mubr.msk.bf16.gmra.mrb[52].mxu1 %vm767_vm1, %v761_v34  ;;  %v726_v42 = vmax.f32 %v662_v35, 0.0  ;;  %v225_v43 = vmul.f32 %v3917_v10, %v2974_v36  ;;  %v295_v44 = vadd.f32 %v3934_v17, %v224_v37  ;;  %v2977_v45 = vunpack.c.l.bf16 %v3143_v33 }
  0x84   :  { %v394_v47 = vpack.c.bf16 %v358_v38, %v357_v31  ;;  %v727_v48 = vmax.f32 %v663_v39, 0.0  ;;  %v593_v49 = vmul.f32 %v3925_v1, %v3105_v40  ;;  %v594_v8 = vmul.f32 %v3925_v1, %v3106_v41 }
  0x85   :  { %v296_v50 = vadd.f32 %v3934_v17, %v225_v43  ;;  %v359_v51 = vmax.f32 %v295_v44, 0.0  ;;  %v2978_v52 = vunpack.c.h.bf16 %v3143_v33  ;;  %v226_v53 = vmul.f32 %v3917_v10, %v2977_v45 }
  0x86   :  { %3364 = vmatmul.mubr.msk.bf16.gmra.mrb[52].mxu0 %vm767_vm1, %v394_v47  ;;  %v762_v55 = vpack.c.bf16 %v727_v48, %v726_v42  ;;  %v664_v7 = vadd.f32 %v3910_v56, %v593_v49  ;;  %v665_v57 = vadd.f32 %v3910_v56, %v594_v8  ;;  %v3109_v58 = vunpack.c.l.bf16 %v3175_v46 }
  0x87   :  { %v360_v59 = vmax.f32 %v296_v50, 0.0  ;;  %v227_v60 = vmul.f32 %v3917_v10, %v2978_v52  ;;  %v297_v61 = vadd.f32 %v3934_v17, %v226_v53  ;;  %v3110_v62 = vunpack.c.h.bf16 %v3175_v46 }
  0x88   :  { %3301 = vmatprep.mubr.msk.bf16.mxu1 %vm767_vm1, %v762_v55  ;;  %v728_v63 = vmax.f32 %v664_v7, 0.0  ;;  %v729_v0 = vmax.f32 %v665_v57, 0.0  ;;  %v595_v2 = vmul.f32 %v3925_v1, %v3109_v58  ;;  %v2981_v3 = vunpack.c.l.bf16 %v3144_v54 }
  0x89   :  { %v395_v5 = vpack.c.bf16 %v360_v59, %v359_v51  ;;  %v298_v6 = vadd.f32 %v3934_v17, %v227_v60  ;;  %v361_v9 = vmax.f32 %v297_v61, 0.0  ;;  %v596_v11 = vmul.f32 %v3925_v1, %v3110_v62 }
  0x8a   :  { %v763_v13 = vpack.c.bf16 %v729_v0, %v728_v63  ;;  %v666_v14 = vadd.f32 %v3910_v56, %v595_v2  ;;  %v2982_v15 = vunpack.c.h.bf16 %v3144_v54  ;;  %v228_v16 = vmul.f32 %v3917_v10, %v2981_v3 }
  0x8b   :  { %3367 = vmatprep.mubr.msk.bf16.mxu0 %vm767_vm1, %v395_v5  ;;  %v362_v18 = vmax.f32 %v298_v6, 0.0  ;;  %v667_v19 = vadd.f32 %v3910_v56, %v596_v11  ;;  %v3113_v20 = vunpack.c.l.bf16 %v3176_v4  ;;  %v3114_v21 = vunpack.c.h.bf16 %v3176_v4 }
  0x8c   :  { %3302 = vmatmul.mubr.msk.bf16.gmra.mrb[56].mxu1 %vm767_vm1, %v763_v13  ;;  %v730_v22 = vmax.f32 %v666_v14, 0.0  ;;  %v229_v23 = vmul.f32 %v3917_v10, %v2982_v15  ;;  %v299_v24 = vadd.f32 %v3934_v17, %v228_v16  ;;  %v2985_v25 = vunpack.c.l.bf16 %v3145_v12 }
  0x8d   :  { %v396_v26 = vpack.c.bf16 %v362_v18, %v361_v9  ;;  %v731_v27 = vmax.f32 %v667_v19, 0.0  ;;  %v597_v28 = vmul.f32 %v3925_v1, %v3113_v20  ;;  %v598_v29 = vmul.f32 %v3925_v1, %v3114_v21 }
  0x8e   :  { %v300_v30 = vadd.f32 %v3934_v17, %v229_v23  ;;  %v363_v31 = vmax.f32 %v299_v24, 0.0  ;;  %v2986_v32 = vunpack.c.h.bf16 %v3145_v12  ;;  %v230_v33 = vmul.f32 %v3917_v10, %v2985_v25 }
  0x8f   :  { %3368 = vmatmul.mubr.msk.bf16.gmra.mrb[56].mxu0 %vm767_vm1, %v396_v26  ;;  %v764_v34 = vpack.c.bf16 %v731_v27, %v730_v22  ;;  %v668_v35 = vadd.f32 %v3910_v56, %v597_v28  ;;  %v669_v36 = vadd.f32 %v3910_v56, %v598_v29 }
  0x90   :  { %v364_v37 = vmax.f32 %v300_v30, 0.0  ;;  %v231_v38 = vmul.f32 %v3917_v10, %v2986_v32  ;;  %v301_v39 = vadd.f32 %v3934_v17, %v230_v33 }
  0x91   :  { %3305 = vmatprep.mubr.msk.bf16.mxu1 %vm767_vm1, %v764_v34  ;;  %v732_v1 = vmax.f32 %v668_v35, 0.0  ;;  %v733_v40 = vmax.f32 %v669_v36, 0.0 }
  0x92   :  { %v397_v41 = vpack.c.bf16 %v364_v37, %v363_v31  ;;  %v302_v42 = vadd.f32 %v3934_v17, %v231_v38  ;;  %v365_v43 = vmax.f32 %v301_v39, 0.0 }
  0x93   :  { %v765_v44 = vpack.c.bf16 %v733_v40, %v732_v1 }
  0x94   :  { %3371 = vmatprep.mubr.msk.bf16.mxu0 %vm767_vm1, %v397_v41  ;;  %v366_v45 = vmax.f32 %v302_v42, 0.0 }
  0x95   :  { %3306 = vmatmul.mubr.msk.bf16.gmra.mrb[60].mxu1 %vm767_vm1, %v765_v44 }
  0x96   :  { %v398_v56 = vpack.c.bf16 %v366_v45, %v365_v43 }
  0x98   :  { %3372 = vmatmul.mubr.msk.bf16.gmra.mrb[60].mxu0 %vm767_vm1, %v398_v56 }
  0xe2   :  { %v3247_v10 = vpop.f32.mrb[0].mxu1 }
  0xe3   :  { %v902_v48 = vpop.f32.mrb[1].mxu1 }
  0xe4   :  { %v3248_v50 = vpop.f32.mrb[2].mxu1 }
  0xe5   :  { %v3313_v46 = vpop.f32.mrb[0].mxu0  ;;  %v905_v53 = vpop.f32.mrb[3].mxu1 }
  0xe6   :  { %v1299_v47 = vadd.f32 %v3313_v46, %v3247_v10  ;;  %v1290_v49 = vpop.f32.mrb[1].mxu0 }
  0xe7   :  { %v1291_v8 = vadd.f32 %v1290_v49, %v902_v48  ;;  %v3314_v51 = vpop.f32.mrb[2].mxu0 }
  0xe8   :  { %v2797_v17 = vpack.c.bf16 %v1299_v47, %v1299_v47  ;;  %v1302_v52 = vadd.f32 %v3314_v51, %v3248_v50  ;;  %v1293_v54 = vpop.f32.mrb[3].mxu0 }
  0xe9   :  { %v2795_v55 = vpack.c.bf16 %v1291_v8, %v1291_v8  ;;  %v1294_v7 = vadd.f32 %v1293_v54, %v905_v53 }
  0xea   :  { %1804 = vst.msk [vmem:[%s4456_s8 + $0x8] sm:$0xf] %vm1801_vm2, %v2797_v17  ;;  %v1546_v57 = vpack.c.bf16 %v1302_v52, %v1299_v47  ;;  %v2798_v58 = vpack.c.bf16 %v1302_v52, %v1302_v52  ;;  %v3251_v3 = vpop.f32.mrb[4].mxu1 }
  0xeb   :  { %1802 = vst.msk [vmem:[%s4456_s8] sm:$0xf] %vm1801_vm2, %v2795_v55  ;;  %v1545_v59 = vpack.c.bf16 %v1294_v7, %v1291_v8  ;;  %v2796_v60 = vpack.c.bf16 %v1294_v7, %v1294_v7  ;;  %v918_v12 = vpop.f32.mrb[5].mxu1 }
  0xec   :  { %1805 = vst.msk [vmem:[%s4456_s8 + $0xc] sm:$0xf] %vm1801_vm2, %v2798_v58  ;;  %v2063_v61 = vunpack.c.l.bf16 %v1546_v57  ;;  %v2064_v62 = vunpack.c.h.bf16 %v1546_v57  ;;  %v3252_v18 = vpop.f32.mrb[6].mxu1 }
  0xed   :  { %1803 = vst.msk [vmem:[%s4456_s8 + $0x4] sm:$0xf] %vm1801_vm2, %v2796_v60  ;;  %v2061_v63 = vunpack.c.l.bf16 %v1545_v59  ;;  %v2062_v0 = vunpack.c.h.bf16 %v1545_v59  ;;  %v3317_v11 = vpop.f32.mrb[4].mxu0  ;;  %v921_v24 = vpop.f32.mrb[7].mxu1 }
  0xee   :  { %v2455_v2 = vmul.f32 %v2063_v61, %v2063_v61  ;;  %v2321_v13 = vsel %vm2317_vm3, %v2063_v61, 0.0  ;;  %v1315_v15 = vadd.f32 %v3317_v11, %v3251_v3  ;;  %v1306_v16 = vpop.f32.mrb[5].mxu0  ;;  %v2456_v19 = vmul.f32 %v2064_v62, %v2064_v62 }
  0xef   :  { %v2318_v4 = vsel %vm2317_vm3, %v2061_v63, 0.0  ;;  %v2319_v5 = vsel %vm2317_vm3, %v2062_v0, 0.0  ;;  %v2453_v6 = vmul.f32 %v2061_v63, %v2061_v63  ;;  %v2454_v9 = vmul.f32 %v2062_v0, %v2062_v0  ;;  %v3318_v23 = vpop.f32.mrb[6].mxu0 }
  0xf0   :  { %v2320_v14 = vadd.f32 %v2319_v5, %v2318_v4  ;;  %v1307_v22 = vadd.f32 %v1306_v16, %v918_v12  ;;  %v2801_v27 = vpack.c.bf16 %v1315_v15, %v1315_v15  ;;  %v1318_v28 = vadd.f32 %v3318_v23, %v3252_v18  ;;  %v1309_v29 = vpop.f32.mrb[7].mxu0 }
  0xf1   :  { %v2517_v20 = vsel %vm2317_vm3, %v2453_v6, 0.0  ;;  %v2518_v21 = vsel %vm2317_vm3, %v2454_v9, 0.0  ;;  %v2323_v30 = vsel %vm2317_vm3, %v2064_v62, 0.0  ;;  %v2520_v31 = vsel %vm2317_vm3, %v2455_v2, 0.0 }
  0xf2   :  { %v2322_v25 = vadd.f32 %v2321_v13, %v2320_v14  ;;  %v2519_v26 = vadd.f32 %v2518_v21, %v2517_v20  ;;  %v2799_v32 = vpack.c.bf16 %v1307_v22, %v1307_v22  ;;  %v1310_v33 = vadd.f32 %v1309_v29, %v921_v24  ;;  %1808 = vst.msk [vmem:[%s4456_s8 + $0x18] sm:$0xf] %vm1801_vm2, %v2801_v27 }
  0xf3   :  { %v1548_v35 = vpack.c.bf16 %v1318_v28, %v1315_v15  ;;  %v2802_v36 = vpack.c.bf16 %v1318_v28, %v1318_v28  ;;  %v2522_v38 = vsel %vm2317_vm3, %v2456_v19, 0.0  ;;  %v3255_v44 = vpop.f32.mrb[8].mxu1 }
  0xf4   :  { %v2521_v34 = vadd.f32 %v2520_v31, %v2519_v26  ;;  %v2324_v37 = vadd.f32 %v2323_v30, %v2322_v25  ;;  %1806 = vst.msk [vmem:[%s4456_s8 + $0x10] sm:$0xf] %vm1801_vm2, %v2799_v32  ;;  %v1547_v39 = vpack.c.bf16 %v1310_v33, %v1307_v22  ;;  %v2800_v1 = vpack.c.bf16 %v1310_v33, %v1310_v33  ;;  %v934_v45 = vpop.f32.mrb[9].mxu1 }
  0xf5   :  { %1809 = vst.msk [vmem:[%s4456_s8 + $0x1c] sm:$0xf] %vm1801_vm2, %v2802_v36  ;;  %v2067_v40 = vunpack.c.l.bf16 %v1548_v35  ;;  %v2068_v56 = vunpack.c.h.bf16 %v1548_v35  ;;  %v3321_v48 = vpop.f32.mrb[8].mxu0  ;;  %v3256_v49 = vpop.f32.mrb[10].mxu1 }
  0xf6   :  { %v2523_v41 = vadd.f32 %v2522_v38, %v2521_v34  ;;  %1807 = vst.msk [vmem:[%s4456_s8 + $0x14] sm:$0xf] %vm1801_vm2, %v2800_v1  ;;  %v2065_v42 = vunpack.c.l.bf16 %v1547_v39  ;;  %v2066_v43 = vunpack.c.h.bf16 %v1547_v39  ;;  %v1331_v51 = vadd.f32 %v3321_v48, %v3255_v44  ;;  %v1322_v17 = vpop.f32.mrb[9].mxu0  ;;  %v937_v52 = vpop.f32.mrb[11].mxu1 }
  0xf7   :  { %v2329_v8 = vsel %vm2317_vm3, %v2067_v40, 0.0  ;;  %v2459_v53 = vmul.f32 %v2067_v40, %v2067_v40  ;;  %v1323_v7 = vadd.f32 %v1322_v17, %v934_v45  ;;  %v3322_v57 = vpop.f32.mrb[10].mxu0  ;;  %v2331_v63 = vsel %vm2317_vm3, %v2068_v56, 0.0 }
  0xf8   :  { %v2325_v10 = vsel %vm2317_vm3, %v2065_v42, 0.0  ;;  %v2457_v46 = vmul.f32 %v2065_v42, %v2065_v42  ;;  %v2458_v47 = vmul.f32 %v2066_v43, %v2066_v43  ;;  %v2327_v54 = vsel %vm2317_vm3, %v2066_v43, 0.0  ;;  %v1325_v62 = vpop.f32.mrb[11].mxu0 }
  0xf9   :  { %v2326_v50 = vadd.f32 %v2325_v10, %v2324_v37  ;;  %v2805_v60 = vpack.c.bf16 %v1331_v51, %v1331_v51  ;;  %v1334_v61 = vadd.f32 %v3322_v57, %v3256_v49  ;;  %v2803_v2 = vpack.c.bf16 %v1323_v7, %v1323_v7 }
  0xfa   :  { %v2524_v55 = vsel %vm2317_vm3, %v2457_v46, 0.0  ;;  %v2526_v0 = vsel %vm2317_vm3, %v2458_v47, 0.0  ;;  %v1326_v3 = vadd.f32 %v1325_v62, %v937_v52  ;;  %v2460_v11 = vmul.f32 %v2068_v56, %v2068_v56 }
  0xfb   :  { %v2328_v58 = vadd.f32 %v2327_v54, %v2326_v50  ;;  %v2525_v59 = vadd.f32 %v2524_v55, %v2523_v41  ;;  %1812 = vst.msk [vmem:[%s4456_s8 + $0x28] sm:$0xf] %vm1801_vm2, %v2805_v60  ;;  %v1550_v6 = vpack.c.bf16 %v1334_v61, %v1331_v51  ;;  %v2806_v9 = vpack.c.bf16 %v1334_v61, %v1334_v61 }
  0xfc   :  { %v2528_v12 = vsel %vm2317_vm3, %v2459_v53, 0.0  ;;  %1810 = vst.msk [vmem:[%s4456_s8 + $0x20] sm:$0xf] %vm1801_vm2, %v2803_v2  ;;  %v1549_v13 = vpack.c.bf16 %v1326_v3, %v1323_v7  ;;  %v2804_v14 = vpack.c.bf16 %v1326_v3, %v1326_v3  ;;  %v3259_v19 = vpop.f32.mrb[12].mxu1  ;;  %v2530_v25 = vsel %vm2317_vm3, %v2460_v11, 0.0 }
  0xfd   :  { %v2330_v4 = vadd.f32 %v2329_v8, %v2328_v58  ;;  %v2527_v5 = vadd.f32 %v2526_v0, %v2525_v59  ;;  %1813 = vst.msk [vmem:[%s4456_s8 + $0x2c] sm:$0xf] %vm1801_vm2, %v2806_v9  ;;  %v2071_v16 = vunpack.c.l.bf16 %v1550_v6  ;;  %v950_v22 = vpop.f32.mrb[13].mxu1  ;;  %v2072_v23 = vunpack.c.h.bf16 %v1550_v6 }
  0xfe   :  { %1811 = vst.msk [vmem:[%s4456_s8 + $0x24] sm:$0xf] %vm1801_vm2, %v2804_v14  ;;  %v2069_v20 = vunpack.c.l.bf16 %v1549_v13  ;;  %v2070_v21 = vunpack.c.h.bf16 %v1549_v13  ;;  %v3260_v24 = vpop.f32.mrb[14].mxu1 }
  0xff   :  { %v2529_v15 = vadd.f32 %v2528_v12, %v2527_v5  ;;  %v2332_v18 = vadd.f32 %v2331_v63, %v2330_v4  ;;  %v3325_v29 = vpop.f32.mrb[12].mxu0  ;;  %v953_v30 = vpop.f32.mrb[15].mxu1  ;;  %v2337_v31 = vsel %vm2317_vm3, %v2071_v16, 0.0  ;;  %v2463_v32 = vmul.f32 %v2071_v16, %v2071_v16 }
 0x100   :  { %v2333_v26 = vsel %vm2317_vm3, %v2069_v20, 0.0  ;;  %v2461_v27 = vmul.f32 %v2069_v20, %v2069_v20  ;;  %v2462_v28 = vmul.f32 %v2070_v21, %v2070_v21  ;;  %v1338_v35 = vpop.f32.mrb[13].mxu0  ;;  %v2335_v36 = vsel %vm2317_vm3, %v2070_v21, 0.0 }
 0x101   :  { %v2334_v33 = vadd.f32 %v2333_v26, %v2332_v18  ;;  %v2531_v34 = vadd.f32 %v2530_v25, %v2529_v15  ;;  %v1347_v38 = vadd.f32 %v3325_v29, %v3259_v19  ;;  %v1339_v39 = vadd.f32 %v1338_v35, %v950_v22  ;;  %v3326_v1 = vpop.f32.mrb[14].mxu0 }
 0x102   :  { %v2532_v37 = vsel %vm2317_vm3, %v2461_v27, 0.0  ;;  %v2464_v40 = vmul.f32 %v2072_v23, %v2072_v23  ;;  %v1350_v43 = vadd.f32 %v3326_v1, %v3260_v24  ;;  %v1341_v44 = vpop.f32.mrb[15].mxu0  ;;  %v2534_v45 = vsel %vm2317_vm3, %v2462_v28, 0.0 }
 0x103   :  { %v2336_v41 = vadd.f32 %v2335_v36, %v2334_v33  ;;  %v2533_v42 = vadd.f32 %v2532_v37, %v2531_v34  ;;  %v2809_v56 = vpack.c.bf16 %v1347_v38, %v1347_v38  ;;  %v2807_v10 = vpack.c.bf16 %v1339_v39, %v1339_v39 }
 0x104   :  { %v1342_v46 = vadd.f32 %v1341_v44, %v953_v30  ;;  %v1552_v49 = vpack.c.bf16 %v1350_v43, %v1347_v38  ;;  %v2810_v8 = vpack.c.bf16 %v1350_v43, %v1350_v43  ;;  %v2339_v50 = vsel %vm2317_vm3, %v2072_v23, 0.0 }
 0x105   :  { %v2338_v47 = vadd.f32 %v2337_v31, %v2336_v41  ;;  %v2535_v48 = vadd.f32 %v2534_v45, %v2533_v42  ;;  %v2536_v51 = vsel %vm2317_vm3, %v2463_v32, 0.0  ;;  %1816 = vst.msk [vmem:[%s4456_s8 + $0x38] sm:$0xf] %vm1801_vm2, %v2809_v56  ;;  %1814 = vst.msk [vmem:[%s4456_s8 + $0x30] sm:$0xf] %vm1801_vm2, %v2807_v10  ;;  %v3263_v53 = vpop.f32.mrb[16].mxu1 }
 0x106   :  { %v1551_v17 = vpack.c.bf16 %v1342_v46, %v1339_v39  ;;  %v2808_v52 = vpack.c.bf16 %v1342_v46, %v1342_v46  ;;  %1817 = vst.msk [vmem:[%s4456_s8 + $0x3c] sm:$0xf] %vm1801_vm2, %v2810_v8  ;;  %v2075_v55 = vunpack.c.l.bf16 %v1552_v49  ;;  %v966_v57 = vpop.f32.mrb[17].mxu1  ;;  %v2538_v61 = vsel %vm2317_vm3, %v2464_v40, 0.0 }
 0x107   :  { %v2537_v54 = vadd.f32 %v2536_v51, %v2535_v48  ;;  %v2340_v7 = vadd.f32 %v2339_v50, %v2338_v47  ;;  %v3264_v60 = vpop.f32.mrb[18].mxu1  ;;  %v2076_v0 = vunpack.c.h.bf16 %v1552_v49 }
 0x108   :  { %1815 = vst.msk [vmem:[%s4456_s8 + $0x34] sm:$0xf] %vm1801_vm2, %v2808_v52  ;;  %v2073_v58 = vunpack.c.l.bf16 %v1551_v17  ;;  %v2074_v59 = vunpack.c.h.bf16 %v1551_v17  ;;  %v3329_v62 = vpop.f32.mrb[16].mxu0  ;;  %v969_v63 = vpop.f32.mrb[19].mxu1  ;;  %v2345_v6 = vsel %vm2317_vm3, %v2075_v55, 0.0  ;;  %v2467_v9 = vmul.f32 %v2075_v55, %v2075_v55 }
 0x109   :  { %v1354_v5 = vpop.f32.mrb[17].mxu0  ;;  %v2539_v12 = vadd.f32 %v2538_v61, %v2537_v54  ;;  %v1363_v16 = vadd.f32 %v3329_v62, %v3263_v53  ;;  %v2468_v24 = vmul.f32 %v2076_v0, %v2076_v0  ;;  %v2347_v33 = vsel %vm2317_vm3, %v2076_v0, 0.0 }
 0x10a   :  { %v2341_v2 = vsel %vm2317_vm3, %v2073_v58, 0.0  ;;  %v2465_v3 = vmul.f32 %v2073_v58, %v2073_v58  ;;  %v2466_v4 = vmul.f32 %v2074_v59, %v2074_v59  ;;  %v3330_v13 = vpop.f32.mrb[18].mxu0  ;;  %v2343_v14 = vsel %vm2317_vm3, %v2074_v59, 0.0 }
 0x10b   :  { %v2342_v11 = vadd.f32 %v2341_v2, %v2340_v7  ;;  %v1355_v18 = vadd.f32 %v1354_v5, %v966_v57  ;;  %v1357_v19 = vpop.f32.mrb[19].mxu0  ;;  %v1366_v22 = vadd.f32 %v3330_v13, %v3264_v60  ;;  %v2813_v26 = vpack.c.bf16 %v1363_v16, %v1363_v16 }
 0x10c   :  { %v2540_v15 = vsel %vm2317_vm3, %v2465_v3, 0.0  ;;  %v1358_v23 = vadd.f32 %v1357_v19, %v969_v63  ;;  %v2542_v25 = vsel %vm2317_vm3, %v2466_v4, 0.0  ;;  %v2544_v34 = vsel %vm2317_vm3, %v2467_v9, 0.0 }
 0x10d   :  { %v2344_v20 = vadd.f32 %v2343_v14, %v2342_v11  ;;  %v2541_v21 = vadd.f32 %v2540_v15, %v2539_v12  ;;  %v2811_v27 = vpack.c.bf16 %v1355_v18, %v1355_v18  ;;  %v1554_v30 = vpack.c.bf16 %v1366_v22, %v1363_v16  ;;  %1820 = vst.msk [vmem:[%s4456_s8 + $0x48] sm:$0xf] %vm1801_vm2, %v2813_v26 }
 0x10e   :  { %v2814_v31 = vpack.c.bf16 %v1366_v22, %v1366_v22  ;;  %v3267_v32 = vpop.f32.mrb[20].mxu1  ;;  %v1553_v35 = vpack.c.bf16 %v1358_v23, %v1355_v18  ;;  %v2812_v36 = vpack.c.bf16 %v1358_v23, %v1358_v23  ;;  %v2546_v45 = vsel %vm2317_vm3, %v2468_v24, 0.0 }
 0x10f   :  { %v2346_v28 = vadd.f32 %v2345_v6, %v2344_v20  ;;  %v2543_v29 = vadd.f32 %v2542_v25, %v2541_v21  ;;  %1818 = vst.msk [vmem:[%s4456_s8 + $0x40] sm:$0xf] %vm1801_vm2, %v2811_v27  ;;  %v982_v37 = vpop.f32.mrb[21].mxu1  ;;  %v2079_v39 = vunpack.c.l.bf16 %v1554_v30  ;;  %v2080_v10 = vunpack.c.h.bf16 %v1554_v30 }
 0x110   :  { %1821 = vst.msk [vmem:[%s4456_s8 + $0x4c] sm:$0xf] %vm1801_vm2, %v2814_v31  ;;  %v3268_v40 = vpop.f32.mrb[22].mxu1  ;;  %1819 = vst.msk [vmem:[%s4456_s8 + $0x44] sm:$0xf] %vm1801_vm2, %v2812_v36  ;;  %v2077_v41 = vunpack.c.l.bf16 %v1553_v35  ;;  %v2078_v42 = vunpack.c.h.bf16 %v1553_v35 }
 0x111   :  { %v2545_v38 = vadd.f32 %v2544_v34, %v2543_v29  ;;  %v2348_v1 = vadd.f32 %v2347_v33, %v2346_v28  ;;  %v3333_v43 = vpop.f32.mrb[20].mxu0  ;;  %v985_v44 = vpop.f32.mrb[23].mxu1  ;;  %v2353_v8 = vsel %vm2317_vm3, %v2079_v39, 0.0  ;;  %v2471_v50 = vmul.f32 %v2079_v39, %v2079_v39 }
 0x112   :  { %v1370_v56 = vpop.f32.mrb[21].mxu0  ;;  %v2349_v46 = vsel %vm2317_vm3, %v2077_v41, 0.0  ;;  %v2469_v47 = vmul.f32 %v2077_v41, %v2077_v41  ;;  %v2470_v48 = vmul.f32 %v2078_v42, %v2078_v42  ;;  %v2351_v53 = vsel %vm2317_vm3, %v2078_v42, 0.0 }
 0x113   :  { %v3334_v49 = vpop.f32.mrb[22].mxu0  ;;  %v2350_v51 = vadd.f32 %v2349_v46, %v2348_v1  ;;  %v2547_v17 = vadd.f32 %v2546_v45, %v2545_v38  ;;  %v1379_v55 = vadd.f32 %v3333_v43, %v3267_v32  ;;  %v1371_v7 = vadd.f32 %v1370_v56, %v982_v37 }
 0x114   :  { %v1373_v52 = vpop.f32.mrb[23].mxu0  ;;  %v2548_v54 = vsel %vm2317_vm3, %v2469_v47, 0.0  ;;  %v1382_v59 = vadd.f32 %v3334_v49, %v3268_v40  ;;  %v2472_v61 = vmul.f32 %v2080_v10, %v2080_v10  ;;  %v2550_v62 = vsel %vm2317_vm3, %v2470_v48, 0.0 }
 0x115   :  { %v2352_v57 = vadd.f32 %v2351_v53, %v2350_v51  ;;  %v2549_v58 = vadd.f32 %v2548_v54, %v2547_v17  ;;  %v1374_v60 = vadd.f32 %v1373_v52, %v985_v44  ;;  %v2817_v63 = vpack.c.bf16 %v1379_v55, %v1379_v55 }
 0x116   :  { %v2815_v0 = vpack.c.bf16 %v1371_v7, %v1371_v7  ;;  %v1556_v5 = vpack.c.bf16 %v1382_v59, %v1379_v55  ;;  %v2818_v6 = vpack.c.bf16 %v1382_v59, %v1382_v59  ;;  %v2355_v11 = vsel %vm2317_vm3, %v2080_v10, 0.0 }
 0x117   :  { %v3271_v2 = vpop.f32.mrb[24].mxu1  ;;  %v2354_v3 = vadd.f32 %v2353_v8, %v2352_v57  ;;  %v2551_v4 = vadd.f32 %v2550_v62, %v2549_v58  ;;  %v2552_v12 = vsel %vm2317_vm3, %v2471_v50, 0.0  ;;  %1824 = vst.msk [vmem:[%s4456_s8 + $0x58] sm:$0xf] %vm1801_vm2, %v2817_v63  ;;  %v1555_v13 = vpack.c.bf16 %v1374_v60, %v1371_v7 }
 0x118   :  { %v998_v9 = vpop.f32.mrb[25].mxu1  ;;  %1822 = vst.msk [vmem:[%s4456_s8 + $0x50] sm:$0xf] %vm1801_vm2, %v2815_v0  ;;  %v2816_v14 = vpack.c.bf16 %v1374_v60, %v1374_v60  ;;  %1825 = vst.msk [vmem:[%s4456_s8 + $0x5c] sm:$0xf] %vm1801_vm2, %v2818_v6  ;;  %v2083_v18 = vunpack.c.l.bf16 %v1556_v5  ;;  %v2554_v26 = vsel %vm2317_vm3, %v2472_v61, 0.0  ;;  %v2084_v28 = vunpack.c.h.bf16 %v1556_v5 }
 0x119   :  { %v3272_v15 = vpop.f32.mrb[26].mxu1  ;;  %v2553_v16 = vadd.f32 %v2552_v12, %v2551_v4  ;;  %v2356_v19 = vadd.f32 %v2355_v11, %v2354_v3  ;;  %v2081_v22 = vunpack.c.l.bf16 %v1555_v13  ;;  %v2082_v23 = vunpack.c.h.bf16 %v1555_v13 }
 0x11a   :  { %v3337_v20 = vpop.f32.mrb[24].mxu0  ;;  %v1001_v21 = vpop.f32.mrb[27].mxu1  ;;  %1823 = vst.msk [vmem:[%s4456_s8 + $0x54] sm:$0xf] %vm1801_vm2, %v2816_v14  ;;  %v2475_v33 = vmul.f32 %v2083_v18, %v2083_v18  ;;  %v2361_v44 = vsel %vm2317_vm3, %v2083_v18, 0.0  ;;  %v2476_v45 = vmul.f32 %v2084_v28, %v2084_v28  ;;  %v2363_v51 = vsel %vm2317_vm3, %v2084_v28, 0.0 }
 0x11b   :  { %v1395_v24 = vadd.f32 %v3337_v20, %v3271_v2  ;;  %v1386_v25 = vpop.f32.mrb[25].mxu0  ;;  %v2357_v29 = vsel %vm2317_vm3, %v2081_v22, 0.0  ;;  %v2473_v30 = vmul.f32 %v2081_v22, %v2081_v22  ;;  %v2474_v31 = vmul.f32 %v2082_v23, %v2082_v23 }
 0x11c   :  { %v3338_v27 = vpop.f32.mrb[26].mxu0  ;;  %v2358_v34 = vadd.f32 %v2357_v29, %v2356_v19  ;;  %v2555_v35 = vadd.f32 %v2554_v26, %v2553_v16  ;;  %v2359_v36 = vsel %vm2317_vm3, %v2082_v23, 0.0  ;;  %v1387_v39 = vadd.f32 %v1386_v25, %v998_v9 }
 0x11d   :  { %v1389_v32 = vpop.f32.mrb[27].mxu0  ;;  %v2556_v37 = vsel %vm2317_vm3, %v2473_v30, 0.0  ;;  %v2821_v38 = vpack.c.bf16 %v1395_v24, %v1395_v24  ;;  %v1398_v41 = vadd.f32 %v3338_v27, %v3272_v15  ;;  %v2558_v56 = vsel %vm2317_vm3, %v2474_v31, 0.0 }
 0x11e   :  { %v2360_v1 = vadd.f32 %v2359_v36, %v2358_v34  ;;  %v2557_v40 = vadd.f32 %v2556_v37, %v2555_v35  ;;  %v1390_v42 = vadd.f32 %v1389_v32, %v1001_v21  ;;  %v2819_v10 = vpack.c.bf16 %v1387_v39, %v1387_v39 }
 0x11f   :  { %1828 = vst.msk [vmem:[%s4456_s8 + $0x68] sm:$0xf] %vm1801_vm2, %v2821_v38  ;;  %v1558_v49 = vpack.c.bf16 %v1398_v41, %v1395_v24  ;;  %v2822_v8 = vpack.c.bf16 %v1398_v41, %v1398_v41  ;;  %v2560_v17 = vsel %vm2317_vm3, %v2475_v33, 0.0  ;;  %v2562_v2 = vsel %vm2317_vm3, %v2476_v45, 0.0 }
 0x120   :  { %v3275_v43 = vpop.f32.mrb[28].mxu1  ;;  %v2362_v47 = vadd.f32 %v2361_v44, %v2360_v1  ;;  %v2559_v48 = vadd.f32 %v2558_v56, %v2557_v40  ;;  %1826 = vst.msk [vmem:[%s4456_s8 + $0x60] sm:$0xf] %vm1801_vm2, %v2819_v10  ;;  %v1557_v52 = vpack.c.bf16 %v1390_v42, %v1387_v39  ;;  %v2820_v53 = vpack.c.bf16 %v1390_v42, %v1390_v42 }
 0x121   :  { %v1014_v46 = vpop.f32.mrb[29].mxu1  ;;  %1829 = vst.msk [vmem:[%s4456_s8 + $0x6c] sm:$0xf] %vm1801_vm2, %v2822_v8  ;;  %v2087_v57 = vunpack.c.l.bf16 %v1558_v49  ;;  %v2088_v4 = vunpack.c.h.bf16 %v1558_v49 }
 0x122   :  { %v3276_v50 = vpop.f32.mrb[30].mxu1  ;;  %v2561_v7 = vadd.f32 %v2560_v17, %v2559_v48  ;;  %v2364_v58 = vadd.f32 %v2363_v51, %v2362_v47  ;;  %1827 = vst.msk [vmem:[%s4456_s8 + $0x64] sm:$0xf] %vm1801_vm2, %v2820_v53  ;;  %v2085_v60 = vunpack.c.l.bf16 %v1557_v52  ;;  %v2086_v61 = vunpack.c.h.bf16 %v1557_v52 }
 0x123   :  { %v3341_v54 = vpop.f32.mrb[28].mxu0  ;;  %v1017_v55 = vpop.f32.mrb[31].mxu1  ;;  %v2479_v11 = vmul.f32 %v2087_v57, %v2087_v57  ;;  %v2369_v25 = vsel %vm2317_vm3, %v2087_v57, 0.0  ;;  %v2371_v26 = vsel %vm2317_vm3, %v2088_v4, 0.0  ;;  %v2480_v27 = vmul.f32 %v2088_v4, %v2088_v4 }
 0x124   :  { %v1402_v59 = vpop.f32.mrb[29].mxu0  ;;  %v1411_v62 = vadd.f32 %v3341_v54, %v3275_v43  ;;  %v2365_v5 = vsel %vm2317_vm3, %v2085_v60, 0.0  ;;  %v2477_v6 = vmul.f32 %v2085_v60, %v2085_v60  ;;  %v2478_v9 = vmul.f32 %v2086_v61, %v2086_v61 }
 0x125   :  { %v1403_v63 = vadd.f32 %v1402_v59, %v1014_v46  ;;  %v3342_v0 = vpop.f32.mrb[30].mxu0  ;;  %v2366_v12 = vadd.f32 %v2365_v5, %v2364_v58  ;;  %v2563_v13 = vadd.f32 %v2562_v2, %v2561_v7  ;;  %v2367_v14 = vsel %vm2317_vm3, %v2086_v61, 0.0 }
 0x126   :  { %v1405_v3 = vpop.f32.mrb[31].mxu0  ;;  %v2564_v15 = vsel %vm2317_vm3, %v2477_v6, 0.0  ;;  %v2825_v16 = vpack.c.bf16 %v1411_v62, %v1411_v62  ;;  %v1414_v22 = vadd.f32 %v3342_v0, %v3276_v50  ;;  %v2566_v28 = vsel %vm2317_vm3, %v2478_v9, 0.0 }
 0x127   :  { %v2823_v18 = vpack.c.bf16 %v1403_v63, %v1403_v63  ;;  %v2368_v20 = vadd.f32 %v2367_v14, %v2366_v12  ;;  %v2565_v21 = vadd.f32 %v2564_v15, %v2563_v13  ;;  %v1406_v23 = vadd.f32 %v1405_v3, %v1017_v55 }
 0x128   :  { %1832 = vst.msk [vmem:[%s4456_s8 + $0x78] sm:$0xf] %vm1801_vm2, %v2825_v16  ;;  %v1560_v32 = vpack.c.bf16 %v1414_v22, %v1411_v62  ;;  %v2826_v33 = vpack.c.bf16 %v1414_v22, %v1414_v22  ;;  %v2568_v36 = vsel %vm2317_vm3, %v2479_v11, 0.0  ;;  %v2570_v48 = vsel %vm2317_vm3, %v2480_v27, 0.0 }
 0x129   :  { %v3279_v19 = vpop.f32.mrb[32].mxu1  ;;  %1830 = vst.msk [vmem:[%s4456_s8 + $0x70] sm:$0xf] %vm1801_vm2, %v2823_v18  ;;  %v2370_v30 = vadd.f32 %v2369_v25, %v2368_v20  ;;  %v2567_v31 = vadd.f32 %v2566_v28, %v2565_v21  ;;  %v1559_v37 = vpack.c.bf16 %v1406_v23, %v1403_v63  ;;  %v2824_v38 = vpack.c.bf16 %v1406_v23, %v1406_v23 }
 0x12a   :  { %v1030_v24 = vpop.f32.mrb[33].mxu1  ;;  %1833 = vst.msk [vmem:[%s4456_s8 + $0x7c] sm:$0xf] %vm1801_vm2, %v2826_v33  ;;  %v2091_v41 = vunpack.c.l.bf16 %v1560_v32  ;;  %v2092_v47 = vunpack.c.h.bf16 %v1560_v32 }
 0x12b   :  { %v3280_v29 = vpop.f32.mrb[34].mxu1  ;;  %v2569_v40 = vadd.f32 %v2568_v36, %v2567_v31  ;;  %v2372_v42 = vadd.f32 %v2371_v26, %v2370_v30  ;;  %1831 = vst.msk [vmem:[%s4456_s8 + $0x74] sm:$0xf] %vm1801_vm2, %v2824_v38  ;;  %v2089_v44 = vunpack.c.l.bf16 %v1559_v37  ;;  %v2090_v45 = vunpack.c.h.bf16 %v1559_v37 }
 0x12c   :  { %v3345_v34 = vpop.f32.mrb[32].mxu0  ;;  %v1033_v35 = vpop.f32.mrb[35].mxu1  ;;  %v2377_v51 = vsel %vm2317_vm3, %v2091_v41, 0.0  ;;  %v2483_v17 = vmul.f32 %v2091_v41, %v2091_v41  ;;  %v2379_v60 = vsel %vm2317_vm3, %v2092_v47, 0.0  ;;  %v2484_v2 = vmul.f32 %v2092_v47, %v2092_v47 }
 0x12d   :  { %v1427_v39 = vadd.f32 %v3345_v34, %v3279_v19  ;;  %v1418_v1 = vpop.f32.mrb[33].mxu0  ;;  %v2373_v49 = vsel %vm2317_vm3, %v2089_v44, 0.0  ;;  %v2481_v8 = vmul.f32 %v2089_v44, %v2089_v44  ;;  %v2482_v50 = vmul.f32 %v2090_v45, %v2090_v45 }
 0x12e   :  { %v3346_v43 = vpop.f32.mrb[34].mxu0  ;;  %v1419_v10 = vadd.f32 %v1418_v1, %v1030_v24  ;;  %v2374_v52 = vadd.f32 %v2373_v49, %v2372_v42  ;;  %v2571_v53 = vadd.f32 %v2570_v48, %v2569_v40  ;;  %v2375_v55 = vsel %vm2317_vm3, %v2090_v45, 0.0 }
 0x12f   :  { %v2829_v56 = vpack.c.bf16 %v1427_v39, %v1427_v39  ;;  %v1421_v46 = vpop.f32.mrb[35].mxu0  ;;  %v2572_v7 = vsel %vm2317_vm3, %v2481_v8, 0.0  ;;  %v1430_v58 = vadd.f32 %v3346_v43, %v3280_v29  ;;  %v2574_v3 = vsel %vm2317_vm3, %v2482_v50, 0.0 }
 0x130   :  { %v2827_v57 = vpack.c.bf16 %v1419_v10, %v1419_v10  ;;  %v2376_v61 = vadd.f32 %v2375_v55, %v2374_v52  ;;  %v2573_v62 = vadd.f32 %v2572_v7, %v2571_v53  ;;  %v1422_v63 = vadd.f32 %v1421_v46, %v1033_v35 }
 0x131   :  { %1836 = vst.msk [vmem:[%s4456_s8 + $0x88] sm:$0xf] %vm1801_vm2, %v2829_v56  ;;  %v1562_v4 = vpack.c.bf16 %v1430_v58, %v1427_v39  ;;  %v2830_v5 = vpack.c.bf16 %v1430_v58, %v1430_v58  ;;  %v2576_v16 = vsel %vm2317_vm3, %v2483_v17, 0.0  ;;  %v2578_v27 = vsel %vm2317_vm3, %v2484_v2, 0.0 }
 0x132   :  { %v3283_v54 = vpop.f32.mrb[36].mxu1  ;;  %1834 = vst.msk [vmem:[%s4456_s8 + $0x80] sm:$0xf] %vm1801_vm2, %v2827_v57  ;;  %v2378_v11 = vadd.f32 %v2377_v51, %v2376_v61  ;;  %v2575_v12 = vadd.f32 %v2574_v3, %v2573_v62  ;;  %v1561_v13 = vpack.c.bf16 %v1422_v63, %v1419_v10  ;;  %v2828_v14 = vpack.c.bf16 %v1422_v63, %v1422_v63 }
 0x133   :  { %v1046_v59 = vpop.f32.mrb[37].mxu1  ;;  %1837 = vst.msk [vmem:[%s4456_s8 + $0x8c] sm:$0xf] %vm1801_vm2, %v2830_v5  ;;  %v2095_v18 = vunpack.c.l.bf16 %v1562_v4  ;;  %v2096_v28 = vunpack.c.h.bf16 %v1562_v4 }
 0x134   :  { %v3284_v0 = vpop.f32.mrb[38].mxu1  ;;  %v2577_v22 = vadd.f32 %v2576_v16, %v2575_v12  ;;  %1835 = vst.msk [vmem:[%s4456_s8 + $0x84] sm:$0xf] %vm1801_vm2, %v2828_v14  ;;  %v2093_v23 = vunpack.c.l.bf16 %v1561_v13  ;;  %v2094_v24 = vunpack.c.h.bf16 %v1561_v13  ;;  %v2380_v25 = vadd.f32 %v2379_v60, %v2378_v11 }
 0x135   :  { %v3349_v6 = vpop.f32.mrb[36].mxu0  ;;  %v1049_v9 = vpop.f32.mrb[39].mxu1  ;;  %v2487_v29 = vmul.f32 %v2095_v18, %v2095_v18  ;;  %v2385_v33 = vsel %vm2317_vm3, %v2095_v18, 0.0  ;;  %v2387_v56 = vsel %vm2317_vm3, %v2096_v28, 0.0  ;;  %v2488_v10 = vmul.f32 %v2096_v28, %v2096_v28 }
 0x136   :  { %v1434_v15 = vpop.f32.mrb[37].mxu0  ;;  %v1443_v19 = vadd.f32 %v3349_v6, %v3283_v54  ;;  %v2381_v30 = vsel %vm2317_vm3, %v2093_v23, 0.0  ;;  %v2485_v31 = vmul.f32 %v2093_v23, %v2093_v23  ;;  %v2486_v32 = vmul.f32 %v2094_v24, %v2094_v24 }
 0x137   :  { %v1435_v20 = vadd.f32 %v1434_v15, %v1046_v59  ;;  %v3350_v21 = vpop.f32.mrb[38].mxu0  ;;  %v2382_v34 = vadd.f32 %v2381_v30, %v2380_v25  ;;  %v2579_v35 = vadd.f32 %v2578_v27, %v2577_v22  ;;  %v2383_v37 = vsel %vm2317_vm3, %v2094_v24, 0.0 }
 0x138   :  { %v1437_v26 = vpop.f32.mrb[39].mxu0  ;;  %v2580_v38 = vsel %vm2317_vm3, %v2485_v31, 0.0  ;;  %v2833_v39 = vpack.c.bf16 %v1443_v19, %v1443_v19  ;;  %v1446_v43 = vadd.f32 %v3350_v21, %v3284_v0  ;;  %v2584_v46 = vsel %vm2317_vm3, %v2487_v29, 0.0 }
 0x139   :  { %v2831_v1 = vpack.c.bf16 %v1435_v20, %v1435_v20  ;;  %v2384_v41 = vadd.f32 %v2383_v37, %v2382_v34  ;;  %v2581_v42 = vadd.f32 %v2580_v38, %v2579_v35  ;;  %v1438_v44 = vadd.f32 %v1437_v26, %v1049_v9 }
 0x13a   :  { %v2582_v47 = vsel %vm2317_vm3, %v2486_v32, 0.0  ;;  %1840 = vst.msk [vmem:[%s4456_s8 + $0x98] sm:$0xf] %vm1801_vm2, %v2833_v39  ;;  %v1564_v51 = vpack.c.bf16 %v1446_v43, %v1443_v19  ;;  %v2834_v17 = vpack.c.bf16 %v1446_v43, %v1446_v43  ;;  %v2586_v4 = vsel %vm2317_vm3, %v2488_v10, 0.0 }
 0x13b   :  { %v3287_v36 = vpop.f32.mrb[40].mxu1  ;;  %1838 = vst.msk [vmem:[%s4456_s8 + $0x90] sm:$0xf] %vm1801_vm2, %v2831_v1  ;;  %v2386_v8 = vadd.f32 %v2385_v33, %v2384_v41  ;;  %v2583_v50 = vadd.f32 %v2582_v47, %v2581_v42  ;;  %v1563_v53 = vpack.c.bf16 %v1438_v44, %v1435_v20  ;;  %v2832_v54 = vpack.c.bf16 %v1438_v44, %v1438_v44 }
 0x13c   :  { %v1062_v40 = vpop.f32.mrb[41].mxu1  ;;  %1841 = vst.msk [vmem:[%s4456_s8 + $0x9c] sm:$0xf] %vm1801_vm2, %v2834_v17  ;;  %v2099_v59 = vunpack.c.l.bf16 %v1564_v51  ;;  %v2100_v60 = vunpack.c.h.bf16 %v1564_v51 }
 0x13d   :  { %v3288_v45 = vpop.f32.mrb[42].mxu1  ;;  %v2585_v58 = vadd.f32 %v2584_v46, %v2583_v50  ;;  %v2388_v61 = vadd.f32 %v2387_v56, %v2386_v8  ;;  %1839 = vst.msk [vmem:[%s4456_s8 + $0x94] sm:$0xf] %vm1801_vm2, %v2832_v54  ;;  %v2097_v63 = vunpack.c.l.bf16 %v1563_v53  ;;  %v2098_v0 = vunpack.c.h.bf16 %v1563_v53 }
 0x13e   :  { %v3353_v48 = vpop.f32.mrb[40].mxu0  ;;  %v1065_v49 = vpop.f32.mrb[43].mxu1  ;;  %v2491_v5 = vmul.f32 %v2099_v59, %v2099_v59  ;;  %v2393_v6 = vsel %vm2317_vm3, %v2099_v59, 0.0  ;;  %v2395_v14 = vsel %vm2317_vm3, %v2100_v60, 0.0  ;;  %v2492_v15 = vmul.f32 %v2100_v60, %v2100_v60 }
 0x13f   :  { %v1450_v52 = vpop.f32.mrb[41].mxu0  ;;  %v1459_v55 = vadd.f32 %v3353_v48, %v3287_v36  ;;  %v2389_v9 = vsel %vm2317_vm3, %v2097_v63, 0.0  ;;  %v2489_v11 = vmul.f32 %v2097_v63, %v2097_v63  ;;  %v2490_v12 = vmul.f32 %v2098_v0, %v2098_v0 }
 0x140   :  { %v1451_v7 = vadd.f32 %v1450_v52, %v1062_v40  ;;  %v3354_v57 = vpop.f32.mrb[42].mxu0  ;;  %v2390_v16 = vadd.f32 %v2389_v9, %v2388_v61  ;;  %v2587_v18 = vadd.f32 %v2586_v4, %v2585_v58  ;;  %v2391_v20 = vsel %vm2317_vm3, %v2098_v0, 0.0 }
 0x141   :  { %v1453_v62 = vpop.f32.mrb[43].mxu0  ;;  %v2837_v2 = vpack.c.bf16 %v1459_v55, %v1459_v55  ;;  %v2588_v21 = vsel %vm2317_vm3, %v2489_v11, 0.0  ;;  %v1462_v22 = vadd.f32 %v3354_v57, %v3288_v45  ;;  %v2592_v25 = vsel %vm2317_vm3, %v2491_v5, 0.0 }
 0x142   :  { %v2835_v3 = vpack.c.bf16 %v1451_v7, %v1451_v7  ;;  %v1454_v23 = vadd.f32 %v1453_v62, %v1065_v49  ;;  %v2392_v26 = vadd.f32 %v2391_v20, %v2390_v16  ;;  %v2589_v27 = vadd.f32 %v2588_v21, %v2587_v18 }
 0x143   :  { %1844 = vst.msk [vmem:[%s4456_s8 + $0xa8] sm:$0xf] %vm1801_vm2, %v2837_v2  ;;  %v2590_v28 = vsel %vm2317_vm3, %v2490_v12, 0.0  ;;  %v1566_v31 = vpack.c.bf16 %v1462_v22, %v1459_v55  ;;  %v2838_v32 = vpack.c.bf16 %v1462_v22, %v1462_v22  ;;  %v2594_v47 = vsel %vm2317_vm3, %v2492_v15, 0.0 }
 0x144   :  { %1842 = vst.msk [vmem:[%s4456_s8 + $0xa0] sm:$0xf] %vm1801_vm2, %v2835_v3  ;;  %v3291_v13 = vpop.f32.mrb[44].mxu1  ;;  %v1565_v33 = vpack.c.bf16 %v1454_v23, %v1451_v7  ;;  %v2836_v34 = vpack.c.bf16 %v1454_v23, %v1454_v23  ;;  %v2394_v36 = vadd.f32 %v2393_v6, %v2392_v26  ;;  %v2591_v37 = vadd.f32 %v2590_v28, %v2589_v27 }
 0x145   :  { %v1078_v19 = vpop.f32.mrb[45].mxu1  ;;  %1845 = vst.msk [vmem:[%s4456_s8 + $0xac] sm:$0xf] %vm1801_vm2, %v2838_v32  ;;  %v2103_v40 = vunpack.c.l.bf16 %v1566_v31  ;;  %v2104_v41 = vunpack.c.h.bf16 %v1566_v31 }
 0x146   :  { %v3292_v24 = vpop.f32.mrb[46].mxu1  ;;  %1843 = vst.msk [vmem:[%s4456_s8 + $0xa4] sm:$0xf] %vm1801_vm2, %v2836_v34  ;;  %v2101_v42 = vunpack.c.l.bf16 %v1565_v33  ;;  %v2102_v43 = vunpack.c.h.bf16 %v1565_v33  ;;  %v2593_v45 = vadd.f32 %v2592_v25, %v2591_v37  ;;  %v2396_v56 = vadd.f32 %v2395_v14, %v2394_v36 }
 0x147   :  { %v3357_v29 = vpop.f32.mrb[44].mxu0  ;;  %v1081_v30 = vpop.f32.mrb[47].mxu1  ;;  %v2495_v48 = vmul.f32 %v2103_v40, %v2103_v40  ;;  %v2401_v49 = vsel %vm2317_vm3, %v2103_v40, 0.0  ;;  %v2403_v52 = vsel %vm2317_vm3, %v2104_v41, 0.0  ;;  %v2496_v53 = vmul.f32 %v2104_v41, %v2104_v41 }
 0x148   :  { %v1466_v35 = vpop.f32.mrb[45].mxu0  ;;  %v1475_v38 = vadd.f32 %v3357_v29, %v3291_v13  ;;  %v2397_v8 = vsel %vm2317_vm3, %v2101_v42, 0.0  ;;  %v2493_v50 = vmul.f32 %v2101_v42, %v2101_v42  ;;  %v2494_v51 = vmul.f32 %v2102_v43, %v2102_v43 }
 0x149   :  { %v1467_v39 = vadd.f32 %v1466_v35, %v1078_v19  ;;  %v3358_v1 = vpop.f32.mrb[46].mxu0  ;;  %v2398_v54 = vadd.f32 %v2397_v8, %v2396_v56  ;;  %v2595_v55 = vadd.f32 %v2594_v47, %v2593_v45  ;;  %v2399_v57 = vsel %vm2317_vm3, %v2102_v43, 0.0 }
 0x14a   :  { %v1469_v44 = vpop.f32.mrb[47].mxu0  ;;  %v2841_v10 = vpack.c.bf16 %v1475_v38, %v1475_v38  ;;  %v2596_v58 = vsel %vm2317_vm3, %v2493_v50, 0.0  ;;  %v1478_v59 = vadd.f32 %v3358_v1, %v3292_v24  ;;  %v2600_v62 = vsel %vm2317_vm3, %v2495_v48, 0.0 }
 0x14b   :  { %v2839_v46 = vpack.c.bf16 %v1467_v39, %v1467_v39  ;;  %v1470_v60 = vadd.f32 %v1469_v44, %v1081_v30  ;;  %v2400_v63 = vadd.f32 %v2399_v57, %v2398_v54  ;;  %v2597_v0 = vadd.f32 %v2596_v58, %v2595_v55 }
 0x14c   :  { %1848 = vst.msk [vmem:[%s4456_s8 + $0xb8] sm:$0xf] %vm1801_vm2, %v2841_v10  ;;  %v2598_v2 = vsel %vm2317_vm3, %v2494_v51, 0.0  ;;  %v1568_v5 = vpack.c.bf16 %v1478_v59, %v1475_v38  ;;  %v2842_v6 = vpack.c.bf16 %v1478_v59, %v1478_v59  ;;  %v2602_v28 = vsel %vm2317_vm3, %v2496_v53, 0.0 }
 0x14d   :  { %1846 = vst.msk [vmem:[%s4456_s8 + $0xb0] sm:$0xf] %vm1801_vm2, %v2839_v46  ;;  %v3295_v17 = vpop.f32.mrb[48].mxu1  ;;  %v1567_v9 = vpack.c.bf16 %v1470_v60, %v1467_v39  ;;  %v2840_v11 = vpack.c.bf16 %v1470_v60, %v1470_v60  ;;  %v2402_v13 = vadd.f32 %v2401_v49, %v2400_v63  ;;  %v2599_v14 = vadd.f32 %v2598_v2, %v2597_v0 }
 0x14e   :  { %v1094_v7 = vpop.f32.mrb[49].mxu1  ;;  %1849 = vst.msk [vmem:[%s4456_s8 + $0xbc] sm:$0xf] %vm1801_vm2, %v2842_v6  ;;  %v2107_v19 = vunpack.c.l.bf16 %v1568_v5  ;;  %v2108_v20 = vunpack.c.h.bf16 %v1568_v5 }
 0x14f   :  { %v3296_v61 = vpop.f32.mrb[50].mxu1  ;;  %1847 = vst.msk [vmem:[%s4456_s8 + $0xb4] sm:$0xf] %vm1801_vm2, %v2840_v11  ;;  %v2105_v21 = vunpack.c.l.bf16 %v1567_v9  ;;  %v2106_v22 = vunpack.c.h.bf16 %v1567_v9  ;;  %v2601_v24 = vadd.f32 %v2600_v62, %v2599_v14  ;;  %v2404_v25 = vadd.f32 %v2403_v52, %v2402_v13 }
 0x150   :  { %v3361_v3 = vpop.f32.mrb[48].mxu0  ;;  %v1097_v4 = vpop.f32.mrb[51].mxu1  ;;  %v2499_v29 = vmul.f32 %v2107_v19, %v2107_v19  ;;  %v2409_v30 = vsel %vm2317_vm3, %v2107_v19, 0.0  ;;  %v2411_v35 = vsel %vm2317_vm3, %v2108_v20, 0.0  ;;  %v2500_v36 = vmul.f32 %v2108_v20, %v2108_v20 }
 0x151   :  { %v1482_v12 = vpop.f32.mrb[49].mxu0  ;;  %v1491_v15 = vadd.f32 %v3361_v3, %v3295_v17  ;;  %v2405_v31 = vsel %vm2317_vm3, %v2105_v21, 0.0  ;;  %v2497_v32 = vmul.f32 %v2105_v21, %v2105_v21  ;;  %v2498_v33 = vmul.f32 %v2106_v22, %v2106_v22 }
 0x152   :  { %v1483_v16 = vadd.f32 %v1482_v12, %v1094_v7  ;;  %v3362_v18 = vpop.f32.mrb[50].mxu0  ;;  %v2406_v37 = vadd.f32 %v2405_v31, %v2404_v25  ;;  %v2603_v38 = vadd.f32 %v2602_v28, %v2601_v24  ;;  %v2407_v1 = vsel %vm2317_vm3, %v2106_v22, 0.0 }
 0x153   :  { %v1485_v23 = vpop.f32.mrb[51].mxu0  ;;  %v2845_v26 = vpack.c.bf16 %v1491_v15, %v1491_v15  ;;  %v2604_v40 = vsel %vm2317_vm3, %v2497_v32, 0.0  ;;  %v1494_v41 = vadd.f32 %v3362_v18, %v3296_v61  ;;  %v2608_v44 = vsel %vm2317_vm3, %v2499_v29, 0.0 }
 0x154   :  { %v2843_v27 = vpack.c.bf16 %v1483_v16, %v1483_v16  ;;  %v1486_v42 = vadd.f32 %v1485_v23, %v1097_v4  ;;  %v2408_v45 = vadd.f32 %v2407_v1, %v2406_v37  ;;  %v2605_v56 = vadd.f32 %v2604_v40, %v2603_v38 }
 0x155   :  { %1852 = vst.msk [vmem:[%s4456_s8 + $0xc8] sm:$0xf] %vm1801_vm2, %v2845_v26  ;;  %v2606_v10 = vsel %vm2317_vm3, %v2498_v33, 0.0  ;;  %v1570_v48 = vpack.c.bf16 %v1494_v41, %v1491_v15  ;;  %v2846_v49 = vpack.c.bf16 %v1494_v41, %v1494_v41  ;;  %v2610_v2 = vsel %vm2317_vm3, %v2500_v36, 0.0 }
 0x156   :  { %1850 = vst.msk [vmem:[%s4456_s8 + $0xc0] sm:$0xf] %vm1801_vm2, %v2843_v27  ;;  %v3299_v34 = vpop.f32.mrb[52].mxu1  ;;  %v1569_v8 = vpack.c.bf16 %v1486_v42, %v1483_v16  ;;  %v2844_v50 = vpack.c.bf16 %v1486_v42, %v1486_v42  ;;  %v2410_v17 = vadd.f32 %v2409_v30, %v2408_v45  ;;  %v2607_v52 = vadd.f32 %v2606_v10, %v2605_v56 }
 0x157   :  { %v1110_v39 = vpop.f32.mrb[53].mxu1  ;;  %1853 = vst.msk [vmem:[%s4456_s8 + $0xcc] sm:$0xf] %vm1801_vm2, %v2846_v49  ;;  %v2111_v7 = vunpack.c.l.bf16 %v1570_v48  ;;  %v2112_v57 = vunpack.c.h.bf16 %v1570_v48 }
 0x158   :  { %v3300_v43 = vpop.f32.mrb[54].mxu1  ;;  %1851 = vst.msk [vmem:[%s4456_s8 + $0xc4] sm:$0xf] %vm1801_vm2, %v2844_v50  ;;  %v2109_v58 = vunpack.c.l.bf16 %v1569_v8  ;;  %v2110_v59 = vunpack.c.h.bf16 %v1569_v8  ;;  %v2609_v61 = vadd.f32 %v2608_v44, %v2607_v52  ;;  %v2412_v62 = vadd.f32 %v2411_v35, %v2410_v17 }
 0x159   :  { %v3365_v46 = vpop.f32.mrb[52].mxu0  ;;  %v1113_v47 = vpop.f32.mrb[55].mxu1  ;;  %v2503_v3 = vmul.f32 %v2111_v7, %v2111_v7  ;;  %v2417_v4 = vsel %vm2317_vm3, %v2111_v7, 0.0  ;;  %v2419_v12 = vsel %vm2317_vm3, %v2112_v57, 0.0  ;;  %v2504_v13 = vmul.f32 %v2112_v57, %v2112_v57 }
 0x15a   :  { %v1498_v51 = vpop.f32.mrb[53].mxu0  ;;  %v1507_v53 = vadd.f32 %v3365_v46, %v3299_v34  ;;  %v2413_v5 = vsel %vm2317_vm3, %v2109_v58, 0.0  ;;  %v2501_v6 = vmul.f32 %v2109_v58, %v2109_v58  ;;  %v2502_v9 = vmul.f32 %v2110_v59, %v2110_v59 }
 0x15b   :  { %v1499_v54 = vadd.f32 %v1498_v51, %v1110_v39  ;;  %v3366_v55 = vpop.f32.mrb[54].mxu0  ;;  %v2414_v14 = vadd.f32 %v2413_v5, %v2412_v62  ;;  %v2611_v15 = vadd.f32 %v2610_v2, %v2609_v61  ;;  %v2415_v18 = vsel %vm2317_vm3, %v2110_v59, 0.0 }
 0x15c   :  { %v1501_v60 = vpop.f32.mrb[55].mxu0  ;;  %v2849_v63 = vpack.c.bf16 %v1507_v53, %v1507_v53  ;;  %v2612_v19 = vsel %vm2317_vm3, %v2501_v6, 0.0  ;;  %v1510_v20 = vadd.f32 %v3366_v55, %v3300_v43  ;;  %v2616_v23 = vsel %vm2317_vm3, %v2503_v3, 0.0 }
 0x15d   :  { %v2847_v0 = vpack.c.bf16 %v1499_v54, %v1499_v54  ;;  %v1502_v21 = vadd.f32 %v1501_v60, %v1113_v47  ;;  %v2416_v24 = vadd.f32 %v2415_v18, %v2414_v14  ;;  %v2613_v25 = vadd.f32 %v2612_v19, %v2611_v15 }
 0x15e   :  { %1856 = vst.msk [vmem:[%s4456_s8 + $0xd8] sm:$0xf] %vm1801_vm2, %v2849_v63  ;;  %v2614_v26 = vsel %vm2317_vm3, %v2502_v9, 0.0  ;;  %v1572_v29 = vpack.c.bf16 %v1510_v20, %v1507_v53  ;;  %v2850_v30 = vpack.c.bf16 %v1510_v20, %v1510_v20  ;;  %v2618_v10 = vsel %vm2317_vm3, %v2504_v13, 0.0 }
 0x15f   :  { %1854 = vst.msk [vmem:[%s4456_s8 + $0xd0] sm:$0xf] %vm1801_vm2, %v2847_v0  ;;  %v3303_v11 = vpop.f32.mrb[56].mxu1  ;;  %v1571_v31 = vpack.c.bf16 %v1502_v21, %v1499_v54  ;;  %v2848_v32 = vpack.c.bf16 %v1502_v21, %v1502_v21  ;;  %v2418_v34 = vadd.f32 %v2417_v4, %v2416_v24  ;;  %v2615_v35 = vadd.f32 %v2614_v26, %v2613_v25 }
 0x160   :  { %v1126_v16 = vpop.f32.mrb[57].mxu1  ;;  %1857 = vst.msk [vmem:[%s4456_s8 + $0xdc] sm:$0xf] %vm1801_vm2, %v2850_v30  ;;  %v2115_v39 = vunpack.c.l.bf16 %v1572_v29  ;;  %v2116_v1 = vunpack.c.h.bf16 %v1572_v29 }
 0x161   :  { %v3304_v22 = vpop.f32.mrb[58].mxu1  ;;  %1855 = vst.msk [vmem:[%s4456_s8 + $0xd4] sm:$0xf] %vm1801_vm2, %v2848_v32  ;;  %v2113_v40 = vunpack.c.l.bf16 %v1571_v31  ;;  %v2114_v41 = vunpack.c.h.bf16 %v1571_v31  ;;  %v2617_v43 = vadd.f32 %v2616_v23, %v2615_v35  ;;  %v2420_v44 = vadd.f32 %v2419_v12, %v2418_v34 }
 0x162   :  { %v3369_v27 = vpop.f32.mrb[56].mxu0  ;;  %v1129_v28 = vpop.f32.mrb[59].mxu1  ;;  %v2425_v46 = vsel %vm2317_vm3, %v2115_v39, 0.0  ;;  %v2427_v50 = vsel %vm2317_vm3, %v2116_v1, 0.0  ;;  %v2507_v51 = vmul.f32 %v2115_v39, %v2115_v39  ;;  %v2508_v59 = vmul.f32 %v2116_v1, %v2116_v1 }
 0x163   :  { %v1514_v33 = vpop.f32.mrb[57].mxu0  ;;  %v1523_v36 = vadd.f32 %v3369_v27, %v3303_v11  ;;  %v2421_v47 = vsel %vm2317_vm3, %v2113_v40, 0.0  ;;  %v2505_v48 = vmul.f32 %v2113_v40, %v2113_v40  ;;  %v2506_v49 = vmul.f32 %v2114_v41, %v2114_v41 }
 0x164   :  { %v1515_v37 = vadd.f32 %v1514_v33, %v1126_v16  ;;  %v3370_v38 = vpop.f32.mrb[58].mxu0  ;;  %v2422_v17 = vadd.f32 %v2421_v47, %v2420_v44  ;;  %v2619_v52 = vadd.f32 %v2618_v10, %v2617_v43  ;;  %v2423_v54 = vsel %vm2317_vm3, %v2114_v41, 0.0 }
 0x165   :  { %v1517_v42 = vpop.f32.mrb[59].mxu0  ;;  %v2853_v45 = vpack.c.bf16 %v1523_v36, %v1523_v36  ;;  %v2620_v55 = vsel %vm2317_vm3, %v2505_v48, 0.0  ;;  %v1526_v7 = vadd.f32 %v3370_v38, %v3304_v22  ;;  %v2622_v62 = vsel %vm2317_vm3, %v2506_v49, 0.0 }
 0x166   :  { %v2851_v56 = vpack.c.bf16 %v1515_v37, %v1515_v37  ;;  %v1518_v57 = vadd.f32 %v1517_v42, %v1129_v28  ;;  %v2424_v60 = vadd.f32 %v2423_v54, %v2422_v17  ;;  %v2621_v61 = vadd.f32 %v2620_v55, %v2619_v52 }
 0x167   :  { %1860 = vst.msk [vmem:[%s4456_s8 + $0xe8] sm:$0xf] %vm1801_vm2, %v2853_v45  ;;  %v1574_v2 = vpack.c.bf16 %v1526_v7, %v1523_v36  ;;  %v2854_v3 = vpack.c.bf16 %v1526_v7, %v1526_v7  ;;  %v2624_v15 = vsel %vm2317_vm3, %v2507_v51, 0.0  ;;  %v2626_v26 = vsel %vm2317_vm3, %v2508_v59, 0.0 }
 0x168   :  { %1858 = vst.msk [vmem:[%s4456_s8 + $0xe0] sm:$0xf] %vm1801_vm2, %v2851_v56  ;;  %v3307_v8 = vpop.f32.mrb[60].mxu1  ;;  %v1573_v4 = vpack.c.bf16 %v1518_v57, %v1515_v37  ;;  %v2852_v5 = vpack.c.bf16 %v1518_v57, %v1518_v57  ;;  %v2426_v9 = vadd.f32 %v2425_v46, %v2424_v60  ;;  %v2623_v11 = vadd.f32 %v2622_v62, %v2621_v61 }
 0x169   :  { %v1142_v53 = vpop.f32.mrb[61].mxu1  ;;  %1861 = vst.msk [vmem:[%s4456_s8 + $0xec] sm:$0xf] %vm1801_vm2, %v2854_v3  ;;  %v2119_v16 = vunpack.c.l.bf16 %v1574_v2  ;;  %v2120_v25 = vunpack.c.h.bf16 %v1574_v2 }
 0x16a   :  { %v3308_v58 = vpop.f32.mrb[62].mxu1  ;;  %1859 = vst.msk [vmem:[%s4456_s8 + $0xe4] sm:$0xf] %vm1801_vm2, %v2852_v5  ;;  %v2117_v18 = vunpack.c.l.bf16 %v1573_v4  ;;  %v2118_v19 = vunpack.c.h.bf16 %v1573_v4  ;;  %v2625_v21 = vadd.f32 %v2624_v15, %v2623_v11  ;;  %v2428_v22 = vadd.f32 %v2427_v50, %v2426_v9 }
 0x16b   :  { %v3373_v63 = vpop.f32.mrb[60].mxu0  ;;  %v1145_v0 = vpop.f32.mrb[63].mxu1  ;;  %v2433_v30 = vsel %vm2317_vm3, %v2119_v16, 0.0  ;;  %v2511_v31 = vmul.f32 %v2119_v16, %v2119_v16  ;;  %v2512_v38 = vmul.f32 %v2120_v25, %v2120_v25  ;;  %v2435_v10 = vsel %vm2317_vm3, %v2120_v25, 0.0 }
 0x16c   :  { %v1530_v6 = vpop.f32.mrb[61].mxu0  ;;  %v1539_v12 = vadd.f32 %v3373_v63, %v3307_v8  ;;  %v2429_v27 = vsel %vm2317_vm3, %v2117_v18, 0.0  ;;  %v2509_v28 = vmul.f32 %v2117_v18, %v2117_v18  ;;  %v2510_v29 = vmul.f32 %v2118_v19, %v2118_v19 }
 0x16d   :  { %v1531_v13 = vadd.f32 %v1530_v6, %v1142_v53  ;;  %v3374_v14 = vpop.f32.mrb[62].mxu0  ;;  %v2430_v32 = vadd.f32 %v2429_v27, %v2428_v22  ;;  %v2627_v33 = vadd.f32 %v2626_v26, %v2625_v21  ;;  %v2431_v34 = vsel %vm2317_vm3, %v2118_v19, 0.0 }
 0x16e   :  { %v1533_v20 = vpop.f32.mrb[63].mxu0  ;;  %v2857_v23 = vpack.c.bf16 %v1539_v12, %v1539_v12  ;;  %v2628_v35 = vsel %vm2317_vm3, %v2509_v28, 0.0  ;;  %v1542_v36 = vadd.f32 %v3374_v14, %v3308_v58  ;;  %v2630_v40 = vsel %vm2317_vm3, %v2510_v29, 0.0 }
 0x16f   :  { %v2855_v24 = vpack.c.bf16 %v1531_v13, %v1531_v13  ;;  %v1534_v37 = vadd.f32 %v1533_v20, %v1145_v0  ;;  %v2432_v39 = vadd.f32 %v2431_v34, %v2430_v32  ;;  %v2629_v1 = vadd.f32 %v2628_v35, %v2627_v33 }
 0x170   :  { %1864 = vst.msk [vmem:[%s4456_s8 + $0xf8] sm:$0xf] %vm1801_vm2, %v2857_v23  ;;  %v1576_v41 = vpack.c.bf16 %v1542_v36, %v1539_v12  ;;  %v2858_v42 = vpack.c.bf16 %v1542_v36, %v1542_v36  ;;  %v2632_v46 = vsel %vm2317_vm3, %v2511_v31, 0.0  ;;  %v2634_v51 = vsel %vm2317_vm3, %v2512_v38, 0.0 }
 0x171   :  { %1862 = vst.msk [vmem:[%s4456_s8 + $0xf0] sm:$0xf] %vm1801_vm2, %v2855_v24  ;;  %v1575_v43 = vpack.c.bf16 %v1534_v37, %v1531_v13  ;;  %v2856_v44 = vpack.c.bf16 %v1534_v37, %v1534_v37  ;;  %v2434_v45 = vadd.f32 %v2433_v30, %v2432_v39  ;;  %v2631_v56 = vadd.f32 %v2630_v40, %v2629_v1 }
 0x172   :  { %1865 = vst.msk [vmem:[%s4456_s8 + $0xfc] sm:$0xf] %vm1801_vm2, %v2858_v42  ;;  %v2123_v8 = vunpack.c.l.bf16 %v1576_v41  ;;  %v2124_v17 = vunpack.c.h.bf16 %v1576_v41 }
 0x173   :  { %1863 = vst.msk [vmem:[%s4456_s8 + $0xf4] sm:$0xf] %vm1801_vm2, %v2856_v44  ;;  %v2121_v47 = vunpack.c.l.bf16 %v1575_v43  ;;  %v2122_v48 = vunpack.c.h.bf16 %v1575_v43  ;;  %v2633_v49 = vadd.f32 %v2632_v46, %v2631_v56  ;;  %v2436_v50 = vadd.f32 %v2435_v10, %v2434_v45 }
 0x174   :  { %v2515_v57 = vmul.f32 %v2123_v8, %v2123_v8  ;;  %v2441_v62 = vsel %vm2317_vm3, %v2123_v8, 0.0  ;;  %v2516_v63 = vmul.f32 %v2124_v17, %v2124_v17  ;;  %v2443_v4 = vsel %vm2317_vm3, %v2124_v17, 0.0 }
 0x175   :  { %v2437_v52 = vsel %vm2317_vm3, %v2121_v47, 0.0  ;;  %v2513_v53 = vmul.f32 %v2121_v47, %v2121_v47  ;;  %v2514_v54 = vmul.f32 %v2122_v48, %v2122_v48  ;;  %v2635_v7 = vadd.f32 %v2634_v51, %v2633_v49 }
 0x176   :  { %v2438_v55 = vadd.f32 %v2437_v52, %v2436_v50  ;;  %v2439_v58 = vsel %vm2317_vm3, %v2122_v48, 0.0  ;;  %v2640_v5 = vsel %vm2317_vm3, %v2515_v57, 0.0  ;;  %v2642_v11 = vsel %vm2317_vm3, %v2516_v63, 0.0 }
 0x177   :  { %v2636_v59 = vsel %vm2317_vm3, %v2513_v53, 0.0  ;;  %v2638_v0 = vsel %vm2317_vm3, %v2514_v54, 0.0 }
 0x178   :  { %v2440_v60 = vadd.f32 %v2439_v58, %v2438_v55  ;;  %v2637_v61 = vadd.f32 %v2636_v59, %v2635_v7 }
 0x17a   :  { %v2442_v2 = vadd.f32 %v2441_v62, %v2440_v60  ;;  %v2639_v3 = vadd.f32 %v2638_v0, %v2637_v61 }
 0x17c   :  { %v2444_v6 = vadd.f32 %v2443_v4, %v2442_v2  ;;  %v2641_v9 = vadd.f32 %v2640_v5, %v2639_v3 }
 0x17e   :  { %v2445_v12 = vrot.slane %v2444_v6, 4  ;;  %v2643_v13 = vadd.f32 %v2642_v11, %v2641_v9 }
 0x180   :  { %v2446_v14 = vadd.f32 %v2445_v12, %v2444_v6  ;;  %v2644_v15 = vrot.slane %v2643_v13, 4 }
 0x182   :  { %v2447_v16 = vrot.slane %v2446_v14, 2  ;;  %v2645_v18 = vadd.f32 %v2644_v15, %v2643_v13 }
 0x184   :  { %v2448_v19 = vadd.f32 %v2447_v16, %v2446_v14  ;;  %v2646_v20 = vrot.slane %v2645_v18, 2 }
 0x186   :  { %v2449_v21 = vrot.slane %v2448_v19, 1  ;;  %v2647_v22 = vadd.f32 %v2646_v20, %v2645_v18 }
 0x188   :  { %v2450_v23 = vadd.f32 %v2449_v21, %v2448_v19  ;;  %v2648_v24 = vrot.slane %v2647_v22, 1 }
 0x18a   :  { %2452 = vst.msk [vmem:[%s4457_s9] sm:$0x1] %vm2451_vm4, %v2450_v23  ;;  %v2649_v25 = vadd.f32 %v2648_v24, %v2647_v22 }
 0x18c   :  { %2650 = vst.msk [vmem:[%s4458_s10] sm:$0x1] %vm2451_vm4, %v2649_v25 }

// kernel: dense_block_forward.9
= control target key start
LH: loop header
LB: loop body
LE: loop exit
PB: predicated region body
PF: predicated region fallthrough
CT: control target
= control target key end

     0   :  { %12 = vsyncpa [#allocation4], 0  ;;  %s4021_s0 = inlined_call_operand.vmem [shape: bf16[2,16,16,8], index: 0, kind: input, shape index: {}]   ;;  %s4022_s1 = inlined_call_operand.vmem [shape: f32[1,8], index: 1, kind: input, shape index: {}]   ;;  %s4023_s2 = inlined_call_operand.vmem [shape: f32[1,8], index: 2, kind: input, shape index: {}]   ;;  %s4024_s3 = inlined_call_operand.vmem [shape: bf16[3,24,4], index: 3, kind: input, shape index: {}]   ;;  %s4025_s4 = inlined_call_operand.vmem [shape: bf16[2,256,4], index: 4, kind: output, shape index: {0}]   ;;  %s4026_s5 = inlined_call_operand.hbm [shape: f32[2,1,4], index: 5, kind: output, shape index: {1}]   ;;  %s4027_s6 = inlined_call_operand.hbm [shape: f32[2,1,4], index: 6, kind: output, shape index: {2}]  }
   0x1   :  { %14 = vsyncpa [#allocation4 + $0x1], 0 }
   0x2   :  { %15 = vsyncpa [#allocation6], 0 }
   0x3   :  { %17 = vsyncpa [#allocation6 + $0x1], 0  ;;  %s3038_s21 = smov 0   ;;  %s3040_s22 = smov 0  }
   0x4   :  { %s3042_s23 = smov 0   ;;  %s3044_s24 = smov 0  }
   0x5 LB: > { %s3059_s25 = sadd.s32 4294967295, %s2996_s24   ;;  %s2236_s26 = sadd.s32 4294967294, %s2996_s24   ;;  %s2996_s24 = sphi %s3044_s24, %s4037_s24   ;;  %s2992_s23 = sphi %s3042_s23, %s4036_s23   ;;  %s2988_s22 = sphi %s3040_s22, %s4035_s22   ;;  %s2984_s21 = sphi %s3038_s21, %s4034_s21  }
   0x6   : > { %s3063_s27 = sadd.s32 1, %s2996_s24   ;;  %s145_s28 = sadd.s32 1, %s2992_s23 }
   0x7   : > { %s142_s29 = ssub.s32 %s2996_s24, %s3063_s27  ;;  %p155_p0 = scmp.ne.s32.totalorder %s2992_s23, %s2988_s22 }
   0x8   : > { %p143_p1 = scmp.eq.s32.totalorder %s142_s29, 0  ;;  %p156_p2 = scmp.eq.s32.totalorder %s3059_s25, 1 }
   0x9   : > { %p161_p3 = scmp.ne.s32.totalorder %s2988_s22, %s2984_s21  ;;  %p162_p4 = scmp.eq.s32.totalorder %s2236_s26, 1 }
   0xa   : > { %s3074_s30 = scalar_select %p143_p1, %s2992_s23, %s145_s28  }
   0xb   : > { %p3076_p5 = por %p156_p2, %p155_p0  ;;  %p3080_p6 = por %p162_p4, %p161_p3 }
   0xc   : > { %p2239_p7 = scmp.ge.s32.totalorder %s2996_s24, 1  ;;  %p223_p8 = scmp.lt.s32.totalorder %s2996_s24, 3 }
   0xe   : > { %p224_p9 = pnand %p2239_p7, %p223_p8 }
   0xf   : > { %p261_p10 = scmp.lt.s32.totalorder (!%p224_p9), %s3059_s25, 1  ;;  %v3101_v0 = vld [vmem:[%s4022_s1] ss:$0 sm:$0xff] (!%p224_p9)  ;;  %vm579_vm0 = vcmask (!%p224_p9), 1046528   ;;  %v2897_v39 = vld [vmem:[%s4024_s3 + $0xc] sm:$0xff] (!%p224_p9)   ;;  %s2998_s28 = smov (!%p224_p9), 8  }
  0x10   : > { %227 = sbr.rel (%p224_p9) target bundleno = 542 (0x21e), region = 36  ;;  %v3110_v9 = vld [vmem:[%s4023_s2] ss:$0 sm:$0xff] (!%p224_p9)  ;;  %2509 = vmatprep.subr.bf16.mxu1 (!%p224_p9), %v2897_v39  ;;  %s2999_s29 = smov (!%p224_p9), 16   ;;  %vm482_vm1 = vcmask (!%p224_p9), 1040384   ;;  %vm446_vm2 = vcmask (!%p224_p9), 195584  }
  0x11   : > { %v3127_v26 = vld [vmem:[%s4024_s3] sm:$0xff] (!%p224_p9)   ;;  %2510 = vmatpush3.bf16.msra.mxu1 (!%p224_p9), %v2897_v39  ;;  %vm1063_vm3 = vcmask (!%p224_p9), 1043456   ;;  %vm868_vm4 = vcmask (!%p224_p9), 64512   ;;  %vm901_vm5 = vcmask (!%p224_p9), 130048   ;;  %vm1851_vm6 = vcmask (!%p224_p9), 27648   ;;  %s3001_s20 = smov (!%p224_p9), [#allocation3]  }
  0x12   : > { %2545 = vmatprep.subr.bf16.mxu0 (!%p224_p9), %v3127_v26  ;;  %vm1916_vm7 = vcmask (!%p224_p9), 31744   ;;  %vm1986_vm8 = vcmask (!%p224_p9), 24576  }
  0x13   : > { %2546 = vmatpush3.bf16.msra.mxu0 (!%p224_p9), %v3127_v26 }
  0x17   : > { %s3088_s9 = scalar_select %p261_p10, %s3059_s25, 1 }
  0x19   : > { %s2342_s10 = sshll.u32 %s3088_s9, 7  ;;  %s3935_s9 = sand.u32 1, %s2988_s22  }
  0x1a   : > { %s3096_s13 = scalar_lea.vmem %s4021_s0, %s2342_s10  ;;  %s3796_s26 = scalar_lea.vmem %s4025_s4, %s2342_s10 }
  0x1b   : > { %v2377_v1 = vld [vmem:[%s3096_s13] sm:$0xff]   ;;  %v2440_v2 = vld [vmem:[%s3096_s13 + $0x8] sm:$0xff]   ;;  %v2441_v3 = vld [vmem:[%s3096_s13 + $0x10] sm:$0xff]   ;;  %s2338_s10 = sshll.u32 %s3059_s25, 4  ;;  %s260_s11 = scalar_lea.vmem [#allocation5], %s3935_s9 }
  0x1c   : > { %v2378_v4 = vunpack.c.l.bf16 %v2377_v1  ;;  %v2379_v5 = vunpack.c.h.bf16 %v2377_v1  ;;  %v2382_v6 = vunpack.c.l.bf16 %v2440_v2  ;;  %v2383_v7 = vunpack.c.h.bf16 %v2440_v2  ;;  %v2442_v8 = vld [vmem:[%s3096_s13 + $0x18] sm:$0xff]   ;;  %v2443_v47 = vld [vmem:[%s3096_s13 + $0x20] sm:$0xff]   ;;  %v2444_v52 = vld [vmem:[%s3096_s13 + $0x28] sm:$0xff]   ;;  %s2128_s12 = sshll.u32 %s260_s11, 4  ;;  %s3945_s15 = scalar_lea.hbm %s4026_s5, %s2338_s10  ;;  %s3955_s12 = int_to_ptr.vmem [resolvable:$true] %s2128_s12 }
  0x1d   : > { %v2386_v10 = vunpack.c.l.bf16 %v2441_v3  ;;  %v2387_v11 = vunpack.c.h.bf16 %v2441_v3  ;;  %v2390_v12 = vunpack.c.l.bf16 %v2442_v8  ;;  %v2391_v13 = vunpack.c.h.bf16 %v2442_v8  ;;  %v2445_v2 = vld [vmem:[%s3096_s13 + $0x30] sm:$0xff]   ;;  %v2446_v3 = vld [vmem:[%s3096_s13 + $0x38] sm:$0xff]   ;;  %s3953_s17 = scalar_lea.hbm %s4027_s6, %s2338_s10  ;;  %s2096_s18 = scalar_lea.sflag [#allocation4], %s3935_s9 }
  0x1e   : > { %v343_v14 = vmul.f32 %v2378_v4, %v3101_v0  ;;  %v344_v15 = vmul.f32 %v2379_v5, %v3101_v0  ;;  %v345_v16 = vmul.f32 %v2382_v6, %v3101_v0  ;;  %v346_v17 = vmul.f32 %v2383_v7, %v3101_v0 }
  0x1f   : > { %v347_v18 = vmul.f32 %v2386_v10, %v3101_v0  ;;  %v348_v19 = vmul.f32 %v2387_v11, %v3101_v0  ;;  %v349_v20 = vmul.f32 %v2390_v12, %v3101_v0  ;;  %v350_v21 = vmul.f32 %v2391_v13, %v3101_v0 }
  0x20   : > { %v382_v22 = vadd.f32 %v3110_v9, %v343_v14  ;;  %v383_v23 = vadd.f32 %v3110_v9, %v344_v15  ;;  %v384_v24 = vadd.f32 %v3110_v9, %v345_v16  ;;  %v385_v25 = vadd.f32 %v3110_v9, %v346_v17 }
  0x21   : > { %v386_v27 = vadd.f32 %v3110_v9, %v347_v18  ;;  %v387_v28 = vadd.f32 %v3110_v9, %v348_v19  ;;  %v388_v29 = vadd.f32 %v3110_v9, %v349_v20  ;;  %v389_v30 = vadd.f32 %v3110_v9, %v350_v21 }
  0x22   : > { %v3133_v31 = vmax.f32 %v382_v22, 0.0  ;;  %v3135_v32 = vmax.f32 %v383_v23, 0.0  ;;  %v3137_v33 = vmax.f32 %v384_v24, 0.0  ;;  %v3139_v34 = vmax.f32 %v385_v25, 0.0 }
  0x23   : > { %v3142_v35 = vmax.f32 %v386_v27, 0.0  ;;  %v3144_v36 = vmax.f32 %v387_v28, 0.0  ;;  %v3146_v37 = vmax.f32 %v388_v29, 0.0  ;;  %v3148_v38 = vmax.f32 %v389_v30, 0.0 }
  0x24   : > { %v2736_v40 = vpack.i.bf16 %v3135_v32, %v3133_v31  ;;  %v580_v41 = vrot.slane %v3133_v31, 1  ;;  %v581_v42 = vrot.slane %v3135_v32, 1  ;;  %v2741_v43 = vpack.i.bf16 %v3139_v34, %v3137_v33 }
  0x25   : > { %v583_v44 = vrot.slane %v3137_v33, 1  ;;  %v584_v45 = vrot.slane %v3139_v34, 1  ;;  %v2746_v46 = vpack.i.bf16 %v3144_v36, %v3142_v35  ;;  %v2761_v50 = vpack.i.bf16 %v3148_v38, %v3146_v37 }
  0x26   : > { %2737 = vrot.lane.b32.xlu0 %v2736_v40, %s2998_s28  ;;  %v582_v48 = vsel %vm579_vm0, %v580_v41, %v581_v42  ;;  %v644_v49 = vsel %vm579_vm0, %v581_v42, 0.0  ;;  %v586_v51 = vrot.slane %v3142_v35, 1  ;;  %v587_v56 = vrot.slane %v3144_v36, 1 }
  0x27   : > { %v2751_v53 = vpack.i.bf16 %v644_v49, %v582_v48  ;;  %v585_v54 = vsel %vm579_vm0, %v583_v44, %v584_v45  ;;  %v645_v55 = vsel %vm579_vm0, %v584_v45, 0.0  ;;  %v589_v58 = vrot.slane %v3146_v37, 1 }
  0x28   : > { %v2756_v57 = vpack.i.bf16 %v645_v55, %v585_v54  ;;  %v590_v59 = vrot.slane %v3148_v38, 1  ;;  %v2394_v60 = vunpack.c.l.bf16 %v2443_v47  ;;  %v588_v61 = vsel %vm579_vm0, %v586_v51, %v587_v56 }
  0x29   : > { %2752 = vrot.lane.b32.xlu1 %v2751_v53, %s2999_s29  ;;  %v646_v62 = vsel %vm579_vm0, %v587_v56, 0.0  ;;  %v2395_v63 = vunpack.c.h.bf16 %v2443_v47  ;;  %v2398_v1 = vunpack.c.l.bf16 %v2444_v52  ;;  %v2399_v11 = vunpack.c.h.bf16 %v2444_v52  ;;  %v2447_v53 = vld [vmem:[%s3096_s13 + $0x40] sm:$0xff]  }
  0x2a   : > { %2742 = vrot.lane.b32.xlu0 %v2741_v43, %s2998_s28  ;;  %v2766_v4 = vpack.i.bf16 %v646_v62, %v588_v61  ;;  %v591_v5 = vsel %vm579_vm0, %v589_v58, %v590_v59  ;;  %v647_v6 = vsel %vm579_vm0, %v590_v59, 0.0  ;;  %v351_v7 = vmul.f32 %v2394_v60, %v3101_v0  ;;  %v2448_v58 = vld [vmem:[%s3096_s13 + $0x48] sm:$0xff]  }
  0x2b   : > { %v2776_v8 = vpack.i.bf16 %v647_v6, %v591_v5  ;;  %v352_v10 = vmul.f32 %v2395_v63, %v3101_v0  ;;  %v353_v12 = vmul.f32 %v2398_v1, %v3101_v0  ;;  %v2402_v14 = vunpack.c.l.bf16 %v2445_v2 }
  0x2c   : > { %v390_v13 = vadd.f32 %v3110_v9, %v351_v7  ;;  %v2403_v15 = vunpack.c.h.bf16 %v2445_v2  ;;  %v2406_v16 = vunpack.c.l.bf16 %v2446_v3  ;;  %v354_v18 = vmul.f32 %v2399_v11, %v3101_v0 }
  0x2d   : > { %2757 = vrot.lane.b32.xlu1 %v2756_v57, %s2999_s29  ;;  %v391_v17 = vadd.f32 %v3110_v9, %v352_v10  ;;  %v392_v19 = vadd.f32 %v3110_v9, %v353_v12  ;;  %v2407_v20 = vunpack.c.h.bf16 %v2446_v3  ;;  %v355_v22 = vmul.f32 %v2402_v14, %v3101_v0  ;;  %v2450_v10 = vld [vmem:[%s3096_s13 + $0x58] sm:$0xff]  }
  0x2e   : > { %2747 = vrot.lane.b32.xlu0 %v2746_v46, %s2998_s28  ;;  %v3194_v21 = vmax.f32 %v390_v13, 0.0  ;;  %v356_v23 = vmul.f32 %v2403_v15, %v3101_v0  ;;  %v357_v24 = vmul.f32 %v2406_v16, %v3101_v0  ;;  %v393_v27 = vadd.f32 %v3110_v9, %v354_v18 }
  0x2f   : > { %v3199_v25 = vmax.f32 %v391_v17, 0.0  ;;  %v3202_v28 = vmax.f32 %v392_v19, 0.0  ;;  %v358_v29 = vmul.f32 %v2407_v20, %v3101_v0  ;;  %v394_v39 = vadd.f32 %v3110_v9, %v355_v22 }
  0x30   : > { %v592_v30 = vrot.slane %v3194_v21, 1  ;;  %v395_v40 = vadd.f32 %v3110_v9, %v356_v23  ;;  %v396_v41 = vadd.f32 %v3110_v9, %v357_v24  ;;  %v3212_v43 = vmax.f32 %v393_v27, 0.0 }
  0x31   : > { %2762 = vrot.lane.b32.xlu1 %v2761_v50, %s2998_s28  ;;  %v2771_v42 = vpack.i.bf16 %v3199_v25, %v3194_v21  ;;  %v593_v44 = vrot.slane %v3199_v25, 1  ;;  %v595_v45 = vrot.slane %v3202_v28, 1  ;;  %v3217_v46 = vmax.f32 %v394_v39, 0.0 }
  0x32   : > { %2767 = vrot.lane.b32.xlu0 %v2766_v4, %s2999_s29  ;;  %v3219_v47 = vmax.f32 %v395_v40, 0.0  ;;  %v397_v48 = vadd.f32 %v3110_v9, %v358_v29  ;;  %v3222_v49 = vmax.f32 %v396_v41, 0.0  ;;  %v596_v52 = vrot.slane %v3212_v43, 1 }
  0x33   : > { %v594_v50 = vsel %vm579_vm0, %v592_v30, %v593_v44  ;;  %v648_v51 = vsel %vm579_vm0, %v593_v44, 0.0  ;;  %v2781_v54 = vpack.i.bf16 %v3212_v43, %v3202_v28  ;;  %v598_v57 = vrot.slane %v3217_v46, 1 }
  0x34   : > { %v2786_v55 = vpack.i.bf16 %v648_v51, %v594_v50  ;;  %v3230_v56 = vmax.f32 %v397_v48, 0.0  ;;  %v597_v59 = vsel %vm579_vm0, %v595_v45, %v596_v52  ;;  %v649_v60 = vsel %vm579_vm0, %v596_v52, 0.0 }
  0x35   : > { %2777 = vrot.lane.b32.xlu1 %v2776_v8, %s2999_s29  ;;  %v599_v61 = vrot.slane %v3219_v47, 1  ;;  %v601_v62 = vrot.slane %v3222_v49, 1  ;;  %v2791_v63 = vpack.i.bf16 %v649_v60, %v597_v59  ;;  %v2796_v1 = vpack.i.bf16 %v3219_v47, %v3217_v46  ;;  %v2449_v8 = vld [vmem:[%s3096_s13 + $0x50] sm:$0xff]  }
  0x36   : > { %2772 = vrot.lane.b32.xlu0 %v2771_v42, %s2998_s28  ;;  %v602_v2 = vrot.slane %v3230_v56, 1  ;;  %v2410_v3 = vunpack.c.l.bf16 %v2447_v53  ;;  %v2411_v6 = vunpack.c.h.bf16 %v2447_v53  ;;  %v2414_v7 = vunpack.c.l.bf16 %v2448_v58 }
  0x37   : > { %v600_v4 = vsel %vm579_vm0, %v598_v57, %v599_v61  ;;  %v650_v5 = vsel %vm579_vm0, %v599_v61, 0.0  ;;  %v2801_v11 = vpack.i.bf16 %v3230_v56, %v3222_v49  ;;  %v2415_v17 = vunpack.c.h.bf16 %v2448_v58 }
  0x38   : > { %v2806_v12 = vpack.i.bf16 %v650_v5, %v600_v4  ;;  %v603_v13 = vsel %vm579_vm0, %v601_v62, %v602_v2  ;;  %v359_v14 = vmul.f32 %v2410_v3, %v3101_v0  ;;  %v651_v15 = vsel %vm579_vm0, %v602_v2, 0.0  ;;  %v2451_v2 = vld [vmem:[%s3096_s13 + $0x60] sm:$0xff]  }
  0x39   : > { %2782 = vrot.lane.b32.xlu1 %v2781_v54, %s2998_s28  ;;  %v360_v16 = vmul.f32 %v2411_v6, %v3101_v0  ;;  %v361_v18 = vmul.f32 %v2414_v7, %v3101_v0  ;;  %v2418_v20 = vunpack.c.l.bf16 %v2449_v8  ;;  %v2419_v22 = vunpack.c.h.bf16 %v2449_v8  ;;  %v2452_v7 = vld [vmem:[%s3096_s13 + $0x68] sm:$0xff]  }
  0x3a   : > { %2787 = vrot.lane.b32.xlu0 %v2786_v55, %s2999_s29  ;;  %v398_v19 = vadd.f32 %v3110_v9, %v359_v14  ;;  %v2422_v23 = vunpack.c.l.bf16 %v2450_v10  ;;  %v362_v27 = vmul.f32 %v2415_v17, %v3101_v0  ;;  %v2423_v30 = vunpack.c.h.bf16 %v2450_v10 }
  0x3b   : > { %v399_v24 = vadd.f32 %v3110_v9, %v360_v16  ;;  %v400_v29 = vadd.f32 %v3110_v9, %v361_v18  ;;  %v363_v40 = vmul.f32 %v2418_v20, %v3101_v0  ;;  %v364_v41 = vmul.f32 %v2419_v22, %v3101_v0  ;;  %v2454_v20 = vld [vmem:[%s3096_s13 + $0x78] sm:$0xff]  }
  0x3c   : > { %v3260_v39 = vmax.f32 %v398_v19, 0.0  ;;  %v365_v42 = vmul.f32 %v2422_v23, %v3101_v0  ;;  %v401_v45 = vadd.f32 %v3110_v9, %v362_v27  ;;  %v366_v50 = vmul.f32 %v2423_v30, %v3101_v0  ;;  %v2453_v19 = vld [vmem:[%s3096_s13 + $0x70] sm:$0xff]  }
  0x3d   : > { %2792 = vrot.lane.b32.xlu1 %v2791_v63, %s2999_s29  ;;  %v3266_v44 = vmax.f32 %v399_v24, 0.0  ;;  %v3269_v48 = vmax.f32 %v400_v29, 0.0  ;;  %v402_v52 = vadd.f32 %v3110_v9, %v363_v40  ;;  %v403_v53 = vadd.f32 %v3110_v9, %v364_v41 }
  0x3e   : > { %2797 = vrot.lane.b32.xlu0 %v2796_v1, %s2998_s28  ;;  %v604_v51 = vrot.slane %v3260_v39, 1  ;;  %v404_v54 = vadd.f32 %v3110_v9, %v365_v42  ;;  %v3277_v55 = vmax.f32 %v401_v45, 0.0  ;;  %v405_v61 = vadd.f32 %v3110_v9, %v366_v50 }
  0x3f   : > { %v605_v57 = vrot.slane %v3266_v44, 1  ;;  %v607_v58 = vrot.slane %v3269_v48, 1  ;;  %v3281_v59 = vmax.f32 %v402_v52, 0.0  ;;  %v3283_v60 = vmax.f32 %v403_v53, 0.0 }
  0x40   : > { %v2811_v62 = vpack.i.bf16 %v651_v15, %v603_v13  ;;  %v2816_v63 = vpack.i.bf16 %v3266_v44, %v3260_v39  ;;  %v608_v1 = vrot.slane %v3277_v55, 1  ;;  %v3294_v5 = vmax.f32 %v404_v54, 0.0 }
  0x41   : > { %2802 = vrot.lane.b32.xlu1 %v2801_v11, %s2998_s28  ;;  %v606_v3 = vsel %vm579_vm0, %v604_v51, %v605_v57  ;;  %v652_v4 = vsel %vm579_vm0, %v605_v57, 0.0  ;;  %v3296_v6 = vmax.f32 %v405_v61, 0.0  ;;  %v610_v11 = vrot.slane %v3281_v59, 1 }
  0x42   : > { %2807 = vrot.lane.b32.xlu0 %v2806_v12, %s2999_s29  ;;  %v609_v8 = vsel %vm579_vm0, %v607_v58, %v608_v1  ;;  %v653_v10 = vsel %vm579_vm0, %v608_v1, 0.0  ;;  %v611_v13 = vrot.slane %v3283_v60, 1  ;;  %v2821_v12 = vpack.i.bf16 %v3277_v55, %v3269_v48 }
  0x43   : > { %v2426_v14 = vunpack.c.l.bf16 %v2451_v2  ;;  %v2826_v15 = vpack.i.bf16 %v652_v4, %v606_v3  ;;  %v2836_v16 = vpack.i.bf16 %v3283_v60, %v3281_v59  ;;  %v2427_v17 = vunpack.c.h.bf16 %v2451_v2 }
  0x44   : > { %v2430_v18 = vunpack.c.l.bf16 %v2452_v7  ;;  %v2831_v22 = vpack.i.bf16 %v653_v10, %v609_v8  ;;  %v613_v23 = vrot.slane %v3294_v5, 1  ;;  %v614_v24 = vrot.slane %v3296_v6, 1 }
  0x45   : > { %2812 = vrot.lane.b32.xlu1 %v2811_v62, %s2999_s29  ;;  %v367_v27 = vmul.f32 %v2426_v14, %v3101_v0  ;;  %v612_v29 = vsel %vm579_vm0, %v610_v11, %v611_v13  ;;  %v368_v30 = vmul.f32 %v2427_v17, %v3101_v0  ;;  %v2431_v40 = vunpack.c.h.bf16 %v2452_v7 }
  0x46   : > { %2817 = vrot.lane.b32.xlu0 %v2816_v63, %s2998_s28  ;;  %v369_v41 = vmul.f32 %v2430_v18, %v3101_v0  ;;  %v2434_v45 = vunpack.c.l.bf16 %v2453_v19  ;;  %v2435_v50 = vunpack.c.h.bf16 %v2453_v19  ;;  %v2438_v51 = vunpack.c.l.bf16 %v2454_v20 }
  0x47   : > { %v406_v42 = vadd.f32 %v3110_v9, %v367_v27  ;;  %v407_v52 = vadd.f32 %v3110_v9, %v368_v30  ;;  %v370_v53 = vmul.f32 %v2431_v40, %v3101_v0  ;;  %v2439_v57 = vunpack.c.h.bf16 %v2454_v20 }
  0x48   : > { %v408_v54 = vadd.f32 %v3110_v9, %v369_v41  ;;  %v371_v61 = vmul.f32 %v2434_v45, %v3101_v0  ;;  %v372_v62 = vmul.f32 %v2435_v50, %v3101_v0  ;;  %v373_v63 = vmul.f32 %v2438_v51, %v3101_v0 }
  0x49   : > { %2822 = vrot.lane.b32.xlu1 %v2821_v12, %s2998_s28  ;;  %v3323_v58 = vmax.f32 %v406_v42, 0.0  ;;  %v654_v1 = vsel %vm579_vm0, %v611_v13, 0.0  ;;  %v3329_v2 = vmax.f32 %v407_v52, 0.0  ;;  %v409_v3 = vadd.f32 %v3110_v9, %v370_v53  ;;  %v3374_v53 = vld [vmem:[%s4024_s3 + $0x8] ss:$0 sps:$4 sm:$0xff]  }
  0x4a   : > { %2827 = vrot.lane.b32.xlu0 %v2826_v15, %s2999_s29  ;;  %v3332_v4 = vmax.f32 %v408_v54, 0.0  ;;  %v410_v8 = vadd.f32 %v3110_v9, %v371_v61  ;;  %v411_v10 = vadd.f32 %v3110_v9, %v372_v62  ;;  %v374_v11 = vmul.f32 %v2439_v57, %v3101_v0  ;;  %2686 = vmatprep.subr.msk.bf16.mxu0 %vm1063_vm3, %v3374_v53 }
  0x4b   : > { %v616_v7 = vrot.slane %v3323_v58, 1  ;;  %v2841_v12 = vpack.i.bf16 %v3296_v6, %v3294_v5  ;;  %v3341_v13 = vmax.f32 %v409_v3, 0.0  ;;  %v617_v14 = vrot.slane %v3329_v2, 1 }
  0x4c   : > { %v412_v15 = vadd.f32 %v3110_v9, %v373_v63  ;;  %v2846_v17 = vpack.i.bf16 %v654_v1, %v612_v29  ;;  %v615_v18 = vsel %vm579_vm0, %v613_v23, %v614_v24  ;;  %v655_v19 = vsel %vm579_vm0, %v614_v24, 0.0 }
  0x4d   : > { %2832 = vrot.lane.b32.xlu1 %v2831_v22, %s2999_s29  ;;  %v619_v0 = vrot.slane %v3332_v4, 1  ;;  %v484_v20 = vrot.slane %v3135_v32, 7  ;;  %v620_v22 = vrot.slane %v3341_v13, 1  ;;  %v3351_v27 = vmax.f32 %v410_v8, 0.0 }
  0x4e   : > { %2837 = vrot.lane.b32.xlu0 %v2836_v16, %s2998_s28  ;;  %v618_v30 = vsel %vm579_vm0, %v616_v7, %v617_v14  ;;  %v656_v40 = vsel %vm579_vm0, %v617_v14, 0.0  ;;  %v3355_v41 = vmax.f32 %v411_v10, 0.0  ;;  %v413_v16 = vadd.f32 %v3110_v9, %v374_v11 }
  0x4f   : > { %v2851_v23 = vpack.i.bf16 %v655_v19, %v615_v18  ;;  %v3359_v24 = vmax.f32 %v412_v15, 0.0  ;;  %v2856_v32 = vpack.i.bf16 %v3329_v2, %v3323_v58  ;;  %v621_v29 = vsel %vm579_vm0, %v619_v0, %v620_v22 }
  0x50   : > { %v657_v42 = vsel %vm579_vm0, %v620_v22, 0.0  ;;  %v483_v45 = vrot.slane %v3133_v31, 7  ;;  %v2861_v9 = vpack.i.bf16 %v3341_v13, %v3332_v4  ;;  %v2866_v50 = vpack.i.bf16 %v656_v40, %v618_v30 }
  0x51   : > { %2842 = vrot.lane.b32.xlu1 %v2841_v12, %s2998_s28  ;;  %v486_v51 = vrot.slane %v3137_v33, 7  ;;  %v487_v52 = vrot.slane %v3139_v34, 7  ;;  %v3376_v54 = vmax.f32 %v413_v16, 0.0  ;;  %v622_v57 = vrot.slane %v3351_v27, 1  ;;  %v2899_v34 = vld [vmem:[%s4024_s3 + $0x14] ss:$0 sps:$4 sm:$0xff]  }
  0x52   : > { %2847 = vrot.lane.b32.xlu0 %v2846_v17, %s2999_s29  ;;  %v623_v61 = vrot.slane %v3355_v41, 1  ;;  %v3383_v62 = vsel %vm482_vm1, %v483_v45, %v484_v20  ;;  %v2871_v63 = vpack.i.bf16 %v657_v42, %v621_v29  ;;  %v2876_v1 = vpack.i.bf16 %v3355_v41, %v3351_v27  ;;  %v3407_v17 = vld [vmem:[%s4024_s3 + $0x18] sm:$0xff]   ;;  %2685 = vmatprep.subr.msk.bf16.mxu1 %vm1063_vm3, %v2899_v34 }
  0x53   : > { %v625_v3 = vrot.slane %v3359_v24, 1  ;;  %v3395_v7 = vsel %vm482_vm1, %v486_v51, %v487_v52  ;;  %v489_v8 = vrot.slane %v3142_v35, 7  ;;  %v490_v10 = vrot.slane %v3144_v36, 7 }
  0x54   : > { %v492_v11 = vrot.slane %v3146_v37, 7  ;;  %v493_v12 = vrot.slane %v3148_v38, 7  ;;  %v495_v14 = vrot.slane %v3194_v21, 7  ;;  %v496_v15 = vrot.slane %v3199_v25, 7 }
  0x55   : > { %2852 = vrot.lane.b32.xlu1 %v2851_v23, %s2999_s29  ;;  %v624_v18 = vsel %vm579_vm0, %v622_v57, %v623_v61  ;;  %v626_v19 = vrot.slane %v3376_v54, 1  ;;  %v3414_v36 = vsel %vm482_vm1, %v489_v8, %v490_v10  ;;  %v3000_v25 = vmov 0  }
  0x56   : > { %2857 = vrot.lane.b32.xlu0 %v2856_v32, %s2998_s28  ;;  %v3419_v38 = vsel %vm482_vm1, %v492_v11, %v493_v12  ;;  %447 = vst.msk [vmem:[#allocation2] sm:$0xff] %vm446_vm2, %v3000_v25  ;;  %449 = vst.msk [vmem:[#allocation2 + $0x88] sm:$0xff] %vm446_vm2, %v3000_v25  ;;  %v658_v0 = vsel %vm579_vm0, %v623_v61, 0.0  ;;  %v3430_v20 = vsel %vm1063_vm3, %v3374_v53, 0  ;;  %v3435_v22 = vsel %vm482_vm1, %v495_v14, %v496_v15 }
  0x57   : > { %v1065_v30 = vsel %vm1063_vm3, %v2899_v34, 0  ;;  %2548 = vmatpush3.bf16.msra.mxu0 %v3430_v20  ;;  %v498_v40 = vrot.slane %v3202_v28, 7  ;;  %v499_v16 = vrot.slane %v3212_v43, 7  ;;  %v501_v23 = vrot.slane %v3217_v46, 7 }
  0x58   : > { %v502_v32 = vrot.slane %v3219_v47, 7  ;;  %2512 = vmatpush3.bf16.msra.mxu1 %v1065_v30  ;;  %2581 = vmatprep.subr.bf16.mxu0 %v3407_v17  ;;  %v504_v29 = vrot.slane %v3222_v49, 7  ;;  %v505_v42 = vrot.slane %v3230_v56, 7  ;;  %v2881_v52 = vpack.i.bf16 %v3376_v54, %v3359_v24 }
  0x59   : > { %2862 = vrot.lane.b32.xlu1 %v2861_v9, %s2998_s28  ;;  %v507_v9 = vrot.slane %v3260_v39, 7  ;;  %v3454_v43 = vsel %vm482_vm1, %v498_v40, %v499_v16  ;;  %2617 = vmatprep.subr.bf16.mxu1 %v3127_v26  ;;  %v2886_v56 = vpack.i.bf16 %v658_v0, %v624_v18  ;;  %v659_v34 = vsel %vm579_vm0, %v626_v19, 0.0 }
  0x5a   : > { %2867 = vrot.lane.b32.xlu0 %v2866_v50, %s2999_s29  ;;  %v508_v50 = vrot.slane %v3266_v44, 7  ;;  %v3460_v47 = vsel %vm482_vm1, %v501_v23, %v502_v32  ;;  %v627_v44 = vsel %vm579_vm0, %v625_v3, %v626_v19  ;;  %v3467_v57 = vsel %vm482_vm1, %v504_v29, %v505_v42 }
  0x5b   : > { %v510_v10 = vrot.slane %v3269_v48, 7  ;;  %v513_v3 = vrot.slane %v3281_v59, 7  ;;  %v514_v15 = vrot.slane %v3283_v60, 7  ;;  %v516_v18 = vrot.slane %v3294_v5, 7 }
  0x5c   : > { %v3472_v61 = vsel %vm482_vm1, %v507_v9, %v508_v50  ;;  %v517_v25 = vrot.slane %v3296_v6, 7  ;;  %v519_v0 = vrot.slane %v3323_v58, 7  ;;  %v2891_v19 = vpack.i.bf16 %v659_v34, %v627_v44 }
  0x5d   : > { %2872 = vrot.lane.b32.xlu1 %v2871_v63, %s2999_s29  ;;  %v511_v63 = vrot.slane %v3277_v55, 7  ;;  %v967_v12 = vld [vmem:[#allocation2] sm:$0xff]  ;;  %v520_v55 = vrot.slane %v3329_v2, 7  ;;  %v3494_v60 = vsel %vm482_vm1, %v513_v3, %v514_v15  ;;  %v522_v2 = vrot.slane %v3332_v4, 7 }
  0x5e   : > { %2877 = vrot.lane.b32.xlu0 %v2876_v1, %s2998_s28  ;;  %2549 = vmatprep.mubr.msk.bf16.mxu0 %vm446_vm2, %v967_v12  ;;  %v3499_v6 = vsel %vm482_vm1, %v516_v18, %v517_v25  ;;  %v523_v16 = vrot.slane %v3341_v13, 7  ;;  %v4029_v32 = vrot.slane %v3351_v27, 7  ;;  %v526_v42 = vrot.slane %v3355_v41, 7 }
  0x5f   : > { %v3487_v1 = vsel %vm482_vm1, %v510_v10, %v511_v63  ;;  %v3505_v30 = vsel %vm482_vm1, %v519_v0, %v520_v55  ;;  %v4028_v50 = vrot.slane %v3359_v24, 7  ;;  %v565_v33 = vsel %vm482_vm1, 0.0, %v489_v8 }
  0x60   : > { %v3522_v44 = vsel %vm482_vm1, %v4029_v32, %v526_v42  ;;  %v569_v28 = vsel %vm482_vm1, 0.0, %v501_v23 }
  0x61   : > { %2882 = vrot.lane.b32.xlu1 %v2881_v52, %s2998_s28  ;;  %v529_v52 = vrot.slane %v3376_v54, 7  ;;  %v563_v54 = vsel %vm482_vm1, 0.0, %v483_v45  ;;  %s254_s28 = scalar_lea.vmem [#allocation3], %s3935_s9 }
  0x62   : > { %2887 = vrot.lane.b32.xlu0 %v2886_v56, %s2999_s29  ;;  %v3516_v56 = vsel %vm482_vm1, %v522_v2, %v523_v16  ;;  %v564_v16 = vsel %vm482_vm1, 0.0, %v486_v51 }
  0x63   : > { %v3527_v13 = vsel %vm482_vm1, %v4028_v50, %v529_v52 }
  0x65   : > { %2892 = vrot.lane.b32.xlu1 %v2891_v19, %s2999_s29  ;;  %s2115_s29 = sshll.u32 %s254_s28, 4  ;;  %s3947_s29 = int_to_ptr.vmem [resolvable:$true] %s2115_s29 }
  0x66   : > { %s2902_s19 = scalar_lea.vmem %s3947_s29, 16 }
  0x67   : > { %p2903_p11 = scmp.ne.s32.totalorder %s3947_s29, %s2902_s19 }
  0x69   : > { %p2904_p12 = pnand %p2903_p11, %p3076_p5 }
  0x6b   : > { %p2905_p13 = pneg %p2904_p12 }
  0x98   : > { %v2738_v41 = vpop.permute.xlu0 %2737 }
  0x99   : > { %v2740_v34 = vunpack.i.h.bf16 %v2738_v41  ;;  %v2739_v63 = vunpack.i.l.bf16 %v2738_v41 }
  0x9b   : > { %v869_v12 = vsel %vm868_vm4, %v563_v54, %v2739_v63  ;;  %v870_v15 = vsel %vm868_vm4, %v3383_v62, %v2740_v34  ;;  %v2753_v25 = vpop.permute.xlu1 %2752 }
  0x9c   : > { %v2755_v55 = vunpack.i.h.bf16 %v2753_v25  ;;  %v2754_v19 = vunpack.i.l.bf16 %v2753_v25  ;;  %v2743_v42 = vpop.permute.xlu0 %2742 }
  0x9d   : > { %v2745_v52 = vunpack.i.h.bf16 %v2743_v42  ;;  %v2744_v31 = vunpack.i.l.bf16 %v2743_v42 }
  0x9e   : > { %v902_v45 = vsel %vm901_vm5, %v869_v12, %v2754_v19  ;;  %v903_v41 = vsel %vm901_vm5, %v870_v15, %v2755_v55 }
  0x9f   : > { %v934_v50 = vpack.c.bf16 %v903_v41, %v902_v45  ;;  %v872_v54 = vsel %vm868_vm4, %v3395_v7, %v2745_v52  ;;  %v871_v62 = vsel %vm868_vm4, %v564_v16, %v2744_v31  ;;  %v2758_v34 = vpop.permute.xlu1 %2757 }
  0xa0   : > { %v2760_v63 = vunpack.i.h.bf16 %v2758_v34  ;;  %v2759_v25 = vunpack.i.l.bf16 %v2758_v34  ;;  %v2748_v32 = vpop.permute.xlu0 %2747 }
  0xa1   : > { %951 = vst.msk [vmem:[#allocation2 + $0x8] sm:$0xff] %vm446_vm2, %v934_v50  ;;  %v2750_v51 = vunpack.i.h.bf16 %v2748_v32  ;;  %v2749_v12 = vunpack.i.l.bf16 %v2748_v32  ;;  %v566_v32 = vsel %vm482_vm1, 0.0, %v492_v11 }
  0xa2   : > { %v905_v15 = vsel %vm901_vm5, %v872_v54, %v2760_v63  ;;  %v904_v55 = vsel %vm901_vm5, %v871_v62, %v2759_v25  ;;  %v567_v25 = vsel %vm482_vm1, 0.0, %v495_v14 }
  0xa3   : > { %v935_v19 = vpack.c.bf16 %v905_v15, %v904_v55  ;;  %v2763_v7 = vpop.permute.xlu1 %2762  ;;  %v874_v16 = vsel %vm868_vm4, %v3414_v36, %v2750_v51  ;;  %v873_v42 = vsel %vm868_vm4, %v565_v33, %v2749_v12  ;;  %v2901_v36 = vld [vmem:[%s4024_s3 + $0x20] ss:$0 sps:$4 sm:$0xff]  }
  0xa4   : > { %v2768_v52 = vpop.permute.xlu0 %2767  ;;  %v2765_v50 = vunpack.i.h.bf16 %v2763_v7  ;;  %v2764_v35 = vunpack.i.l.bf16 %v2763_v7 }
  0xa5   : > { %952 = vst.msk [vmem:[#allocation2 + $0x10] sm:$0xff] %vm446_vm2, %v935_v19  ;;  %v2770_v31 = vunpack.i.h.bf16 %v2768_v52  ;;  %v2769_v8 = vunpack.i.l.bf16 %v2768_v52 }
  0xa6   : > { %v876_v11 = vsel %vm868_vm4, %v3419_v38, %v2765_v50  ;;  %v875_v51 = vsel %vm868_vm4, %v566_v32, %v2764_v35  ;;  %v1528_v38 = vsel %vm1063_vm3, %v2901_v36, 0 }
  0xa7   : > { %v906_v45 = vsel %vm901_vm5, %v873_v42, %v2769_v8  ;;  %v907_v41 = vsel %vm901_vm5, %v874_v16, %v2770_v31  ;;  %v2778_v54 = vpop.permute.xlu1 %2777 }
  0xa8   : > { %v936_v62 = vpack.c.bf16 %v907_v41, %v906_v45  ;;  %v2780_v34 = vunpack.i.h.bf16 %v2778_v54  ;;  %v2779_v63 = vunpack.i.l.bf16 %v2778_v54  ;;  %v2773_v33 = vpop.permute.xlu0 %2772  ;;  %v986_v37 = vld [vmem:[#allocation2 + $0x8] sm:$0xff] }
  0xa9   : > { %v2775_v12 = vunpack.i.h.bf16 %v2773_v33  ;;  %v2774_v15 = vunpack.i.l.bf16 %v2773_v33  ;;  %2513 = vmatprep.mubr.msk.bf16.mxu1 %vm446_vm2, %v986_v37  ;;  %2550 = vmatmul.mubr.msk.bf16.vlgmr.msra.gmra.mrb[0].mxu0 %vm446_vm2, %v986_v37 }
  0xaa   : > { %953 = vst.msk [vmem:[#allocation2 + $0x18] sm:$0xff] %vm446_vm2, %v936_v62  ;;  %v908_v55 = vsel %vm901_vm5, %v875_v51, %v2779_v63  ;;  %v909_v21 = vsel %vm901_vm5, %v876_v11, %v2780_v34  ;;  %2582 = vmatpush3.bf16.msra.mxu0 %v3407_v17 }
  0xab   : > { %v937_v14 = vpack.c.bf16 %v909_v21, %v908_v55  ;;  %v2783_v19 = vpop.permute.xlu1 %2782  ;;  %2688 = vmatprep.subr.msk.bf16.mxu0 %vm1063_vm3, %v2901_v36  ;;  %v878_v7 = vsel %vm868_vm4, %v3435_v22, %v2775_v12  ;;  %v877_v16 = vsel %vm868_vm4, %v567_v25, %v2774_v15  ;;  %v568_v22 = vsel %vm482_vm1, 0.0, %v498_v40 }
  0xac   : > { %v2788_v42 = vpop.permute.xlu0 %2787  ;;  %v3578_v52 = vld [vmem:[#allocation2 + $0x10] sm:$0xff]  ;;  %v2785_v50 = vunpack.i.h.bf16 %v2783_v19  ;;  %v2784_v35 = vunpack.i.l.bf16 %v2783_v19 }
  0xad   : > { %954 = vst.msk [vmem:[#allocation2 + $0x20] sm:$0xff] %vm446_vm2, %v937_v14  ;;  %v2790_v31 = vunpack.i.h.bf16 %v2788_v42  ;;  %v2789_v17 = vunpack.i.l.bf16 %v2788_v42  ;;  %2514 = vmatmul.mubr.msk.bf16.vlgmr.msra.gmra.mrb[0].mxu1 %vm446_vm2, %v3578_v52  ;;  %2553 = vmatprep.mubr.msk.bf16.mxu0 %vm446_vm2, %v3578_v52  ;;  %v571_v42 = vsel %vm482_vm1, 0.0, %v507_v9 }
  0xae   : > { %2619 = vmatpush3.bf16.msra.mxu1 %v3127_v26  ;;  %2584 = vmatpush3.bf16.msra.mxu0 %v1528_v38  ;;  %v880_v26 = vsel %vm868_vm4, %v3454_v43, %v2785_v50  ;;  %v879_v40 = vsel %vm868_vm4, %v568_v22, %v2784_v35 }
  0xaf   : > { %v910_v8 = vsel %vm901_vm5, %v877_v16, %v2789_v17  ;;  %v911_v32 = vsel %vm901_vm5, %v878_v7, %v2790_v31  ;;  %v2793_v45 = vpop.permute.xlu1 %2792  ;;  %2687 = vmatprep.subr.msk.bf16.mxu1 %vm1063_vm3, %v3374_v53 }
  0xb0   : > { %v938_v41 = vpack.c.bf16 %v911_v32, %v910_v8  ;;  %v2795_v54 = vunpack.i.h.bf16 %v2793_v45  ;;  %v2794_v36 = vunpack.i.l.bf16 %v2793_v45  ;;  %v2798_v62 = vpop.permute.xlu0 %2797 }
  0xb1   : > { %v2800_v34 = vunpack.i.h.bf16 %v2798_v62  ;;  %v2799_v63 = vunpack.i.l.bf16 %v2798_v62  ;;  %v3599_v25 = vld [vmem:[#allocation2 + $0x18] sm:$0xff] }
  0xb2   : > { %955 = vst.msk [vmem:[#allocation2 + $0x28] sm:$0xff] %vm446_vm2, %v938_v41  ;;  %v912_v53 = vsel %vm901_vm5, %v879_v40, %v2794_v36  ;;  %v913_v33 = vsel %vm901_vm5, %v880_v26, %v2795_v54  ;;  %2517 = vmatprep.mubr.msk.bf16.mxu1 %vm446_vm2, %v3599_v25  ;;  %2554 = vmatmul.mubr.msk.bf16.gmra.mrb[4].mxu0 %vm446_vm2, %v3599_v25 }
  0xb3   : > { %v939_v46 = vpack.c.bf16 %v913_v33, %v912_v53  ;;  %v2803_v23 = vpop.permute.xlu1 %2802  ;;  %2620 = vmatpush3.bf16.msra.mxu1 %v3430_v20  ;;  %v882_v43 = vsel %vm868_vm4, %v3460_v47, %v2800_v34  ;;  %v881_v37 = vsel %vm868_vm4, %v569_v28, %v2799_v63  ;;  %v570_v20 = vsel %vm482_vm1, 0.0, %v504_v29 }
  0xb4   : > { %v2808_v11 = vpop.permute.xlu0 %2807  ;;  %v3612_v51 = vld [vmem:[#allocation2 + $0x20] sm:$0xff]  ;;  %v2805_v12 = vunpack.i.h.bf16 %v2803_v23  ;;  %v2804_v15 = vunpack.i.l.bf16 %v2803_v23 }
  0xb5   : > { %956 = vst.msk [vmem:[#allocation2 + $0x30] sm:$0xff] %vm446_vm2, %v939_v46  ;;  %v2810_v55 = vunpack.i.h.bf16 %v2808_v11  ;;  %v2809_v21 = vunpack.i.l.bf16 %v2808_v11  ;;  %2518 = vmatmul.mubr.msk.bf16.gmra.mrb[4].mxu1 %vm446_vm2, %v3612_v51  ;;  %2557 = vmatprep.mubr.msk.bf16.mxu0 %vm446_vm2, %v3612_v51  ;;  %v573_v46 = vsel %vm482_vm1, 0.0, %v513_v3 }
  0xb6   : > { %v884_v35 = vsel %vm868_vm4, %v3467_v57, %v2805_v12  ;;  %v883_v49 = vsel %vm868_vm4, %v570_v20, %v2804_v15 }
  0xb7   : > { %v914_v47 = vsel %vm901_vm5, %v881_v37, %v2809_v21  ;;  %v915_v14 = vsel %vm901_vm5, %v882_v43, %v2810_v55  ;;  %v2813_v19 = vpop.permute.xlu1 %2812 }
  0xb8   : > { %v940_v38 = vpack.c.bf16 %v915_v14, %v914_v47  ;;  %v2815_v7 = vunpack.i.h.bf16 %v2813_v19  ;;  %v2814_v16 = vunpack.i.l.bf16 %v2813_v19  ;;  %v2818_v50 = vpop.permute.xlu0 %2817 }
  0xb9   : > { %v2820_v31 = vunpack.i.h.bf16 %v2818_v50  ;;  %v2819_v29 = vunpack.i.l.bf16 %v2818_v50  ;;  %v3630_v17 = vld [vmem:[#allocation2 + $0x28] sm:$0xff] }
  0xba   : > { %957 = vst.msk [vmem:[#allocation2 + $0x38] sm:$0xff] %vm446_vm2, %v940_v38  ;;  %v916_v22 = vsel %vm901_vm5, %v883_v49, %v2814_v16  ;;  %v917_v8 = vsel %vm901_vm5, %v884_v35, %v2815_v7  ;;  %2521 = vmatprep.mubr.msk.bf16.mxu1 %vm446_vm2, %v3630_v17  ;;  %2558 = vmatmul.mubr.msk.bf16.gmra.mrb[8].mxu0 %vm446_vm2, %v3630_v17  ;;  %v575_v49 = vsel %vm482_vm1, 0.0, %v519_v0 }
  0xbb   : > { %v941_v39 = vpack.c.bf16 %v917_v8, %v916_v22  ;;  %v2823_v9 = vpop.permute.xlu1 %2822  ;;  %v886_v57 = vsel %vm868_vm4, %v3472_v61, %v2820_v31  ;;  %v885_v32 = vsel %vm868_vm4, %v571_v42, %v2819_v29  ;;  %v572_v61 = vsel %vm482_vm1, 0.0, %v510_v10 }
  0xbc   : > { %v2828_v45 = vpop.permute.xlu0 %2827  ;;  %v3642_v41 = vld [vmem:[#allocation2 + $0x30] sm:$0xff]  ;;  %v2825_v54 = vunpack.i.h.bf16 %v2823_v9  ;;  %v2824_v36 = vunpack.i.l.bf16 %v2823_v9 }
  0xbd   : > { %958 = vst.msk [vmem:[#allocation2 + $0x40] sm:$0xff] %vm446_vm2, %v941_v39  ;;  %v2830_v28 = vunpack.i.h.bf16 %v2828_v45  ;;  %v2829_v62 = vunpack.i.l.bf16 %v2828_v45  ;;  %2522 = vmatmul.mubr.msk.bf16.gmra.mrb[8].mxu1 %vm446_vm2, %v3642_v41  ;;  %2561 = vmatprep.mubr.msk.bf16.mxu0 %vm446_vm2, %v3642_v41 }
  0xbe   : > { %v888_v43 = vsel %vm868_vm4, %v3487_v1, %v2825_v54  ;;  %v887_v48 = vsel %vm868_vm4, %v572_v61, %v2824_v36 }
  0xbf   : > { %v918_v26 = vsel %vm901_vm5, %v885_v32, %v2829_v62  ;;  %v919_v40 = vsel %vm901_vm5, %v886_v57, %v2830_v28  ;;  %v2833_v34 = vpop.permute.xlu1 %2832 }
  0xc0   : > { %v942_v63 = vpack.c.bf16 %v919_v40, %v918_v26  ;;  %v2835_v53 = vunpack.i.h.bf16 %v2833_v34  ;;  %v2834_v33 = vunpack.i.l.bf16 %v2833_v34  ;;  %v2838_v23 = vpop.permute.xlu0 %2837 }
  0xc1   : > { %v2840_v37 = vunpack.i.h.bf16 %v2838_v23  ;;  %v2839_v10 = vunpack.i.l.bf16 %v2838_v23  ;;  %v3660_v11 = vld [vmem:[#allocation2 + $0x38] sm:$0xff] }
  0xc2   : > { %959 = vst.msk [vmem:[#allocation2 + $0x48] sm:$0xff] %vm446_vm2, %v942_v63  ;;  %v920_v12 = vsel %vm901_vm5, %v887_v48, %v2834_v33  ;;  %v921_v15 = vsel %vm901_vm5, %v888_v43, %v2835_v53  ;;  %2525 = vmatprep.mubr.msk.bf16.mxu1 %vm446_vm2, %v3660_v11  ;;  %2562 = vmatmul.mubr.msk.bf16.gmra.mrb[12].mxu0 %vm446_vm2, %v3660_v11  ;;  %v4032_v63 = vrot.slane %v3351_v27, 7 }
  0xc3   : > { %v943_v59 = vpack.c.bf16 %v921_v15, %v920_v12  ;;  %v2843_v3 = vpop.permute.xlu1 %2842  ;;  %2585 = vmatprep.mubr.msk.bf16.mxu0 %vm446_vm2, %v3578_v52  ;;  %v890_v1 = vsel %vm868_vm4, %v3494_v60, %v2840_v37  ;;  %v889_v55 = vsel %vm868_vm4, %v573_v46, %v2839_v10  ;;  %v574_v52 = vsel %vm482_vm1, 0.0, %v516_v18 }
  0xc4   : > { %v2848_v21 = vpop.permute.xlu0 %2847  ;;  %v3674_v20 = vld [vmem:[#allocation2 + $0x40] sm:$0xff]  ;;  %v2845_v47 = vunpack.i.h.bf16 %v2843_v3  ;;  %v2844_v14 = vunpack.i.l.bf16 %v2843_v3  ;;  %v577_v53 = vsel %vm482_vm1, 0.0, %v4032_v63 }
  0xc5   : > { %960 = vst.msk [vmem:[#allocation2 + $0x50] sm:$0xff] %vm446_vm2, %v943_v59  ;;  %v2850_v19 = vunpack.i.h.bf16 %v2848_v21  ;;  %v2849_v38 = vunpack.i.l.bf16 %v2848_v21  ;;  %2526 = vmatmul.mubr.msk.bf16.gmra.mrb[12].mxu1 %vm446_vm2, %v3674_v20 }
  0xc6   : > { %v892_v29 = vsel %vm868_vm4, %v3499_v6, %v2845_v47  ;;  %v891_v5 = vsel %vm868_vm4, %v574_v52, %v2844_v14 }
  0xc7   : > { %v922_v60 = vsel %vm901_vm5, %v889_v55, %v2849_v38  ;;  %v923_v7 = vsel %vm901_vm5, %v890_v1, %v2850_v19  ;;  %v2853_v16 = vpop.permute.xlu1 %2852 }
  0xc8   : > { %v944_v42 = vpack.c.bf16 %v923_v7, %v922_v60  ;;  %v2855_v50 = vunpack.i.h.bf16 %v2853_v16  ;;  %v2854_v35 = vunpack.i.l.bf16 %v2853_v16  ;;  %v2858_v31 = vpop.permute.xlu0 %2857 }
  0xc9   : > { %v2860_v22 = vunpack.i.h.bf16 %v2858_v31  ;;  %v2859_v18 = vunpack.i.l.bf16 %v2858_v31  ;;  %v3690_v8 = vld [vmem:[#allocation2 + $0x48] sm:$0xff] }
  0xca   : > { %961 = vst.msk [vmem:[#allocation2 + $0x58] sm:$0xff] %vm446_vm2, %v944_v42  ;;  %v924_v39 = vsel %vm901_vm5, %v891_v5, %v2854_v35  ;;  %v925_v9 = vsel %vm901_vm5, %v892_v29, %v2855_v50  ;;  %2529 = vmatprep.mubr.msk.bf16.mxu1 %vm446_vm2, %v3690_v8  ;;  %2586 = vmatmul.mubr.msk.bf16.vlgmr.msra.gmra.mrb[0].mxu0 %vm446_vm2, %v3599_v25  ;;  %v576_v25 = vsel %vm482_vm1, 0.0, %v522_v2 }
  0xcb   : > { %v945_v58 = vpack.c.bf16 %v925_v9, %v924_v39  ;;  %v2863_v0 = vpop.permute.xlu1 %2862  ;;  %2589 = vmatprep.mubr.msk.bf16.mxu0 %vm446_vm2, %v3612_v51  ;;  %v894_v6 = vsel %vm868_vm4, %v3505_v30, %v2860_v22  ;;  %v893_v57 = vsel %vm868_vm4, %v575_v49, %v2859_v18 }
  0xcc   : > { %v2868_v32 = vpop.permute.xlu0 %2867  ;;  %v3704_v45 = vld [vmem:[#allocation2 + $0x50] sm:$0xff]  ;;  %v2865_v54 = vunpack.i.h.bf16 %v2863_v0  ;;  %v2864_v36 = vunpack.i.l.bf16 %v2863_v0 }
  0xcd   : > { %962 = vst.msk [vmem:[#allocation2 + $0x60] sm:$0xff] %vm446_vm2, %v945_v58  ;;  %v2870_v28 = vunpack.i.h.bf16 %v2868_v32  ;;  %v2869_v62 = vunpack.i.l.bf16 %v2868_v32  ;;  %2530 = vmatmul.mubr.msk.bf16.gmra.mrb[16].mxu1 %vm446_vm2, %v3704_v45 }
  0xce   : > { %v896_v46 = vsel %vm868_vm4, %v3516_v56, %v2865_v54  ;;  %v895_v4 = vsel %vm868_vm4, %v576_v25, %v2864_v36 }
  0xcf   : > { %v926_v30 = vsel %vm901_vm5, %v893_v57, %v2869_v62  ;;  %v927_v51 = vsel %vm901_vm5, %v894_v6, %v2870_v28  ;;  %v2873_v61 = vpop.permute.xlu1 %2872 }
  0xd0   : > { %v946_v26 = vpack.c.bf16 %v927_v51, %v926_v30  ;;  %v2875_v40 = vunpack.i.h.bf16 %v2873_v61  ;;  %v2874_v34 = vunpack.i.l.bf16 %v2873_v61  ;;  %v2878_v33 = vpop.permute.xlu0 %2877 }
  0xd1   : > { %v2880_v23 = vunpack.i.h.bf16 %v2878_v33  ;;  %v2879_v2 = vunpack.i.l.bf16 %v2878_v33  ;;  %v996_v43 = vld [vmem:[#allocation2 + $0x58] sm:$0xff] }
  0xd2   : > { %963 = vst.msk [vmem:[#allocation2 + $0x68] sm:$0xff] %vm446_vm2, %v946_v26  ;;  %v928_v48 = vsel %vm901_vm5, %v895_v4, %v2874_v34  ;;  %v929_v37 = vsel %vm901_vm5, %v896_v46, %v2875_v40  ;;  %2533 = vmatprep.mubr.msk.bf16.mxu1 %vm446_vm2, %v996_v43  ;;  %2590 = vmatmul.mubr.msk.bf16.gmra.mrb[4].mxu0 %vm446_vm2, %v3630_v17  ;;  %v4033_v17 = vrot.slane %v3359_v24, 7 }
  0xd3   : > { %v947_v27 = vpack.c.bf16 %v929_v37, %v928_v48  ;;  %v2883_v10 = vpop.permute.xlu1 %2882  ;;  %2593 = vmatprep.mubr.msk.bf16.mxu0 %vm446_vm2, %v3642_v41  ;;  %v898_v56 = vsel %vm868_vm4, %v3522_v44, %v2880_v23  ;;  %v897_v12 = vsel %vm868_vm4, %v577_v53, %v2879_v2 }
  0xd4   : > { %v2888_v15 = vpop.permute.xlu0 %2887  ;;  %v997_v59 = vld [vmem:[#allocation2 + $0x60] sm:$0xff]  ;;  %v2885_v3 = vunpack.i.h.bf16 %v2883_v10  ;;  %v2884_v1 = vunpack.i.l.bf16 %v2883_v10  ;;  %v578_v47 = vsel %vm482_vm1, 0.0, %v4033_v17 }
  0xd5   : > { %964 = vst.msk [vmem:[#allocation2 + $0x70] sm:$0xff] %vm446_vm2, %v947_v27  ;;  %v2890_v55 = vunpack.i.h.bf16 %v2888_v15  ;;  %v2889_v21 = vunpack.i.l.bf16 %v2888_v15  ;;  %2534 = vmatmul.mubr.msk.bf16.gmra.mrb[20].mxu1 %vm446_vm2, %v997_v59 }
  0xd6   : > { %v900_v60 = vsel %vm868_vm4, %v3527_v13, %v2885_v3  ;;  %v899_v7 = vsel %vm868_vm4, %v578_v47, %v2884_v1 }
  0xd7   : > { %v930_v41 = vsel %vm901_vm5, %v897_v12, %v2889_v21  ;;  %v931_v44 = vsel %vm901_vm5, %v898_v56, %v2890_v55  ;;  %v2893_v14 = vpop.permute.xlu1 %2892 }
  0xd8   : > { %v948_v19 = vpack.c.bf16 %v931_v44, %v930_v41  ;;  %v2895_v38 = vunpack.i.h.bf16 %v2893_v14  ;;  %v2894_v52 = vunpack.i.l.bf16 %v2893_v14 }
  0xd9   : > { %v998_v16 = vld [vmem:[#allocation2 + $0x68] sm:$0xff] }
  0xda   : > { %965 = vst.msk [vmem:[#allocation2 + $0x78] sm:$0xff] %vm446_vm2, %v948_v19  ;;  %v932_v24 = vsel %vm901_vm5, %v899_v7, %v2894_v52  ;;  %v933_v42 = vsel %vm901_vm5, %v900_v60, %v2895_v38  ;;  %2537 = vmatprep.mubr.msk.bf16.mxu1 %vm446_vm2, %v998_v16  ;;  %2594 = vmatmul.mubr.msk.bf16.gmra.mrb[8].mxu0 %vm446_vm2, %v3660_v11  ;;  %v1465_v11 = vld [vmem:[#allocation2 + $0x88] sm:$0xff] }
  0xdb   : > { %v949_v50 = vpack.c.bf16 %v933_v42, %v932_v24  ;;  %2597 = vmatprep.mubr.msk.bf16.mxu0 %vm446_vm2, %v3674_v20 }
  0xdc   : > { %v999_v35 = vld [vmem:[#allocation2 + $0x70] sm:$0xff] }
  0xdd   : > { %966 = vst.msk [vmem:[#allocation2 + $0x80] sm:$0xff] %vm446_vm2, %v949_v50  ;;  %2538 = vmatmul.mubr.msk.bf16.gmra.mrb[24].mxu1 %vm446_vm2, %v999_v35 }
  0xe1   : > { %v1000_v13 = vld [vmem:[#allocation2 + $0x78] sm:$0xff] }
  0xe2   : > { %2541 = vmatprep.mubr.msk.bf16.mxu1 %vm446_vm2, %v1000_v13  ;;  %2598 = vmatmul.mubr.msk.bf16.gmra.mrb[12].mxu0 %vm446_vm2, %v3690_v8 }
  0xe3   : > { %2601 = vmatprep.mubr.msk.bf16.mxu0 %vm446_vm2, %v3704_v45 }
  0xe4   : > { %v1001_v49 = vld [vmem:[#allocation2 + $0x80] sm:$0xff] }
  0xe5   : > { %2542 = vmatmul.mubr.msk.bf16.gmra.mrb[28].mxu1 %vm446_vm2, %v1001_v49 }
  0xe6   : > { %2565 = vmatprep.mubr.msk.bf16.mxu1 %vm446_vm2, %v3674_v20 }
  0xea   : > { %2602 = vmatmul.mubr.msk.bf16.gmra.mrb[16].mxu0 %vm446_vm2, %v996_v43 }
  0xeb   : > { %2605 = vmatprep.mubr.msk.bf16.mxu0 %vm446_vm2, %v997_v59 }
  0xed   : > { %2566 = vmatmul.mubr.msk.bf16.vlgmr.msra.gmra.mrb[16].mxu1 %vm446_vm2, %v3690_v8 }
  0xee   : > { %2569 = vmatprep.mubr.msk.bf16.mxu1 %vm446_vm2, %v3704_v45 }
  0xf2   : > { %2606 = vmatmul.mubr.msk.bf16.gmra.mrb[20].mxu0 %vm446_vm2, %v998_v16 }
  0xf3   : > { %2609 = vmatprep.mubr.msk.bf16.mxu0 %vm446_vm2, %v999_v35 }
  0xf5   : > { %2570 = vmatmul.mubr.msk.bf16.gmra.mrb[20].mxu1 %vm446_vm2, %v996_v43 }
  0xf6   : > { %2573 = vmatprep.mubr.msk.bf16.mxu1 %vm446_vm2, %v997_v59 }
  0xfa   : > { %2610 = vmatmul.mubr.msk.bf16.gmra.mrb[24].mxu0 %vm446_vm2, %v1000_v13 }
  0xfb   : > { %2613 = vmatprep.mubr.msk.bf16.mxu0 %vm446_vm2, %v1001_v49 }
  0xfd   : > { %2574 = vmatmul.mubr.msk.bf16.gmra.mrb[24].mxu1 %vm446_vm2, %v998_v16 }
  0xfe   : > { %2577 = vmatprep.mubr.msk.bf16.mxu1 %vm446_vm2, %v999_v35 }
 0x102   : > { %2614 = vmatmul.mubr.msk.bf16.gmra.mrb[28].mxu0 %vm446_vm2, %v1465_v11 }
 0x105   : > { %2578 = vmatmul.mubr.msk.bf16.gmra.mrb[28].mxu1 %vm446_vm2, %v1000_v13 }
 0x180   : > { %v2515_v20 = vpop.f32.mrb[0].mxu1 }
 0x181   : > { %v1101_v31 = vpop.f32.mrb[1].mxu1 }
 0x182   : > { %v2516_v29 = vpop.f32.mrb[2].mxu1 }
 0x183   : > { %v1104_v5 = vpop.f32.mrb[3].mxu1 }
 0x188   : > { %v2519_v22 = vpop.f32.mrb[4].mxu1 }
 0x189   : > { %v1117_v18 = vpop.f32.mrb[5].mxu1 }
 0x18a   : > { %v2520_v8 = vpop.f32.mrb[6].mxu1 }
 0x18b   : > { %v1120_v39 = vpop.f32.mrb[7].mxu1 }
 0x190   : > { %v3775_v9 = vpop.f32.mrb[8].mxu1 }
 0x191   : > { %v3777_v58 = vpop.f32.mrb[9].mxu1 }
 0x192   : > { %v3779_v0 = vpop.f32.mrb[10].mxu1 }
 0x193   : > { %v3781_v6 = vpop.f32.mrb[11].mxu1 }
 0x198   : > { %v3783_v57 = vpop.f32.mrb[12].mxu1 }
 0x199   : > { %v3785_v32 = vpop.f32.mrb[13].mxu1 }
 0x19a   : > { %v3787_v45 = vpop.f32.mrb[14].mxu1 }
 0x19b   : > { %v3789_v54 = vpop.f32.mrb[15].mxu1 }
 0x19d   : > { %v2587_v36 = vpop.f32.mrb[0].mxu0 }
 0x19e   : > { %v2621_v28 = vadd.f32 %v2587_v36, %v2515_v20  ;;  %v1564_v62 = vpop.f32.mrb[1].mxu0 }
 0x19f   : > { %v2622_v25 = vadd.f32 %v1564_v62, %v1101_v31  ;;  %v2588_v30 = vpop.f32.mrb[2].mxu0 }
 0x1a0   : > { %v2346_v51 = vpack.c.bf16 %v2621_v28, %v2621_v28  ;;  %v2623_v61 = vadd.f32 %v2588_v30, %v2516_v29  ;;  %v1567_v26 = vpop.f32.mrb[3].mxu0 }
 0x1a1   : > { %v2344_v40 = vpack.c.bf16 %v2622_v25, %v2622_v25  ;;  %v2624_v34 = vadd.f32 %v1567_v26, %v1104_v5 }
 0x1a2   : > { %1854 = vst.msk [vmem:[%s3796_s26 + $0x8] sm:$0xf] %vm1851_vm6, %v2346_v51  ;;  %v1724_v63 = vpack.c.bf16 %v2623_v61, %v2621_v28  ;;  %v2347_v53 = vpack.c.bf16 %v2623_v61, %v2623_v61 }
 0x1a3   : > { %1852 = vst.msk [vmem:[%s3796_s26] sm:$0xf] %vm1851_vm6, %v2344_v40  ;;  %v1723_v33 = vpack.c.bf16 %v2624_v34, %v2622_v25  ;;  %v2345_v46 = vpack.c.bf16 %v2624_v34, %v2624_v34 }
 0x1a4   : > { %1855 = vst.msk [vmem:[%s3796_s26 + $0xc] sm:$0xf] %vm1851_vm6, %v2347_v53  ;;  %v1886_v4 = vunpack.c.l.bf16 %v1724_v63  ;;  %v1887_v23 = vunpack.c.h.bf16 %v1724_v63 }
 0x1a5   : > { %1853 = vst.msk [vmem:[%s3796_s26 + $0x4] sm:$0xf] %vm1851_vm6, %v2345_v46  ;;  %v1884_v2 = vunpack.c.l.bf16 %v1723_v33  ;;  %v1885_v43 = vunpack.c.h.bf16 %v1723_v33  ;;  %v2591_v48 = vpop.f32.mrb[4].mxu0 }
 0x1a6   : > { %v1920_v37 = vsel %vm1916_vm7, %v1886_v4, 0.0  ;;  %v1990_v27 = vmul.f32 %v1886_v4, %v1886_v4  ;;  %v1580_v10 = vpop.f32.mrb[5].mxu0  ;;  %v1922_v1 = vsel %vm1916_vm7, %v1887_v23, 0.0  ;;  %v1991_v55 = vmul.f32 %v1887_v23, %v1887_v23 }
 0x1a7   : > { %v1917_v56 = vsel %vm1916_vm7, %v1884_v2, 0.0  ;;  %v1918_v12 = vsel %vm1916_vm7, %v1885_v43, 0.0  ;;  %v1988_v15 = vmul.f32 %v1884_v2, %v1884_v2  ;;  %v1989_v59 = vmul.f32 %v1885_v43, %v1885_v43  ;;  %v2592_v3 = vpop.f32.mrb[6].mxu0 }
 0x1a8   : > { %v1919_v21 = vadd.f32 %v1918_v12, %v1917_v56  ;;  %v2625_v17 = vadd.f32 %v2591_v48, %v2519_v22  ;;  %v1583_v47 = vpop.f32.mrb[7].mxu0  ;;  %v2626_v14 = vadd.f32 %v1580_v10, %v1117_v18  ;;  %v2627_v19 = vadd.f32 %v2592_v3, %v2520_v8 }
 0x1a9   : > { %v2020_v41 = vsel %vm1916_vm7, %v1988_v15, 0.0  ;;  %v2021_v44 = vsel %vm1916_vm7, %v1989_v59, 0.0  ;;  %v2628_v7 = vadd.f32 %v1583_v47, %v1120_v39  ;;  %v2023_v16 = vsel %vm1916_vm7, %v1990_v27, 0.0 }
 0x1aa   : > { %v1921_v38 = vadd.f32 %v1920_v37, %v1919_v21  ;;  %v2022_v52 = vadd.f32 %v2021_v44, %v2020_v41  ;;  %v2350_v60 = vpack.c.bf16 %v2625_v17, %v2625_v17  ;;  %v2348_v24 = vpack.c.bf16 %v2626_v14, %v2626_v14 }
 0x1ab   : > { %v1726_v42 = vpack.c.bf16 %v2627_v19, %v2625_v17  ;;  %v2351_v50 = vpack.c.bf16 %v2627_v19, %v2627_v19  ;;  %v1725_v13 = vpack.c.bf16 %v2628_v7, %v2626_v14  ;;  %v2349_v49 = vpack.c.bf16 %v2628_v7, %v2628_v7 }
 0x1ac   : > { %v2024_v35 = vadd.f32 %v2023_v16, %v2022_v52  ;;  %1858 = vst.msk [vmem:[%s3796_s26 + $0x18] sm:$0xf] %vm1851_vm6, %v2350_v60  ;;  %v1923_v11 = vadd.f32 %v1922_v1, %v1921_v38  ;;  %v2025_v20 = vsel %vm1916_vm7, %v1991_v55, 0.0  ;;  %1856 = vst.msk [vmem:[%s3796_s26 + $0x10] sm:$0xf] %vm1851_vm6, %v2348_v24 }
 0x1ad   : > { %1859 = vst.msk [vmem:[%s3796_s26 + $0x1c] sm:$0xf] %vm1851_vm6, %v2351_v50  ;;  %v1890_v31 = vunpack.c.l.bf16 %v1726_v42  ;;  %v2595_v29 = vpop.f32.mrb[8].mxu0  ;;  %1857 = vst.msk [vmem:[%s3796_s26 + $0x14] sm:$0xf] %vm1851_vm6, %v2349_v49  ;;  %v1888_v5 = vunpack.c.l.bf16 %v1725_v13  ;;  %v1889_v22 = vunpack.c.h.bf16 %v1725_v13  ;;  %v1891_v36 = vunpack.c.h.bf16 %v1726_v42 }
 0x1ae   : > { %v2026_v18 = vadd.f32 %v2025_v20, %v2024_v35  ;;  %v2629_v8 = vadd.f32 %v2595_v29, %v3775_v9  ;;  %v1596_v39 = vpop.f32.mrb[9].mxu0 }
 0x1af   : > { %v2596_v28 = vpop.f32.mrb[10].mxu0  ;;  %v1924_v62 = vsel %vm1916_vm7, %v1888_v5, 0.0  ;;  %v1992_v25 = vmul.f32 %v1888_v5, %v1888_v5  ;;  %v1993_v30 = vmul.f32 %v1889_v22, %v1889_v22  ;;  %v1928_v61 = vsel %vm1916_vm7, %v1890_v31, 0.0 }
 0x1b0   : > { %v1599_v51 = vpop.f32.mrb[11].mxu0  ;;  %v1994_v26 = vmul.f32 %v1890_v31, %v1890_v31  ;;  %v1925_v40 = vadd.f32 %v1924_v62, %v1923_v11  ;;  %v2354_v34 = vpack.c.bf16 %v2629_v8, %v2629_v8  ;;  %v1926_v63 = vsel %vm1916_vm7, %v1889_v22, 0.0 }
 0x1b1   : > { %v2027_v53 = vsel %vm1916_vm7, %v1992_v25, 0.0  ;;  %v2630_v9 = vadd.f32 %v1596_v39, %v3777_v58  ;;  %v2631_v33 = vadd.f32 %v2596_v28, %v3779_v0  ;;  %v1995_v46 = vmul.f32 %v1891_v36, %v1891_v36 }
 0x1b2   : > { %v1927_v4 = vadd.f32 %v1926_v63, %v1925_v40  ;;  %v2028_v23 = vadd.f32 %v2027_v53, %v2026_v18  ;;  %1862 = vst.msk [vmem:[%s3796_s26 + $0x28] sm:$0xf] %vm1851_vm6, %v2354_v34  ;;  %v2632_v2 = vadd.f32 %v1599_v51, %v3781_v6  ;;  %v2029_v43 = vsel %vm1916_vm7, %v1993_v30, 0.0 }
 0x1b3   : > { %v2352_v48 = vpack.c.bf16 %v2630_v9, %v2630_v9  ;;  %v1728_v37 = vpack.c.bf16 %v2631_v33, %v2629_v8  ;;  %v2355_v27 = vpack.c.bf16 %v2631_v33, %v2631_v33  ;;  %v1930_v15 = vsel %vm1916_vm7, %v1891_v36, 0.0 }
 0x1b4   : > { %v1929_v10 = vadd.f32 %v1928_v61, %v1927_v4  ;;  %v2030_v56 = vadd.f32 %v2029_v43, %v2028_v23  ;;  %v1727_v58 = vpack.c.bf16 %v2632_v2, %v2630_v9  ;;  %v2353_v12 = vpack.c.bf16 %v2632_v2, %v2632_v2 }
 0x1b5   : > { %v2599_v0 = vpop.f32.mrb[12].mxu0  ;;  %v2031_v59 = vsel %vm1916_vm7, %v1994_v26, 0.0  ;;  %1860 = vst.msk [vmem:[%s3796_s26 + $0x20] sm:$0xf] %vm1851_vm6, %v2352_v48  ;;  %1863 = vst.msk [vmem:[%s3796_s26 + $0x2c] sm:$0xf] %vm1851_vm6, %v2355_v27  ;;  %v1894_v6 = vunpack.c.l.bf16 %v1728_v37  ;;  %v1895_v19 = vunpack.c.h.bf16 %v1728_v37 }
 0x1b6   : > { %v2633_v3 = vadd.f32 %v2599_v0, %v3783_v57  ;;  %v1612_v1 = vpop.f32.mrb[13].mxu0  ;;  %v2032_v55 = vadd.f32 %v2031_v59, %v2030_v56  ;;  %1861 = vst.msk [vmem:[%s3796_s26 + $0x24] sm:$0xf] %vm1851_vm6, %v2353_v12  ;;  %v1892_v21 = vunpack.c.l.bf16 %v1727_v58  ;;  %v1893_v17 = vunpack.c.h.bf16 %v1727_v58 }
 0x1b7   : > { %v1931_v47 = vadd.f32 %v1930_v15, %v1929_v10  ;;  %v2600_v41 = vpop.f32.mrb[14].mxu0  ;;  %v2033_v44 = vsel %vm1916_vm7, %v1995_v46, 0.0  ;;  %v1998_v7 = vmul.f32 %v1894_v6, %v1894_v6  ;;  %v2634_v35 = vadd.f32 %v1612_v1, %v3785_v32 }
 0x1b8   : > { %v1615_v14 = vpop.f32.mrb[15].mxu0  ;;  %v1932_v38 = vsel %vm1916_vm7, %v1892_v21, 0.0  ;;  %v1996_v52 = vmul.f32 %v1892_v21, %v1892_v21  ;;  %v1997_v60 = vmul.f32 %v1893_v17, %v1893_v17  ;;  %v2034_v57 = vadd.f32 %v2033_v44, %v2032_v55 }
 0x1b9   : > { %v1933_v16 = vadd.f32 %v1932_v38, %v1931_v47  ;;  %v1934_v24 = vsel %vm1916_vm7, %v1893_v17, 0.0  ;;  %v2358_v50 = vpack.c.bf16 %v2633_v3, %v2633_v3  ;;  %v2635_v11 = vadd.f32 %v2600_v41, %v3787_v45 }
 0x1ba   : > { %v2035_v42 = vsel %vm1916_vm7, %v1996_v52, 0.0  ;;  %v2636_v20 = vadd.f32 %v1615_v14, %v3789_v54  ;;  %v1936_v31 = vsel %vm1916_vm7, %v1894_v6, 0.0  ;;  %v1999_v29 = vmul.f32 %v1895_v19, %v1895_v19 }
 0x1bb   : > { %v1935_v13 = vadd.f32 %v1934_v24, %v1933_v16  ;;  %v2036_v49 = vadd.f32 %v2035_v42, %v2034_v57  ;;  %v2037_v5 = vsel %vm1916_vm7, %v1997_v60, 0.0  ;;  %1866 = vst.msk [vmem:[%s3796_s26 + $0x38] sm:$0xf] %vm1851_vm6, %v2358_v50  ;;  %v2356_v22 = vpack.c.bf16 %v2634_v35, %v2634_v35 }
 0x1bc   : > { %v1730_v32 = vpack.c.bf16 %v2635_v11, %v2633_v3  ;;  %v2359_v36 = vpack.c.bf16 %v2635_v11, %v2635_v11  ;;  %v1938_v45 = vsel %vm1916_vm7, %v1895_v19, 0.0  ;;  %v2039_v54 = vsel %vm1916_vm7, %v1998_v7, 0.0 }
 0x1bd   : > { %v2603_v18 = vpop.f32.mrb[16].mxu0  ;;  %v1937_v8 = vadd.f32 %v1936_v31, %v1935_v13  ;;  %v2038_v39 = vadd.f32 %v2037_v5, %v2036_v49  ;;  %1864 = vst.msk [vmem:[%s3796_s26 + $0x30] sm:$0xf] %vm1851_vm6, %v2356_v22  ;;  %v1729_v62 = vpack.c.bf16 %v2636_v20, %v2634_v35  ;;  %v2357_v25 = vpack.c.bf16 %v2636_v20, %v2636_v20 }
 0x1be   : > { %v1628_v28 = vpop.f32.mrb[17].mxu0  ;;  %1867 = vst.msk [vmem:[%s3796_s26 + $0x3c] sm:$0xf] %vm1851_vm6, %v2359_v36  ;;  %v1898_v61 = vunpack.c.l.bf16 %v1730_v32  ;;  %v2041_v46 = vsel %vm1916_vm7, %v1999_v29, 0.0  ;;  %v1899_v23 = vunpack.c.h.bf16 %v1730_v32 }
 0x1bf   : > { %v2604_v30 = vpop.f32.mrb[18].mxu0  ;;  %v2040_v51 = vadd.f32 %v2039_v54, %v2038_v39  ;;  %v1939_v26 = vadd.f32 %v1938_v45, %v1937_v8  ;;  %1865 = vst.msk [vmem:[%s3796_s26 + $0x34] sm:$0xf] %vm1851_vm6, %v2357_v25  ;;  %v1896_v63 = vunpack.c.l.bf16 %v1729_v62  ;;  %v1897_v53 = vunpack.c.h.bf16 %v1729_v62 }
 0x1c0   : > { %v2567_v40 = vpop.f32.mrb[16].mxu1  ;;  %v1631_v34 = vpop.f32.mrb[19].mxu0  ;;  %v1944_v27 = vsel %vm1916_vm7, %v1898_v61, 0.0  ;;  %v2002_v10 = vmul.f32 %v1898_v61, %v1898_v61  ;;  %v1946_v47 = vsel %vm1916_vm7, %v1899_v23, 0.0  ;;  %v2003_v41 = vmul.f32 %v1899_v23, %v1899_v23 }
 0x1c1   : > { %v2637_v9 = vadd.f32 %v2603_v18, %v2567_v40  ;;  %v1386_v33 = vpop.f32.mrb[17].mxu1  ;;  %v1940_v2 = vsel %vm1916_vm7, %v1896_v63, 0.0  ;;  %v2000_v43 = vmul.f32 %v1896_v63, %v1896_v63  ;;  %v2001_v48 = vmul.f32 %v1897_v53, %v1897_v53 }
 0x1c2   : > { %v2568_v4 = vpop.f32.mrb[18].mxu1  ;;  %v1941_v56 = vadd.f32 %v1940_v2, %v1939_v26  ;;  %v2042_v58 = vadd.f32 %v2041_v46, %v2040_v51  ;;  %v1942_v12 = vsel %vm1916_vm7, %v1897_v53, 0.0  ;;  %v2638_v59 = vadd.f32 %v1628_v28, %v1386_v33 }
 0x1c3   : > { %v1389_v37 = vpop.f32.mrb[19].mxu1  ;;  %v2043_v0 = vsel %vm1916_vm7, %v2000_v43, 0.0  ;;  %v2362_v15 = vpack.c.bf16 %v2637_v9, %v2637_v9  ;;  %v2639_v55 = vadd.f32 %v2604_v30, %v2568_v4  ;;  %v2045_v44 = vsel %vm1916_vm7, %v2001_v48, 0.0 }
 0x1c4   : > { %v1943_v3 = vadd.f32 %v1942_v12, %v1941_v56  ;;  %v2044_v1 = vadd.f32 %v2043_v0, %v2042_v58  ;;  %v2640_v21 = vadd.f32 %v1631_v34, %v1389_v37  ;;  %v2360_v14 = vpack.c.bf16 %v2638_v59, %v2638_v59 }
 0x1c5   : > { %v2607_v6 = vpop.f32.mrb[20].mxu0  ;;  %1870 = vst.msk [vmem:[%s3796_s26 + $0x48] sm:$0xf] %vm1851_vm6, %v2362_v15  ;;  %v1732_v60 = vpack.c.bf16 %v2639_v55, %v2637_v9  ;;  %v2363_v7 = vpack.c.bf16 %v2639_v55, %v2639_v55  ;;  %v2047_v24 = vsel %vm1916_vm7, %v2002_v10, 0.0  ;;  %v2049_v32 = vsel %vm1916_vm7, %v2003_v41, 0.0 }
 0x1c6   : > { %v1644_v17 = vpop.f32.mrb[21].mxu0  ;;  %v1945_v38 = vadd.f32 %v1944_v27, %v1943_v3  ;;  %v2046_v52 = vadd.f32 %v2045_v44, %v2044_v1  ;;  %1868 = vst.msk [vmem:[%s3796_s26 + $0x40] sm:$0xf] %vm1851_vm6, %v2360_v14  ;;  %v1731_v42 = vpack.c.bf16 %v2640_v21, %v2638_v59  ;;  %v2361_v50 = vpack.c.bf16 %v2640_v21, %v2640_v21 }
 0x1c7   : > { %v2608_v19 = vpop.f32.mrb[22].mxu0  ;;  %1871 = vst.msk [vmem:[%s3796_s26 + $0x4c] sm:$0xf] %vm1851_vm6, %v2363_v7  ;;  %v1902_v11 = vunpack.c.l.bf16 %v1732_v60  ;;  %v1903_v20 = vunpack.c.h.bf16 %v1732_v60 }
 0x1c8   : > { %v2571_v16 = vpop.f32.mrb[20].mxu1  ;;  %v1647_v57 = vpop.f32.mrb[23].mxu0  ;;  %v2048_v49 = vadd.f32 %v2047_v24, %v2046_v52  ;;  %v1947_v31 = vadd.f32 %v1946_v47, %v1945_v38  ;;  %1869 = vst.msk [vmem:[%s3796_s26 + $0x44] sm:$0xf] %vm1851_vm6, %v2361_v50  ;;  %v1900_v5 = vunpack.c.l.bf16 %v1731_v42  ;;  %v1901_v22 = vunpack.c.h.bf16 %v1731_v42 }
 0x1c9   : > { %v2641_v35 = vadd.f32 %v2607_v6, %v2571_v16  ;;  %v1402_v13 = vpop.f32.mrb[21].mxu1  ;;  %v2006_v36 = vmul.f32 %v1902_v11, %v1902_v11  ;;  %v1952_v28 = vsel %vm1916_vm7, %v1902_v11, 0.0  ;;  %v1954_v30 = vsel %vm1916_vm7, %v1903_v20, 0.0 }
 0x1ca   : > { %v2572_v29 = vpop.f32.mrb[22].mxu1  ;;  %v2642_v8 = vadd.f32 %v1644_v17, %v1402_v13  ;;  %v1948_v45 = vsel %vm1916_vm7, %v1900_v5, 0.0  ;;  %v2004_v54 = vmul.f32 %v1900_v5, %v1900_v5  ;;  %v2005_v62 = vmul.f32 %v1901_v22, %v1901_v22 }
 0x1cb   : > { %v2366_v18 = vpack.c.bf16 %v2641_v35, %v2641_v35  ;;  %v1405_v39 = vpop.f32.mrb[23].mxu1  ;;  %v2007_v51 = vmul.f32 %v1903_v20, %v1903_v20  ;;  %v1949_v61 = vadd.f32 %v1948_v45, %v1947_v31  ;;  %v2050_v26 = vadd.f32 %v2049_v32, %v2048_v49 }
 0x1cc   : > { %v1950_v34 = vsel %vm1916_vm7, %v1901_v22, 0.0  ;;  %v2051_v63 = vsel %vm1916_vm7, %v2004_v54, 0.0  ;;  %v2364_v53 = vpack.c.bf16 %v2642_v8, %v2642_v8  ;;  %v2643_v9 = vadd.f32 %v2608_v19, %v2572_v29 }
 0x1cd   : > { %1874 = vst.msk [vmem:[%s3796_s26 + $0x58] sm:$0xf] %vm1851_vm6, %v2366_v18  ;;  %v2611_v25 = vpop.f32.mrb[24].mxu0  ;;  %v2055_v46 = vsel %vm1916_vm7, %v2006_v36, 0.0  ;;  %v1951_v4 = vadd.f32 %v1950_v34, %v1949_v61  ;;  %v2052_v23 = vadd.f32 %v2051_v63, %v2050_v26  ;;  %v2644_v2 = vadd.f32 %v1647_v57, %v1405_v39 }
 0x1ce   : > { %v1660_v40 = vpop.f32.mrb[25].mxu0  ;;  %v2053_v37 = vsel %vm1916_vm7, %v2005_v62, 0.0  ;;  %1872 = vst.msk [vmem:[%s3796_s26 + $0x50] sm:$0xf] %vm1851_vm6, %v2364_v53  ;;  %v1734_v27 = vpack.c.bf16 %v2643_v9, %v2641_v35  ;;  %v2367_v10 = vpack.c.bf16 %v2643_v9, %v2643_v9  ;;  %v2057_v19 = vsel %vm1916_vm7, %v2007_v51, 0.0 }
 0x1cf   : > { %v2612_v33 = vpop.f32.mrb[26].mxu0  ;;  %v1953_v12 = vadd.f32 %v1952_v28, %v1951_v4  ;;  %v2054_v0 = vadd.f32 %v2053_v37, %v2052_v23  ;;  %v1733_v15 = vpack.c.bf16 %v2644_v2, %v2642_v8  ;;  %v2365_v59 = vpack.c.bf16 %v2644_v2, %v2644_v2 }
 0x1d0   : > { %v2575_v43 = vpop.f32.mrb[24].mxu1  ;;  %v1663_v48 = vpop.f32.mrb[27].mxu0  ;;  %1875 = vst.msk [vmem:[%s3796_s26 + $0x5c] sm:$0xf] %vm1851_vm6, %v2367_v10  ;;  %v1906_v3 = vunpack.c.l.bf16 %v1734_v27  ;;  %v1907_v1 = vunpack.c.h.bf16 %v1734_v27 }
 0x1d1   : > { %v2645_v56 = vadd.f32 %v2611_v25, %v2575_v43  ;;  %v1418_v58 = vpop.f32.mrb[25].mxu1  ;;  %v2056_v47 = vadd.f32 %v2055_v46, %v2054_v0  ;;  %1873 = vst.msk [vmem:[%s3796_s26 + $0x54] sm:$0xf] %vm1851_vm6, %v2365_v59  ;;  %v1904_v41 = vunpack.c.l.bf16 %v1733_v15  ;;  %v1905_v44 = vunpack.c.h.bf16 %v1733_v15 }
 0x1d2   : > { %v2576_v6 = vpop.f32.mrb[26].mxu1  ;;  %v2646_v21 = vadd.f32 %v1660_v40, %v1418_v58  ;;  %v1955_v14 = vadd.f32 %v1954_v30, %v1953_v12  ;;  %v1960_v38 = vsel %vm1916_vm7, %v1906_v3, 0.0  ;;  %v1962_v60 = vsel %vm1916_vm7, %v1907_v1, 0.0 }
 0x1d3   : > { %v2370_v55 = vpack.c.bf16 %v2645_v56, %v2645_v56  ;;  %v1421_v17 = vpop.f32.mrb[27].mxu1  ;;  %v1956_v7 = vsel %vm1916_vm7, %v1904_v41, 0.0  ;;  %v2008_v16 = vmul.f32 %v1904_v41, %v1904_v41  ;;  %v2009_v57 = vmul.f32 %v1905_v44, %v1905_v44 }
 0x1d4   : > { %v2010_v42 = vmul.f32 %v1906_v3, %v1906_v3  ;;  %v2011_v50 = vmul.f32 %v1907_v1, %v1907_v1  ;;  %v1957_v35 = vadd.f32 %v1956_v7, %v1955_v14  ;;  %v2058_v13 = vadd.f32 %v2057_v19, %v2056_v47 }
 0x1d5   : > { %1878 = vst.msk [vmem:[%s3796_s26 + $0x68] sm:$0xf] %vm1851_vm6, %v2370_v55  ;;  %v2615_v52 = vpop.f32.mrb[28].mxu0  ;;  %v1958_v11 = vsel %vm1916_vm7, %v1905_v44, 0.0  ;;  %v2059_v20 = vsel %vm1916_vm7, %v2008_v16, 0.0  ;;  %v2368_v31 = vpack.c.bf16 %v2646_v21, %v2646_v21  ;;  %v2647_v29 = vadd.f32 %v2612_v33, %v2576_v6 }
 0x1d6   : > { %v1676_v24 = vpop.f32.mrb[29].mxu0  ;;  %v1959_v18 = vadd.f32 %v1958_v11, %v1957_v35  ;;  %v2060_v8 = vadd.f32 %v2059_v20, %v2058_v13  ;;  %v2648_v39 = vadd.f32 %v1663_v48, %v1421_v17  ;;  %v2061_v28 = vsel %vm1916_vm7, %v2009_v57, 0.0 }
 0x1d7   : > { %v2616_v49 = vpop.f32.mrb[30].mxu0  ;;  %1876 = vst.msk [vmem:[%s3796_s26 + $0x60] sm:$0xf] %vm1851_vm6, %v2368_v31  ;;  %v1736_v45 = vpack.c.bf16 %v2647_v29, %v2645_v56  ;;  %v2371_v54 = vpack.c.bf16 %v2647_v29, %v2647_v29  ;;  %v2063_v34 = vsel %vm1916_vm7, %v2010_v42, 0.0  ;;  %v2065_v43 = vsel %vm1916_vm7, %v2011_v50, 0.0 }
 0x1d8   : > { %v2579_v5 = vpop.f32.mrb[28].mxu1  ;;  %v1679_v22 = vpop.f32.mrb[31].mxu0  ;;  %v1961_v30 = vadd.f32 %v1960_v38, %v1959_v18  ;;  %v2062_v51 = vadd.f32 %v2061_v28, %v2060_v8  ;;  %v1735_v61 = vpack.c.bf16 %v2648_v39, %v2646_v21  ;;  %v2369_v26 = vpack.c.bf16 %v2648_v39, %v2648_v39 }
 0x1d9   : > { %v2649_v32 = vadd.f32 %v2615_v52, %v2579_v5  ;;  %v1434_v36 = vpop.f32.mrb[29].mxu1  ;;  %1879 = vst.msk [vmem:[%s3796_s26 + $0x6c] sm:$0xf] %vm1851_vm6, %v2371_v54  ;;  %v1910_v63 = vunpack.c.l.bf16 %v1736_v45  ;;  %v1911_v2 = vunpack.c.h.bf16 %v1736_v45 }
 0x1da   : > { %v2650_v62 = vadd.f32 %v1676_v24, %v1434_v36  ;;  %v2580_v25 = vpop.f32.mrb[30].mxu1  ;;  %v2064_v33 = vadd.f32 %v2063_v34, %v2062_v51  ;;  %1877 = vst.msk [vmem:[%s3796_s26 + $0x64] sm:$0xf] %vm1851_vm6, %v2369_v26  ;;  %v1908_v46 = vunpack.c.l.bf16 %v1735_v61  ;;  %v1909_v4 = vunpack.c.h.bf16 %v1735_v61 }
 0x1db   : > { %v1437_v40 = vpop.f32.mrb[31].mxu1  ;;  %v2374_v53 = vpack.c.bf16 %v2649_v32, %v2649_v32  ;;  %v1963_v23 = vadd.f32 %v1962_v60, %v1961_v30  ;;  %v1968_v10 = vsel %vm1916_vm7, %v1910_v63, 0.0  ;;  %v2014_v56 = vmul.f32 %v1910_v63, %v1910_v63 }
 0x1dc   : > { %v2372_v9 = vpack.c.bf16 %v2650_v62, %v2650_v62  ;;  %v1964_v48 = vsel %vm1916_vm7, %v1908_v46, 0.0  ;;  %v2012_v37 = vmul.f32 %v1908_v46, %v1908_v46  ;;  %v2013_v27 = vmul.f32 %v1909_v4, %v1909_v4 }
 0x1dd   : > { %1882 = vst.msk [vmem:[%s3796_s26 + $0x78] sm:$0xf] %vm1851_vm6, %v2374_v53  ;;  %v1965_v58 = vadd.f32 %v1964_v48, %v1963_v23  ;;  %v2066_v12 = vadd.f32 %v2065_v43, %v2064_v33  ;;  %v1966_v0 = vsel %vm1916_vm7, %v1909_v4, 0.0  ;;  %v2651_v59 = vadd.f32 %v2616_v49, %v2580_v25 }
 0x1de   : > { %1880 = vst.msk [vmem:[%s3796_s26 + $0x70] sm:$0xf] %vm1851_vm6, %v2372_v9  ;;  %v2067_v15 = vsel %vm1916_vm7, %v2012_v37, 0.0  ;;  %v2652_v6 = vadd.f32 %v1679_v22, %v1437_v40  ;;  %v2015_v3 = vmul.f32 %v1911_v2, %v1911_v2  ;;  %v2069_v21 = vsel %vm1916_vm7, %v2013_v27, 0.0 }
 0x1df   : > { %v1967_v1 = vadd.f32 %v1966_v0, %v1965_v58  ;;  %v2068_v55 = vadd.f32 %v2067_v15, %v2066_v12  ;;  %v1738_v17 = vpack.c.bf16 %v2651_v59, %v2649_v32  ;;  %v2375_v47 = vpack.c.bf16 %v2651_v59, %v2651_v59 }
 0x1e0   : > { %v1737_v41 = vpack.c.bf16 %v2652_v6, %v2650_v62  ;;  %v2373_v44 = vpack.c.bf16 %v2652_v6, %v2652_v6  ;;  %v1970_v38 = vsel %vm1916_vm7, %v1911_v2, 0.0  ;;  %v2071_v52 = vsel %vm1916_vm7, %v2014_v56, 0.0 }
 0x1e1   : > { %v1969_v14 = vadd.f32 %v1968_v10, %v1967_v1  ;;  %v2070_v19 = vadd.f32 %v2069_v21, %v2068_v55  ;;  %1883 = vst.msk [vmem:[%s3796_s26 + $0x7c] sm:$0xf] %vm1851_vm6, %v2375_v47  ;;  %v1914_v57 = vunpack.c.l.bf16 %v1738_v17  ;;  %v2073_v42 = vsel %vm1916_vm7, %v2015_v3, 0.0 }
 0x1e2   : > { %1881 = vst.msk [vmem:[%s3796_s26 + $0x74] sm:$0xf] %vm1851_vm6, %v2373_v44  ;;  %v1912_v60 = vunpack.c.l.bf16 %v1737_v41  ;;  %v1913_v7 = vunpack.c.h.bf16 %v1737_v41  ;;  %v1915_v50 = vunpack.c.h.bf16 %v1738_v17  ;;  %s2906_s26 = sshll.u32 %s3001_s20, 4  ;;  %s2907_s26 = int_to_ptr.vmem [resolvable:$false] %s2906_s26 }
 0x1e3   : > { %v2072_v16 = vadd.f32 %v2071_v52, %v2070_v19  ;;  %v1971_v24 = vadd.f32 %v1970_v38, %v1969_v14  ;;  %v2018_v31 = vmul.f32 %v1914_v57, %v1914_v57  ;;  %v1976_v8 = vsel %vm1916_vm7, %v1914_v57, 0.0  ;;  %s2908_s13 = scalar_lea.vmem %s2907_s26, 32  ;;  %p2909_p0 = scmp.lt.s32.totalorder %s3947_s29, %s2907_s26 }
 0x1e4   : > { %v1972_v35 = vsel %vm1916_vm7, %v1912_v60, 0.0  ;;  %v2016_v13 = vmul.f32 %v1912_v60, %v1912_v60  ;;  %v2017_v49 = vmul.f32 %v1913_v7, %v1913_v7  ;;  %v1974_v29 = vsel %vm1916_vm7, %v1913_v7, 0.0  ;;  %p2910_p1 = scmp.lt.s32.totalorder %s2908_s13, %s2902_s19 }
 0x1e5   : > { %v1973_v11 = vadd.f32 %v1972_v35, %v1971_v24  ;;  %v2074_v20 = vadd.f32 %v2073_v42, %v2072_v16  ;;  %v2019_v39 = vmul.f32 %v1915_v50, %v1915_v50  ;;  %v1978_v45 = vsel %vm1916_vm7, %v1915_v50, 0.0 }
 0x1e6   : > { %v2075_v5 = vsel %vm1916_vm7, %v2016_v13, 0.0  ;;  %v2077_v32 = vsel %vm1916_vm7, %v2017_v49, 0.0  ;;  %v2079_v54 = vsel %vm1916_vm7, %v2018_v31, 0.0  ;;  %p2911_p2 = por %p2910_p1, %p2909_p0 }
 0x1e7   : > { %v1975_v22 = vadd.f32 %v1974_v29, %v1973_v11  ;;  %v2076_v18 = vadd.f32 %v2075_v5, %v2074_v20  ;;  %v2081_v30 = vsel %vm1916_vm7, %v2019_v39, 0.0 }
 0x1e8   : > { %p2912_p3 = pnand %p2911_p2, %p2905_p13 }
 0x1e9   : > { %v1977_v36 = vadd.f32 %v1976_v8, %v1975_v22  ;;  %v2078_v28 = vadd.f32 %v2077_v32, %v2076_v18 }
 0x1eb   : > { %v1979_v62 = vadd.f32 %v1978_v45, %v1977_v36  ;;  %v2080_v25 = vadd.f32 %v2079_v54, %v2078_v28 }
 0x1ed   : > { %v1980_v51 = vrot.slane %v1979_v62, 4  ;;  %v2082_v61 = vadd.f32 %v2081_v30, %v2080_v25 }
 0x1ef   : > { %v1981_v26 = vadd.f32 %v1980_v51, %v1979_v62  ;;  %v2083_v40 = vrot.slane %v2082_v61, 4 }
 0x1f1   : > { %v1982_v34 = vrot.slane %v1981_v26, 2  ;;  %v2084_v63 = vadd.f32 %v2083_v40, %v2082_v61 }
 0x1f3   : > { %v1983_v53 = vadd.f32 %v1982_v34, %v1981_v26  ;;  %v2085_v9 = vrot.slane %v2084_v63, 2 }
 0x1f5   : > { %v1984_v33 = vrot.slane %v1983_v53, 1  ;;  %v2086_v46 = vadd.f32 %v2085_v9, %v2084_v63 }
 0x1f7   : > { %v1985_v4 = vadd.f32 %v1984_v33, %v1983_v53  ;;  %v2087_v23 = vrot.slane %v2086_v46, 1 }
 0x1f9   : > { %1987 = vst.msk [vmem:[%s254_s28] sm:$0x1] %vm1986_vm8, %v1985_v4  ;;  %v2088_v2 = vadd.f32 %v2087_v23, %v2086_v46 }
 0x1fa   : > { %2915 = shalt.err (!%p2912_p3)
}
 0x1fb   : > { %s2916_s10 = scalar_lea.hbm %s3945_s15, 16  ;;  %s2920_s25 = scalar_lea.hbm %s4026_s5, 32 }
 0x1fc   : > { %p2917_p4 = scmp.ne.s32.totalorder %s3945_s15, %s2916_s10  ;;  %p2921_p9 = scmp.lt.u32.totalorder %s3945_s15, %s4026_s5 }
 0x1fd   : > { %p2922_p10 = scmp.lt.u32.totalorder %s2920_s25, %s2916_s10  ;;  %p2924_p12 = scmp.lt.u32.totalorder %s2916_s10, %s3945_s15 }
 0x1fe   : > { %p2918_p7 = pnand %p2917_p4, %p3076_p5 }
 0x1ff   : > { %p2923_p11 = por %p2922_p10, %p2921_p9 }
 0x200   : > { %p2919_p8 = pneg %p2918_p7 }
 0x201   : > { %p2925_p13 = por %p2924_p12, %p2923_p11 }
 0x203   : > { %p2926_p0 = pnand %p2925_p13, %p2919_p8 }
 0x205   : > { %2929 = shalt.err (!%p2926_p0)
}
 0x206   : > { %2689 = dma.vmem_to_hbm [thread:$0]  (%p3076_p5), %s3947_s29, 16, %s3945_s15, %s2096_s18   ;;  %2089 = vst.msk [vmem:[%s260_s11] sm:$0x1] %vm1986_vm8, %v2088_v2 }
 0x207   : > { %s2100_s19 = scalar_lea.sflag [#allocation6], %s3935_s9  ;;  %s2930_s26 = scalar_lea.vmem %s3955_s12, 16 }
 0x208   : > { %p2931_p1 = scmp.ne.s32.totalorder %s3955_s12, %s2930_s26  ;;  %s3002_s13 = smov [#allocation5]  }
 0x209   : > { %s2934_s10 = sshll.u32 %s3002_s13, 4  ;;  %s2935_s10 = int_to_ptr.vmem [resolvable:$false] %s2934_s10 }
 0x20a   : > { %p2932_p2 = pnand %p2931_p1, %p3076_p5  ;;  %s2936_s28 = scalar_lea.vmem %s2935_s10, 32 }
 0x20b   : > { %p2937_p4 = scmp.lt.s32.totalorder %s3955_s12, %s2935_s10  ;;  %p2938_p7 = scmp.lt.s32.totalorder %s2936_s28, %s2930_s26 }
 0x20c   : > { %p2933_p3 = pneg %p2932_p2 }
 0x20d   : > { %p2939_p8 = por %p2938_p7, %p2937_p4 }
 0x20f   : > { %p2940_p9 = pnand %p2939_p8, %p2933_p3 }
 0x211   : > { %2943 = shalt.err (!%p2940_p9)
}
 0x212   : > { %s2944_s9 = scalar_lea.hbm %s3953_s17, 16  ;;  %s2948_s15 = scalar_lea.hbm %s4027_s6, 32 }
 0x213   : > { %p2945_p10 = scmp.ne.s32.totalorder %s3953_s17, %s2944_s9  ;;  %p2949_p13 = scmp.lt.u32.totalorder %s3953_s17, %s4027_s6 }
 0x214   : > { %p2950_p0 = scmp.lt.u32.totalorder %s2948_s15, %s2944_s9  ;;  %p2952_p2 = scmp.lt.u32.totalorder %s2944_s9, %s3953_s17 }
 0x215   : > { %p2946_p11 = pnand %p2945_p10, %p3076_p5 }
 0x216   : > { %p2951_p1 = por %p2950_p0, %p2949_p13 }
 0x217   : > { %p2947_p12 = pneg %p2946_p11 }
 0x218   : > { %p2953_p3 = por %p2952_p2, %p2951_p1 }
 0x21a   : > { %p2954_p4 = pnand %p2953_p3, %p2947_p12 }
 0x21c   : > { %2957 = shalt.err (!%p2954_p4)
}
 0x21d   : > { %2690 = dma.vmem_to_hbm [thread:$0]  (%p3076_p5), %s3955_s12, 16, %s3953_s17, %s2100_s19  }
 0x21e PF: > { %p2700_p7 = scmp.ge.s32.totalorder %s2996_s24, 2  ;;  %s2148_s25 = sand.u32 1, %s2984_s21  }
 0x21f   : > { %s2149_s16 = scalar_lea.sflag [#allocation4], %s2148_s25 }
 0x220   : > { %p2694_p8 = pnand %p2700_p7, %p3080_p6 }
 0x222   : > { %2975 = dma.done.wait (!%p2694_p8), %s2149_s16, 16  }
 0x223   : > { %2977 = vsyncadd (!%p2694_p8), %s2149_s16, 4294967280  ;;  %s2157_s20 = scalar_lea.sflag [#allocation6], %s2148_s25 }
 0x224   : > { %2979 = dma.done.wait (!%p2694_p8), %s2157_s20, 16  }
 0x225   : > { %2981 = vsyncadd (!%p2694_p8), %s2157_s20, 4294967280  ;;  %p20_p5 = scmp.ge.s32.totalorder %s3063_s27, 4   ;;  %s4034_s21 = smov %s2988_s22 }
 0x226   : > { %s4035_s22 = smov %s2992_s23  ;;  %s4036_s23 = smov %s3074_s30 }
 0x227   : > { %s4037_s24 = smov %s3063_s27  ;;  %22 = sbr.rel (!%p20_p5) target bundleno = 5 (0x5), region = 105 }
 0x22e   :  { %2161 = vsyncpa [#allocation4], 1 }
 0x22f   :  { %2163 = vsyncpa [#allocation4 + $0x1], 1 }
 0x230   :  { %2164 = vsyncpa [#allocation6], 1 }
 0x231   :  { %2166 = vsyncpa [#allocation6 + $0x1], 1 }

</bundles_post_ra>
